<compile_context>
chip_gen: v7x
topology: tpu7x:2x2x1
jax: 0.10.0
libtpu: 0.0.40
codegen_flags: <defaults>
</compile_context>

<pallas_src>
import math
from functools import partial

import jax
import jax.numpy as jnp
from jax import lax
from jax.experimental import pallas as pl
from jax.experimental.pallas import tpu as pltpu

F32 = jnp.float32


def _rup(x, m):
    return ((x + m - 1) // m) * m


def _choose_tile(m):
    for t in (512, 256, 128, 64, 32, 16, 8):
        if m >= t:
            return t
    return 8


# ----------------------------------------------------------------------------
# Pallas kernels
# ----------------------------------------------------------------------------
def _mm_relu_stats_kernel(x_ref, w_ref, o_ref, st_ref):
    # Fused branch 1x1x1 convs: out = relu(x @ w_cat), plus per-tile BN partial
    # sums (row 0 = sum, row 1 = sum of squares) written to a per-tile block.
    y = jnp.maximum(
        jnp.dot(x_ref[...], w_ref[...], preferred_element_type=jnp.float32), 0.0)
    o_ref[...] = y
    s = jnp.sum(y, axis=0, keepdims=True)
    q = jnp.sum(y * y, axis=0, keepdims=True)
    st_ref[...] = jnp.concatenate(
        [s, q, jnp.zeros((6, y.shape[1]), jnp.float32)], axis=0)


def _conv3_kernel(prev_ref, curr_ref, next_ref, w_ref, o_ref, st_ref, *,
                  slab, wp, w_valid):
    # One output depth-plane of a 'same' 3x3x3 conv + ReLU.
    #   prev/curr/next : (plane, Cin)  zero-padded planes d-1, d, d+1
    #   w_ref          : (3, 3, 3*Cin, Cout)   rows of the K dim ordered kw=0,1,2
    #   o_ref          : (slab, Cout)   contiguous row slab covering the interior
    #   st_ref         : (8, Cout)      per-plane BN partials (interior rows only)
    wf = w_ref[...]
    ext = slab + 2 * wp
    acc = jnp.zeros(o_ref.shape, jnp.float32)          # local accumulator (one store)
    for kd, p_ref in enumerate((prev_ref, curr_ref, next_ref)):
        p = p_ref[...]
        # kw-only im2col staging: stage[r] = [p[r], p[r+1], p[r+2]] along channels.
        stage = jnp.concatenate(
            [p[0:ext, :], p[1:1 + ext, :], p[2:2 + ext, :]], axis=1)
        for kh in range(3):
            acc = acc + jnp.dot(stage[kh * wp: kh * wp + slab, :], wf[kd, kh],
                                preferred_element_type=jnp.float32)
    acc = jnp.maximum(acc, 0.0)                          # fused ReLU
    o_ref[...] = acc

    # BN partial sums over interior columns only (ring columns are cropped later).
    col = lax.broadcasted_iota(jnp.int32, (slab, 1), 0) % wp
    masked = jnp.where(col < w_valid, acc, 0.0)
    s = jnp.sum(masked, axis=0, keepdims=True)
    q = jnp.sum(masked * masked, axis=0, keepdims=True)
    st_ref[...] = jnp.concatenate(
        [s, q, jnp.zeros((6, acc.shape[1]), jnp.float32)], axis=0)


def _comb_kernel(h1_ref, h2_ref, h3_ref, x_ref, w_ref, b_ref, o_ref):
    # out = relu(x + [h1|h2|h3] @ w_eff + b_eff)
    # (BN scale/shift and lin_act are folded into w_eff / b_eff by the wrapper.)
    hcat = jnp.concatenate([h1_ref[...], h2_ref[...], h3_ref[...]], axis=1)
    acc = jnp.dot(hcat, w_ref[...], preferred_element_type=jnp.float32)
    o_ref[...] = jnp.maximum(x_ref[...] + acc + b_ref[...], 0.0)


# ----------------------------------------------------------------------------
# Pallas wrappers
# ----------------------------------------------------------------------------
def conv1x1_relu_stats(x2, w_cat):
    """x2: (M, Cin); w_cat: (Cin, Cout).  Returns (relu(x2@w_cat), colsum, colsumsq)."""
    M, cin = x2.shape
    cout = w_cat.shape[1]
    tm = _choose_tile(M)
    mp = _rup(M, tm)
    if mp != M:
        x2 = jnp.pad(x2, ((0, mp - M), (0, 0)))          # zero rows: stats-safe
    nt = mp // tm
    y, st = pl.pallas_call(
        _mm_relu_stats_kernel,
        out_shape=(jax.ShapeDtypeStruct((mp, cout), F32),
                   jax.ShapeDtypeStruct((nt, 8, cout), F32)),
        grid=(nt,),
        in_specs=[pl.BlockSpec((tm, cin), lambda i: (i, 0)),
                  pl.BlockSpec((cin, cout), lambda i: (0, 0))],
        out_specs=(pl.BlockSpec((tm, cout), lambda i: (i, 0)),
                   pl.BlockSpec((None, 8, cout), lambda i: (i, 0, 0))),
        compiler_params=pltpu.CompilerParams(dimension_semantics=("parallel",)),
    )(x2, w_cat)
    s = jnp.sum(st[:, 0, :], axis=0)
    q = jnp.sum(st[:, 1, :], axis=0)
    return y[:M], s, q


def conv3x3x3_relu(t, w_kkh):
    """t: (N, D, H, W, Cin); w_kkh: (3, 3, 3*Cin, Cout).
    'Same' 3x3x3 conv + ReLU; also returns per-channel sum / sum-of-squares."""
    n, d, h, w, cin = t.shape
    cout = w_kkh.shape[-1]
    wp = _rup(w + 2, 8)                  # sublane-aligned padded width
    plane = (h + 2) * wp
    slab = (h - 1) * wp + w              # contiguous rows covering all interior voxels
    tp = jnp.pad(t, ((0, 0), (1, 1), (1, 1), (1, wp - w - 1), (0, 0)))
    tp = tp.reshape(n, d + 2, plane, cin)

    out, st = pl.pallas_call(
        partial(_conv3_kernel, slab=slab, wp=wp, w_valid=w),
        out_shape=(jax.ShapeDtypeStruct((n, d, slab, cout), F32),
                   jax.ShapeDtypeStruct((n, d, 8, cout), F32)),
        grid=(n, d),
        in_specs=[pl.BlockSpec((None, None, plane, cin), lambda i, j: (i, j, 0, 0)),
                  pl.BlockSpec((None, None, plane, cin), lambda i, j: (i, j + 1, 0, 0)),
                  pl.BlockSpec((None, None, plane, cin), lambda i, j: (i, j + 2, 0, 0)),
                  pl.BlockSpec((3, 3, 3 * cin, cout), lambda i, j: (0, 0, 0, 0))],
        out_specs=(pl.BlockSpec((None, None, slab, cout), lambda i, j: (i, j, 0, 0)),
                   pl.BlockSpec((None, None, 8, cout), lambda i, j: (i, j, 0, 0))),
        compiler_params=pltpu.CompilerParams(
            dimension_semantics=("parallel", "parallel")),
    )(tp, tp, tp, w_kkh)

    # crop: slab row s = h0*wp + w0  ->  keep w0 < w
    out = jnp.pad(out, ((0, 0), (0, 0), (0, h * wp - slab), (0, 0)))
    out = out.reshape(n, d, h, wp, cout)[:, :, :, :w, :]
    s = jnp.sum(st[:, :, 0, :], axis=(0, 1))
    q = jnp.sum(st[:, :, 1, :], axis=(0, 1))
    return out, s, q


def comb_residual_relu(h1, h2, h3, x2, w_eff, bias_row):
    M, cin = x2.shape
    tm = _choose_tile(M)
    mp = _rup(M, tm)
    pad = mp - M
    if pad:
        h1 = jnp.pad(h1, ((0, pad), (0, 0)))
        h2 = jnp.pad(h2, ((0, pad), (0, 0)))
        h3 = jnp.pad(h3, ((0, pad), (0, 0)))
        x2 = jnp.pad(x2, ((0, pad), (0, 0)))
    out = pl.pallas_call(
        _comb_kernel,
        out_shape=jax.ShapeDtypeStruct((mp, cin), F32),
        grid=(mp // tm,),
        in_specs=[pl.BlockSpec((tm, h1.shape[1]), lambda i: (i, 0)),
                  pl.BlockSpec((tm, h2.shape[1]), lambda i: (i, 0)),
                  pl.BlockSpec((tm, h3.shape[1]), lambda i: (i, 0)),
                  pl.BlockSpec((tm, cin), lambda i: (i, 0)),
                  pl.BlockSpec(w_eff.shape, lambda i: (0, 0)),
                  pl.BlockSpec((1, cin), lambda i: (0, 0))],
        out_specs=pl.BlockSpec((tm, cin), lambda i: (i, 0)),
        compiler_params=pltpu.CompilerParams(dimension_semantics=("parallel",)),
    )(h1, h2, h3, x2, w_eff, bias_row)
    return out[:M]


# ----------------------------------------------------------------------------
# Module A forward (Pallas path)
# ----------------------------------------------------------------------------
def module_a_forward(params, x_ncdhw, lin_act=0.1, eps=0.01):
    x = jnp.transpose(x_ncdhw.astype(F32), (0, 2, 3, 4, 1))        # NCDHW -> NDHWC
    n, d, h, w, cin = x.shape
    M = n * d * h * w
    x2 = x.reshape(M, cin)
    base = params["bn1_g"].shape[0]

    # all three branch 1x1x1 convs in one matmul (x2 read once); BN1 stats fused
    y, s_all, q_all = conv1x1_relu_stats(x2, params["w1_cat"])     # (M, 3*base)
    h1 = y[:, :base]
    t2 = y[:, base:2 * base].reshape(n, d, h, w, base)
    t3 = y[:, 2 * base:].reshape(n, d, h, w, base)
    s1, q1 = s_all[:base], q_all[:base]

    # branch 2: 3x3x3 conv + ReLU (BN2 stats fused in the conv epilogue)
    h2_vol, s2, q2 = conv3x3x3_relu(t2, params["b2_w2"])
    h2 = h2_vol.reshape(M, -1)
    # branch 3: two 3x3x3 convs + ReLU (stats only needed after the second)
    u3, _, _ = conv3x3x3_relu(t3, params["b3_w2"])
    h3_vol, s3, q3 = conv3x3x3_relu(u3, params["b3_w3"])
    h3 = h3_vol.reshape(M, -1)

    # training-mode BatchNorm (biased variance), folded into the comb weights
    # NOTE: single-pass E[x^2]-E[x]^2 in f32; fine at these magnitudes.
    def bn_fold(s, q, gamma, beta):
        mean = s / M
        var = jnp.maximum(q / M - mean * mean, 0.0)
        scale = gamma / jnp.sqrt(var + eps)
        shift = beta - mean * scale
        return scale, shift

    sc1, sh1 = bn_fold(s1, q1, params["bn1_g"], params["bn1_b"])
    sc2, sh2 = bn_fold(s2, q2, params["bn2_g"], params["bn2_b"])
    sc3, sh3 = bn_fold(s3, q3, params["bn3_g"], params["bn3_b"])
    scale_cat = jnp.concatenate([sc1, sc2, sc3])
    shift_cat = jnp.concatenate([sh1, sh2, sh3])

    wc = params["comb_w"]                                # (4*base, in_size)
    w_eff = (lin_act * scale_cat)[:, None] * wc          # fold BN scale + lin_act
    b_eff = (lin_act * (shift_cat @ wc)).reshape(1, -1)  # fold BN shift + lin_act
    out2 = comb_residual_relu(h1, h2, h3, x2, w_eff, b_eff)
    return jnp.transpose(out2.reshape(n, d, h, w, cin), (0, 4, 1, 2, 3))


# ----------------------------------------------------------------------------
# Deterministic parameters (PyTorch layout) + kernel-layout preparation
# ----------------------------------------------------------------------------
def init_torch_params(key, in_size, base):
    ks = jax.random.split(key, 7)

    def conv_w(k, cout, cin, ksz):
        fan_in = cin * math.prod(ksz)
        return jax.random.normal(k, (cout, cin) + ksz, F32) / math.sqrt(fan_in)

    return {
        "b1_w1": conv_w(ks[0], base, in_size, (1, 1, 1)),
        "b2_w1": conv_w(ks[1], base, in_size, (1, 1, 1)),
        "b2_w2": conv_w(ks[2], base, base, (3, 3, 3)),
        "b3_w1": conv_w(ks[3], base, in_size, (1, 1, 1)),
        "b3_w2": conv_w(ks[4], 3 * base // 2, base, (3, 3, 3)),
        "b3_w3": conv_w(ks[5], 2 * base, 3 * base // 2, (3, 3, 3)),
        "comb_w": conv_w(ks[6], in_size, 4 * base, (1, 1, 1)),
        "bn1_g": jnp.ones((base,), F32), "bn1_b": jnp.zeros((base,), F32),
        "bn2_g": jnp.ones((base,), F32), "bn2_b": jnp.zeros((base,), F32),
        "bn3_g": jnp.ones((2 * base,), F32), "bn3_b": jnp.zeros((2 * base,), F32),
    }


def prep_params(pt):
    """Convert PyTorch conv layouts to matmul-friendly layouts once, at init."""
    def c1(wt):   # (O, I, 1, 1, 1) -> (I, O)
        return jnp.transpose(wt.reshape(wt.shape[0], wt.shape[1]), (1, 0))

    def c3(wt):   # (O, I, 3, 3, 3) -> (3 kd, 3 kh, 3*I [kw-major], O)
        o, i = wt.shape[0], wt.shape[1]
        return jnp.transpose(wt, (2, 3, 4, 1, 0)).reshape(3, 3, 3 * i, o)

    p = {}
    p["w1_cat"] = jnp.concatenate(
        [c1(pt["b1_w1"]), c1(pt["b2_w1"]), c1(pt["b3_w1"])], axis=1)
    p["b2_w2"] = c3(pt["b2_w2"])
    p["b3_w2"] = c3(pt["b3_w2"])
    p["b3_w3"] = c3(pt["b3_w3"])
    p["comb_w"] = c1(pt["comb_w"])                       # (4*base, in_size)
    for k in ("bn1_g", "bn1_b", "bn2_g", "bn2_b", "bn3_g", "bn3_b"):
        p[k] = pt[k]
    return p


# ----------------------------------------------------------------------------
# Pure-JAX reference (mirrors the torch module exactly) for a self-check
# ----------------------------------------------------------------------------
def ref_forward(pt, x_ncdhw, lin_act=0.1, eps=0.01):
    x = x_ncdhw.astype(F32)

    def conv(v, wt):
        pad = [(k // 2, k // 2) for k in wt.shape[2:]]
        return lax.conv_general_dilated(
            v, wt, (1, 1, 1), pad,
            dimension_numbers=("NCDHW", "OIDHW", "NCDHW"),
            precision=lax.Precision.HIGHEST)

    def bn(v, g, b):
        mean = jnp.mean(v, axis=(0, 2, 3, 4), keepdims=True)
        var = jnp.mean((v - mean) ** 2, axis=(0, 2, 3, 4), keepdims=True)
        return (v - mean) / jnp.sqrt(var + eps) * g.reshape(1, -1, 1, 1, 1) \
               + b.reshape(1, -1, 1, 1, 1)

    r = jax.nn.relu
    b1 = bn(r(conv(x, pt["b1_w1"])), pt["bn1_g"], pt["bn1_b"])
    b2 = bn(r(conv(r(conv(x, pt["b2_w1"])), pt["b2_w2"])), pt["bn2_g"], pt["bn2_b"])
    t = r(conv(x, pt["b3_w1"]))
    t = r(conv(t, pt["b3_w2"]))
    b3 = bn(r(conv(t, pt["b3_w3"])), pt["bn3_g"], pt["bn3_b"])
    cat = jnp.concatenate([b1, b2, b3], axis=1)
    return r(x + lin_act * conv(cat, pt["comb_w"]))


if __name__ == "__main__":
    in_size, base = 4, 8
    N, D, H, W = 2, 8, 8, 8

    key = jax.random.PRNGKey(0)
    k_param, k_x = jax.random.split(key)
    pt_params = init_torch_params(k_param, in_size, base)
    params = prep_params(pt_params)
    x = jax.random.normal(k_x, (N, in_size, D, H, W), F32)

    out = jax.block_until_ready(jax.jit(module_a_forward)(params, x))
    assert out.shape == (N, in_size, D, H, W), out.shape
    assert bool(jnp.all(jnp.isfinite(out)))

    ref = jax.block_until_ready(jax.jit(ref_forward)(pt_params, x))
    assert jnp.allclose(out, ref, atol=5e-2, rtol=5e-2), \
        float(jnp.max(jnp.abs(out - ref)))

    print("KERNEL_OK")
</pallas_src>

<mosaic_0001>
module attributes {stable_mosaic.version = 11 : i64} {
  func.func @_mm_relu_stats_kernel(%arg0: i32, %arg1: memref<512x4xf32, #tpu.memory_space<vmem>>, %arg2: memref<4x24xf32, #tpu.memory_space<vmem>>, %arg3: memref<512x24xf32, #tpu.memory_space<vmem>>, %arg4: memref<1x8x24xf32, #tpu.memory_space<vmem>>) attributes {dimension_semantics = [#tpu.dimension_semantics<parallel>], iteration_bounds = array<i64: 2>, scalar_prefetch = 0 : i64, scratch_operands = 0 : i64, tpu.core_type = #tpu.core_type<tc>, window_params = [{transform_indices = @transform_0, window_bounds = array<i64: 512, 4>}, {pipeline_mode = #tpu.pipeline_mode<synchronous>, transform_indices = @transform_1, window_bounds = array<i64: 4, 24>}, {transform_indices = @transform_2, window_bounds = array<i64: 512, 24>}, {transform_indices = @transform_3, window_bounds = array<i64: 1, 8, 24>}]} {
    %c0 = arith.constant 0 : index
    %c0_0 = arith.constant 0 : index
    %0 = vector.load %arg1[%c0, %c0_0] : memref<512x4xf32, #tpu.memory_space<vmem>>, vector<512x4xf32>
    %c0_1 = arith.constant 0 : index
    %c0_2 = arith.constant 0 : index
    %1 = vector.load %arg2[%c0_1, %c0_2] : memref<4x24xf32, #tpu.memory_space<vmem>>, vector<4x24xf32>
    %cst = arith.constant dense<0.000000e+00> : vector<512x24xf32>
    %2 = tpu.matmul %0, %1, %cst {dimension_numbers = #tpu.dot_dimension_numbers<[1], [0], [0], [1], [0, 0, 1, 1], [], []>} : vector<512x4xf32>, vector<4x24xf32>, vector<512x24xf32> -> vector<512x24xf32>
    %cst_3 = arith.constant 0.000000e+00 : f32
    %3 = vector.broadcast %cst_3 : f32 to vector<512x24xf32>
    %4 = arith.maximumf %2, %3 : vector<512x24xf32>
    %c0_4 = arith.constant 0 : index
    %c0_5 = arith.constant 0 : index
    %5 = vector.load %arg3[%c0_4, %c0_5] : memref<512x24xf32, #tpu.memory_space<vmem>>, vector<512x24xf32>
    tpu.vector_store %arg3[%c0_4, %c0_5], %4 {strides = array<i32>} : memref<512x24xf32, #tpu.memory_space<vmem>>, vector<512x24xf32>,
    %cst_6 = arith.constant dense<0.000000e+00> : vector<24xf32>
    %6 = vector.multi_reduction <add>, %4, %cst_6 [0] : vector<512x24xf32> to vector<24xf32>
    %7 = vector.shape_cast %6 : vector<24xf32> to vector<1x24xf32>
    %8 = arith.mulf %4, %4 : vector<512x24xf32>
    %cst_7 = arith.constant dense<0.000000e+00> : vector<24xf32>
    %9 = vector.multi_reduction <add>, %8, %cst_7 [0] : vector<512x24xf32> to vector<24xf32>
    %10 = vector.shape_cast %9 : vector<24xf32> to vector<1x24xf32>
    %cst_8 = arith.constant 0.000000e+00 : f32
    %11 = vector.broadcast %cst_8 : f32 to vector<6x24xf32>
    %12 = tpu.concatenate %7, %10, %11 in 0 : vector<1x24xf32>, vector<1x24xf32>, vector<6x24xf32> -> vector<8x24xf32>
    %c0_9 = arith.constant 0 : index
    %c0_10 = arith.constant 0 : index
    %c0_11 = arith.constant 0 : index
    %13 = vector.load %arg4[%c0_9, %c0_10, %c0_11] : memref<1x8x24xf32, #tpu.memory_space<vmem>>, vector<1x8x24xf32>
    %14 = vector.shape_cast %13 : vector<1x8x24xf32> to vector<8x24xf32>
    %15 = vector.shape_cast %12 : vector<8x24xf32> to vector<1x8x24xf32>
    tpu.vector_store %arg4[%c0_9, %c0_10, %c0_11], %15 {strides = array<i32>} : memref<1x8x24xf32, #tpu.memory_space<vmem>>, vector<1x8x24xf32>,
    return
  }
  func.func @transform_0(%arg0: i32) -> (i32, i32) {
    %c0_i32 = arith.constant 0 : i32
    %c0_i32_0 = arith.constant 0 : i32
    return %arg0, %c0_i32 : i32, i32
  }
  func.func @transform_1(%arg0: i32) -> (i32, i32) {
    %c0_i32 = arith.constant 0 : i32
    %c0_i32_0 = arith.constant 0 : i32
    %c0_i32_1 = arith.constant 0 : i32
    return %c0_i32, %c0_i32_0 : i32, i32
  }
  func.func @transform_2(%arg0: i32) -> (i32, i32) {
    %c0_i32 = arith.constant 0 : i32
    %c0_i32_0 = arith.constant 0 : i32
    return %arg0, %c0_i32 : i32, i32
  }
  func.func @transform_3(%arg0: i32) -> (i32, i32, i32) {
    %c0_i32 = arith.constant 0 : i32
    %c0_i32_0 = arith.constant 0 : i32
    %c0_i32_1 = arith.constant 0 : i32
    return %arg0, %c0_i32, %c0_i32_0 : i32, i32, i32
  }
}

module attributes {stable_mosaic.version = 11 : i64} {
  func.func @_conv3_kernel(%arg0: i32, %arg1: i32, %arg2: memref<1x1x160x8xf32, #tpu.memory_space<vmem>>, %arg3: memref<1x1x160x8xf32, #tpu.memory_space<vmem>>, %arg4: memref<1x1x160x8xf32, #tpu.memory_space<vmem>>, %arg5: memref<3x3x24x8xf32, #tpu.memory_space<vmem>>, %arg6: memref<1x1x120x8xf32, #tpu.memory_space<vmem>>, %arg7: memref<1x1x8x8xf32, #tpu.memory_space<vmem>>) attributes {dimension_semantics = [#tpu.dimension_semantics<parallel>, #tpu.dimension_semantics<parallel>], iteration_bounds = array<i64: 2, 8>, scalar_prefetch = 0 : i64, scratch_operands = 0 : i64, tpu.core_type = #tpu.core_type<tc>, window_params = [{transform_indices = @transform_0, window_bounds = array<i64: 1, 1, 160, 8>}, {transform_indices = @transform_1, window_bounds = array<i64: 1, 1, 160, 8>}, {transform_indices = @transform_2, window_bounds = array<i64: 1, 1, 160, 8>}, {pipeline_mode = #tpu.pipeline_mode<synchronous>, transform_indices = @transform_3, window_bounds = array<i64: 3, 3, 24, 8>}, {transform_indices = @transform_4, window_bounds = array<i64: 1, 1, 120, 8>}, {transform_indices = @transform_5, window_bounds = array<i64: 1, 1, 8, 8>}]} {
    %c0 = arith.constant 0 : index
    %c0_0 = arith.constant 0 : index
    %c0_1 = arith.constant 0 : index
    %c0_2 = arith.constant 0 : index
    %0 = vector.load %arg5[%c0, %c0_0, %c0_1, %c0_2] : memref<3x3x24x8xf32, #tpu.memory_space<vmem>>, vector<3x3x24x8xf32>
    %cst = arith.constant 0.000000e+00 : f32
    %1 = vector.broadcast %cst : f32 to vector<120x8xf32>
    %c0_3 = arith.constant 0 : index
    %c0_4 = arith.constant 0 : index
    %c0_5 = arith.constant 0 : index
    %c0_6 = arith.constant 0 : index
    %2 = vector.load %arg2[%c0_3, %c0_4, %c0_5, %c0_6] : memref<1x1x160x8xf32, #tpu.memory_space<vmem>>, vector<1x1x160x8xf32>
    %3 = vector.shape_cast %2 : vector<1x1x160x8xf32> to vector<160x8xf32>
    %4 = vector.extract_strided_slice %3 {offsets = [0, 0], sizes = [152, 8], strides = [1, 1]} : vector<160x8xf32> to vector<152x8xf32>
    %5 = vector.extract_strided_slice %3 {offsets = [1, 0], sizes = [152, 8], strides = [1, 1]} : vector<160x8xf32> to vector<152x8xf32>
    %6 = vector.extract_strided_slice %3 {offsets = [2, 0], sizes = [152, 8], strides = [1, 1]} : vector<160x8xf32> to vector<152x8xf32>
    %7 = tpu.concatenate %4, %5, %6 in 1 : vector<152x8xf32>, vector<152x8xf32>, vector<152x8xf32> -> vector<152x24xf32>
    %8 = vector.extract_strided_slice %7 {offsets = [0, 0], sizes = [120, 24], strides = [1, 1]} : vector<152x24xf32> to vector<120x24xf32>
    %9 = vector.extract_strided_slice %0 {offsets = [0, 0, 0, 0], sizes = [1, 1, 24, 8], strides = [1, 1, 1, 1]} : vector<3x3x24x8xf32> to vector<1x1x24x8xf32>
    %10 = vector.shape_cast %9 : vector<1x1x24x8xf32> to vector<24x8xf32>
    %cst_7 = arith.constant dense<0.000000e+00> : vector<120x8xf32>
    %11 = tpu.matmul %8, %10, %cst_7 {dimension_numbers = #tpu.dot_dimension_numbers<[1], [0], [0], [1], [0, 0, 1, 1], [], []>} : vector<120x24xf32>, vector<24x8xf32>, vector<120x8xf32> -> vector<120x8xf32>
    %12 = arith.addf %1, %11 : vector<120x8xf32>
    %13 = vector.extract_strided_slice %7 {offsets = [16, 0], sizes = [120, 24], strides = [1, 1]} : vector<152x24xf32> to vector<120x24xf32>
    %14 = vector.extract_strided_slice %0 {offsets = [0, 1, 0, 0], sizes = [1, 1, 24, 8], strides = [1, 1, 1, 1]} : vector<3x3x24x8xf32> to vector<1x1x24x8xf32>
    %15 = vector.shape_cast %14 : vector<1x1x24x8xf32> to vector<24x8xf32>
    %cst_8 = arith.constant dense<0.000000e+00> : vector<120x8xf32>
    %16 = tpu.matmul %13, %15, %cst_8 {dimension_numbers = #tpu.dot_dimension_numbers<[1], [0], [0], [1], [0, 0, 1, 1], [], []>} : vector<120x24xf32>, vector<24x8xf32>, vector<120x8xf32> -> vector<120x8xf32>
    %17 = arith.addf %12, %16 : vector<120x8xf32>
    %18 = vector.extract_strided_slice %7 {offsets = [32, 0], sizes = [120, 24], strides = [1, 1]} : vector<152x24xf32> to vector<120x24xf32>
    %19 = vector.extract_strided_slice %0 {offsets = [0, 2, 0, 0], sizes = [1, 1, 24, 8], strides = [1, 1, 1, 1]} : vector<3x3x24x8xf32> to vector<1x1x24x8xf32>
    %20 = vector.shape_cast %19 : vector<1x1x24x8xf32> to vector<24x8xf32>
    %cst_9 = arith.constant dense<0.000000e+00> : vector<120x8xf32>
    %21 = tpu.matmul %18, %20, %cst_9 {dimension_numbers = #tpu.dot_dimension_numbers<[1], [0], [0], [1], [0, 0, 1, 1], [], []>} : vector<120x24xf32>, vector<24x8xf32>, vector<120x8xf32> -> vector<120x8xf32>
    %22 = arith.addf %17, %21 : vector<120x8xf32>
    %c0_10 = arith.constant 0 : index
    %c0_11 = arith.constant 0 : index
    %c0_12 = arith.constant 0 : index
    %c0_13 = arith.constant 0 : index
    %23 = vector.load %arg3[%c0_10, %c0_11, %c0_12, %c0_13] : memref<1x1x160x8xf32, #tpu.memory_space<vmem>>, vector<1x1x160x8xf32>
    %24 = vector.shape_cast %23 : vector<1x1x160x8xf32> to vector<160x8xf32>
    %25 = vector.extract_strided_slice %24 {offsets = [0, 0], sizes = [152, 8], strides = [1, 1]} : vector<160x8xf32> to vector<152x8xf32>
    %26 = vector.extract_strided_slice %24 {offsets = [1, 0], sizes = [152, 8], strides = [1, 1]} : vector<160x8xf32> to vector<152x8xf32>
    %27 = vector.extract_strided_slice %24 {offsets = [2, 0], sizes = [152, 8], strides = [1, 1]} : vector<160x8xf32> to vector<152x8xf32>
    %28 = tpu.concatenate %25, %26, %27 in 1 : vector<152x8xf32>, vector<152x8xf32>, vector<152x8xf32> -> vector<152x24xf32>
    %29 = vector.extract_strided_slice %28 {offsets = [0, 0], sizes = [120, 24], strides = [1, 1]} : vector<152x24xf32> to vector<120x24xf32>
    %30 = vector.extract_strided_slice %0 {offsets = [1, 0, 0, 0], sizes = [1, 1, 24, 8], strides = [1, 1, 1, 1]} : vector<3x3x24x8xf32> to vector<1x1x24x8xf32>
    %31 = vector.shape_cast %30 : vector<1x1x24x8xf32> to vector<24x8xf32>
    %cst_14 = arith.constant dense<0.000000e+00> : vector<120x8xf32>
    %32 = tpu.matmul %29, %31, %cst_14 {dimension_numbers = #tpu.dot_dimension_numbers<[1], [0], [0], [1], [0, 0, 1, 1], [], []>} : vector<120x24xf32>, vector<24x8xf32>, vector<120x8xf32> -> vector<120x8xf32>
    %33 = arith.addf %22, %32 : vector<120x8xf32>
    %34 = vector.extract_strided_slice %28 {offsets = [16, 0], sizes = [120, 24], strides = [1, 1]} : vector<152x24xf32> to vector<120x24xf32>
    %35 = vector.extract_strided_slice %0 {offsets = [1, 1, 0, 0], sizes = [1, 1, 24, 8], strides = [1, 1, 1, 1]} : vector<3x3x24x8xf32> to vector<1x1x24x8xf32>
    %36 = vector.shape_cast %35 : vector<1x1x24x8xf32> to vector<24x8xf32>
    %cst_15 = arith.constant dense<0.000000e+00> : vector<120x8xf32>
    %37 = tpu.matmul %34, %36, %cst_15 {dimension_numbers = #tpu.dot_dimension_numbers<[1], [0], [0], [1], [0, 0, 1, 1], [], []>} : vector<120x24xf32>, vector<24x8xf32>, vector<120x8xf32> -> vector<120x8xf32>
    %38 = arith.addf %33, %37 : vector<120x8xf32>
    %39 = vector.extract_strided_slice %28 {offsets = [32, 0], sizes = [120, 24], strides = [1, 1]} : vector<152x24xf32> to vector<120x24xf32>
    %40 = vector.extract_strided_slice %0 {offsets = [1, 2, 0, 0], sizes = [1, 1, 24, 8], strides = [1, 1, 1, 1]} : vector<3x3x24x8xf32> to vector<1x1x24x8xf32>
    %41 = vector.shape_cast %40 : vector<1x1x24x8xf32> to vector<24x8xf32>
    %cst_16 = arith.constant dense<0.000000e+00> : vector<120x8xf32>
    %42 = tpu.matmul %39, %41, %cst_16 {dimension_numbers = #tpu.dot_dimension_numbers<[1], [0], [0], [1], [0, 0, 1, 1], [], []>} : vector<120x24xf32>, vector<24x8xf32>, vector<120x8xf32> -> vector<120x8xf32>
    %43 = arith.addf %38, %42 : vector<120x8xf32>
    %c0_17 = arith.constant 0 : index
    %c0_18 = arith.constant 0 : index
    %c0_19 = arith.constant 0 : index
    %c0_20 = arith.constant 0 : index
    %44 = vector.load %arg4[%c0_17, %c0_18, %c0_19, %c0_20] : memref<1x1x160x8xf32, #tpu.memory_space<vmem>>, vector<1x1x160x8xf32>
    %45 = vector.shape_cast %44 : vector<1x1x160x8xf32> to vector<160x8xf32>
    %46 = vector.extract_strided_slice %45 {offsets = [0, 0], sizes = [152, 8], strides = [1, 1]} : vector<160x8xf32> to vector<152x8xf32>
    %47 = vector.extract_strided_slice %45 {offsets = [1, 0], sizes = [152, 8], strides = [1, 1]} : vector<160x8xf32> to vector<152x8xf32>
    %48 = vector.extract_strided_slice %45 {offsets = [2, 0], sizes = [152, 8], strides = [1, 1]} : vector<160x8xf32> to vector<152x8xf32>
    %49 = tpu.concatenate %46, %47, %48 in 1 : vector<152x8xf32>, vector<152x8xf32>, vector<152x8xf32> -> vector<152x24xf32>
    %50 = vector.extract_strided_slice %49 {offsets = [0, 0], sizes = [120, 24], strides = [1, 1]} : vector<152x24xf32> to vector<120x24xf32>
    %51 = vector.extract_strided_slice %0 {offsets = [2, 0, 0, 0], sizes = [1, 1, 24, 8], strides = [1, 1, 1, 1]} : vector<3x3x24x8xf32> to vector<1x1x24x8xf32>
    %52 = vector.shape_cast %51 : vector<1x1x24x8xf32> to vector<24x8xf32>
    %cst_21 = arith.constant dense<0.000000e+00> : vector<120x8xf32>
    %53 = tpu.matmul %50, %52, %cst_21 {dimension_numbers = #tpu.dot_dimension_numbers<[1], [0], [0], [1], [0, 0, 1, 1], [], []>} : vector<120x24xf32>, vector<24x8xf32>, vector<120x8xf32> -> vector<120x8xf32>
    %54 = arith.addf %43, %53 : vector<120x8xf32>
    %55 = vector.extract_strided_slice %49 {offsets = [16, 0], sizes = [120, 24], strides = [1, 1]} : vector<152x24xf32> to vector<120x24xf32>
    %56 = vector.extract_strided_slice %0 {offsets = [2, 1, 0, 0], sizes = [1, 1, 24, 8], strides = [1, 1, 1, 1]} : vector<3x3x24x8xf32> to vector<1x1x24x8xf32>
    %57 = vector.shape_cast %56 : vector<1x1x24x8xf32> to vector<24x8xf32>
    %cst_22 = arith.constant dense<0.000000e+00> : vector<120x8xf32>
    %58 = tpu.matmul %55, %57, %cst_22 {dimension_numbers = #tpu.dot_dimension_numbers<[1], [0], [0], [1], [0, 0, 1, 1], [], []>} : vector<120x24xf32>, vector<24x8xf32>, vector<120x8xf32> -> vector<120x8xf32>
    %59 = arith.addf %54, %58 : vector<120x8xf32>
    %60 = vector.extract_strided_slice %49 {offsets = [32, 0], sizes = [120, 24], strides = [1, 1]} : vector<152x24xf32> to vector<120x24xf32>
    %61 = vector.extract_strided_slice %0 {offsets = [2, 2, 0, 0], sizes = [1, 1, 24, 8], strides = [1, 1, 1, 1]} : vector<3x3x24x8xf32> to vector<1x1x24x8xf32>
    %62 = vector.shape_cast %61 : vector<1x1x24x8xf32> to vector<24x8xf32>
    %cst_23 = arith.constant dense<0.000000e+00> : vector<120x8xf32>
    %63 = tpu.matmul %60, %62, %cst_23 {dimension_numbers = #tpu.dot_dimension_numbers<[1], [0], [0], [1], [0, 0, 1, 1], [], []>} : vector<120x24xf32>, vector<24x8xf32>, vector<120x8xf32> -> vector<120x8xf32>
    %64 = arith.addf %59, %63 : vector<120x8xf32>
    %cst_24 = arith.constant 0.000000e+00 : f32
    %65 = vector.broadcast %cst_24 : f32 to vector<120x8xf32>
    %66 = arith.maximumf %64, %65 : vector<120x8xf32>
    %c0_25 = arith.constant 0 : index
    %c0_26 = arith.constant 0 : index
    %c0_27 = arith.constant 0 : index
    %c0_28 = arith.constant 0 : index
    %67 = vector.load %arg6[%c0_25, %c0_26, %c0_27, %c0_28] : memref<1x1x120x8xf32, #tpu.memory_space<vmem>>, vector<1x1x120x8xf32>
    %68 = vector.shape_cast %67 : vector<1x1x120x8xf32> to vector<120x8xf32>
    %69 = vector.shape_cast %66 : vector<120x8xf32> to vector<1x1x120x8xf32>
    tpu.vector_store %arg6[%c0_25, %c0_26, %c0_27, %c0_28], %69 {strides = array<i32>} : memref<1x1x120x8xf32, #tpu.memory_space<vmem>>, vector<1x1x120x8xf32>,
    %70 = tpu.iota {dimensions = array<i32: 0>} : vector<120x1xi32>
    %c16_i32 = arith.constant 16 : i32
    %c0_i32 = arith.constant 0 : i32
    %71 = arith.cmpi eq, %c16_i32, %c0_i32 : i32
    %c1_i32 = arith.constant 1 : i32
    %72 = arith.select %71, %c1_i32, %c16_i32 : i32
    %73 = vector.broadcast %72 : i32 to vector<120x1xi32>
    %74 = arith.remsi %70, %73 : vector<120x1xi32>
    %c0_i32_29 = arith.constant 0 : i32
    %75 = vector.broadcast %c0_i32_29 : i32 to vector<120x1xi32>
    %76 = arith.cmpi ne, %74, %75 : vector<120x1xi32>
    %c0_i32_30 = arith.constant 0 : i32
    %77 = vector.broadcast %c0_i32_30 : i32 to vector<120x1xi32>
    %78 = arith.cmpi slt, %74, %77 : vector<120x1xi32>
    %c0_i32_31 = arith.constant 0 : i32
    %79 = arith.cmpi slt, %72, %c0_i32_31 : i32
    %80 = vector.broadcast %79 : i1 to vector<120x1xi1>
    %81 = vector.broadcast %80 : vector<120x1xi1> to vector<120x1xi1>
    %82 = arith.xori %78, %81 : vector<120x1xi1>
    %83 = arith.andi %82, %76 : vector<120x1xi1>
    %84 = vector.broadcast %72 : i32 to vector<120x1xi32>
    %85 = arith.addi %74, %84 : vector<120x1xi32>
    %86 = arith.select %83, %85, %74 : vector<120x1xi1>, vector<120x1xi32>
    %c8_i32 = arith.constant 8 : i32
    %87 = vector.broadcast %c8_i32 : i32 to vector<120x1xi32>
    %88 = arith.cmpi slt, %86, %87 : vector<120x1xi32>
    %cst_32 = arith.constant 0.000000e+00 : f32
    %89 = vector.shape_cast %88 : vector<120x1xi1> to vector<120x1xi1>
    %90 = vector.broadcast %89 : vector<120x1xi1> to vector<120x8xi1>
    %91 = vector.broadcast %cst_32 : f32 to vector<120x8xf32>
    %92 = arith.select %90, %66, %91 : vector<120x8xi1>, vector<120x8xf32>
    %cst_33 = arith.constant dense<0.000000e+00> : vector<8xf32>
    %93 = vector.multi_reduction <add>, %92, %cst_33 [0] : vector<120x8xf32> to vector<8xf32>
    %94 = vector.shape_cast %93 : vector<8xf32> to vector<1x8xf32>
    %95 = arith.mulf %92, %92 : vector<120x8xf32>
    %cst_34 = arith.constant dense<0.000000e+00> : vector<8xf32>
    %96 = vector.multi_reduction <add>, %95, %cst_34 [0] : vector<120x8xf32> to vector<8xf32>
    %97 = vector.shape_cast %96 : vector<8xf32> to vector<1x8xf32>
    %cst_35 = arith.constant 0.000000e+00 : f32
    %98 = vector.broadcast %cst_35 : f32 to vector<6x8xf32>
    %99 = tpu.concatenate %94, %97, %98 in 0 : vector<1x8xf32>, vector<1x8xf32>, vector<6x8xf32> -> vector<8x8xf32>
    %c0_36 = arith.constant 0 : index
    %c0_37 = arith.constant 0 : index
    %c0_38 = arith.constant 0 : index
    %c0_39 = arith.constant 0 : index
    %100 = vector.load %arg7[%c0_36, %c0_37, %c0_38, %c0_39] : memref<1x1x8x8xf32, #tpu.memory_space<vmem>>, vector<1x1x8x8xf32>
    %101 = vector.shape_cast %100 : vector<1x1x8x8xf32> to vector<8x8xf32>
    %102 = vector.shape_cast %99 : vector<8x8xf32> to vector<1x1x8x8xf32>
    tpu.vector_store %arg7[%c0_36, %c0_37, %c0_38, %c0_39], %102 {strides = array<i32>} : memref<1x1x8x8xf32, #tpu.memory_space<vmem>>, vector<1x1x8x8xf32>,
    return
  }
  func.func @transform_0(%arg0: i32, %arg1: i32) -> (i32, i32, i32, i32) {
    %c0_i32 = arith.constant 0 : i32
    %c0_i32_0 = arith.constant 0 : i32
    %c0_i32_1 = arith.constant 0 : i32
    return %arg0, %arg1, %c0_i32, %c0_i32_0 : i32, i32, i32, i32
  }
  func.func @transform_1(%arg0: i32, %arg1: i32) -> (i32, i32, i32, i32) {
    %c1_i32 = arith.constant 1 : i32
    %0 = arith.addi %arg1, %c1_i32 : i32
    %c0_i32 = arith.constant 0 : i32
    %c0_i32_0 = arith.constant 0 : i32
    %c0_i32_1 = arith.constant 0 : i32
    return %arg0, %0, %c0_i32, %c0_i32_0 : i32, i32, i32, i32
  }
  func.func @transform_2(%arg0: i32, %arg1: i32) -> (i32, i32, i32, i32) {
    %c2_i32 = arith.constant 2 : i32
    %0 = arith.addi %arg1, %c2_i32 : i32
    %c0_i32 = arith.constant 0 : i32
    %c0_i32_0 = arith.constant 0 : i32
    %c0_i32_1 = arith.constant 0 : i32
    return %arg0, %0, %c0_i32, %c0_i32_0 : i32, i32, i32, i32
  }
  func.func @transform_3(%arg0: i32, %arg1: i32) -> (i32, i32, i32, i32) {
    %c0_i32 = arith.constant 0 : i32
    %c0_i32_0 = arith.constant 0 : i32
    %c0_i32_1 = arith.constant 0 : i32
    %c0_i32_2 = arith.constant 0 : i32
    %c0_i32_3 = arith.constant 0 : i32
    return %c0_i32, %c0_i32_0, %c0_i32_1, %c0_i32_2 : i32, i32, i32, i32
  }
  func.func @transform_4(%arg0: i32, %arg1: i32) -> (i32, i32, i32, i32) {
    %c0_i32 = arith.constant 0 : i32
    %c0_i32_0 = arith.constant 0 : i32
    %c0_i32_1 = arith.constant 0 : i32
    return %arg0, %arg1, %c0_i32, %c0_i32_0 : i32, i32, i32, i32
  }
  func.func @transform_5(%arg0: i32, %arg1: i32) -> (i32, i32, i32, i32) {
    %c0_i32 = arith.constant 0 : i32
    %c0_i32_0 = arith.constant 0 : i32
    %c0_i32_1 = arith.constant 0 : i32
    return %arg0, %arg1, %c0_i32, %c0_i32_0 : i32, i32, i32, i32
  }
}

module attributes {stable_mosaic.version = 11 : i64} {
  func.func @_conv3_kernel(%arg0: i32, %arg1: i32, %arg2: memref<1x1x160x8xf32, #tpu.memory_space<vmem>>, %arg3: memref<1x1x160x8xf32, #tpu.memory_space<vmem>>, %arg4: memref<1x1x160x8xf32, #tpu.memory_space<vmem>>, %arg5: memref<3x3x24x12xf32, #tpu.memory_space<vmem>>, %arg6: memref<1x1x120x12xf32, #tpu.memory_space<vmem>>, %arg7: memref<1x1x8x12xf32, #tpu.memory_space<vmem>>) attributes {dimension_semantics = [#tpu.dimension_semantics<parallel>, #tpu.dimension_semantics<parallel>], iteration_bounds = array<i64: 2, 8>, scalar_prefetch = 0 : i64, scratch_operands = 0 : i64, tpu.core_type = #tpu.core_type<tc>, window_params = [{transform_indices = @transform_0, window_bounds = array<i64: 1, 1, 160, 8>}, {transform_indices = @transform_1, window_bounds = array<i64: 1, 1, 160, 8>}, {transform_indices = @transform_2, window_bounds = array<i64: 1, 1, 160, 8>}, {pipeline_mode = #tpu.pipeline_mode<synchronous>, transform_indices = @transform_3, window_bounds = array<i64: 3, 3, 24, 12>}, {transform_indices = @transform_4, window_bounds = array<i64: 1, 1, 120, 12>}, {transform_indices = @transform_5, window_bounds = array<i64: 1, 1, 8, 12>}]} {
    %c0 = arith.constant 0 : index
    %c0_0 = arith.constant 0 : index
    %c0_1 = arith.constant 0 : index
    %c0_2 = arith.constant 0 : index
    %0 = vector.load %arg5[%c0, %c0_0, %c0_1, %c0_2] : memref<3x3x24x12xf32, #tpu.memory_space<vmem>>, vector<3x3x24x12xf32>
    %cst = arith.constant 0.000000e+00 : f32
    %1 = vector.broadcast %cst : f32 to vector<120x12xf32>
    %c0_3 = arith.constant 0 : index
    %c0_4 = arith.constant 0 : index
    %c0_5 = arith.constant 0 : index
    %c0_6 = arith.constant 0 : index
    %2 = vector.load %arg2[%c0_3, %c0_4, %c0_5, %c0_6] : memref<1x1x160x8xf32, #tpu.memory_space<vmem>>, vector<1x1x160x8xf32>
    %3 = vector.shape_cast %2 : vector<1x1x160x8xf32> to vector<160x8xf32>
    %4 = vector.extract_strided_slice %3 {offsets = [0, 0], sizes = [152, 8], strides = [1, 1]} : vector<160x8xf32> to vector<152x8xf32>
    %5 = vector.extract_strided_slice %3 {offsets = [1, 0], sizes = [152, 8], strides = [1, 1]} : vector<160x8xf32> to vector<152x8xf32>
    %6 = vector.extract_strided_slice %3 {offsets = [2, 0], sizes = [152, 8], strides = [1, 1]} : vector<160x8xf32> to vector<152x8xf32>
    %7 = tpu.concatenate %4, %5, %6 in 1 : vector<152x8xf32>, vector<152x8xf32>, vector<152x8xf32> -> vector<152x24xf32>
    %8 = vector.extract_strided_slice %7 {offsets = [0, 0], sizes = [120, 24], strides = [1, 1]} : vector<152x24xf32> to vector<120x24xf32>
    %9 = vector.extract_strided_slice %0 {offsets = [0, 0, 0, 0], sizes = [1, 1, 24, 12], strides = [1, 1, 1, 1]} : vector<3x3x24x12xf32> to vector<1x1x24x12xf32>
    %10 = vector.shape_cast %9 : vector<1x1x24x12xf32> to vector<24x12xf32>
    %cst_7 = arith.constant dense<0.000000e+00> : vector<120x12xf32>
    %11 = tpu.matmul %8, %10, %cst_7 {dimension_numbers = #tpu.dot_dimension_numbers<[1], [0], [0], [1], [0, 0, 1, 1], [], []>} : vector<120x24xf32>, vector<24x12xf32>, vector<120x12xf32> -> vector<120x12xf32>
    %12 = arith.addf %1, %11 : vector<120x12xf32>
    %13 = vector.extract_strided_slice %7 {offsets = [16, 0], sizes = [120, 24], strides = [1, 1]} : vector<152x24xf32> to vector<120x24xf32>
    %14 = vector.extract_strided_slice %0 {offsets = [0, 1, 0, 0], sizes = [1, 1, 24, 12], strides = [1, 1, 1, 1]} : vector<3x3x24x12xf32> to vector<1x1x24x12xf32>
    %15 = vector.shape_cast %14 : vector<1x1x24x12xf32> to vector<24x12xf32>
    %cst_8 = arith.constant dense<0.000000e+00> : vector<120x12xf32>
    %16 = tpu.matmul %13, %15, %cst_8 {dimension_numbers = #tpu.dot_dimension_numbers<[1], [0], [0], [1], [0, 0, 1, 1], [], []>} : vector<120x24xf32>, vector<24x12xf32>, vector<120x12xf32> -> vector<120x12xf32>
    %17 = arith.addf %12, %16 : vector<120x12xf32>
    %18 = vector.extract_strided_slice %7 {offsets = [32, 0], sizes = [120, 24], strides = [1, 1]} : vector<152x24xf32> to vector<120x24xf32>
    %19 = vector.extract_strided_slice %0 {offsets = [0, 2, 0, 0], sizes = [1, 1, 24, 12], strides = [1, 1, 1, 1]} : vector<3x3x24x12xf32> to vector<1x1x24x12xf32>
    %20 = vector.shape_cast %19 : vector<1x1x24x12xf32> to vector<24x12xf32>
    %cst_9 = arith.constant dense<0.000000e+00> : vector<120x12xf32>
    %21 = tpu.matmul %18, %20, %cst_9 {dimension_numbers = #tpu.dot_dimension_numbers<[1], [0], [0], [1], [0, 0, 1, 1], [], []>} : vector<120x24xf32>, vector<24x12xf32>, vector<120x12xf32> -> vector<120x12xf32>
    %22 = arith.addf %17, %21 : vector<120x12xf32>
    %c0_10 = arith.constant 0 : index
    %c0_11 = arith.constant 0 : index
    %c0_12 = arith.constant 0 : index
    %c0_13 = arith.constant 0 : index
    %23 = vector.load %arg3[%c0_10, %c0_11, %c0_12, %c0_13] : memref<1x1x160x8xf32, #tpu.memory_space<vmem>>, vector<1x1x160x8xf32>
    %24 = vector.shape_cast %23 : vector<1x1x160x8xf32> to vector<160x8xf32>
    %25 = vector.extract_strided_slice %24 {offsets = [0, 0], sizes = [152, 8], strides = [1, 1]} : vector<160x8xf32> to vector<152x8xf32>
    %26 = vector.extract_strided_slice %24 {offsets = [1, 0], sizes = [152, 8], strides = [1, 1]} : vector<160x8xf32> to vector<152x8xf32>
    %27 = vector.extract_strided_slice %24 {offsets = [2, 0], sizes = [152, 8], strides = [1, 1]} : vector<160x8xf32> to vector<152x8xf32>
    %28 = tpu.concatenate %25, %26, %27 in 1 : vector<152x8xf32>, vector<152x8xf32>, vector<152x8xf32> -> vector<152x24xf32>
    %29 = vector.extract_strided_slice %28 {offsets = [0, 0], sizes = [120, 24], strides = [1, 1]} : vector<152x24xf32> to vector<120x24xf32>
    %30 = vector.extract_strided_slice %0 {offsets = [1, 0, 0, 0], sizes = [1, 1, 24, 12], strides = [1, 1, 1, 1]} : vector<3x3x24x12xf32> to vector<1x1x24x12xf32>
    %31 = vector.shape_cast %30 : vector<1x1x24x12xf32> to vector<24x12xf32>
    %cst_14 = arith.constant dense<0.000000e+00> : vector<120x12xf32>
    %32 = tpu.matmul %29, %31, %cst_14 {dimension_numbers = #tpu.dot_dimension_numbers<[1], [0], [0], [1], [0, 0, 1, 1], [], []>} : vector<120x24xf32>, vector<24x12xf32>, vector<120x12xf32> -> vector<120x12xf32>
    %33 = arith.addf %22, %32 : vector<120x12xf32>
    %34 = vector.extract_strided_slice %28 {offsets = [16, 0], sizes = [120, 24], strides = [1, 1]} : vector<152x24xf32> to vector<120x24xf32>
    %35 = vector.extract_strided_slice %0 {offsets = [1, 1, 0, 0], sizes = [1, 1, 24, 12], strides = [1, 1, 1, 1]} : vector<3x3x24x12xf32> to vector<1x1x24x12xf32>
    %36 = vector.shape_cast %35 : vector<1x1x24x12xf32> to vector<24x12xf32>
    %cst_15 = arith.constant dense<0.000000e+00> : vector<120x12xf32>
    %37 = tpu.matmul %34, %36, %cst_15 {dimension_numbers = #tpu.dot_dimension_numbers<[1], [0], [0], [1], [0, 0, 1, 1], [], []>} : vector<120x24xf32>, vector<24x12xf32>, vector<120x12xf32> -> vector<120x12xf32>
    %38 = arith.addf %33, %37 : vector<120x12xf32>
    %39 = vector.extract_strided_slice %28 {offsets = [32, 0], sizes = [120, 24], strides = [1, 1]} : vector<152x24xf32> to vector<120x24xf32>
    %40 = vector.extract_strided_slice %0 {offsets = [1, 2, 0, 0], sizes = [1, 1, 24, 12], strides = [1, 1, 1, 1]} : vector<3x3x24x12xf32> to vector<1x1x24x12xf32>
    %41 = vector.shape_cast %40 : vector<1x1x24x12xf32> to vector<24x12xf32>
    %cst_16 = arith.constant dense<0.000000e+00> : vector<120x12xf32>
    %42 = tpu.matmul %39, %41, %cst_16 {dimension_numbers = #tpu.dot_dimension_numbers<[1], [0], [0], [1], [0, 0, 1, 1], [], []>} : vector<120x24xf32>, vector<24x12xf32>, vector<120x12xf32> -> vector<120x12xf32>
    %43 = arith.addf %38, %42 : vector<120x12xf32>
    %c0_17 = arith.constant 0 : index
    %c0_18 = arith.constant 0 : index
    %c0_19 = arith.constant 0 : index
    %c0_20 = arith.constant 0 : index
    %44 = vector.load %arg4[%c0_17, %c0_18, %c0_19, %c0_20] : memref<1x1x160x8xf32, #tpu.memory_space<vmem>>, vector<1x1x160x8xf32>
    %45 = vector.shape_cast %44 : vector<1x1x160x8xf32> to vector<160x8xf32>
    %46 = vector.extract_strided_slice %45 {offsets = [0, 0], sizes = [152, 8], strides = [1, 1]} : vector<160x8xf32> to vector<152x8xf32>
    %47 = vector.extract_strided_slice %45 {offsets = [1, 0], sizes = [152, 8], strides = [1, 1]} : vector<160x8xf32> to vector<152x8xf32>
    %48 = vector.extract_strided_slice %45 {offsets = [2, 0], sizes = [152, 8], strides = [1, 1]} : vector<160x8xf32> to vector<152x8xf32>
    %49 = tpu.concatenate %46, %47, %48 in 1 : vector<152x8xf32>, vector<152x8xf32>, vector<152x8xf32> -> vector<152x24xf32>
    %50 = vector.extract_strided_slice %49 {offsets = [0, 0], sizes = [120, 24], strides = [1, 1]} : vector<152x24xf32> to vector<120x24xf32>
    %51 = vector.extract_strided_slice %0 {offsets = [2, 0, 0, 0], sizes = [1, 1, 24, 12], strides = [1, 1, 1, 1]} : vector<3x3x24x12xf32> to vector<1x1x24x12xf32>
    %52 = vector.shape_cast %51 : vector<1x1x24x12xf32> to vector<24x12xf32>
    %cst_21 = arith.constant dense<0.000000e+00> : vector<120x12xf32>
    %53 = tpu.matmul %50, %52, %cst_21 {dimension_numbers = #tpu.dot_dimension_numbers<[1], [0], [0], [1], [0, 0, 1, 1], [], []>} : vector<120x24xf32>, vector<24x12xf32>, vector<120x12xf32> -> vector<120x12xf32>
    %54 = arith.addf %43, %53 : vector<120x12xf32>
    %55 = vector.extract_strided_slice %49 {offsets = [16, 0], sizes = [120, 24], strides = [1, 1]} : vector<152x24xf32> to vector<120x24xf32>
    %56 = vector.extract_strided_slice %0 {offsets = [2, 1, 0, 0], sizes = [1, 1, 24, 12], strides = [1, 1, 1, 1]} : vector<3x3x24x12xf32> to vector<1x1x24x12xf32>
    %57 = vector.shape_cast %56 : vector<1x1x24x12xf32> to vector<24x12xf32>
    %cst_22 = arith.constant dense<0.000000e+00> : vector<120x12xf32>
    %58 = tpu.matmul %55, %57, %cst_22 {dimension_numbers = #tpu.dot_dimension_numbers<[1], [0], [0], [1], [0, 0, 1, 1], [], []>} : vector<120x24xf32>, vector<24x12xf32>, vector<120x12xf32> -> vector<120x12xf32>
    %59 = arith.addf %54, %58 : vector<120x12xf32>
    %60 = vector.extract_strided_slice %49 {offsets = [32, 0], sizes = [120, 24], strides = [1, 1]} : vector<152x24xf32> to vector<120x24xf32>
    %61 = vector.extract_strided_slice %0 {offsets = [2, 2, 0, 0], sizes = [1, 1, 24, 12], strides = [1, 1, 1, 1]} : vector<3x3x24x12xf32> to vector<1x1x24x12xf32>
    %62 = vector.shape_cast %61 : vector<1x1x24x12xf32> to vector<24x12xf32>
    %cst_23 = arith.constant dense<0.000000e+00> : vector<120x12xf32>
    %63 = tpu.matmul %60, %62, %cst_23 {dimension_numbers = #tpu.dot_dimension_numbers<[1], [0], [0], [1], [0, 0, 1, 1], [], []>} : vector<120x24xf32>, vector<24x12xf32>, vector<120x12xf32> -> vector<120x12xf32>
    %64 = arith.addf %59, %63 : vector<120x12xf32>
    %cst_24 = arith.constant 0.000000e+00 : f32
    %65 = vector.broadcast %cst_24 : f32 to vector<120x12xf32>
    %66 = arith.maximumf %64, %65 : vector<120x12xf32>
    %c0_25 = arith.constant 0 : index
    %c0_26 = arith.constant 0 : index
    %c0_27 = arith.constant 0 : index
    %c0_28 = arith.constant 0 : index
    %67 = vector.load %arg6[%c0_25, %c0_26, %c0_27, %c0_28] : memref<1x1x120x12xf32, #tpu.memory_space<vmem>>, vector<1x1x120x12xf32>
    %68 = vector.shape_cast %67 : vector<1x1x120x12xf32> to vector<120x12xf32>
    %69 = vector.shape_cast %66 : vector<120x12xf32> to vector<1x1x120x12xf32>
    tpu.vector_store %arg6[%c0_25, %c0_26, %c0_27, %c0_28], %69 {strides = array<i32>} : memref<1x1x120x12xf32, #tpu.memory_space<vmem>>, vector<1x1x120x12xf32>,
    %70 = tpu.iota {dimensions = array<i32: 0>} : vector<120x1xi32>
    %c16_i32 = arith.constant 16 : i32
    %c0_i32 = arith.constant 0 : i32
    %71 = arith.cmpi eq, %c16_i32, %c0_i32 : i32
    %c1_i32 = arith.constant 1 : i32
    %72 = arith.select %71, %c1_i32, %c16_i32 : i32
    %73 = vector.broadcast %72 : i32 to vector<120x1xi32>
    %74 = arith.remsi %70, %73 : vector<120x1xi32>
    %c0_i32_29 = arith.constant 0 : i32
    %75 = vector.broadcast %c0_i32_29 : i32 to vector<120x1xi32>
    %76 = arith.cmpi ne, %74, %75 : vector<120x1xi32>
    %c0_i32_30 = arith.constant 0 : i32
    %77 = vector.broadcast %c0_i32_30 : i32 to vector<120x1xi32>
    %78 = arith.cmpi slt, %74, %77 : vector<120x1xi32>
    %c0_i32_31 = arith.constant 0 : i32
    %79 = arith.cmpi slt, %72, %c0_i32_31 : i32
    %80 = vector.broadcast %79 : i1 to vector<120x1xi1>
    %81 = vector.broadcast %80 : vector<120x1xi1> to vector<120x1xi1>
    %82 = arith.xori %78, %81 : vector<120x1xi1>
    %83 = arith.andi %82, %76 : vector<120x1xi1>
    %84 = vector.broadcast %72 : i32 to vector<120x1xi32>
    %85 = arith.addi %74, %84 : vector<120x1xi32>
    %86 = arith.select %83, %85, %74 : vector<120x1xi1>, vector<120x1xi32>
    %c8_i32 = arith.constant 8 : i32
    %87 = vector.broadcast %c8_i32 : i32 to vector<120x1xi32>
    %88 = arith.cmpi slt, %86, %87 : vector<120x1xi32>
    %cst_32 = arith.constant 0.000000e+00 : f32
    %89 = vector.shape_cast %88 : vector<120x1xi1> to vector<120x1xi1>
    %90 = vector.broadcast %89 : vector<120x1xi1> to vector<120x12xi1>
    %91 = vector.broadcast %cst_32 : f32 to vector<120x12xf32>
    %92 = arith.select %90, %66, %91 : vector<120x12xi1>, vector<120x12xf32>
    %cst_33 = arith.constant dense<0.000000e+00> : vector<12xf32>
    %93 = vector.multi_reduction <add>, %92, %cst_33 [0] : vector<120x12xf32> to vector<12xf32>
    %94 = vector.shape_cast %93 : vector<12xf32> to vector<1x12xf32>
    %95 = arith.mulf %92, %92 : vector<120x12xf32>
    %cst_34 = arith.constant dense<0.000000e+00> : vector<12xf32>
    %96 = vector.multi_reduction <add>, %95, %cst_34 [0] : vector<120x12xf32> to vector<12xf32>
    %97 = vector.shape_cast %96 : vector<12xf32> to vector<1x12xf32>
    %cst_35 = arith.constant 0.000000e+00 : f32
    %98 = vector.broadcast %cst_35 : f32 to vector<6x12xf32>
    %99 = tpu.concatenate %94, %97, %98 in 0 : vector<1x12xf32>, vector<1x12xf32>, vector<6x12xf32> -> vector<8x12xf32>
    %c0_36 = arith.constant 0 : index
    %c0_37 = arith.constant 0 : index
    %c0_38 = arith.constant 0 : index
    %c0_39 = arith.constant 0 : index
    %100 = vector.load %arg7[%c0_36, %c0_37, %c0_38, %c0_39] : memref<1x1x8x12xf32, #tpu.memory_space<vmem>>, vector<1x1x8x12xf32>
    %101 = vector.shape_cast %100 : vector<1x1x8x12xf32> to vector<8x12xf32>
    %102 = vector.shape_cast %99 : vector<8x12xf32> to vector<1x1x8x12xf32>
    tpu.vector_store %arg7[%c0_36, %c0_37, %c0_38, %c0_39], %102 {strides = array<i32>} : memref<1x1x8x12xf32, #tpu.memory_space<vmem>>, vector<1x1x8x12xf32>,
    return
  }
  func.func @transform_0(%arg0: i32, %arg1: i32) -> (i32, i32, i32, i32) {
    %c0_i32 = arith.constant 0 : i32
    %c0_i32_0 = arith.constant 0 : i32
    %c0_i32_1 = arith.constant 0 : i32
    return %arg0, %arg1, %c0_i32, %c0_i32_0 : i32, i32, i32, i32
  }
  func.func @transform_1(%arg0: i32, %arg1: i32) -> (i32, i32, i32, i32) {
    %c1_i32 = arith.constant 1 : i32
    %0 = arith.addi %arg1, %c1_i32 : i32
    %c0_i32 = arith.constant 0 : i32
    %c0_i32_0 = arith.constant 0 : i32
    %c0_i32_1 = arith.constant 0 : i32
    return %arg0, %0, %c0_i32, %c0_i32_0 : i32, i32, i32, i32
  }
  func.func @transform_2(%arg0: i32, %arg1: i32) -> (i32, i32, i32, i32) {
    %c2_i32 = arith.constant 2 : i32
    %0 = arith.addi %arg1, %c2_i32 : i32
    %c0_i32 = arith.constant 0 : i32
    %c0_i32_0 = arith.constant 0 : i32
    %c0_i32_1 = arith.constant 0 : i32
    return %arg0, %0, %c0_i32, %c0_i32_0 : i32, i32, i32, i32
  }
  func.func @transform_3(%arg0: i32, %arg1: i32) -> (i32, i32, i32, i32) {
    %c0_i32 = arith.constant 0 : i32
    %c0_i32_0 = arith.constant 0 : i32
    %c0_i32_1 = arith.constant 0 : i32
    %c0_i32_2 = arith.constant 0 : i32
    %c0_i32_3 = arith.constant 0 : i32
    return %c0_i32, %c0_i32_0, %c0_i32_1, %c0_i32_2 : i32, i32, i32, i32
  }
  func.func @transform_4(%arg0: i32, %arg1: i32) -> (i32, i32, i32, i32) {
    %c0_i32 = arith.constant 0 : i32
    %c0_i32_0 = arith.constant 0 : i32
    %c0_i32_1 = arith.constant 0 : i32
    return %arg0, %arg1, %c0_i32, %c0_i32_0 : i32, i32, i32, i32
  }
  func.func @transform_5(%arg0: i32, %arg1: i32) -> (i32, i32, i32, i32) {
    %c0_i32 = arith.constant 0 : i32
    %c0_i32_0 = arith.constant 0 : i32
    %c0_i32_1 = arith.constant 0 : i32
    return %arg0, %arg1, %c0_i32, %c0_i32_0 : i32, i32, i32, i32
  }
}

module attributes {stable_mosaic.version = 11 : i64} {
  func.func @_conv3_kernel(%arg0: i32, %arg1: i32, %arg2: memref<1x1x160x12xf32, #tpu.memory_space<vmem>>, %arg3: memref<1x1x160x12xf32, #tpu.memory_space<vmem>>, %arg4: memref<1x1x160x12xf32, #tpu.memory_space<vmem>>, %arg5: memref<3x3x36x16xf32, #tpu.memory_space<vmem>>, %arg6: memref<1x1x120x16xf32, #tpu.memory_space<vmem>>, %arg7: memref<1x1x8x16xf32, #tpu.memory_space<vmem>>) attributes {dimension_semantics = [#tpu.dimension_semantics<parallel>, #tpu.dimension_semantics<parallel>], iteration_bounds = array<i64: 2, 8>, scalar_prefetch = 0 : i64, scratch_operands = 0 : i64, tpu.core_type = #tpu.core_type<tc>, window_params = [{transform_indices = @transform_0, window_bounds = array<i64: 1, 1, 160, 12>}, {transform_indices = @transform_1, window_bounds = array<i64: 1, 1, 160, 12>}, {transform_indices = @transform_2, window_bounds = array<i64: 1, 1, 160, 12>}, {pipeline_mode = #tpu.pipeline_mode<synchronous>, transform_indices = @transform_3, window_bounds = array<i64: 3, 3, 36, 16>}, {transform_indices = @transform_4, window_bounds = array<i64: 1, 1, 120, 16>}, {transform_indices = @transform_5, window_bounds = array<i64: 1, 1, 8, 16>}]} {
    %c0 = arith.constant 0 : index
    %c0_0 = arith.constant 0 : index
    %c0_1 = arith.constant 0 : index
    %c0_2 = arith.constant 0 : index
    %0 = vector.load %arg5[%c0, %c0_0, %c0_1, %c0_2] : memref<3x3x36x16xf32, #tpu.memory_space<vmem>>, vector<3x3x36x16xf32>
    %cst = arith.constant 0.000000e+00 : f32
    %1 = vector.broadcast %cst : f32 to vector<120x16xf32>
    %c0_3 = arith.constant 0 : index
    %c0_4 = arith.constant 0 : index
    %c0_5 = arith.constant 0 : index
    %c0_6 = arith.constant 0 : index
    %2 = vector.load %arg2[%c0_3, %c0_4, %c0_5, %c0_6] : memref<1x1x160x12xf32, #tpu.memory_space<vmem>>, vector<1x1x160x12xf32>
    %3 = vector.shape_cast %2 : vector<1x1x160x12xf32> to vector<160x12xf32>
    %4 = vector.extract_strided_slice %3 {offsets = [0, 0], sizes = [152, 12], strides = [1, 1]} : vector<160x12xf32> to vector<152x12xf32>
    %5 = vector.extract_strided_slice %3 {offsets = [1, 0], sizes = [152, 12], strides = [1, 1]} : vector<160x12xf32> to vector<152x12xf32>
    %6 = vector.extract_strided_slice %3 {offsets = [2, 0], sizes = [152, 12], strides = [1, 1]} : vector<160x12xf32> to vector<152x12xf32>
    %7 = tpu.concatenate %4, %5, %6 in 1 : vector<152x12xf32>, vector<152x12xf32>, vector<152x12xf32> -> vector<152x36xf32>
    %8 = vector.extract_strided_slice %7 {offsets = [0, 0], sizes = [120, 36], strides = [1, 1]} : vector<152x36xf32> to vector<120x36xf32>
    %9 = vector.extract_strided_slice %0 {offsets = [0, 0, 0, 0], sizes = [1, 1, 36, 16], strides = [1, 1, 1, 1]} : vector<3x3x36x16xf32> to vector<1x1x36x16xf32>
    %10 = vector.shape_cast %9 : vector<1x1x36x16xf32> to vector<36x16xf32>
    %cst_7 = arith.constant dense<0.000000e+00> : vector<120x16xf32>
    %11 = tpu.matmul %8, %10, %cst_7 {dimension_numbers = #tpu.dot_dimension_numbers<[1], [0], [0], [1], [0, 0, 1, 1], [], []>} : vector<120x36xf32>, vector<36x16xf32>, vector<120x16xf32> -> vector<120x16xf32>
    %12 = arith.addf %1, %11 : vector<120x16xf32>
    %13 = vector.extract_strided_slice %7 {offsets = [16, 0], sizes = [120, 36], strides = [1, 1]} : vector<152x36xf32> to vector<120x36xf32>
    %14 = vector.extract_strided_slice %0 {offsets = [0, 1, 0, 0], sizes = [1, 1, 36, 16], strides = [1, 1, 1, 1]} : vector<3x3x36x16xf32> to vector<1x1x36x16xf32>
    %15 = vector.shape_cast %14 : vector<1x1x36x16xf32> to vector<36x16xf32>
    %cst_8 = arith.constant dense<0.000000e+00> : vector<120x16xf32>
    %16 = tpu.matmul %13, %15, %cst_8 {dimension_numbers = #tpu.dot_dimension_numbers<[1], [0], [0], [1], [0, 0, 1, 1], [], []>} : vector<120x36xf32>, vector<36x16xf32>, vector<120x16xf32> -> vector<120x16xf32>
    %17 = arith.addf %12, %16 : vector<120x16xf32>
    %18 = vector.extract_strided_slice %7 {offsets = [32, 0], sizes = [120, 36], strides = [1, 1]} : vector<152x36xf32> to vector<120x36xf32>
    %19 = vector.extract_strided_slice %0 {offsets = [0, 2, 0, 0], sizes = [1, 1, 36, 16], strides = [1, 1, 1, 1]} : vector<3x3x36x16xf32> to vector<1x1x36x16xf32>
    %20 = vector.shape_cast %19 : vector<1x1x36x16xf32> to vector<36x16xf32>
    %cst_9 = arith.constant dense<0.000000e+00> : vector<120x16xf32>
    %21 = tpu.matmul %18, %20, %cst_9 {dimension_numbers = #tpu.dot_dimension_numbers<[1], [0], [0], [1], [0, 0, 1, 1], [], []>} : vector<120x36xf32>, vector<36x16xf32>, vector<120x16xf32> -> vector<120x16xf32>
    %22 = arith.addf %17, %21 : vector<120x16xf32>
    %c0_10 = arith.constant 0 : index
    %c0_11 = arith.constant 0 : index
    %c0_12 = arith.constant 0 : index
    %c0_13 = arith.constant 0 : index
    %23 = vector.load %arg3[%c0_10, %c0_11, %c0_12, %c0_13] : memref<1x1x160x12xf32, #tpu.memory_space<vmem>>, vector<1x1x160x12xf32>
    %24 = vector.shape_cast %23 : vector<1x1x160x12xf32> to vector<160x12xf32>
    %25 = vector.extract_strided_slice %24 {offsets = [0, 0], sizes = [152, 12], strides = [1, 1]} : vector<160x12xf32> to vector<152x12xf32>
    %26 = vector.extract_strided_slice %24 {offsets = [1, 0], sizes = [152, 12], strides = [1, 1]} : vector<160x12xf32> to vector<152x12xf32>
    %27 = vector.extract_strided_slice %24 {offsets = [2, 0], sizes = [152, 12], strides = [1, 1]} : vector<160x12xf32> to vector<152x12xf32>
    %28 = tpu.concatenate %25, %26, %27 in 1 : vector<152x12xf32>, vector<152x12xf32>, vector<152x12xf32> -> vector<152x36xf32>
    %29 = vector.extract_strided_slice %28 {offsets = [0, 0], sizes = [120, 36], strides = [1, 1]} : vector<152x36xf32> to vector<120x36xf32>
    %30 = vector.extract_strided_slice %0 {offsets = [1, 0, 0, 0], sizes = [1, 1, 36, 16], strides = [1, 1, 1, 1]} : vector<3x3x36x16xf32> to vector<1x1x36x16xf32>
    %31 = vector.shape_cast %30 : vector<1x1x36x16xf32> to vector<36x16xf32>
    %cst_14 = arith.constant dense<0.000000e+00> : vector<120x16xf32>
    %32 = tpu.matmul %29, %31, %cst_14 {dimension_numbers = #tpu.dot_dimension_numbers<[1], [0], [0], [1], [0, 0, 1, 1], [], []>} : vector<120x36xf32>, vector<36x16xf32>, vector<120x16xf32> -> vector<120x16xf32>
    %33 = arith.addf %22, %32 : vector<120x16xf32>
    %34 = vector.extract_strided_slice %28 {offsets = [16, 0], sizes = [120, 36], strides = [1, 1]} : vector<152x36xf32> to vector<120x36xf32>
    %35 = vector.extract_strided_slice %0 {offsets = [1, 1, 0, 0], sizes = [1, 1, 36, 16], strides = [1, 1, 1, 1]} : vector<3x3x36x16xf32> to vector<1x1x36x16xf32>
    %36 = vector.shape_cast %35 : vector<1x1x36x16xf32> to vector<36x16xf32>
    %cst_15 = arith.constant dense<0.000000e+00> : vector<120x16xf32>
    %37 = tpu.matmul %34, %36, %cst_15 {dimension_numbers = #tpu.dot_dimension_numbers<[1], [0], [0], [1], [0, 0, 1, 1], [], []>} : vector<120x36xf32>, vector<36x16xf32>, vector<120x16xf32> -> vector<120x16xf32>
    %38 = arith.addf %33, %37 : vector<120x16xf32>
    %39 = vector.extract_strided_slice %28 {offsets = [32, 0], sizes = [120, 36], strides = [1, 1]} : vector<152x36xf32> to vector<120x36xf32>
    %40 = vector.extract_strided_slice %0 {offsets = [1, 2, 0, 0], sizes = [1, 1, 36, 16], strides = [1, 1, 1, 1]} : vector<3x3x36x16xf32> to vector<1x1x36x16xf32>
    %41 = vector.shape_cast %40 : vector<1x1x36x16xf32> to vector<36x16xf32>
    %cst_16 = arith.constant dense<0.000000e+00> : vector<120x16xf32>
    %42 = tpu.matmul %39, %41, %cst_16 {dimension_numbers = #tpu.dot_dimension_numbers<[1], [0], [0], [1], [0, 0, 1, 1], [], []>} : vector<120x36xf32>, vector<36x16xf32>, vector<120x16xf32> -> vector<120x16xf32>
    %43 = arith.addf %38, %42 : vector<120x16xf32>
    %c0_17 = arith.constant 0 : index
    %c0_18 = arith.constant 0 : index
    %c0_19 = arith.constant 0 : index
    %c0_20 = arith.constant 0 : index
    %44 = vector.load %arg4[%c0_17, %c0_18, %c0_19, %c0_20] : memref<1x1x160x12xf32, #tpu.memory_space<vmem>>, vector<1x1x160x12xf32>
    %45 = vector.shape_cast %44 : vector<1x1x160x12xf32> to vector<160x12xf32>
    %46 = vector.extract_strided_slice %45 {offsets = [0, 0], sizes = [152, 12], strides = [1, 1]} : vector<160x12xf32> to vector<152x12xf32>
    %47 = vector.extract_strided_slice %45 {offsets = [1, 0], sizes = [152, 12], strides = [1, 1]} : vector<160x12xf32> to vector<152x12xf32>
    %48 = vector.extract_strided_slice %45 {offsets = [2, 0], sizes = [152, 12], strides = [1, 1]} : vector<160x12xf32> to vector<152x12xf32>
    %49 = tpu.concatenate %46, %47, %48 in 1 : vector<152x12xf32>, vector<152x12xf32>, vector<152x12xf32> -> vector<152x36xf32>
    %50 = vector.extract_strided_slice %49 {offsets = [0, 0], sizes = [120, 36], strides = [1, 1]} : vector<152x36xf32> to vector<120x36xf32>
    %51 = vector.extract_strided_slice %0 {offsets = [2, 0, 0, 0], sizes = [1, 1, 36, 16], strides = [1, 1, 1, 1]} : vector<3x3x36x16xf32> to vector<1x1x36x16xf32>
    %52 = vector.shape_cast %51 : vector<1x1x36x16xf32> to vector<36x16xf32>
    %cst_21 = arith.constant dense<0.000000e+00> : vector<120x16xf32>
    %53 = tpu.matmul %50, %52, %cst_21 {dimension_numbers = #tpu.dot_dimension_numbers<[1], [0], [0], [1], [0, 0, 1, 1], [], []>} : vector<120x36xf32>, vector<36x16xf32>, vector<120x16xf32> -> vector<120x16xf32>
    %54 = arith.addf %43, %53 : vector<120x16xf32>
    %55 = vector.extract_strided_slice %49 {offsets = [16, 0], sizes = [120, 36], strides = [1, 1]} : vector<152x36xf32> to vector<120x36xf32>
    %56 = vector.extract_strided_slice %0 {offsets = [2, 1, 0, 0], sizes = [1, 1, 36, 16], strides = [1, 1, 1, 1]} : vector<3x3x36x16xf32> to vector<1x1x36x16xf32>
    %57 = vector.shape_cast %56 : vector<1x1x36x16xf32> to vector<36x16xf32>
    %cst_22 = arith.constant dense<0.000000e+00> : vector<120x16xf32>
    %58 = tpu.matmul %55, %57, %cst_22 {dimension_numbers = #tpu.dot_dimension_numbers<[1], [0], [0], [1], [0, 0, 1, 1], [], []>} : vector<120x36xf32>, vector<36x16xf32>, vector<120x16xf32> -> vector<120x16xf32>
    %59 = arith.addf %54, %58 : vector<120x16xf32>
    %60 = vector.extract_strided_slice %49 {offsets = [32, 0], sizes = [120, 36], strides = [1, 1]} : vector<152x36xf32> to vector<120x36xf32>
    %61 = vector.extract_strided_slice %0 {offsets = [2, 2, 0, 0], sizes = [1, 1, 36, 16], strides = [1, 1, 1, 1]} : vector<3x3x36x16xf32> to vector<1x1x36x16xf32>
    %62 = vector.shape_cast %61 : vector<1x1x36x16xf32> to vector<36x16xf32>
    %cst_23 = arith.constant dense<0.000000e+00> : vector<120x16xf32>
    %63 = tpu.matmul %60, %62, %cst_23 {dimension_numbers = #tpu.dot_dimension_numbers<[1], [0], [0], [1], [0, 0, 1, 1], [], []>} : vector<120x36xf32>, vector<36x16xf32>, vector<120x16xf32> -> vector<120x16xf32>
    %64 = arith.addf %59, %63 : vector<120x16xf32>
    %cst_24 = arith.constant 0.000000e+00 : f32
    %65 = vector.broadcast %cst_24 : f32 to vector<120x16xf32>
    %66 = arith.maximumf %64, %65 : vector<120x16xf32>
    %c0_25 = arith.constant 0 : index
    %c0_26 = arith.constant 0 : index
    %c0_27 = arith.constant 0 : index
    %c0_28 = arith.constant 0 : index
    %67 = vector.load %arg6[%c0_25, %c0_26, %c0_27, %c0_28] : memref<1x1x120x16xf32, #tpu.memory_space<vmem>>, vector<1x1x120x16xf32>
    %68 = vector.shape_cast %67 : vector<1x1x120x16xf32> to vector<120x16xf32>
    %69 = vector.shape_cast %66 : vector<120x16xf32> to vector<1x1x120x16xf32>
    tpu.vector_store %arg6[%c0_25, %c0_26, %c0_27, %c0_28], %69 {strides = array<i32>} : memref<1x1x120x16xf32, #tpu.memory_space<vmem>>, vector<1x1x120x16xf32>,
    %70 = tpu.iota {dimensions = array<i32: 0>} : vector<120x1xi32>
    %c16_i32 = arith.constant 16 : i32
    %c0_i32 = arith.constant 0 : i32
    %71 = arith.cmpi eq, %c16_i32, %c0_i32 : i32
    %c1_i32 = arith.constant 1 : i32
    %72 = arith.select %71, %c1_i32, %c16_i32 : i32
    %73 = vector.broadcast %72 : i32 to vector<120x1xi32>
    %74 = arith.remsi %70, %73 : vector<120x1xi32>
    %c0_i32_29 = arith.constant 0 : i32
    %75 = vector.broadcast %c0_i32_29 : i32 to vector<120x1xi32>
    %76 = arith.cmpi ne, %74, %75 : vector<120x1xi32>
    %c0_i32_30 = arith.constant 0 : i32
    %77 = vector.broadcast %c0_i32_30 : i32 to vector<120x1xi32>
    %78 = arith.cmpi slt, %74, %77 : vector<120x1xi32>
    %c0_i32_31 = arith.constant 0 : i32
    %79 = arith.cmpi slt, %72, %c0_i32_31 : i32
    %80 = vector.broadcast %79 : i1 to vector<120x1xi1>
    %81 = vector.broadcast %80 : vector<120x1xi1> to vector<120x1xi1>
    %82 = arith.xori %78, %81 : vector<120x1xi1>
    %83 = arith.andi %82, %76 : vector<120x1xi1>
    %84 = vector.broadcast %72 : i32 to vector<120x1xi32>
    %85 = arith.addi %74, %84 : vector<120x1xi32>
    %86 = arith.select %83, %85, %74 : vector<120x1xi1>, vector<120x1xi32>
    %c8_i32 = arith.constant 8 : i32
    %87 = vector.broadcast %c8_i32 : i32 to vector<120x1xi32>
    %88 = arith.cmpi slt, %86, %87 : vector<120x1xi32>
    %cst_32 = arith.constant 0.000000e+00 : f32
    %89 = vector.shape_cast %88 : vector<120x1xi1> to vector<120x1xi1>
    %90 = vector.broadcast %89 : vector<120x1xi1> to vector<120x16xi1>
    %91 = vector.broadcast %cst_32 : f32 to vector<120x16xf32>
    %92 = arith.select %90, %66, %91 : vector<120x16xi1>, vector<120x16xf32>
    %cst_33 = arith.constant dense<0.000000e+00> : vector<16xf32>
    %93 = vector.multi_reduction <add>, %92, %cst_33 [0] : vector<120x16xf32> to vector<16xf32>
    %94 = vector.shape_cast %93 : vector<16xf32> to vector<1x16xf32>
    %95 = arith.mulf %92, %92 : vector<120x16xf32>
    %cst_34 = arith.constant dense<0.000000e+00> : vector<16xf32>
    %96 = vector.multi_reduction <add>, %95, %cst_34 [0] : vector<120x16xf32> to vector<16xf32>
    %97 = vector.shape_cast %96 : vector<16xf32> to vector<1x16xf32>
    %cst_35 = arith.constant 0.000000e+00 : f32
    %98 = vector.broadcast %cst_35 : f32 to vector<6x16xf32>
    %99 = tpu.concatenate %94, %97, %98 in 0 : vector<1x16xf32>, vector<1x16xf32>, vector<6x16xf32> -> vector<8x16xf32>
    %c0_36 = arith.constant 0 : index
    %c0_37 = arith.constant 0 : index
    %c0_38 = arith.constant 0 : index
    %c0_39 = arith.constant 0 : index
    %100 = vector.load %arg7[%c0_36, %c0_37, %c0_38, %c0_39] : memref<1x1x8x16xf32, #tpu.memory_space<vmem>>, vector<1x1x8x16xf32>
    %101 = vector.shape_cast %100 : vector<1x1x8x16xf32> to vector<8x16xf32>
    %102 = vector.shape_cast %99 : vector<8x16xf32> to vector<1x1x8x16xf32>
    tpu.vector_store %arg7[%c0_36, %c0_37, %c0_38, %c0_39], %102 {strides = array<i32>} : memref<1x1x8x16xf32, #tpu.memory_space<vmem>>, vector<1x1x8x16xf32>,
    return
  }
  func.func @transform_0(%arg0: i32, %arg1: i32) -> (i32, i32, i32, i32) {
    %c0_i32 = arith.constant 0 : i32
    %c0_i32_0 = arith.constant 0 : i32
    %c0_i32_1 = arith.constant 0 : i32
    return %arg0, %arg1, %c0_i32, %c0_i32_0 : i32, i32, i32, i32
  }
  func.func @transform_1(%arg0: i32, %arg1: i32) -> (i32, i32, i32, i32) {
    %c1_i32 = arith.constant 1 : i32
    %0 = arith.addi %arg1, %c1_i32 : i32
    %c0_i32 = arith.constant 0 : i32
    %c0_i32_0 = arith.constant 0 : i32
    %c0_i32_1 = arith.constant 0 : i32
    return %arg0, %0, %c0_i32, %c0_i32_0 : i32, i32, i32, i32
  }
  func.func @transform_2(%arg0: i32, %arg1: i32) -> (i32, i32, i32, i32) {
    %c2_i32 = arith.constant 2 : i32
    %0 = arith.addi %arg1, %c2_i32 : i32
    %c0_i32 = arith.constant 0 : i32
    %c0_i32_0 = arith.constant 0 : i32
    %c0_i32_1 = arith.constant 0 : i32
    return %arg0, %0, %c0_i32, %c0_i32_0 : i32, i32, i32, i32
  }
  func.func @transform_3(%arg0: i32, %arg1: i32) -> (i32, i32, i32, i32) {
    %c0_i32 = arith.constant 0 : i32
    %c0_i32_0 = arith.constant 0 : i32
    %c0_i32_1 = arith.constant 0 : i32
    %c0_i32_2 = arith.constant 0 : i32
    %c0_i32_3 = arith.constant 0 : i32
    return %c0_i32, %c0_i32_0, %c0_i32_1, %c0_i32_2 : i32, i32, i32, i32
  }
  func.func @transform_4(%arg0: i32, %arg1: i32) -> (i32, i32, i32, i32) {
    %c0_i32 = arith.constant 0 : i32
    %c0_i32_0 = arith.constant 0 : i32
    %c0_i32_1 = arith.constant 0 : i32
    return %arg0, %arg1, %c0_i32, %c0_i32_0 : i32, i32, i32, i32
  }
  func.func @transform_5(%arg0: i32, %arg1: i32) -> (i32, i32, i32, i32) {
    %c0_i32 = arith.constant 0 : i32
    %c0_i32_0 = arith.constant 0 : i32
    %c0_i32_1 = arith.constant 0 : i32
    return %arg0, %arg1, %c0_i32, %c0_i32_0 : i32, i32, i32, i32
  }
}

module attributes {stable_mosaic.version = 11 : i64} {
  func.func @_comb_kernel(%arg0: i32, %arg1: memref<512x8xf32, #tpu.memory_space<vmem>>, %arg2: memref<512x8xf32, #tpu.memory_space<vmem>>, %arg3: memref<512x16xf32, #tpu.memory_space<vmem>>, %arg4: memref<512x4xf32, #tpu.memory_space<vmem>>, %arg5: memref<32x4xf32, #tpu.memory_space<vmem>>, %arg6: memref<1x4xf32, #tpu.memory_space<vmem>>, %arg7: memref<512x4xf32, #tpu.memory_space<vmem>>) attributes {dimension_semantics = [#tpu.dimension_semantics<parallel>], iteration_bounds = array<i64: 2>, scalar_prefetch = 0 : i64, scratch_operands = 0 : i64, tpu.core_type = #tpu.core_type<tc>, window_params = [{transform_indices = @transform_0, window_bounds = array<i64: 512, 8>}, {transform_indices = @transform_1, window_bounds = array<i64: 512, 8>}, {transform_indices = @transform_2, window_bounds = array<i64: 512, 16>}, {transform_indices = @transform_3, window_bounds = array<i64: 512, 4>}, {pipeline_mode = #tpu.pipeline_mode<synchronous>, transform_indices = @transform_4, window_bounds = array<i64: 32, 4>}, {pipeline_mode = #tpu.pipeline_mode<synchronous>, transform_indices = @transform_5, window_bounds = array<i64: 1, 4>}, {transform_indices = @transform_6, window_bounds = array<i64: 512, 4>}]} {
    %c0 = arith.constant 0 : index
    %c0_0 = arith.constant 0 : index
    %0 = vector.load %arg1[%c0, %c0_0] : memref<512x8xf32, #tpu.memory_space<vmem>>, vector<512x8xf32>
    %c0_1 = arith.constant 0 : index
    %c0_2 = arith.constant 0 : index
    %1 = vector.load %arg2[%c0_1, %c0_2] : memref<512x8xf32, #tpu.memory_space<vmem>>, vector<512x8xf32>
    %c0_3 = arith.constant 0 : index
    %c0_4 = arith.constant 0 : index
    %2 = vector.load %arg3[%c0_3, %c0_4] : memref<512x16xf32, #tpu.memory_space<vmem>>, vector<512x16xf32>
    %3 = tpu.concatenate %0, %1, %2 in 1 : vector<512x8xf32>, vector<512x8xf32>, vector<512x16xf32> -> vector<512x32xf32>
    %c0_5 = arith.constant 0 : index
    %c0_6 = arith.constant 0 : index
    %4 = vector.load %arg5[%c0_5, %c0_6] : memref<32x4xf32, #tpu.memory_space<vmem>>, vector<32x4xf32>
    %cst = arith.constant dense<0.000000e+00> : vector<512x4xf32>
    %5 = tpu.matmul %3, %4, %cst {dimension_numbers = #tpu.dot_dimension_numbers<[1], [0], [0], [1], [0, 0, 1, 1], [], []>} : vector<512x32xf32>, vector<32x4xf32>, vector<512x4xf32> -> vector<512x4xf32>
    %c0_7 = arith.constant 0 : index
    %c0_8 = arith.constant 0 : index
    %6 = vector.load %arg4[%c0_7, %c0_8] : memref<512x4xf32, #tpu.memory_space<vmem>>, vector<512x4xf32>
    %7 = arith.addf %6, %5 : vector<512x4xf32>
    %c0_9 = arith.constant 0 : index
    %c0_10 = arith.constant 0 : index
    %8 = vector.load %arg6[%c0_9, %c0_10] : memref<1x4xf32, #tpu.memory_space<vmem>>, vector<1x4xf32>
    %9 = vector.broadcast %8 : vector<1x4xf32> to vector<512x4xf32>
    %10 = arith.addf %7, %9 : vector<512x4xf32>
    %cst_11 = arith.constant 0.000000e+00 : f32
    %11 = vector.broadcast %cst_11 : f32 to vector<512x4xf32>
    %12 = arith.maximumf %10, %11 : vector<512x4xf32>
    %c0_12 = arith.constant 0 : index
    %c0_13 = arith.constant 0 : index
    %13 = vector.load %arg7[%c0_12, %c0_13] : memref<512x4xf32, #tpu.memory_space<vmem>>, vector<512x4xf32>
    tpu.vector_store %arg7[%c0_12, %c0_13], %12 {strides = array<i32>} : memref<512x4xf32, #tpu.memory_space<vmem>>, vector<512x4xf32>,
    return
  }
  func.func @transform_0(%arg0: i32) -> (i32, i32) {
    %c0_i32 = arith.constant 0 : i32
    %c0_i32_0 = arith.constant 0 : i32
    return %arg0, %c0_i32 : i32, i32
  }
  func.func @transform_1(%arg0: i32) -> (i32, i32) {
    %c0_i32 = arith.constant 0 : i32
    %c0_i32_0 = arith.constant 0 : i32
    return %arg0, %c0_i32 : i32, i32
  }
  func.func @transform_2(%arg0: i32) -> (i32, i32) {
    %c0_i32 = arith.constant 0 : i32
    %c0_i32_0 = arith.constant 0 : i32
    return %arg0, %c0_i32 : i32, i32
  }
  func.func @transform_3(%arg0: i32) -> (i32, i32) {
    %c0_i32 = arith.constant 0 : i32
    %c0_i32_0 = arith.constant 0 : i32
    return %arg0, %c0_i32 : i32, i32
  }
  func.func @transform_4(%arg0: i32) -> (i32, i32) {
    %c0_i32 = arith.constant 0 : i32
    %c0_i32_0 = arith.constant 0 : i32
    %c0_i32_1 = arith.constant 0 : i32
    return %c0_i32, %c0_i32_0 : i32, i32
  }
  func.func @transform_5(%arg0: i32) -> (i32, i32) {
    %c0_i32 = arith.constant 0 : i32
    %c0_i32_0 = arith.constant 0 : i32
    %c0_i32_1 = arith.constant 0 : i32
    return %c0_i32, %c0_i32_0 : i32, i32
  }
  func.func @transform_6(%arg0: i32) -> (i32, i32) {
    %c0_i32 = arith.constant 0 : i32
    %c0_i32_0 = arith.constant 0 : i32
    return %arg0, %c0_i32 : i32, i32
  }
}

</mosaic_0001>

<bundles_post_ra>
// kernel: module_a_forward.5
= control target key start
LH: loop header
LB: loop body
LE: loop exit
PB: predicated region body
PF: predicated region fallthrough
CT: control target
= control target key end

     0   :  { %9 = vsyncpa [#allocation3], 0  ;;  %s1732_s12 = smov 0   ;;  %s2455_s0 = inlined_call_operand.vmem [shape: f32[1024,4], index: 0, kind: input, shape index: {}]   ;;  %s2456_s1 = inlined_call_operand.hbm [shape: f32[4,24], index: 1, kind: input, shape index: {}]   ;;  %s2457_s2 = inlined_call_operand.vmem [shape: f32[1024,24], index: 2, kind: output, shape index: {0}]   ;;  %s2458_s3 = inlined_call_operand.vmem [shape: f32[2,8,24], index: 3, kind: output, shape index: {1}]  }
   0x1 LB: > { %s1738_s13 = sadd.s32 4294967295, %s1709_s12   ;;  %p1410_p0 = scmp.ge.s32.totalorder %s1709_s12, 1  ;;  %s1709_s12 = sphi %s1732_s12, %s15_s12  }
   0x2   : > { %p119_p1 = scmp.lt.s32.totalorder %s1709_s12, 3  ;;  %p2459_p3 = scmp.eq.s32.totalorder %s1738_s13, 0 }
   0x3   : > { %s1711_s15 = smov [#allocation2]   ;;  %s1671_s20 = scalar_lea.hbm %s2456_s1, 64 }
   0x4   : > { %p1742_p2 = pnand %p1410_p0, %p119_p1  ;;  %s132_s16 = sshll.u32 %s1711_s15, 4  ;;  %s133_s16 = int_to_ptr.vmem [resolvable:$true] %s132_s16 }
   0x5   : > { %p1672_p6 = scmp.ne.s32.totalorder %s2456_s1, %s1671_s20  ;;  %p1678_p10 = scmp.lt.u32.totalorder %s1671_s20, %s2456_s1 }
   0x6   : > { %s2461_s14 = scalar_select %p1742_p2, 1, 0 }
   0x7   : > { %p1656_p4 = pneg %p1742_p2 }
   0x9   : > { %p1751_p5 = pnand %p2459_p3, %p1656_p4 }
   0xb   : > { %p1673_p7 = pneg %p1751_p5 }
   0xd   : > { %p1674_p8 = pnand %p1673_p7, %p1672_p6 }
   0xf   : > { %p1675_p9 = pneg %p1674_p8 }
  0x11   : > { %p1680_p11 = pnand %p1678_p10, %p1675_p9 }
  0x13   : > { %1683 = shalt.err (!%p1680_p11)
}
  0x14   : > { %s1684_s25 = scalar_lea.vmem %s133_s16, 64  ;;  %p1692_p1 = scmp.lt.s32.totalorder %s133_s16, %s133_s16 }
  0x15   : > { %p1685_p12 = scmp.ne.s32.totalorder %s133_s16, %s1684_s25  ;;  %p1693_p4 = scmp.lt.s32.totalorder %s1684_s25, %s1684_s25 }
  0x17   : > { %p1687_p13 = pnand %p1685_p12, %p1673_p7  ;;  %p1694_p3 = por %p1693_p4, %p1692_p1 }
  0x19   : > { %p1688_p0 = pneg %p1687_p13 }
  0x1b   : > { %p1695_p2 = pnand %p1694_p3, %p1688_p0 }
  0x1d   : > { %1698 = shalt.err (!%p1695_p2)
}
  0x1e   : > { %1659 = dma.hbm_to_vmem [thread:$0]  (!%p1751_p5), %s2456_s1, 64, %s133_s16, [#allocation3]  }
  0x1f   : > { %p2463_p6 = scmp.ne.s32.totalorder %s2461_s14, 0 }
  0x20   : > { %p2464_p8 = scmp.eq.s32.totalorder (!%p2463_p6), %s1738_s13, 0 }
  0x21   : > { %154 = sbr.rel (%p2463_p6) target bundleno = 410 (0x19a), region = 28 }
  0x28   : > { %1704 = dma.done.wait (%p2464_p8), [#allocation3], 64   ;;  %p2465_p7 = pmov %p2464_p8 }
  0x29   : > { %s1415_s28 = sshll.u32 %s1738_s13, 6  ;;  %vm456_vm0 = vcmask 1043456   ;;  %vm263_vm1 = vcmask 31744   ;;  %v262_v0 = vld [vmem:[#allocation2] sm:$0xf]  ;;  %vm909_vm2 = vcmask 195584  }
  0x2a   : > { %1706 = vsyncadd (%p2465_p7), [#allocation3], 4294967232  ;;  %p183_p9 = scmp.lt.s32.totalorder %s1415_s28, 127  ;;  %1552 = vmatprep.subr.msk.mxu0 %vm456_vm0, %v262_v0  ;;  %1650 = vmatprep.subr.msk.mxu1 %vm456_vm0, %v262_v0  ;;  %p194_p2 = scmp.lt.s32.totalorder %s1738_s13, 1  ;;  %vm1304_vm3 = vcmask 1040384   ;;  %vm1306_vm4 = vcmask 1041408  }
  0x2b   : > { %1553 = vmatpush3.msk.msra.mxu0 %vm456_vm0, %v262_v0  ;;  %1651 = vmatpush3.msk.msra.mxu1 %vm456_vm0, %v262_v0 }
  0x2c   : > { %s2467_s28 = smov (!%p183_p9, %s1415_s28), 127  ;;  %s2469_s13 = smov (!%p194_p2, %s1738_s13), 1 }
  0x2d   : > { %s1416_s29 = sshll.u32 %s2467_s28, 3  ;;  %s1419_s9 = sshll.u32 %s2469_s13, 3 }
  0x2e   : > { %s1786_s5 = scalar_lea.vmem %s2455_s0, %s1416_s29  ;;  %s1921_s8 = scalar_lea.vmem %s2457_s2, %s1416_s29 }
  0x2f   : > { %v198_v1 = vld [vmem:[%s1786_s5] sm:$0xff]  ;;  %v199_v2 = vld [vmem:[%s1786_s5 + $0x8] sm:$0xff]  ;;  %v200_v3 = vld [vmem:[%s1786_s5 + $0x10] sm:$0xff]  ;;  %s197_s14 = scalar_lea.vmem %s2458_s3, %s1419_s9 }
  0x30   : > { %1554 = vmatprep.mubr.msk.f32.mxu0 %vm263_vm1, %v198_v1  ;;  %v201_v4 = vld [vmem:[%s1786_s5 + $0x18] sm:$0xff]  ;;  %v202_v5 = vld [vmem:[%s1786_s5 + $0x20] sm:$0xff]  ;;  %v203_v6 = vld [vmem:[%s1786_s5 + $0x28] sm:$0xff] }
  0x31   : > { %1555 = vmatmul.mubr.msk.f32.vlgmr.msra.gmra.mrb[0].mxu0 %vm263_vm1, %v199_v2  ;;  %v204_v7 = vld [vmem:[%s1786_s5 + $0x30] sm:$0xff]  ;;  %v230_v8 = vld [vmem:[%s1786_s5 + $0x100] sm:$0xff]  ;;  %v231_v9 = vld [vmem:[%s1786_s5 + $0x108] sm:$0xff] }
  0x32   : > { %1557 = vmatprep.mubr.msk.f32.mxu0 %vm263_vm1, %v200_v3  ;;  %v232_v10 = vld [vmem:[%s1786_s5 + $0x110] sm:$0xff]  ;;  %v205_v11 = vld [vmem:[%s1786_s5 + $0x38] sm:$0xff]  ;;  %1602 = vmatprep.mubr.msk.f32.mxu1 %vm263_vm1, %v230_v8  ;;  %v206_v12 = vld [vmem:[%s1786_s5 + $0x40] sm:$0xff] }
  0x33   : > { %1603 = vmatmul.mubr.msk.f32.vlgmr.msra.gmra.mrb[0].mxu1 %vm263_vm1, %v231_v9  ;;  %v233_v13 = vld [vmem:[%s1786_s5 + $0x118] sm:$0xff]  ;;  %v234_v14 = vld [vmem:[%s1786_s5 + $0x120] sm:$0xff]  ;;  %v207_v15 = vld [vmem:[%s1786_s5 + $0x48] sm:$0xff] }
  0x34   : > { %1605 = vmatprep.mubr.msk.f32.mxu1 %vm263_vm1, %v232_v10  ;;  %v208_v16 = vld [vmem:[%s1786_s5 + $0x50] sm:$0xff]  ;;  %v235_v17 = vld [vmem:[%s1786_s5 + $0x128] sm:$0xff]  ;;  %v209_v19 = vld [vmem:[%s1786_s5 + $0x58] sm:$0xff] }
  0x35   : > { %1558 = vmatmul.mubr.msk.f32.gmra.mrb[2].mxu0 %vm263_vm1, %v201_v4  ;;  %v236_v18 = vld [vmem:[%s1786_s5 + $0x130] sm:$0xff]  ;;  %v210_v20 = vld [vmem:[%s1786_s5 + $0x60] sm:$0xff]  ;;  %v237_v21 = vld [vmem:[%s1786_s5 + $0x138] sm:$0xff] }
  0x36   : > { %1560 = vmatprep.mubr.msk.f32.mxu0 %vm263_vm1, %v202_v5  ;;  %v238_v22 = vld [vmem:[%s1786_s5 + $0x140] sm:$0xff]  ;;  %v211_v23 = vld [vmem:[%s1786_s5 + $0x68] sm:$0xff]  ;;  %v212_v24 = vld [vmem:[%s1786_s5 + $0x70] sm:$0xff] }
  0x37   : > { %1606 = vmatmul.mubr.msk.f32.gmra.mrb[2].mxu1 %vm263_vm1, %v233_v13  ;;  %v239_v25 = vld [vmem:[%s1786_s5 + $0x148] sm:$0xff]  ;;  %v240_v26 = vld [vmem:[%s1786_s5 + $0x150] sm:$0xff]  ;;  %v213_v27 = vld [vmem:[%s1786_s5 + $0x78] sm:$0xff] }
  0x38   : > { %1608 = vmatprep.mubr.msk.f32.mxu1 %vm263_vm1, %v234_v14  ;;  %v214_v28 = vld [vmem:[%s1786_s5 + $0x80] sm:$0xff]  ;;  %v241_v29 = vld [vmem:[%s1786_s5 + $0x158] sm:$0xff]  ;;  %v215_v31 = vld [vmem:[%s1786_s5 + $0x88] sm:$0xff] }
  0x39   : > { %1561 = vmatmul.mubr.msk.f32.gmra.mrb[4].mxu0 %vm263_vm1, %v203_v6  ;;  %v242_v30 = vld [vmem:[%s1786_s5 + $0x160] sm:$0xff]  ;;  %v216_v32 = vld [vmem:[%s1786_s5 + $0x90] sm:$0xff]  ;;  %v243_v33 = vld [vmem:[%s1786_s5 + $0x168] sm:$0xff] }
  0x3a   : > { %1563 = vmatprep.mubr.msk.f32.mxu0 %vm263_vm1, %v204_v7  ;;  %v244_v34 = vld [vmem:[%s1786_s5 + $0x170] sm:$0xff]  ;;  %v217_v35 = vld [vmem:[%s1786_s5 + $0x98] sm:$0xff]  ;;  %v218_v36 = vld [vmem:[%s1786_s5 + $0xa0] sm:$0xff] }
  0x3b   : > { %1609 = vmatmul.mubr.msk.f32.gmra.mrb[4].mxu1 %vm263_vm1, %v235_v17  ;;  %v245_v37 = vld [vmem:[%s1786_s5 + $0x178] sm:$0xff]  ;;  %v246_v38 = vld [vmem:[%s1786_s5 + $0x180] sm:$0xff]  ;;  %v219_v39 = vld [vmem:[%s1786_s5 + $0xa8] sm:$0xff] }
  0x3c   : > { %1611 = vmatprep.mubr.msk.f32.mxu1 %vm263_vm1, %v236_v18  ;;  %v220_v40 = vld [vmem:[%s1786_s5 + $0xb0] sm:$0xff]  ;;  %v247_v41 = vld [vmem:[%s1786_s5 + $0x188] sm:$0xff]  ;;  %v221_v43 = vld [vmem:[%s1786_s5 + $0xb8] sm:$0xff] }
  0x3d   : > { %1564 = vmatmul.mubr.msk.f32.gmra.mrb[6].mxu0 %vm263_vm1, %v205_v11  ;;  %v248_v42 = vld [vmem:[%s1786_s5 + $0x190] sm:$0xff]  ;;  %v222_v44 = vld [vmem:[%s1786_s5 + $0xc0] sm:$0xff]  ;;  %v249_v45 = vld [vmem:[%s1786_s5 + $0x198] sm:$0xff] }
  0x3e   : > { %1566 = vmatprep.mubr.msk.f32.mxu0 %vm263_vm1, %v206_v12  ;;  %v250_v46 = vld [vmem:[%s1786_s5 + $0x1a0] sm:$0xff]  ;;  %v223_v47 = vld [vmem:[%s1786_s5 + $0xc8] sm:$0xff]  ;;  %v224_v48 = vld [vmem:[%s1786_s5 + $0xd0] sm:$0xff] }
  0x3f   : > { %1612 = vmatmul.mubr.msk.f32.gmra.mrb[6].mxu1 %vm263_vm1, %v237_v21  ;;  %v251_v49 = vld [vmem:[%s1786_s5 + $0x1a8] sm:$0xff]  ;;  %v252_v50 = vld [vmem:[%s1786_s5 + $0x1b0] sm:$0xff]  ;;  %v225_v51 = vld [vmem:[%s1786_s5 + $0xd8] sm:$0xff] }
  0x40   : > { %1614 = vmatprep.mubr.msk.f32.mxu1 %vm263_vm1, %v238_v22  ;;  %v226_v52 = vld [vmem:[%s1786_s5 + $0xe0] sm:$0xff]  ;;  %v253_v53 = vld [vmem:[%s1786_s5 + $0x1b8] sm:$0xff]  ;;  %v227_v55 = vld [vmem:[%s1786_s5 + $0xe8] sm:$0xff] }
  0x41   : > { %1567 = vmatmul.mubr.msk.f32.gmra.mrb[8].mxu0 %vm263_vm1, %v207_v15  ;;  %v254_v54 = vld [vmem:[%s1786_s5 + $0x1c0] sm:$0xff]  ;;  %v228_v56 = vld [vmem:[%s1786_s5 + $0xf0] sm:$0xff]  ;;  %v255_v57 = vld [vmem:[%s1786_s5 + $0x1c8] sm:$0xff] }
  0x42   : > { %1569 = vmatprep.mubr.msk.f32.mxu0 %vm263_vm1, %v208_v16  ;;  %v256_v58 = vld [vmem:[%s1786_s5 + $0x1d0] sm:$0xff]  ;;  %v229_v59 = vld [vmem:[%s1786_s5 + $0xf8] sm:$0xff]  ;;  %v258_v61 = vld [vmem:[%s1786_s5 + $0x1e0] sm:$0xff] }
  0x43   : > { %1615 = vmatmul.mubr.msk.f32.gmra.mrb[8].mxu1 %vm263_vm1, %v239_v25  ;;  %v257_v60 = vld [vmem:[%s1786_s5 + $0x1d8] sm:$0xff]  ;;  %v259_v62 = vld [vmem:[%s1786_s5 + $0x1e8] sm:$0xff]  ;;  %v260_v63 = vld [vmem:[%s1786_s5 + $0x1f0] sm:$0xff] }
  0x44   : > { %1617 = vmatprep.mubr.msk.f32.mxu1 %vm263_vm1, %v240_v26  ;;  %v261_v0 = vld [vmem:[%s1786_s5 + $0x1f8] sm:$0xff] }
  0x45   : > { %1570 = vmatmul.mubr.msk.f32.gmra.mrb[10].mxu0 %vm263_vm1, %v209_v19 }
  0x46   : > { %1572 = vmatprep.mubr.msk.f32.mxu0 %vm263_vm1, %v210_v20 }
  0x47   : > { %1618 = vmatmul.mubr.msk.f32.gmra.mrb[10].mxu1 %vm263_vm1, %v241_v29 }
  0x48   : > { %1620 = vmatprep.mubr.msk.f32.mxu1 %vm263_vm1, %v242_v30 }
  0x49   : > { %1573 = vmatmul.mubr.msk.f32.gmra.mrb[12].mxu0 %vm263_vm1, %v211_v23 }
  0x4a   : > { %1575 = vmatprep.mubr.msk.f32.mxu0 %vm263_vm1, %v212_v24 }
  0x4b   : > { %1621 = vmatmul.mubr.msk.f32.gmra.mrb[12].mxu1 %vm263_vm1, %v243_v33 }
  0x4c   : > { %1623 = vmatprep.mubr.msk.f32.mxu1 %vm263_vm1, %v244_v34 }
  0x4d   : > { %1576 = vmatmul.mubr.msk.f32.gmra.mrb[14].mxu0 %vm263_vm1, %v213_v27 }
  0x4e   : > { %1578 = vmatprep.mubr.msk.f32.mxu0 %vm263_vm1, %v214_v28 }
  0x4f   : > { %1624 = vmatmul.mubr.msk.f32.gmra.mrb[14].mxu1 %vm263_vm1, %v245_v37 }
  0x50   : > { %1626 = vmatprep.mubr.msk.f32.mxu1 %vm263_vm1, %v246_v38 }
  0x51   : > { %1579 = vmatmul.mubr.msk.f32.gmra.mrb[16].mxu0 %vm263_vm1, %v215_v31 }
  0x52   : > { %1581 = vmatprep.mubr.msk.f32.mxu0 %vm263_vm1, %v216_v32 }
  0x53   : > { %1627 = vmatmul.mubr.msk.f32.gmra.mrb[16].mxu1 %vm263_vm1, %v247_v41 }
  0x54   : > { %1629 = vmatprep.mubr.msk.f32.mxu1 %vm263_vm1, %v248_v42 }
  0x55   : > { %1582 = vmatmul.mubr.msk.f32.gmra.mrb[18].mxu0 %vm263_vm1, %v217_v35 }
  0x56   : > { %1584 = vmatprep.mubr.msk.f32.mxu0 %vm263_vm1, %v218_v36 }
  0x57   : > { %1630 = vmatmul.mubr.msk.f32.gmra.mrb[18].mxu1 %vm263_vm1, %v249_v45 }
  0x58   : > { %1632 = vmatprep.mubr.msk.f32.mxu1 %vm263_vm1, %v250_v46 }
  0x59   : > { %1585 = vmatmul.mubr.msk.f32.gmra.mrb[20].mxu0 %vm263_vm1, %v219_v39 }
  0x5a   : > { %1587 = vmatprep.mubr.msk.f32.mxu0 %vm263_vm1, %v220_v40 }
  0x5b   : > { %1633 = vmatmul.mubr.msk.f32.gmra.mrb[20].mxu1 %vm263_vm1, %v251_v49 }
  0x5c   : > { %1635 = vmatprep.mubr.msk.f32.mxu1 %vm263_vm1, %v252_v50 }
  0x5d   : > { %1588 = vmatmul.mubr.msk.f32.gmra.mrb[22].mxu0 %vm263_vm1, %v221_v43 }
  0x5e   : > { %1590 = vmatprep.mubr.msk.f32.mxu0 %vm263_vm1, %v222_v44 }
  0x5f   : > { %1636 = vmatmul.mubr.msk.f32.gmra.mrb[22].mxu1 %vm263_vm1, %v253_v53 }
  0x60   : > { %1638 = vmatprep.mubr.msk.f32.mxu1 %vm263_vm1, %v254_v54 }
  0x61   : > { %1591 = vmatmul.mubr.msk.f32.gmra.mrb[24].mxu0 %vm263_vm1, %v223_v47 }
  0x62   : > { %1593 = vmatprep.mubr.msk.f32.mxu0 %vm263_vm1, %v224_v48 }
  0x63   : > { %1639 = vmatmul.mubr.msk.f32.gmra.mrb[24].mxu1 %vm263_vm1, %v255_v57 }
  0x64   : > { %1641 = vmatprep.mubr.msk.f32.mxu1 %vm263_vm1, %v256_v58 }
  0x65   : > { %1594 = vmatmul.mubr.msk.f32.gmra.mrb[26].mxu0 %vm263_vm1, %v225_v51 }
  0x66   : > { %1596 = vmatprep.mubr.msk.f32.mxu0 %vm263_vm1, %v226_v52 }
  0x67   : > { %1642 = vmatmul.mubr.msk.f32.gmra.mrb[26].mxu1 %vm263_vm1, %v257_v60 }
  0x68   : > { %1644 = vmatprep.mubr.msk.f32.mxu1 %vm263_vm1, %v258_v61 }
  0x69   : > { %1597 = vmatmul.mubr.msk.f32.gmra.mrb[28].mxu0 %vm263_vm1, %v227_v55 }
  0x6a   : > { %1599 = vmatprep.mubr.msk.f32.mxu0 %vm263_vm1, %v228_v56 }
  0x6b   : > { %1645 = vmatmul.mubr.msk.f32.gmra.mrb[28].mxu1 %vm263_vm1, %v259_v62 }
  0x6c   : > { %1647 = vmatprep.mubr.msk.f32.mxu1 %vm263_vm1, %v260_v63 }
  0x6d   : > { %1600 = vmatmul.mubr.msk.f32.gmra.mrb[30].mxu0 %vm263_vm1, %v229_v59 }
  0x6f   : > { %1648 = vmatmul.mubr.msk.f32.gmra.mrb[30].mxu1 %vm263_vm1, %v261_v0 }
 0x104   : > { %v1556_v1 = vpop.f32.mrb[0].mxu0 }
 0x105   : > { %v846_v2 = vmax.f32 %v1556_v1, 0.0  ;;  %v526_v3 = vpop.f32.mrb[1].mxu0 }
 0x106   : > { %v845_v4 = vmax.f32 %v526_v3, 0.0  ;;  %v1604_v27 = vpop.f32.mrb[0].mxu1 }
 0x107   : > { %911 = vst.msk [vmem:[%s1921_s8 + $0x8] sm:$0xff] %vm909_vm2, %v846_v2  ;;  %v975_v5 = vsel %vm909_vm2, %v846_v2, 0.0  ;;  %v1108_v6 = vmul.f32 %v846_v2, %v846_v2  ;;  %v686_v32 = vpop.f32.mrb[1].mxu1  ;;  %v1944_v36 = vmax.f32 %v1604_v27, 0.0 }
 0x108   : > { %910 = vst.msk [vmem:[%s1921_s8] sm:$0xff] %vm909_vm2, %v845_v4  ;;  %v974_v7 = vsel %vm909_vm2, %v845_v4, 0.0  ;;  %v1107_v8 = vmul.f32 %v845_v4, %v845_v4  ;;  %v1559_v9 = vpop.f32.mrb[2].mxu0  ;;  %v1946_v37 = vmax.f32 %v686_v32, 0.0 }
 0x109   : > { %v1172_v10 = vsel %vm909_vm2, %v1108_v6, 0.0  ;;  %v976_v11 = vadd.f32 %v975_v5, %v974_v7  ;;  %v848_v12 = vmax.f32 %v1559_v9, 0.0  ;;  %v536_v13 = vpop.f32.mrb[3].mxu0  ;;  %943 = vst.msk [vmem:[%s1921_s8 + $0x108] sm:$0xff] %vm909_vm2, %v1944_v36 }
 0x10a   : > { %v1171_v14 = vsel %vm909_vm2, %v1107_v8, 0.0  ;;  %v847_v15 = vmax.f32 %v536_v13, 0.0  ;;  %942 = vst.msk [vmem:[%s1921_s8 + $0x100] sm:$0xff] %vm909_vm2, %v1946_v37  ;;  %v1607_v45 = vpop.f32.mrb[2].mxu1 }
 0x10b   : > { %v1173_v16 = vadd.f32 %v1172_v10, %v1171_v14  ;;  %913 = vst.msk [vmem:[%s1921_s8 + $0x18] sm:$0xff] %vm909_vm2, %v848_v12  ;;  %v1110_v17 = vmul.f32 %v848_v12, %v848_v12  ;;  %v979_v24 = vsel %vm909_vm2, %v848_v12, 0.0  ;;  %v696_v48 = vpop.f32.mrb[3].mxu1  ;;  %v1964_v61 = vmax.f32 %v1607_v45, 0.0 }
 0x10c   : > { %912 = vst.msk [vmem:[%s1921_s8 + $0x10] sm:$0xff] %vm909_vm2, %v847_v15  ;;  %v977_v18 = vsel %vm909_vm2, %v847_v15, 0.0  ;;  %v1109_v19 = vmul.f32 %v847_v15, %v847_v15  ;;  %v1562_v20 = vpop.f32.mrb[4].mxu0  ;;  %v1977_v14 = vmax.f32 %v696_v48, 0.0 }
 0x10d   : > { %v978_v21 = vadd.f32 %v977_v18, %v976_v11  ;;  %v850_v22 = vmax.f32 %v1562_v20, 0.0  ;;  %v546_v23 = vpop.f32.mrb[5].mxu0  ;;  %v1176_v28 = vsel %vm909_vm2, %v1110_v17, 0.0  ;;  %945 = vst.msk [vmem:[%s1921_s8 + $0x118] sm:$0xff] %vm909_vm2, %v1964_v61 }
 0x10e   : > { %v1174_v25 = vsel %vm909_vm2, %v1109_v19, 0.0  ;;  %v849_v26 = vmax.f32 %v546_v23, 0.0  ;;  %v1610_v62 = vpop.f32.mrb[4].mxu1  ;;  %944 = vst.msk [vmem:[%s1921_s8 + $0x110] sm:$0xff] %vm909_vm2, %v1977_v14 }
 0x10f   : > { %v1175_v29 = vadd.f32 %v1174_v25, %v1173_v16  ;;  %915 = vst.msk [vmem:[%s1921_s8 + $0x28] sm:$0xff] %vm909_vm2, %v850_v22  ;;  %v1112_v30 = vmul.f32 %v850_v22, %v850_v22  ;;  %v980_v31 = vadd.f32 %v979_v24, %v978_v21  ;;  %v983_v42 = vsel %vm909_vm2, %v850_v22, 0.0  ;;  %v706_v1 = vpop.f32.mrb[5].mxu1 }
 0x110   : > { %914 = vst.msk [vmem:[%s1921_s8 + $0x20] sm:$0xff] %vm909_vm2, %v849_v26  ;;  %v981_v33 = vsel %vm909_vm2, %v849_v26, 0.0  ;;  %v1111_v34 = vmul.f32 %v849_v26, %v849_v26  ;;  %v1565_v35 = vpop.f32.mrb[6].mxu0 }
 0x111   : > { %v982_v38 = vadd.f32 %v981_v33, %v980_v31  ;;  %v1177_v39 = vadd.f32 %v1176_v28, %v1175_v29  ;;  %v852_v40 = vmax.f32 %v1565_v35, 0.0  ;;  %v556_v41 = vpop.f32.mrb[7].mxu0  ;;  %v1180_v49 = vsel %vm909_vm2, %v1112_v30, 0.0 }
 0x112   : > { %v1178_v43 = vsel %vm909_vm2, %v1111_v34, 0.0  ;;  %v851_v44 = vmax.f32 %v556_v41, 0.0  ;;  %v1613_v15 = vpop.f32.mrb[6].mxu1  ;;  %v1992_v31 = vmax.f32 %v1610_v62, 0.0 }
 0x113   : > { %v1179_v46 = vadd.f32 %v1178_v43, %v1177_v39  ;;  %917 = vst.msk [vmem:[%s1921_s8 + $0x38] sm:$0xff] %vm909_vm2, %v852_v40  ;;  %v984_v47 = vadd.f32 %v983_v42, %v982_v38  ;;  %v1114_v50 = vmul.f32 %v852_v40, %v852_v40  ;;  %v987_v58 = vsel %vm909_vm2, %v852_v40, 0.0  ;;  %v1981_v18 = vpop.f32.mrb[7].mxu1 }
 0x114   : > { %916 = vst.msk [vmem:[%s1921_s8 + $0x30] sm:$0xff] %vm909_vm2, %v851_v44  ;;  %v985_v51 = vsel %vm909_vm2, %v851_v44, 0.0  ;;  %v1113_v52 = vmul.f32 %v851_v44, %v851_v44  ;;  %v1568_v53 = vpop.f32.mrb[8].mxu0  ;;  %947 = vst.msk [vmem:[%s1921_s8 + $0x128] sm:$0xff] %vm909_vm2, %v1992_v31 }
 0x115   : > { %v986_v54 = vadd.f32 %v985_v51, %v984_v47  ;;  %v1181_v55 = vadd.f32 %v1180_v49, %v1179_v46  ;;  %v854_v56 = vmax.f32 %v1568_v53, 0.0  ;;  %v566_v57 = vpop.f32.mrb[9].mxu0  ;;  %v1184_v2 = vsel %vm909_vm2, %v1114_v50, 0.0 }
 0x116   : > { %v1182_v59 = vsel %vm909_vm2, %v1113_v52, 0.0  ;;  %v853_v60 = vmax.f32 %v566_v57, 0.0  ;;  %v1994_v32 = vpop.f32.mrb[8].mxu1  ;;  %v2009_v50 = vmax.f32 %v706_v1, 0.0 }
 0x117   : > { %v1183_v63 = vadd.f32 %v1182_v59, %v1181_v55  ;;  %919 = vst.msk [vmem:[%s1921_s8 + $0x48] sm:$0xff] %vm909_vm2, %v854_v56  ;;  %v988_v0 = vadd.f32 %v987_v58, %v986_v54  ;;  %v1116_v3 = vmul.f32 %v854_v56, %v854_v56  ;;  %v991_v11 = vsel %vm909_vm2, %v854_v56, 0.0  ;;  %v1998_v35 = vpop.f32.mrb[9].mxu1 }
 0x118   : > { %918 = vst.msk [vmem:[%s1921_s8 + $0x40] sm:$0xff] %vm909_vm2, %v853_v60  ;;  %v989_v4 = vsel %vm909_vm2, %v853_v60, 0.0  ;;  %v1115_v5 = vmul.f32 %v853_v60, %v853_v60  ;;  %v1571_v6 = vpop.f32.mrb[10].mxu0  ;;  %946 = vst.msk [vmem:[%s1921_s8 + $0x120] sm:$0xff] %vm909_vm2, %v2009_v50 }
 0x119   : > { %v990_v7 = vadd.f32 %v989_v4, %v988_v0  ;;  %v1185_v8 = vadd.f32 %v1184_v2, %v1183_v63  ;;  %v856_v9 = vmax.f32 %v1571_v6, 0.0  ;;  %v576_v10 = vpop.f32.mrb[11].mxu0  ;;  %v1188_v19 = vsel %vm909_vm2, %v1116_v3, 0.0 }
 0x11a   : > { %v1186_v12 = vsel %vm909_vm2, %v1115_v5, 0.0  ;;  %v855_v13 = vmax.f32 %v576_v10, 0.0  ;;  %v2011_v51 = vpop.f32.mrb[10].mxu1  ;;  %v2026_v4 = vmax.f32 %v1613_v15, 0.0 }
 0x11b   : > { %v1187_v16 = vadd.f32 %v1186_v12, %v1185_v8  ;;  %921 = vst.msk [vmem:[%s1921_s8 + $0x58] sm:$0xff] %vm909_vm2, %v856_v9  ;;  %v992_v17 = vadd.f32 %v991_v11, %v990_v7  ;;  %v1118_v20 = vmul.f32 %v856_v9, %v856_v9  ;;  %v995_v28 = vsel %vm909_vm2, %v856_v9, 0.0  ;;  %v2015_v54 = vpop.f32.mrb[11].mxu1 }
 0x11c   : > { %920 = vst.msk [vmem:[%s1921_s8 + $0x50] sm:$0xff] %vm909_vm2, %v855_v13  ;;  %v993_v21 = vsel %vm909_vm2, %v855_v13, 0.0  ;;  %v1117_v22 = vmul.f32 %v855_v13, %v855_v13  ;;  %v1574_v23 = vpop.f32.mrb[12].mxu0  ;;  %949 = vst.msk [vmem:[%s1921_s8 + $0x138] sm:$0xff] %vm909_vm2, %v2026_v4 }
 0x11d   : > { %v994_v24 = vadd.f32 %v993_v21, %v992_v17  ;;  %v1189_v25 = vadd.f32 %v1188_v19, %v1187_v16  ;;  %v858_v26 = vmax.f32 %v1574_v23, 0.0  ;;  %v586_v27 = vpop.f32.mrb[13].mxu0  ;;  %v1192_v38 = vsel %vm909_vm2, %v1118_v20, 0.0 }
 0x11e   : > { %v1190_v29 = vsel %vm909_vm2, %v1117_v22, 0.0  ;;  %v857_v30 = vmax.f32 %v586_v27, 0.0  ;;  %v2028_v5 = vpop.f32.mrb[12].mxu1  ;;  %v2044_v23 = vmax.f32 %v1981_v18, 0.0 }
 0x11f   : > { %v1191_v33 = vadd.f32 %v1190_v29, %v1189_v25  ;;  %923 = vst.msk [vmem:[%s1921_s8 + $0x68] sm:$0xff] %vm909_vm2, %v858_v26  ;;  %v996_v34 = vadd.f32 %v995_v28, %v994_v24  ;;  %v1120_v39 = vmul.f32 %v858_v26, %v858_v26  ;;  %v999_v47 = vsel %vm909_vm2, %v858_v26, 0.0  ;;  %v2032_v8 = vpop.f32.mrb[13].mxu1 }
 0x120   : > { %922 = vst.msk [vmem:[%s1921_s8 + $0x60] sm:$0xff] %vm909_vm2, %v857_v30  ;;  %v997_v40 = vsel %vm909_vm2, %v857_v30, 0.0  ;;  %v1119_v41 = vmul.f32 %v857_v30, %v857_v30  ;;  %v1577_v42 = vpop.f32.mrb[14].mxu0  ;;  %948 = vst.msk [vmem:[%s1921_s8 + $0x130] sm:$0xff] %vm909_vm2, %v2044_v23 }
 0x121   : > { %v998_v43 = vadd.f32 %v997_v40, %v996_v34  ;;  %v1193_v44 = vadd.f32 %v1192_v38, %v1191_v33  ;;  %v860_v45 = vmax.f32 %v1577_v42, 0.0  ;;  %v596_v46 = vpop.f32.mrb[15].mxu0  ;;  %v1196_v55 = vsel %vm909_vm2, %v1120_v39, 0.0 }
 0x122   : > { %v1194_v48 = vsel %vm909_vm2, %v1119_v41, 0.0  ;;  %v859_v49 = vmax.f32 %v596_v46, 0.0  ;;  %v2046_v24 = vpop.f32.mrb[14].mxu1 }
 0x123   : > { %v1195_v52 = vadd.f32 %v1194_v48, %v1193_v44  ;;  %925 = vst.msk [vmem:[%s1921_s8 + $0x78] sm:$0xff] %vm909_vm2, %v860_v45  ;;  %v1000_v53 = vadd.f32 %v999_v47, %v998_v43  ;;  %v1122_v56 = vmul.f32 %v860_v45, %v860_v45  ;;  %v1003_v1 = vsel %vm909_vm2, %v860_v45, 0.0  ;;  %v2050_v27 = vpop.f32.mrb[15].mxu1 }
 0x124   : > { %924 = vst.msk [vmem:[%s1921_s8 + $0x70] sm:$0xff] %vm909_vm2, %v859_v49  ;;  %v1001_v57 = vsel %vm909_vm2, %v859_v49, 0.0  ;;  %v1121_v58 = vmul.f32 %v859_v49, %v859_v49  ;;  %v1580_v59 = vpop.f32.mrb[16].mxu0  ;;  %v2062_v44 = vmax.f32 %v1994_v32, 0.0 }
 0x125   : > { %v1002_v60 = vadd.f32 %v1001_v57, %v1000_v53  ;;  %v1197_v62 = vadd.f32 %v1196_v55, %v1195_v52  ;;  %v862_v63 = vmax.f32 %v1580_v59, 0.0  ;;  %v606_v0 = vpop.f32.mrb[17].mxu0  ;;  %v1200_v9 = vsel %vm909_vm2, %v1122_v56, 0.0 }
 0x126   : > { %v1198_v2 = vsel %vm909_vm2, %v1121_v58, 0.0  ;;  %v861_v3 = vmax.f32 %v606_v0, 0.0  ;;  %v2064_v45 = vpop.f32.mrb[16].mxu1  ;;  %951 = vst.msk [vmem:[%s1921_s8 + $0x148] sm:$0xff] %vm909_vm2, %v2062_v44  ;;  %v2080_v0 = vmax.f32 %v1998_v35, 0.0 }
 0x127   : > { %v1199_v6 = vadd.f32 %v1198_v2, %v1197_v62  ;;  %927 = vst.msk [vmem:[%s1921_s8 + $0x88] sm:$0xff] %vm909_vm2, %v862_v63  ;;  %v1004_v7 = vadd.f32 %v1003_v1, %v1002_v60  ;;  %v1124_v10 = vmul.f32 %v862_v63, %v862_v63  ;;  %v1007_v20 = vsel %vm909_vm2, %v862_v63, 0.0  ;;  %v2068_v48 = vpop.f32.mrb[17].mxu1 }
 0x128   : > { %926 = vst.msk [vmem:[%s1921_s8 + $0x80] sm:$0xff] %vm909_vm2, %v861_v3  ;;  %v1005_v11 = vsel %vm909_vm2, %v861_v3, 0.0  ;;  %v1123_v12 = vmul.f32 %v861_v3, %v861_v3  ;;  %v1583_v13 = vpop.f32.mrb[18].mxu0  ;;  %950 = vst.msk [vmem:[%s1921_s8 + $0x140] sm:$0xff] %vm909_vm2, %v2080_v0 }
 0x129   : > { %v1006_v15 = vadd.f32 %v1005_v11, %v1004_v7  ;;  %v1201_v16 = vadd.f32 %v1200_v9, %v1199_v6  ;;  %v864_v17 = vmax.f32 %v1583_v13, 0.0  ;;  %v616_v19 = vpop.f32.mrb[19].mxu0  ;;  %v1204_v28 = vsel %vm909_vm2, %v1124_v10, 0.0 }
 0x12a   : > { %v1202_v21 = vsel %vm909_vm2, %v1123_v12, 0.0  ;;  %v863_v22 = vmax.f32 %v616_v19, 0.0  ;;  %v2082_v1 = vpop.f32.mrb[18].mxu1 }
 0x12b   : > { %v1203_v25 = vadd.f32 %v1202_v21, %v1201_v16  ;;  %929 = vst.msk [vmem:[%s1921_s8 + $0x98] sm:$0xff] %vm909_vm2, %v864_v17  ;;  %v1008_v26 = vadd.f32 %v1007_v20, %v1006_v15  ;;  %v1126_v29 = vmul.f32 %v864_v17, %v864_v17  ;;  %v1011_v41 = vsel %vm909_vm2, %v864_v17, 0.0  ;;  %v2086_v6 = vpop.f32.mrb[19].mxu1 }
 0x12c   : > { %928 = vst.msk [vmem:[%s1921_s8 + $0x90] sm:$0xff] %vm909_vm2, %v863_v22  ;;  %v1009_v30 = vsel %vm909_vm2, %v863_v22, 0.0  ;;  %v1125_v33 = vmul.f32 %v863_v22, %v863_v22  ;;  %v1586_v34 = vpop.f32.mrb[20].mxu0  ;;  %v2098_v21 = vmax.f32 %v2011_v51, 0.0 }
 0x12d   : > { %v1010_v18 = vadd.f32 %v1009_v30, %v1008_v26  ;;  %v1205_v38 = vadd.f32 %v1204_v28, %v1203_v25  ;;  %v866_v39 = vmax.f32 %v1586_v34, 0.0  ;;  %v626_v40 = vpop.f32.mrb[21].mxu0  ;;  %v1208_v49 = vsel %vm909_vm2, %v1126_v29, 0.0 }
 0x12e   : > { %v1206_v42 = vsel %vm909_vm2, %v1125_v33, 0.0  ;;  %v865_v43 = vmax.f32 %v626_v40, 0.0  ;;  %v2100_v22 = vpop.f32.mrb[20].mxu1  ;;  %953 = vst.msk [vmem:[%s1921_s8 + $0x158] sm:$0xff] %vm909_vm2, %v2098_v21 }
 0x12f   : > { %v1207_v46 = vadd.f32 %v1206_v42, %v1205_v38  ;;  %931 = vst.msk [vmem:[%s1921_s8 + $0xa8] sm:$0xff] %vm909_vm2, %v866_v39  ;;  %v1012_v47 = vadd.f32 %v1011_v41, %v1010_v18  ;;  %v1128_v52 = vmul.f32 %v866_v39, %v866_v39  ;;  %v1015_v60 = vsel %vm909_vm2, %v866_v39, 0.0  ;;  %v2104_v28 = vpop.f32.mrb[21].mxu1 }
 0x130   : > { %930 = vst.msk [vmem:[%s1921_s8 + $0xa0] sm:$0xff] %vm909_vm2, %v865_v43  ;;  %v1013_v53 = vsel %vm909_vm2, %v865_v43, 0.0  ;;  %v1127_v55 = vmul.f32 %v865_v43, %v865_v43  ;;  %v1589_v56 = vpop.f32.mrb[22].mxu0 }
 0x131   : > { %v1014_v32 = vadd.f32 %v1013_v53, %v1012_v47  ;;  %v1209_v57 = vadd.f32 %v1208_v49, %v1207_v46  ;;  %v868_v58 = vmax.f32 %v1589_v56, 0.0  ;;  %v636_v59 = vpop.f32.mrb[23].mxu0  ;;  %v1212_v7 = vsel %vm909_vm2, %v1128_v52, 0.0 }
 0x132   : > { %v1210_v62 = vsel %vm909_vm2, %v1127_v55, 0.0  ;;  %v867_v63 = vmax.f32 %v636_v59, 0.0  ;;  %v2116_v46 = vmax.f32 %v2015_v54, 0.0  ;;  %v2118_v47 = vpop.f32.mrb[22].mxu1 }
 0x133   : > { %v1211_v2 = vadd.f32 %v1210_v62, %v1209_v57  ;;  %933 = vst.msk [vmem:[%s1921_s8 + $0xb8] sm:$0xff] %vm909_vm2, %v868_v58  ;;  %v1016_v3 = vadd.f32 %v1015_v60, %v1014_v32  ;;  %v1130_v9 = vmul.f32 %v868_v58, %v868_v58  ;;  %v1019_v17 = vsel %vm909_vm2, %v868_v58, 0.0  ;;  %v2122_v53 = vpop.f32.mrb[23].mxu1 }
 0x134   : > { %932 = vst.msk [vmem:[%s1921_s8 + $0xb0] sm:$0xff] %vm909_vm2, %v867_v63  ;;  %v1017_v10 = vsel %vm909_vm2, %v867_v63, 0.0  ;;  %v1129_v11 = vmul.f32 %v867_v63, %v867_v63  ;;  %v1592_v12 = vpop.f32.mrb[24].mxu0  ;;  %952 = vst.msk [vmem:[%s1921_s8 + $0x150] sm:$0xff] %vm909_vm2, %v2116_v46 }
 0x135   : > { %v1018_v35 = vadd.f32 %v1017_v10, %v1016_v3  ;;  %v1213_v13 = vadd.f32 %v1212_v7, %v1211_v2  ;;  %v870_v15 = vmax.f32 %v1592_v12, 0.0  ;;  %v646_v16 = vpop.f32.mrb[25].mxu0  ;;  %v1216_v29 = vsel %vm909_vm2, %v1130_v9, 0.0 }
 0x136   : > { %v1214_v19 = vsel %vm909_vm2, %v1129_v11, 0.0  ;;  %v869_v20 = vmax.f32 %v646_v16, 0.0  ;;  %v2134_v7 = vmax.f32 %v2028_v5, 0.0  ;;  %v2136_v9 = vpop.f32.mrb[24].mxu1 }
 0x137   : > { %v1215_v25 = vadd.f32 %v1214_v19, %v1213_v13  ;;  %935 = vst.msk [vmem:[%s1921_s8 + $0xc8] sm:$0xff] %vm909_vm2, %v870_v15  ;;  %v1020_v26 = vadd.f32 %v1019_v17, %v1018_v35  ;;  %v1132_v30 = vmul.f32 %v870_v15, %v870_v15  ;;  %v1023_v41 = vsel %vm909_vm2, %v870_v15, 0.0  ;;  %v2140_v12 = vpop.f32.mrb[25].mxu1 }
 0x138   : > { %934 = vst.msk [vmem:[%s1921_s8 + $0xc0] sm:$0xff] %vm909_vm2, %v869_v20  ;;  %v1021_v33 = vsel %vm909_vm2, %v869_v20, 0.0  ;;  %v1131_v34 = vmul.f32 %v869_v20, %v869_v20  ;;  %v1595_v18 = vpop.f32.mrb[26].mxu0  ;;  %955 = vst.msk [vmem:[%s1921_s8 + $0x168] sm:$0xff] %vm909_vm2, %v2134_v7 }
 0x139   : > { %v1022_v51 = vadd.f32 %v1021_v33, %v1020_v26  ;;  %v1217_v38 = vadd.f32 %v1216_v29, %v1215_v25  ;;  %v872_v39 = vmax.f32 %v1595_v18, 0.0  ;;  %v656_v40 = vpop.f32.mrb[27].mxu0  ;;  %v1220_v55 = vsel %vm909_vm2, %v1132_v30, 0.0 }
 0x13a   : > { %v1218_v42 = vsel %vm909_vm2, %v1131_v34, 0.0  ;;  %v871_v43 = vmax.f32 %v656_v40, 0.0  ;;  %v2152_v33 = vmax.f32 %v2032_v8, 0.0  ;;  %v2154_v34 = vpop.f32.mrb[26].mxu1 }
 0x13b   : > { %v1219_v49 = vadd.f32 %v1218_v42, %v1217_v38  ;;  %937 = vst.msk [vmem:[%s1921_s8 + $0xd8] sm:$0xff] %vm909_vm2, %v872_v39  ;;  %v1024_v52 = vadd.f32 %v1023_v41, %v1022_v51  ;;  %v1134_v56 = vmul.f32 %v872_v39, %v872_v39  ;;  %v1027_v63 = vsel %vm909_vm2, %v872_v39, 0.0  ;;  %v2162_v40 = vpop.f32.mrb[27].mxu1 }
 0x13c   : > { %936 = vst.msk [vmem:[%s1921_s8 + $0xd0] sm:$0xff] %vm909_vm2, %v871_v43  ;;  %v1025_v32 = vsel %vm909_vm2, %v871_v43, 0.0  ;;  %v1133_v57 = vmul.f32 %v871_v43, %v871_v43  ;;  %v1598_v58 = vpop.f32.mrb[28].mxu0  ;;  %v1140_v38 = vmul.f32 %v1944_v36, %v1944_v36  ;;  %v1139_v39 = vmul.f32 %v1946_v37, %v1946_v37  ;;  %954 = vst.msk [vmem:[%s1921_s8 + $0x160] sm:$0xff] %vm909_vm2, %v2152_v33 }
 0x13d   : > { %v1026_v54 = vadd.f32 %v1025_v32, %v1024_v52  ;;  %v1221_v59 = vadd.f32 %v1220_v55, %v1219_v49  ;;  %v874_v60 = vmax.f32 %v1598_v58, 0.0  ;;  %v666_v62 = vpop.f32.mrb[29].mxu0  ;;  %v1224_v35 = vsel %vm909_vm2, %v1134_v56, 0.0 }
 0x13e   : > { %v1222_v2 = vsel %vm909_vm2, %v1133_v57, 0.0  ;;  %v873_v3 = vmax.f32 %v666_v62, 0.0  ;;  %v1037_v56 = vsel %vm909_vm2, %v1946_v37, 0.0  ;;  %v2176_v57 = vmax.f32 %v2046_v24, 0.0 }
 0x13f   : > { %v1223_v10 = vadd.f32 %v1222_v2, %v1221_v59  ;;  %939 = vst.msk [vmem:[%s1921_s8 + $0xe8] sm:$0xff] %vm909_vm2, %v874_v60  ;;  %v1028_v11 = vadd.f32 %v1027_v63, %v1026_v54  ;;  %v1136_v13 = vmul.f32 %v874_v60, %v874_v60  ;;  %v1031_v26 = vsel %vm909_vm2, %v874_v60, 0.0  ;;  %v2184_v59 = vpop.f32.mrb[28].mxu1 }
 0x140   : > { %938 = vst.msk [vmem:[%s1921_s8 + $0xe0] sm:$0xff] %vm909_vm2, %v873_v3  ;;  %v1029_v15 = vsel %vm909_vm2, %v873_v3, 0.0  ;;  %v1135_v16 = vmul.f32 %v873_v3, %v873_v3  ;;  %v1601_v17 = vpop.f32.mrb[30].mxu0  ;;  %v2179_v58 = vmax.f32 %v2050_v27, 0.0  ;;  %v2182_v54 = vmax.f32 %v2064_v45, 0.0  ;;  %v2191_v2 = vpop.f32.mrb[29].mxu1 }
 0x141   : > { %v1030_v5 = vadd.f32 %v1029_v15, %v1028_v11  ;;  %v1225_v19 = vadd.f32 %v1224_v35, %v1223_v10  ;;  %v876_v20 = vmax.f32 %v1601_v17, 0.0  ;;  %v676_v25 = vpop.f32.mrb[31].mxu0  ;;  %v1228_v41 = vsel %vm909_vm2, %v1136_v13, 0.0  ;;  %957 = vst.msk [vmem:[%s1921_s8 + $0x178] sm:$0xff] %vm909_vm2, %v2176_v57 }
 0x142   : > { %v1226_v29 = vsel %vm909_vm2, %v1135_v16, 0.0  ;;  %v875_v30 = vmax.f32 %v676_v25, 0.0  ;;  %v1141_v63 = vmul.f32 %v1977_v14, %v1977_v14  ;;  %v2189_v37 = vmax.f32 %v2068_v48, 0.0  ;;  %956 = vst.msk [vmem:[%s1921_s8 + $0x170] sm:$0xff] %vm909_vm2, %v2179_v58  ;;  %959 = vst.msk [vmem:[%s1921_s8 + $0x188] sm:$0xff] %vm909_vm2, %v2182_v54  ;;  %v2214_v13 = vpop.f32.mrb[30].mxu1 }
 0x143   : > { %v1227_v18 = vadd.f32 %v1226_v29, %v1225_v19  ;;  %941 = vst.msk [vmem:[%s1921_s8 + $0xf8] sm:$0xff] %vm909_vm2, %v876_v20  ;;  %v1032_v51 = vadd.f32 %v1031_v26, %v1030_v5  ;;  %v1138_v42 = vmul.f32 %v876_v20, %v876_v20  ;;  %v1035_v49 = vsel %vm909_vm2, %v876_v20, 0.0  ;;  %v2220_v5 = vpop.f32.mrb[31].mxu1 }
 0x144   : > { %940 = vst.msk [vmem:[%s1921_s8 + $0xf0] sm:$0xff] %vm909_vm2, %v875_v30  ;;  %v1033_v8 = vsel %vm909_vm2, %v875_v30, 0.0  ;;  %v1137_v43 = vmul.f32 %v875_v30, %v875_v30  ;;  %v1234_v27 = vsel %vm909_vm2, %v1139_v39, 0.0  ;;  %958 = vst.msk [vmem:[%s1921_s8 + $0x180] sm:$0xff] %vm909_vm2, %v2189_v37  ;;  %v1039_v48 = vsel %vm909_vm2, %v1944_v36, 0.0 }
 0x145   : > { %v1034_v52 = vadd.f32 %v1033_v8, %v1032_v51  ;;  %v1229_v55 = vadd.f32 %v1228_v41, %v1227_v18  ;;  %v1232_v24 = vsel %vm909_vm2, %v1138_v42, 0.0  ;;  %v1236_v10 = vsel %vm909_vm2, %v1140_v38, 0.0 }
 0x146   : > { %v1230_v32 = vsel %vm909_vm2, %v1137_v43, 0.0  ;;  %v1142_v11 = vmul.f32 %v1964_v61, %v1964_v61  ;;  %v1041_v35 = vsel %vm909_vm2, %v1977_v14, 0.0  ;;  %v1238_v17 = vsel %vm909_vm2, %v1141_v63, 0.0 }
 0x147   : > { %v1036_v60 = vadd.f32 %v1035_v49, %v1034_v52  ;;  %v1231_v62 = vadd.f32 %v1230_v32, %v1229_v55  ;;  %v2218_v36 = vmax.f32 %v2082_v1, 0.0  ;;  %v1143_v19 = vmul.f32 %v2009_v50, %v2009_v50 }
 0x148   : > { %v2225_v20 = vmax.f32 %v2086_v6, 0.0  ;;  %v2228_v14 = vmax.f32 %v2100_v22, 0.0  ;;  %v2231_v25 = vmax.f32 %v2104_v28, 0.0  ;;  %v1043_v1 = vsel %vm909_vm2, %v1964_v61, 0.0 }
 0x149   : > { %v1233_v45 = vadd.f32 %v1232_v24, %v1231_v62  ;;  %v1038_v3 = vadd.f32 %v1037_v56, %v1036_v60  ;;  %961 = vst.msk [vmem:[%s1921_s8 + $0x198] sm:$0xff] %vm909_vm2, %v2218_v36  ;;  %v1045_v30 = vsel %vm909_vm2, %v2009_v50, 0.0  ;;  %v1240_v6 = vsel %vm909_vm2, %v1142_v11, 0.0 }
 0x14a   : > { %960 = vst.msk [vmem:[%s1921_s8 + $0x190] sm:$0xff] %vm909_vm2, %v2225_v20  ;;  %963 = vst.msk [vmem:[%s1921_s8 + $0x1a8] sm:$0xff] %vm909_vm2, %v2228_v14  ;;  %v1144_v61 = vmul.f32 %v1992_v31, %v1992_v31  ;;  %v1242_v50 = vsel %vm909_vm2, %v1143_v19, 0.0  ;;  %v1145_v18 = vmul.f32 %v2044_v23, %v2044_v23  ;;  %v2256_v51 = vmax.f32 %v2118_v47, 0.0 }
 0x14b   : > { %v1235_v15 = vadd.f32 %v1234_v27, %v1233_v45  ;;  %v1040_v16 = vadd.f32 %v1039_v48, %v1038_v3  ;;  %962 = vst.msk [vmem:[%s1921_s8 + $0x1a0] sm:$0xff] %vm909_vm2, %v2231_v25  ;;  %v2259_v41 = vmax.f32 %v2122_v53, 0.0  ;;  %v2262_v42 = vmax.f32 %v2136_v9, 0.0 }
 0x14c   : > { %v1047_v8 = vsel %vm909_vm2, %v1992_v31, 0.0  ;;  %v1049_v43 = vsel %vm909_vm2, %v2044_v23, 0.0  ;;  %965 = vst.msk [vmem:[%s1921_s8 + $0x1b8] sm:$0xff] %vm909_vm2, %v2256_v51  ;;  %v2272_v47 = vmax.f32 %v2140_v12, 0.0  ;;  %v1244_v53 = vsel %vm909_vm2, %v1144_v61, 0.0 }
 0x14d   : > { %v1042_v26 = vadd.f32 %v1041_v35, %v1040_v16  ;;  %v1237_v29 = vadd.f32 %v1236_v10, %v1235_v15  ;;  %964 = vst.msk [vmem:[%s1921_s8 + $0x1b0] sm:$0xff] %vm909_vm2, %v2259_v41  ;;  %967 = vst.msk [vmem:[%s1921_s8 + $0x1c8] sm:$0xff] %vm909_vm2, %v2262_v42  ;;  %v1146_v31 = vmul.f32 %v2026_v4, %v2026_v4  ;;  %v1246_v23 = vsel %vm909_vm2, %v1145_v18, 0.0 }
 0x14e   : > { %v1147_v9 = vmul.f32 %v2080_v0, %v2080_v0  ;;  %966 = vst.msk [vmem:[%s1921_s8 + $0x1c0] sm:$0xff] %vm909_vm2, %v2272_v47  ;;  %v1051_v12 = vsel %vm909_vm2, %v2026_v4, 0.0  ;;  %v1053_v32 = vsel %vm909_vm2, %v2080_v0, 0.0  ;;  %v2294_v60 = vmax.f32 %v2154_v34, 0.0 }
 0x14f   : > { %v1239_v22 = vadd.f32 %v1238_v17, %v1237_v29  ;;  %v1044_v28 = vadd.f32 %v1043_v1, %v1042_v26  ;;  %v2297_v62 = vmax.f32 %v2162_v40, 0.0  ;;  %v2300_v63 = vmax.f32 %v2184_v59, 0.0 }
 0x150   : > { %v1148_v4 = vmul.f32 %v2062_v44, %v2062_v44  ;;  %v2305_v45 = vmax.f32 %v2191_v2, 0.0  ;;  %v1248_v0 = vsel %vm909_vm2, %v1146_v31, 0.0  ;;  %v1250_v3 = vsel %vm909_vm2, %v1147_v9, 0.0  ;;  %969 = vst.msk [vmem:[%s1921_s8 + $0x1d8] sm:$0xff] %vm909_vm2, %v2294_v60 }
 0x151   : > { %v1046_v38 = vadd.f32 %v1045_v30, %v1044_v28  ;;  %v1241_v39 = vadd.f32 %v1240_v6, %v1239_v22  ;;  %v1149_v34 = vmul.f32 %v2116_v46, %v2116_v46  ;;  %968 = vst.msk [vmem:[%s1921_s8 + $0x1d0] sm:$0xff] %vm909_vm2, %v2297_v62  ;;  %971 = vst.msk [vmem:[%s1921_s8 + $0x1e8] sm:$0xff] %vm909_vm2, %v2300_v63  ;;  %v1055_v2 = vsel %vm909_vm2, %v2062_v44, 0.0 }
 0x152   : > { %970 = vst.msk [vmem:[%s1921_s8 + $0x1e0] sm:$0xff] %vm909_vm2, %v2305_v45  ;;  %v1057_v48 = vsel %vm909_vm2, %v2116_v46, 0.0  ;;  %v1252_v10 = vsel %vm909_vm2, %v1148_v4, 0.0  ;;  %v2329_v15 = vmax.f32 %v2214_v13, 0.0  ;;  %v1150_v16 = vmul.f32 %v2098_v21, %v2098_v21 }
 0x153   : > { %v1243_v49 = vadd.f32 %v1242_v50, %v1241_v39  ;;  %v1048_v52 = vadd.f32 %v1047_v8, %v1046_v38  ;;  %v1254_v17 = vsel %vm909_vm2, %v1149_v34, 0.0  ;;  %v1151_v19 = vmul.f32 %v2152_v33, %v2152_v33 }
 0x154   : > { %v2337_v44 = vmax.f32 %v2220_v5, 0.0  ;;  %973 = vst.msk [vmem:[%s1921_s8 + $0x1f8] sm:$0xff] %vm909_vm2, %v2329_v15  ;;  %v1059_v13 = vsel %vm909_vm2, %v2098_v21, 0.0  ;;  %v1061_v29 = vsel %vm909_vm2, %v2152_v33, 0.0  ;;  %v1256_v6 = vsel %vm909_vm2, %v1150_v16, 0.0 }
 0x155   : > { %v1050_v55 = vadd.f32 %v1049_v43, %v1048_v52  ;;  %v1245_v56 = vadd.f32 %v1244_v53, %v1243_v49  ;;  %v1152_v5 = vmul.f32 %v2134_v7, %v2134_v7  ;;  %v1258_v22 = vsel %vm909_vm2, %v1151_v19, 0.0 }
 0x156   : > { %972 = vst.msk [vmem:[%s1921_s8 + $0x1f0] sm:$0xff] %vm909_vm2, %v2337_v44  ;;  %v1153_v28 = vmul.f32 %v2179_v58, %v2179_v58  ;;  %v1063_v33 = vsel %vm909_vm2, %v2134_v7, 0.0  ;;  %v1065_v50 = vsel %vm909_vm2, %v2179_v58, 0.0  ;;  %v1154_v8 = vmul.f32 %v2176_v57, %v2176_v57 }
 0x157   : > { %v1247_v24 = vadd.f32 %v1246_v23, %v1245_v56  ;;  %v1052_v27 = vadd.f32 %v1051_v12, %v1050_v55  ;;  %v1260_v39 = vsel %vm909_vm2, %v1152_v5, 0.0  ;;  %v1155_v49 = vmul.f32 %v2189_v37, %v2189_v37 }
 0x158   : > { %v1262_v43 = vsel %vm909_vm2, %v1153_v28, 0.0  ;;  %v1067_v7 = vsel %vm909_vm2, %v2176_v57, 0.0  ;;  %v1069_v58 = vsel %vm909_vm2, %v2189_v37, 0.0  ;;  %v1264_v9 = vsel %vm909_vm2, %v1154_v8, 0.0 }
 0x159   : > { %v1054_v40 = vadd.f32 %v1053_v32, %v1052_v27  ;;  %v1249_v59 = vadd.f32 %v1248_v0, %v1247_v24  ;;  %v1156_v12 = vmul.f32 %v2182_v54, %v2182_v54  ;;  %v1266_v55 = vsel %vm909_vm2, %v1155_v49, 0.0 }
 0x15a   : > { %v1157_v56 = vmul.f32 %v2225_v20, %v2225_v20  ;;  %v1071_v57 = vsel %vm909_vm2, %v2182_v54, 0.0  ;;  %v1073_v37 = vsel %vm909_vm2, %v2225_v20, 0.0  ;;  %v1075_v54 = vsel %vm909_vm2, %v2218_v36, 0.0 }
 0x15b   : > { %v1251_v11 = vadd.f32 %v1250_v3, %v1249_v59  ;;  %v1056_v35 = vadd.f32 %v1055_v2, %v1054_v40  ;;  %v1268_v0 = vsel %vm909_vm2, %v1156_v12, 0.0  ;;  %v1158_v3 = vmul.f32 %v2218_v36, %v2218_v36 }
 0x15c   : > { %v1270_v34 = vsel %vm909_vm2, %v1157_v56, 0.0  ;;  %v1159_v40 = vmul.f32 %v2231_v25, %v2231_v25  ;;  %v1077_v20 = vsel %vm909_vm2, %v2231_v25, 0.0  ;;  %v1079_v36 = vsel %vm909_vm2, %v2228_v14, 0.0 }
 0x15d   : > { %v1058_v26 = vadd.f32 %v1057_v48, %v1056_v35  ;;  %v1253_v46 = vadd.f32 %v1252_v10, %v1251_v11  ;;  %v1272_v11 = vsel %vm909_vm2, %v1158_v3, 0.0  ;;  %v1160_v35 = vmul.f32 %v2228_v14, %v2228_v14 }
 0x15e   : > { %v1274_v16 = vsel %vm909_vm2, %v1159_v40, 0.0  ;;  %v1081_v25 = vsel %vm909_vm2, %v2259_v41, 0.0  ;;  %v1083_v14 = vsel %vm909_vm2, %v2256_v51, 0.0 }
 0x15f   : > { %v1255_v1 = vadd.f32 %v1254_v17, %v1253_v46  ;;  %v1060_v30 = vadd.f32 %v1059_v13, %v1058_v26  ;;  %v1161_v17 = vmul.f32 %v2259_v41, %v2259_v41  ;;  %v1085_v41 = vsel %vm909_vm2, %v2272_v47, 0.0 }
 0x161   : > { %v1062_v61 = vadd.f32 %v1061_v29, %v1060_v30  ;;  %v1257_v21 = vadd.f32 %v1256_v6, %v1255_v1  ;;  %v1276_v29 = vsel %vm909_vm2, %v1160_v35, 0.0  ;;  %v1162_v1 = vmul.f32 %v2256_v51, %v2256_v51 }
 0x162   : > { %v1278_v30 = vsel %vm909_vm2, %v1161_v17, 0.0  ;;  %v1163_v6 = vmul.f32 %v2272_v47, %v2272_v47  ;;  %v1087_v51 = vsel %vm909_vm2, %v2262_v42, 0.0  ;;  %v1089_v47 = vsel %vm909_vm2, %v2297_v62, 0.0 }
 0x163   : > { %v1259_v18 = vadd.f32 %v1258_v22, %v1257_v21  ;;  %v1064_v38 = vadd.f32 %v1063_v33, %v1062_v61  ;;  %v1280_v21 = vsel %vm909_vm2, %v1162_v1, 0.0  ;;  %v1164_v33 = vmul.f32 %v2262_v42, %v2262_v42 }
 0x164   : > { %v1091_v42 = vsel %vm909_vm2, %v2294_v60, 0.0 }
 0x165   : > { %v1066_v52 = vadd.f32 %v1065_v50, %v1064_v38  ;;  %v1261_v53 = vadd.f32 %v1260_v39, %v1259_v18  ;;  %v1282_v50 = vsel %vm909_vm2, %v1163_v6, 0.0  ;;  %v1165_v18 = vmul.f32 %v2297_v62, %v2297_v62 }
 0x166   : > { %v1284_v49 = vsel %vm909_vm2, %v1164_v33, 0.0  ;;  %v1093_v62 = vsel %vm909_vm2, %v2305_v45, 0.0 }
 0x167   : > { %v1263_v31 = vadd.f32 %v1262_v43, %v1261_v53  ;;  %v1068_v23 = vadd.f32 %v1067_v7, %v1066_v52  ;;  %v1166_v52 = vmul.f32 %v2294_v60, %v2294_v60  ;;  %v1286_v53 = vsel %vm909_vm2, %v1165_v18, 0.0 }
 0x168   : > { %v1167_v7 = vmul.f32 %v2305_v45, %v2305_v45  ;;  %v1095_v60 = vsel %vm909_vm2, %v2300_v63, 0.0  ;;  %v1097_v45 = vsel %vm909_vm2, %v2337_v44, 0.0 }
 0x169   : > { %v1070_v32 = vadd.f32 %v1069_v58, %v1068_v23  ;;  %v1265_v24 = vadd.f32 %v1264_v9, %v1263_v31  ;;  %v1288_v12 = vsel %vm909_vm2, %v1166_v52, 0.0 }
 0x16a   : > { %v1290_v56 = vsel %vm909_vm2, %v1167_v7, 0.0 }
 0x16b   : > { %v1267_v4 = vadd.f32 %v1266_v55, %v1265_v24  ;;  %v1072_v27 = vadd.f32 %v1071_v57, %v1070_v32  ;;  %v1168_v55 = vmul.f32 %v2300_v63, %v2300_v63  ;;  %v1169_v32 = vmul.f32 %v2337_v44, %v2337_v44 }
 0x16d   : > { %v1074_v59 = vadd.f32 %v1073_v37, %v1072_v27  ;;  %v1269_v2 = vadd.f32 %v1268_v0, %v1267_v4  ;;  %v1292_v27 = vsel %vm909_vm2, %v1168_v55, 0.0  ;;  %v1170_v0 = vmul.f32 %v2329_v15, %v2329_v15 }
 0x16e   : > { %v1294_v3 = vsel %vm909_vm2, %v1169_v32, 0.0 }
 0x16f   : > { %v1271_v48 = vadd.f32 %v1270_v34, %v1269_v2  ;;  %v1076_v10 = vadd.f32 %v1075_v54, %v1074_v59  ;;  %v1099_v59 = vsel %vm909_vm2, %v2329_v15, 0.0  ;;  %v1296_v54 = vsel %vm909_vm2, %v1170_v0, 0.0 }
 0x171   : > { %v1078_v19 = vadd.f32 %v1077_v20, %v1076_v10  ;;  %v1273_v26 = vadd.f32 %v1272_v11, %v1271_v48 }
 0x173   : > { %v1275_v46 = vadd.f32 %v1274_v16, %v1273_v26  ;;  %v1080_v13 = vadd.f32 %v1079_v36, %v1078_v19 }
 0x175   : > { %v1082_v5 = vadd.f32 %v1081_v25, %v1080_v13  ;;  %v1277_v22 = vadd.f32 %v1276_v29, %v1275_v46 }
 0x177   : > { %v1279_v28 = vadd.f32 %v1278_v30, %v1277_v22  ;;  %v1084_v61 = vadd.f32 %v1083_v14, %v1082_v5 }
 0x179   : > { %v1086_v38 = vadd.f32 %v1085_v41, %v1084_v61  ;;  %v1281_v39 = vadd.f32 %v1280_v21, %v1279_v28 }
 0x17b   : > { %v1283_v8 = vadd.f32 %v1282_v50, %v1281_v39  ;;  %v1088_v43 = vadd.f32 %v1087_v51, %v1086_v38 }
 0x17d   : > { %v1090_v58 = vadd.f32 %v1089_v47, %v1088_v43  ;;  %v1285_v31 = vadd.f32 %v1284_v49, %v1283_v8 }
 0x17f   : > { %v1287_v23 = vadd.f32 %v1286_v53, %v1285_v31  ;;  %v1092_v9 = vadd.f32 %v1091_v42, %v1090_v58 }
 0x181   : > { %v1094_v24 = vadd.f32 %v1093_v62, %v1092_v9  ;;  %v1289_v57 = vadd.f32 %v1288_v12, %v1287_v23 }
 0x183   : > { %v1291_v37 = vadd.f32 %v1290_v56, %v1289_v57  ;;  %v1096_v4 = vadd.f32 %v1095_v60, %v1094_v24 }
 0x185   : > { %v1098_v34 = vadd.f32 %v1097_v45, %v1096_v4  ;;  %v1293_v40 = vadd.f32 %v1292_v27, %v1291_v37 }
 0x187   : > { %v1100_v2 = vadd.f32 %v1099_v59, %v1098_v34  ;;  %v1295_v63 = vadd.f32 %v1294_v3, %v1293_v40 }
 0x189   : > { %v1101_v44 = vrot.slane %v1100_v2, 4  ;;  %v1297_v20 = vadd.f32 %v1296_v54, %v1295_v63 }
 0x18b   : > { %v1102_v48 = vadd.f32 %v1101_v44, %v1100_v2  ;;  %v1298_v10 = vrot.slane %v1297_v20, 4 }
 0x18d   : > { %v1103_v11 = vrot.slane %v1102_v48, 2  ;;  %v1299_v35 = vadd.f32 %v1298_v10, %v1297_v20 }
 0x18f   : > { %v1104_v16 = vadd.f32 %v1103_v11, %v1102_v48  ;;  %v1300_v17 = vrot.slane %v1299_v35, 2 }
 0x191   : > { %v1105_v19 = vrot.slane %v1104_v16, 1  ;;  %v1301_v26 = vadd.f32 %v1300_v17, %v1299_v35 }
 0x193   : > { %v1302_v36 = vrot.slane %v1301_v26, 1  ;;  %v1106_v15 = vadd.f32 %v1105_v19, %v1104_v16 }
 0x195   : > { %v1303_v25 = vadd.f32 %v1302_v36, %v1301_v26 }
 0x197   : > { %v1305_v46 = vsel %vm1304_vm3, %v1106_v15, %v1303_v25 }
 0x198   : > { %v1307_v13 = vsel %vm1306_vm4, %v1305_v46, 0.0 }
 0x199   : > { %1308 = vst.msk [vmem:[%s197_s14] sm:$0xff] %vm909_vm2, %v1307_v13 }
 0x19a PF: > { %s15_s12 = sadd.s32 1, %s1709_s12  }
 0x19b   : > { %p12_p3 = scmp.ge.s32.totalorder %s15_s12, 4  }
 0x19d   :  { %14 = sbr.rel (!%p12_p3) target bundleno = 1 (0x1), region = 75 }
 0x1a4   :  { %1345 = vsyncpa [#allocation3], 1 }
 0x1a5   :  { %1347 = vsyncpa [#allocation3 + $0x1], 1 }

// kernel: module_a_forward.6
= control target key start
LH: loop header
LB: loop body
LE: loop exit
PB: predicated region body
PF: predicated region fallthrough
CT: control target
= control target key end

     0   :  { %s4455_s18 = smov 0   ;;  %s4457_s19 = smov 0   ;;  %s6037_s0 = inlined_call_operand.vmem [shape: f32[2,10,160,8], index: 0, kind: input, shape index: {}, may-alias: {0,1,2}]   ;;  %s6038_s1 = inlined_call_operand.vmem [shape: f32[2,10,160,8], index: 1, kind: input, shape index: {}, may-alias: {0,1,2}]   ;;  %s6039_s2 = inlined_call_operand.vmem [shape: f32[2,10,160,8], index: 2, kind: input, shape index: {}, may-alias: {0,1,2}]   ;;  %s6040_s3 = inlined_call_operand.vmem [shape: f32[3,3,24,8], index: 3, kind: input, shape index: {}]   ;;  %s6041_s4 = inlined_call_operand.vmem [shape: f32[2,8,120,8], index: 4, kind: output, shape index: {0}]   ;;  %s6042_s5 = inlined_call_operand.vmem [shape: f32[2,8,8,8], index: 5, kind: output, shape index: {1}]  }
   0x1   :  { %s4459_s20 = smov 0   ;;  %s4461_s21 = smov 0  }
   0x2   :  { %s4463_s22 = smov 0  }
   0x3 LB: > { %s25_s23 = sadd.s32 1, %s4410_s20  ;;  %s28_s24 = sadd.s32 1, %s4414_s21  ;;  %s4418_s22 = sphi %s4463_s22, %s16_s22   ;;  %s4414_s21 = sphi %s4461_s21, %s6108_s21   ;;  %s4410_s20 = sphi %s4459_s20, %s6107_s20   ;;  %s4406_s19 = sphi %s4457_s19, %s6106_s19   ;;  %s4402_s18 = sphi %s4455_s18, %s6105_s18  }
   0x4   : > { %p26_p0 = scmp.ge.s32.totalorder %s25_s23, 8  ;;  %p3306_p1 = scmp.ge.s32.totalorder %s4418_s22, 1 }
   0x5   : > { %p252_p2 = scmp.lt.s32.totalorder %s4418_s22, 17 }
   0x6   : > { %s6110_s23 = smov (%p26_p0, %s25_s23), 0  ;;  %s6112_s24 = smov (!%p26_p0, %s28_s24), %s4414_s21 }
   0x7   : > { %p253_p3 = pnand %p3306_p1, %p252_p2  ;;  %p30_p4 = scmp.ge.s32.totalorder %s6112_s24, 2 }
   0x9   : > { %s6114_s24 = smov (%p30_p4, %s6112_s24), 0  ;;  %256 = sbr.rel (%p253_p3) target bundleno = 697 (0x2b9), region = 36 }
  0x10   : > { %p316_p5 = scmp.lt.s32.totalorder %s4406_s19, 1  ;;  %p318_p6 = scmp.lt.s32.totalorder %s4402_s18, 9  ;;  %v367_v0 = vld [vmem:[%s6040_s3 + $0x18] sm:$0xff]  ;;  %v6046_v1 = vmov 0.0|0.0   ;;  %v368_v2 = vld [vmem:[%s6040_s3 + $0x20] sm:$0xff]  ;;  %vm4421_vm0 = vmmov 0  }
  0x11   : > { %4071 = vmatprep.subr.bf16.mxu1 %v6046_v1  ;;  %4083 = vmatprep.subr.bf16.mxu0 %v6046_v1  ;;  %v4072_v3 = vpack.c.bf16 %v368_v2, %v367_v0  ;;  %v6052_v4 = vmov 0.0   ;;  %s325_s6 = sadd.s32 1, %s4402_s18  ;;  %v369_v5 = vld [vmem:[%s6040_s3 + $0x28] sm:$0xff]  ;;  %v376_v6 = vld [vmem:[%s6040_s3 + $0x60] sm:$0xff]  ;;  %vm528_vm1 = vcmask 1045504   ;;  %vm431_vm2 = vcmask 1046528  }
  0x12   : > { %s6116_s19 = smov (!%p316_p5, %s4406_s19), 1  ;;  %3618 = vmatprep.mubr.msk.f32.mxu1 %vm4421_vm0, %v6052_v4  ;;  %3822 = vmatprep.mubr.msk.f32.mxu0 %vm4421_vm0, %v6052_v4  ;;  %p328_p7 = scmp.lt.s32.totalorder %s325_s6, 9  ;;  %v377_v7 = vld [vmem:[%s6040_s3 + $0x68] sm:$0xff]  ;;  %v378_v36 = vld [vmem:[%s6040_s3 + $0x70] sm:$0xff]  ;;  %vm625_vm3 = vcmask 64512   ;;  %vm645_vm4 = vcmask 130048  }
  0x13   : > { %s319_s29 = scalar_select %p318_p6, %s4402_s18, 9  ;;  %4073 = vmatpush3.bf16.msra.mxu1 %v4072_v3  ;;  %v4533_v11 = vpack.c.bf16 %v377_v7, %v376_v6  ;;  %vm665_vm5 = vcmask 195584   ;;  %vm3113_vm6 = vcmask 1040384   ;;  %vm3115_vm7 = vcmask 1041408  }
  0x14   : > { %s4504_s30 = smul.u32 200, %s6116_s19  ;;  %3616 = vmatprep.subr.mxu1 %v6052_v4  ;;  %s6118_s6 = smov (!%p328_p7, %s325_s6), 9 }
  0x15   : > { %s4327_s7 = smul.u32 20, %s319_s29  ;;  %6069 = vst [vmem:[#allocation2_spill] sm:$0xff] %v4533_v11  ;;  %4085 = vmatpush3.bf16.msra.mxu0 %v4533_v11  ;;  %s4423_s27 = smov 16  }
  0x16   : > { %s4329_s26 = smul.u32 20, %s6118_s6  ;;  %3820 = vmatprep.subr.mxu0 %v6052_v4  ;;  %s4424_s28 = smov 8  }
  0x17   : > { %s322_s10 = sadd.s32 %s4504_s30, %s4327_s7  ;;  %3617 = vmatpush3.msra.mxu1 %v369_v5  ;;  %s336_s12 = sadd.s32 2, %s4402_s18 }
  0x18   : > { %s3307_s11 = sshll.u32 %s322_s10, 3  ;;  %4074 = vmatprep.subr.bf16.mxu1 %v6046_v1  ;;  %s332_s29 = sadd.s32 %s4329_s26, %s4504_s30 }
  0x19   : > { %s4515_s14 = scalar_lea.vmem %s6037_s0, %s3307_s11  ;;  %s3308_s6 = sshll.u32 %s332_s29, 3  ;;  %3821 = vmatpush3.msra.mxu0 %v378_v36 }
  0x1a   : > { %v4525_v8 = vld [vmem:[%s4515_s14 + $0x10] sm:$0xff]  ;;  %v4528_v9 = vld [vmem:[%s4515_s14 + $0x18] sm:$0xff]  ;;  %v4531_v10 = vld [vmem:[%s4515_s14 + $0x20] sm:$0xff]  ;;  %s4555_s9 = scalar_lea.vmem %s6038_s1, %s3308_s6  ;;  %4086 = vmatprep.subr.bf16.mxu0 %v6046_v1  ;;  %p339_p8 = scmp.lt.s32.totalorder %s336_s12, 9 }
  0x1b   : > { %v532_v12 = vrot.slane %v4525_v8, 2  ;;  %v534_v13 = vrot.slane %v4528_v9, 2  ;;  %v435_v14 = vrot.slane %v4525_v8, 1  ;;  %v437_v15 = vrot.slane %v4528_v9, 1  ;;  %v4558_v20 = vld [vmem:[%s4555_s9 + $0x18] sm:$0xff]  ;;  %v4561_v21 = vld [vmem:[%s4555_s9 + $0x20] sm:$0xff] }
  0x1c   : > { %v439_v16 = vrot.slane %v4531_v10, 1  ;;  %v4564_v22 = vld [vmem:[%s4555_s9 + $0x10] sm:$0xff]  ;;  %v1203_v23 = vrot.slane %v4558_v20, 1  ;;  %v1205_v24 = vrot.slane %v4561_v21, 1  ;;  %v1299_v26 = vrot.slane %v4558_v20, 2  ;;  %v4574_v29 = vld [vmem:[%s4555_s9 + $0x28] sm:$0xff] }
  0x1d   : > { %v535_v17 = vsel %vm528_vm1, %v532_v12, %v534_v13  ;;  %v438_v18 = vsel %vm431_vm2, %v435_v14, %v437_v15  ;;  %v6044_v25 = vrot.slane %v4564_v22, 1  ;;  %v1301_v27 = vrot.slane %v4561_v21, 2  ;;  %v4592_v37 = vld [vmem:[%s4515_s14 + $0x28] sm:$0xff]  ;;  %v4602_v42 = vld [vmem:[%s4555_s9 + $0x30] sm:$0xff]  ;;  %v4620_v52 = vld [vmem:[%s4555_s9 + $0x38] sm:$0xff]  ;;  %s6120_s12 = smov (!%p339_p8, %s336_s12), 9 }
  0x1e   : > { %572 = vrot.lane.b32.xlu0 %v535_v17, %s4423_s27  ;;  %475 = vrot.lane.b32.xlu1 %v438_v18, %s4424_s28  ;;  %v440_v19 = vsel %vm431_vm2, %v437_v15, %v439_v16  ;;  %v6043_v28 = vrot.slane %v4564_v22, 2  ;;  %v1206_v30 = vsel %vm431_vm2, %v1203_v23, %v1205_v24  ;;  %v1207_v33 = vrot.slane %v4574_v29, 1  ;;  %v4611_v47 = vld [vmem:[%s4515_s14 + $0x30] sm:$0xff]  ;;  %v4629_v57 = vld [vmem:[%s4515_s14 + $0x38] sm:$0xff]  ;;  %s4330_s25 = smul.u32 20, %s6120_s12  ;;  %p349_p9 = scmp.lt.s32.totalorder %s4402_s18, 7 }
  0x1f   : > { %v1204_v31 = vsel %vm431_vm2, %v6044_v25, %v1203_v23  ;;  %v1302_v32 = vsel %vm528_vm1, %v1299_v26, %v1301_v27  ;;  %v536_v35 = vrot.slane %v4531_v10, 2  ;;  %v1303_v39 = vrot.slane %v4574_v29, 2  ;;  %v4638_v62 = vld [vmem:[%s4555_s9 + $0x40] sm:$0xff] }
  0x20   : > { %v1300_v34 = vsel %vm528_vm1, %v6043_v28, %v1299_v26  ;;  %v1208_v38 = vsel %vm431_vm2, %v1205_v24, %v1207_v33  ;;  %v441_v41 = vrot.slane %v4592_v37, 1  ;;  %v1209_v44 = vrot.slane %v4602_v42, 1  ;;  %v4647_v5 = vld [vmem:[%s4515_s14 + $0x40] sm:$0xff]  ;;  %v4665_v24 = vld [vmem:[%s4515_s14 + $0x48] sm:$0xff]  ;;  %s343_s26 = sadd.s32 %s4330_s25, %s4504_s30  ;;  %s6122_s18 = smov (!%p349_p9, %s4402_s18), 7 }
  0x21   : > { %v537_v40 = vsel %vm528_vm1, %v534_v13, %v536_v35  ;;  %v1304_v43 = vsel %vm528_vm1, %v1301_v27, %v1303_v39  ;;  %v538_v46 = vrot.slane %v4592_v37, 2  ;;  %v1305_v49 = vrot.slane %v4602_v42, 2  ;;  %s3309_s30 = sshll.u32 %s343_s26, 3  ;;  %s4331_s16 = smul.u32 15, %s6122_s18 }
  0x22   : > { %477 = vrot.lane.b32.xlu0 %v440_v19, %s4424_s28  ;;  %1243 = vrot.lane.b32.xlu1 %v1206_v30, %s4424_s28  ;;  %v442_v45 = vsel %vm431_vm2, %v439_v16, %v441_v41  ;;  %v1210_v48 = vsel %vm431_vm2, %v1207_v33, %v1209_v44  ;;  %v443_v51 = vrot.slane %v4611_v47, 1  ;;  %v1211_v54 = vrot.slane %v4620_v52, 1  ;;  %v4656_v16 = vld [vmem:[%s4555_s9 + $0x48] sm:$0xff]  ;;  %s4892_s15 = scalar_lea.vmem %s6039_s2, %s3309_s30  ;;  %s3311_s30 = sshll.u32 %s6116_s19, 3 }
  0x23   : > { %v539_v50 = vsel %vm528_vm1, %v536_v35, %v538_v46  ;;  %v1306_v53 = vsel %vm528_vm1, %v1303_v39, %v1305_v49  ;;  %v540_v56 = vrot.slane %v4611_v47, 2  ;;  %v1307_v59 = vrot.slane %v4620_v52, 2  ;;  %v5050_v28 = vld [vmem:[%s4892_s15 + $0x40] sm:$0xff]  ;;  %s361_s7 = sadd.s32 %s3311_s30, %s6122_s18 }
  0x24   : > { %v444_v55 = vsel %vm431_vm2, %v441_v41, %v443_v51  ;;  %v1212_v58 = vsel %vm431_vm2, %v1209_v44, %v1211_v54  ;;  %v445_v61 = vrot.slane %v4629_v57, 1  ;;  %v1213_v0 = vrot.slane %v4638_v62, 1  ;;  %v4694_v44 = vld [vmem:[%s4515_s14 + $0x58] sm:$0xff] }
  0x25   : > { %v541_v60 = vsel %vm528_vm1, %v538_v46, %v540_v56  ;;  %v1308_v63 = vsel %vm528_vm1, %v1305_v49, %v1307_v59  ;;  %v542_v3 = vrot.slane %v4629_v57, 2  ;;  %v1309_v7 = vrot.slane %v4638_v62, 2 }
  0x26   : > { %1241 = vrot.lane.b32.xlu0 %v1204_v31, %s4424_s28  ;;  %1339 = vrot.lane.b32.xlu1 %v1302_v32, %s4423_s27  ;;  %v446_v2 = vsel %vm431_vm2, %v443_v51, %v445_v61  ;;  %v1214_v6 = vsel %vm431_vm2, %v1211_v54, %v1213_v0  ;;  %v447_v15 = vrot.slane %v4647_v5, 1  ;;  %v1215_v18 = vrot.slane %v4656_v16, 1  ;;  %v4674_v32 = vld [vmem:[%s4555_s9 + $0x50] sm:$0xff] }
  0x27   : > { %v543_v13 = vsel %vm528_vm1, %v540_v56, %v542_v3  ;;  %v1310_v17 = vsel %vm528_vm1, %v1307_v59, %v1309_v7  ;;  %v544_v23 = vrot.slane %v4647_v5, 2  ;;  %v1311_v27 = vrot.slane %v4656_v16, 2  ;;  %v4714_v56 = vld [vmem:[%s4515_s14 + $0x68] sm:$0xff] }
  0x28   : > { %v448_v19 = vsel %vm431_vm2, %v445_v61, %v447_v15  ;;  %v1216_v26 = vsel %vm431_vm2, %v1213_v0, %v1215_v18  ;;  %v449_v31 = vrot.slane %v4665_v24, 1  ;;  %v546_v36 = vrot.slane %v4665_v24, 2 }
  0x29   : > { %v545_v30 = vsel %vm528_vm1, %v542_v3, %v544_v23  ;;  %v1312_v33 = vsel %vm528_vm1, %v1309_v7, %v1311_v27  ;;  %v453_v49 = vrot.slane %v4694_v44, 1  ;;  %v457_v61 = vrot.slane %v4714_v56, 1  ;;  %v4732_v7 = vld [vmem:[%s4515_s14 + $0x78] sm:$0xff] }
  0x2a   : > { %1337 = vrot.lane.b32.xlu0 %v1300_v34, %s4423_s27  ;;  %1245 = vrot.lane.b32.xlu1 %v1208_v38, %s4424_s28  ;;  %v1217_v34 = vrot.slane %v4674_v32, 1  ;;  %v450_v35 = vsel %vm431_vm2, %v447_v15, %v449_v31  ;;  %v4683_v38 = vld [vmem:[%s4515_s14 + $0x50] sm:$0xff]  ;;  %v547_v41 = vsel %vm528_vm1, %v544_v23, %v546_v36 }
  0x2b   : > { %v548_v46 = vrot.slane %v4683_v38, 2 }
  0x2c   : > { %v1218_v39 = vsel %vm431_vm2, %v1215_v18, %v1217_v34  ;;  %v461_v18 = vrot.slane %v4732_v7, 1 }
  0x2d   : > { %v549_v51 = vsel %vm528_vm1, %v546_v36, %v548_v46 }
  0x2e   : > { %574 = vrot.lane.b32.xlu0 %v537_v40, %s4423_s27  ;;  %1341 = vrot.lane.b32.xlu1 %v1304_v43, %s4423_s27  ;;  %v1313_v40 = vrot.slane %v4674_v32, 2  ;;  %v451_v43 = vrot.slane %v4683_v38, 1 }
  0x30   : > { %v454_v54 = vsel %vm431_vm2, %v451_v43, %v453_v49 }
  0x32   : > { %479 = vrot.lane.b32.xlu0 %v442_v45, %s4424_s28  ;;  %1247 = vrot.lane.b32.xlu1 %v1210_v48, %s4424_s28  ;;  %v1314_v45 = vsel %vm528_vm1, %v1311_v27, %v1313_v40  ;;  %v452_v48 = vsel %vm431_vm2, %v449_v31, %v451_v43  ;;  %v4750_v31 = vld [vmem:[%s4555_s9 + $0x58] sm:$0xff] }
  0x36   : > { %576 = vrot.lane.b32.xlu0 %v539_v50, %s4423_s27  ;;  %1343 = vrot.lane.b32.xlu1 %v1306_v53, %s4423_s27  ;;  %v4705_v50 = vld [vmem:[%s4515_s14 + $0x60] sm:$0xff]  ;;  %v550_v53 = vrot.slane %v4694_v44, 2 }
  0x37   : > { %v552_v59 = vrot.slane %v4705_v50, 2 }
  0x39   : > { %v553_v0 = vsel %vm528_vm1, %v550_v53, %v552_v59 }
  0x3a   : > { %481 = vrot.lane.b32.xlu0 %v444_v55, %s4424_s28  ;;  %1249 = vrot.lane.b32.xlu1 %v1212_v58, %s4424_s28  ;;  %v455_v55 = vrot.slane %v4705_v50, 1  ;;  %v551_v58 = vsel %vm528_vm1, %v548_v46, %v550_v53 }
  0x3c   : > { %v458_v3 = vsel %vm431_vm2, %v455_v55, %v457_v61 }
  0x3e   : > { %578 = vrot.lane.b32.xlu0 %v541_v60, %s4423_s27  ;;  %1345 = vrot.lane.b32.xlu1 %v1308_v63, %s4423_s27  ;;  %v456_v60 = vsel %vm431_vm2, %v453_v49, %v455_v55  ;;  %v4723_v63 = vld [vmem:[%s4515_s14 + $0x70] sm:$0xff]  ;;  %v4770_v49 = vld [vmem:[%s4555_s9 + $0x60] sm:$0xff] }
  0x3f   : > { %v556_v15 = vrot.slane %v4723_v63, 2  ;;  %v1221_v53 = vrot.slane %v4770_v49, 1  ;;  %v4783_v55 = vld [vmem:[%s4515_s14] sm:$0xff] }
  0x42   : > { %483 = vrot.lane.b32.xlu0 %v446_v2, %s4424_s28  ;;  %1251 = vrot.lane.b32.xlu1 %v1214_v6, %s4424_s28  ;;  %v554_v2 = vrot.slane %v4714_v56, 2  ;;  %v459_v6 = vrot.slane %v4723_v63, 1 }
  0x44   : > { %v557_v23 = vsel %vm528_vm1, %v554_v2, %v556_v15  ;;  %v462_v27 = vsel %vm431_vm2, %v459_v6, %v461_v18 }
  0x46   : > { %580 = vrot.lane.b32.xlu0 %v543_v13, %s4423_s27  ;;  %1347 = vrot.lane.b32.xlu1 %v1310_v17, %s4423_s27  ;;  %v555_v13 = vsel %vm528_vm1, %v552_v59, %v554_v2  ;;  %v460_v17 = vsel %vm431_vm2, %v457_v61, %v459_v6  ;;  %v4796_v61 = vld [vmem:[%s4555_s9 + $0x68] sm:$0xff] }
  0x47   : > { %v1223_v6 = vrot.slane %v4796_v61, 1 }
  0x4a   : > { %485 = vrot.lane.b32.xlu0 %v448_v19, %s4424_s28  ;;  %1253 = vrot.lane.b32.xlu1 %v1216_v26, %s4424_s28  ;;  %v4741_v19 = vld [vmem:[%s4515_s14 + $0x80] sm:$0xff]  ;;  %v558_v26 = vrot.slane %v4732_v7, 2 }
  0x4e   : > { %582 = vrot.lane.b32.xlu0 %v545_v30, %s4423_s27  ;;  %1349 = vrot.lane.b32.xlu1 %v1312_v33, %s4423_s27  ;;  %v463_v30 = vrot.slane %v4741_v19, 1  ;;  %v559_v33 = vsel %vm528_vm1, %v556_v15, %v558_v26  ;;  %v529_v15 = vrot.slane %v4783_v55, 2 }
  0x50   : > { %v464_v36 = vsel %vm431_vm2, %v461_v18, %v463_v30  ;;  %v1224_v18 = vsel %vm431_vm2, %v1221_v53, %v1223_v6 }
  0x52   : > { %487 = vrot.lane.b32.xlu0 %v450_v35, %s4424_s28  ;;  %1255 = vrot.lane.b32.xlu1 %v1218_v39, %s4424_s28  ;;  %v1219_v35 = vrot.slane %v4750_v31, 1  ;;  %v560_v39 = vrot.slane %v4741_v19, 2 }
  0x54   : > { %v1220_v43 = vsel %vm431_vm2, %v1217_v34, %v1219_v35  ;;  %v561_v46 = vsel %vm528_vm1, %v558_v26, %v560_v39  ;;  %v1222_v59 = vsel %vm431_vm2, %v1219_v35, %v1221_v53  ;;  %v365_v53 = vld [vmem:[%s6040_s3 + $0x8] sm:$0xff] }
  0x56   : > { %584 = vrot.lane.b32.xlu0 %v547_v41, %s4423_s27  ;;  %1351 = vrot.lane.b32.xlu1 %v1314_v45, %s4423_s27  ;;  %v4759_v41 = vld [vmem:[%s4515_s14 + $0x88] sm:$0xff]  ;;  %v1315_v45 = vrot.slane %v4750_v31, 2 }
  0x5a   : > { %489 = vrot.lane.b32.xlu0 %v452_v48, %s4424_s28  ;;  %586 = vrot.lane.b32.xlu1 %v549_v51, %s4423_s27  ;;  %v6048_v48 = vrot.slane %v4759_v41, 1  ;;  %v1316_v51 = vsel %vm528_vm1, %v1313_v40, %v1315_v45  ;;  %v1317_v40 = vrot.slane %v4770_v49, 2 }
  0x5c   : > { %v466_v34 = vsel %vm431_vm2, %v463_v30, %v6048_v48  ;;  %v5122_v48 = vld [vmem:[%s4892_s15 + $0x60] sm:$0xff] }
  0x5e   : > { %491 = vrot.lane.b32.xlu0 %v454_v54, %s4424_s28  ;;  %588 = vrot.lane.b32.xlu1 %v551_v58, %s4423_s27  ;;  %v6045_v54 = vrot.slane %v4759_v41, 2  ;;  %v4786_v58 = vld [vmem:[%s4515_s14 + $0x8] sm:$0xff] }
  0x5f   : > { %v433_v2 = vrot.slane %v4786_v58, 1 }
  0x61   : > { %v436_v35 = vsel %vm431_vm2, %v433_v2, %v435_v14  ;;  %v4835_v14 = vld [vmem:[%s4555_s9 + $0x80] sm:$0xff] }
  0x62   : > { %493 = vrot.lane.b32.xlu0 %v456_v60, %s4424_s28  ;;  %590 = vrot.lane.b32.xlu1 %v553_v0, %s4423_s27  ;;  %v563_v60 = vsel %vm528_vm1, %v560_v39, %v6045_v54  ;;  %v432_v0 = vrot.slane %v4783_v55, 1  ;;  %v5086_v54 = vld [vmem:[%s4892_s15 + $0x50] sm:$0xff] }
  0x66   : > { %495 = vrot.lane.b32.xlu0 %v458_v3, %s4424_s28  ;;  %592 = vrot.lane.b32.xlu1 %v555_v13, %s4423_s27  ;;  %v1318_v3 = vsel %vm528_vm1, %v1315_v45, %v1317_v40  ;;  %v434_v13 = vsel %vm431_vm2, %v432_v0, %v433_v2  ;;  %v4850_v2 = vld [vmem:[%s4555_s9 + $0x88] sm:$0xff] }
  0x6a   : > { %497 = vrot.lane.b32.xlu0 %v460_v17, %s4424_s28  ;;  %594 = vrot.lane.b32.xlu1 %v557_v23, %s4423_s27  ;;  %v530_v17 = vrot.slane %v4786_v58, 2  ;;  %v1319_v23 = vrot.slane %v4796_v61, 2 }
  0x6c   : > { %v531_v26 = vsel %vm528_vm1, %v529_v15, %v530_v17  ;;  %v1320_v30 = vsel %vm528_vm1, %v1317_v40, %v1319_v23  ;;  %v533_v45 = vsel %vm528_vm1, %v530_v17, %v532_v12  ;;  %v1229_v40 = vrot.slane %v4835_v14, 1 }
  0x6d   : > { %v1325_v17 = vrot.slane %v4835_v14, 2 }
  0x6e   : > { %499 = vrot.lane.b32.xlu0 %v462_v27, %s4424_s28  ;;  %596 = vrot.lane.b32.xlu1 %v559_v33, %s4423_s27  ;;  %v4813_v27 = vld [vmem:[%s4555_s9 + $0x70] sm:$0xff] }
  0x6f   : > { %v1225_v33 = vrot.slane %v4813_v27, 1 }
  0x71   : > { %v1226_v39 = vsel %vm431_vm2, %v1223_v6, %v1225_v33 }
  0x72   : > { %501 = vrot.lane.b32.xlu0 %v464_v36, %s4424_s28  ;;  %1257 = vrot.lane.b32.xlu1 %v1220_v43, %s4424_s28  ;;  %v4824_v36 = vld [vmem:[%s4555_s9 + $0x78] sm:$0xff]  ;;  %v1321_v43 = vrot.slane %v4813_v27, 2 }
  0x73   : > { %v1323_v12 = vrot.slane %v4824_v36, 2 }
  0x76   : > { %598 = vrot.lane.b32.xlu0 %v561_v46, %s4423_s27  ;;  %1353 = vrot.lane.b32.xlu1 %v1316_v51, %s4423_s27  ;;  %v1227_v46 = vrot.slane %v4824_v36, 1  ;;  %v364_v51 = vld [vmem:[%s6040_s3] sm:$0xff] }
  0x7a   : > { %503 = vrot.lane.b32.xlu0 %v466_v34, %s4424_s28  ;;  %1259 = vrot.lane.b32.xlu1 %v1222_v59, %s4424_s28  ;;  %v1322_v34 = vsel %vm528_vm1, %v1319_v23, %v1321_v43  ;;  %v1228_v59 = vsel %vm431_vm2, %v1225_v33, %v1227_v46  ;;  %v1231_v23 = vrot.slane %v4850_v2, 1  ;;  %v1326_v33 = vsel %vm528_vm1, %v1323_v12, %v1325_v17 }
  0x7e   : > { %600 = vrot.lane.b32.xlu0 %v563_v60, %s4423_s27  ;;  %1355 = vrot.lane.b32.xlu1 %v1318_v3, %s4423_s27  ;;  %v4075_v3 = vpack.c.bf16 %v365_v53, %v364_v51  ;;  %v379_v51 = vld [vmem:[%s6040_s3 + $0x78] sm:$0xff]  ;;  %v380_v53 = vld [vmem:[%s6040_s3 + $0x80] sm:$0xff] }
  0x82   : > { %471 = vrot.lane.b32.xlu0 %v434_v13, %s4424_s28  ;;  %1261 = vrot.lane.b32.xlu1 %v1224_v18, %s4424_s28  ;;  %v1324_v13 = vsel %vm528_vm1, %v1321_v43, %v1323_v12  ;;  %v1230_v18 = vsel %vm431_vm2, %v1227_v46, %v1229_v40  ;;  %v1232_v43 = vsel %vm431_vm2, %v1229_v40, %v1231_v23 }
  0x86   : > { %568 = vrot.lane.b32.xlu0 %v531_v26, %s4423_s27  ;;  %1357 = vrot.lane.b32.xlu1 %v1320_v30, %s4423_s27  ;;  %v4867_v30 = vld [vmem:[%s4555_s9 + $0x90] sm:$0xff] }
  0x8a   : > { %473 = vrot.lane.b32.xlu0 %v436_v35, %s4424_s28  ;;  %1263 = vrot.lane.b32.xlu1 %v1226_v39, %s4424_s28  ;;  %v1327_v35 = vrot.slane %v4850_v2, 2 }
  0x8c   : > { %v1328_v12 = vsel %vm528_vm1, %v1325_v17, %v1327_v35 }
  0x8e   : > { %570 = vrot.lane.b32.xlu0 %v533_v45, %s4423_s27  ;;  %1359 = vrot.lane.b32.xlu1 %v1322_v34, %s4423_s27  ;;  %v1233_v45 = vrot.slane %v4867_v30, 1  ;;  %v1177_v34 = vld [vmem:[%s4555_s9 + $0x98] sm:$0xff] }
  0x90   : > { %v573_v60 = vpop.permute.xlu0 %572  ;;  %v476_v0 = vpop.permute.xlu1 %475 }
  0x91   : > { %v628_v6 = vsel %vm625_vm3, %v4525_v8, %v476_v0  ;;  %v366_v8 = vld [vmem:[%s6040_s3 + $0x10] sm:$0xff]  ;;  %v4087_v0 = vpack.c.bf16 %v380_v53, %v379_v51 }
  0x92   : > { %1265 = vrot.lane.b32.xlu0 %v1228_v59, %s4424_s28  ;;  %v4858_v15 = vsel %vm645_vm4, %v628_v6, %v573_v60  ;;  %1361 = vrot.lane.b32.xlu1 %v1324_v13, %s4423_s27  ;;  %v1329_v59 = vrot.slane %v4867_v30, 2  ;;  %v1234_v60 = vsel %vm431_vm2, %v1231_v23, %v1233_v45  ;;  %v1235_v13 = vrot.slane %v1177_v34, 1 }
  0x93   : > { %3619 = vmatmul.mubr.msk.f32.vlgmr.msra.gmra.mrb[0].mxu1 %vm665_vm5, %v4858_v15  ;;  %v1331_v23 = vrot.slane %v1177_v34, 2 }
  0x94   : > { %v478_v26 = vpop.permute.xlu0 %477  ;;  %3621 = vmatprep.mubr.msk.f32.mxu1 %vm4421_vm0, %v6052_v4  ;;  %4076 = vmatpush3.bf16.msra.mxu1 %v4075_v3  ;;  %v1244_v39 = vpop.permute.xlu1 %1243  ;;  %v1330_v17 = vsel %vm528_vm1, %v1327_v35, %v1329_v59 }
  0x95   : > { %3667 = vmatprep.subr.mxu1 %v6052_v4  ;;  %v629_v51 = vsel %vm625_vm3, %v4528_v9, %v478_v26  ;;  %v1393_v53 = vsel %vm625_vm3, %v4558_v20, %v1244_v39  ;;  %v381_v9 = vld [vmem:[%s6040_s3 + $0x88] sm:$0xff]  ;;  %v1332_v20 = vsel %vm528_vm1, %v1329_v59, %v1331_v23  ;;  %v4959_v23 = vld [vmem:[%s4892_s15 + $0x18] sm:$0xff] }
  0x96   : > { %1267 = vrot.lane.b32.xlu0 %v1230_v18, %s4424_s28  ;;  %1363 = vrot.lane.b32.xlu1 %v1326_v33, %s4423_s27  ;;  %v4902_v18 = vld [vmem:[%s4892_s15] sm:$0xff]  ;;  %v4909_v33 = vld [vmem:[%s4892_s15 + $0x8] sm:$0xff] }
  0x97   : > { %v2086_v26 = vrot.slane %v4902_v18, 2  ;;  %v2087_v39 = vrot.slane %v4909_v33, 2 }
  0x98   : > { %v1242_v46 = vpop.permute.xlu0 %1241  ;;  %3668 = vmatpush3.msra.mxu1 %v366_v8  ;;  %v1340_v40 = vpop.permute.xlu1 %1339 }
  0x99   : > { %4077 = vmatprep.subr.bf16.mxu1 %v6046_v1  ;;  %v1392_v3 = vsel %vm625_vm3, %v4564_v22, %v1242_v46  ;;  %v1990_v46 = vrot.slane %v4902_v18, 1  ;;  %v4926_v35 = vsel %vm645_vm4, %v1393_v53, %v1340_v40 }
  0x9a   : > { %1269 = vrot.lane.b32.xlu0 %v1232_v43, %s4424_s28  ;;  %1365 = vrot.lane.b32.xlu1 %v1328_v12, %s4423_s27  ;;  %6071 = vst [vmem:[#allocation4_spill] sm:$0xff] %v4926_v35 }
  0x9c   : > { %v1338_v6 = vpop.permute.xlu0 %1337  ;;  %v1246_v43 = vpop.permute.xlu1 %1245 }
  0x9d   : > { %v4906_v8 = vsel %vm645_vm4, %v1392_v3, %v1338_v6  ;;  %v1991_v3 = vrot.slane %v4909_v33, 1  ;;  %v1394_v40 = vsel %vm625_vm3, %v4561_v21, %v1246_v43  ;;  %v2088_v21 = vsel %vm528_vm1, %v2086_v26, %v2087_v39 }
  0x9e   : > { %6070 = vst [vmem:[#allocation3_spill] sm:$0xff] %v4906_v8  ;;  %3823 = vmatmul.mubr.msk.f32.vlgmr.msra.gmra.mrb[0].mxu0 %vm665_vm5, %v4906_v8  ;;  %1271 = vrot.lane.b32.xlu0 %v1234_v60, %s4424_s28  ;;  %v1236_v60 = vsel %vm431_vm2, %v1233_v45, %v1235_v13 }
  0x9f   : > { %3825 = vmatprep.mubr.msk.f32.mxu0 %vm4421_vm0, %v6052_v4  ;;  %4088 = vmatpush3.bf16.msra.mxu0 %v4087_v0  ;;  %v4933_v0 = vld [vmem:[%s4892_s15 + $0x10] sm:$0xff]  ;;  %v1992_v13 = vsel %vm431_vm2, %v1990_v46, %v1991_v3 }
  0xa0   : > { %v575_v12 = vpop.permute.xlu0 %574  ;;  %3871 = vmatprep.subr.mxu0 %v6052_v4  ;;  %1367 = vrot.lane.b32.xlu1 %v1330_v17, %s4423_s27  ;;  %v1342_v45 = vpop.permute.xlu1 %1341  ;;  %v1993_v59 = vrot.slane %v4933_v0, 1  ;;  %v2089_v43 = vrot.slane %v4933_v0, 2 }
  0xa1   : > { %v4930_v34 = vsel %vm645_vm4, %v629_v51, %v575_v12  ;;  %v4955_v17 = vsel %vm645_vm4, %v1394_v40, %v1342_v45 }
  0xa2   : > { %3622 = vmatmul.mubr.msk.f32.gmra.mrb[2].mxu1 %vm665_vm5, %v4930_v34  ;;  %3826 = vmatmul.mubr.msk.f32.gmra.mrb[2].mxu0 %vm665_vm5, %v4926_v35  ;;  %6072 = vst [vmem:[#allocation5_spill] sm:$0xff] %v4955_v17  ;;  %v1994_v12 = vsel %vm431_vm2, %v1991_v3, %v1993_v59  ;;  %v2090_v26 = vsel %vm528_vm1, %v2087_v39, %v2089_v43  ;;  %v2013_v35 = vrot.slane %v5122_v48, 1 }
  0xa3   : > { %1273 = vrot.lane.b32.xlu0 %v1236_v60, %s4424_s28  ;;  %3828 = vmatprep.mubr.msk.f32.mxu0 %vm4421_vm0, %v6052_v4  ;;  %v1995_v60 = vrot.slane %v4959_v23, 1 }
  0xa4   : > { %v480_v6 = vpop.permute.xlu0 %479  ;;  %3624 = vmatprep.mubr.msk.f32.mxu1 %vm4421_vm0, %v6052_v4  ;;  %3872 = vmatpush3.msra.mxu0 %v381_v9  ;;  %v1248_v46 = vpop.permute.xlu1 %1247 }
  0xa5   : > { %1369 = vrot.lane.b32.xlu1 %v1332_v20, %s4423_s27  ;;  %4089 = vmatprep.subr.bf16.mxu0 %v6046_v1  ;;  %v630_v51 = vsel %vm625_vm3, %v4531_v10, %v480_v6  ;;  %v4978_v20 = vld [vmem:[%s4892_s15 + $0x20] sm:$0xff]  ;;  %v2091_v10 = vrot.slane %v4959_v23, 2  ;;  %v1395_v3 = vsel %vm625_vm3, %v4574_v29, %v1248_v46  ;;  %v4998_v29 = vld [vmem:[%s4892_s15 + $0x28] sm:$0xff] }
  0xa6   : > { %3829 = vmatmul.mubr.msk.f32.gmra.mrb[4].mxu0 %vm665_vm5, %v4955_v17  ;;  %v1997_v39 = vrot.slane %v4978_v20, 1  ;;  %v2093_v46 = vrot.slane %v4978_v20, 2 }
  0xa7   : > { %2029 = vrot.lane.b32.xlu0 %v1992_v13, %s4424_s28  ;;  %3831 = vmatprep.mubr.msk.f32.mxu0 %vm4421_vm0, %v6052_v4  ;;  %v1996_v13 = vsel %vm431_vm2, %v1993_v59, %v1995_v60 }
  0xa8   : > { %v577_v53 = vpop.permute.xlu0 %576  ;;  %v1344_v45 = vpop.permute.xlu1 %1343 }
  0xa9   : > { %2125 = vrot.lane.b32.xlu1 %v2088_v21, %s4423_s27  ;;  %v4975_v9 = vsel %vm645_vm4, %v630_v51, %v577_v53  ;;  %v4990_v40 = vsel %vm645_vm4, %v1395_v3, %v1344_v45  ;;  %v2092_v21 = vsel %vm528_vm1, %v2089_v43, %v2091_v10  ;;  %v5014_v3 = vld [vmem:[%s4892_s15 + $0x30] sm:$0xff]  ;;  %v2094_v45 = vsel %vm528_vm1, %v2091_v10, %v2093_v46 }
  0xaa   : > { %3625 = vmatmul.mubr.msk.f32.gmra.mrb[4].mxu1 %vm665_vm5, %v4975_v9  ;;  %6073 = vst [vmem:[#allocation6_spill] sm:$0xff] %v4990_v40  ;;  %3832 = vmatmul.mubr.msk.f32.gmra.mrb[6].mxu0 %vm665_vm5, %v4990_v40  ;;  %v2001_v10 = vrot.slane %v5014_v3, 1 }
  0xab   : > { %2031 = vrot.lane.b32.xlu0 %v1994_v12, %s4424_s28  ;;  %3627 = vmatprep.mubr.msk.f32.mxu1 %vm4421_vm0, %v6052_v4  ;;  %v1998_v12 = vsel %vm431_vm2, %v1995_v60, %v1997_v39 }
  0xac   : > { %v482_v6 = vpop.permute.xlu0 %481  ;;  %3834 = vmatprep.mubr.msk.f32.mxu0 %vm4421_vm0, %v6052_v4  ;;  %v1250_v51 = vpop.permute.xlu1 %1249 }
  0xad   : > { %2127 = vrot.lane.b32.xlu1 %v2090_v26, %s4423_s27  ;;  %v631_v59 = vsel %vm625_vm3, %v4592_v37, %v482_v6  ;;  %v1999_v26 = vrot.slane %v4998_v29, 1  ;;  %v2095_v37 = vrot.slane %v4998_v29, 2  ;;  %v1396_v60 = vsel %vm625_vm3, %v4602_v42, %v1250_v51  ;;  %v5034_v42 = vld [vmem:[%s4892_s15 + $0x38] sm:$0xff] }
  0xaf   : > { %2033 = vrot.lane.b32.xlu0 %v1996_v13, %s4424_s28  ;;  %v2096_v51 = vsel %vm528_vm1, %v2093_v46, %v2095_v37 }
  0xb0   : > { %v579_v53 = vpop.permute.xlu0 %578  ;;  %v1346_v6 = vpop.permute.xlu1 %1345 }
  0xb1   : > { %2129 = vrot.lane.b32.xlu1 %v2092_v21, %s4423_s27  ;;  %v5011_v43 = vsel %vm645_vm4, %v631_v59, %v579_v53  ;;  %v5026_v13 = vsel %vm645_vm4, %v1396_v60, %v1346_v6  ;;  %v2000_v59 = vsel %vm431_vm2, %v1997_v39, %v1999_v26  ;;  %v2097_v53 = vrot.slane %v5014_v3, 2 }
  0xb2   : > { %3628 = vmatmul.mubr.msk.f32.gmra.mrb[6].mxu1 %vm665_vm5, %v5011_v43  ;;  %6074 = vst [vmem:[#allocation7_spill] sm:$0xff] %v5026_v13  ;;  %3835 = vmatmul.mubr.msk.f32.gmra.mrb[8].mxu0 %vm665_vm5, %v5026_v13  ;;  %v2002_v6 = vsel %vm431_vm2, %v1999_v26, %v2001_v10 }
  0xb3   : > { %2035 = vrot.lane.b32.xlu0 %v1998_v12, %s4424_s28  ;;  %3630 = vmatprep.mubr.msk.f32.mxu1 %vm4421_vm0, %v6052_v4 }
  0xb4   : > { %v484_v21 = vpop.permute.xlu0 %483  ;;  %3837 = vmatprep.mubr.msk.f32.mxu0 %vm4421_vm0, %v6052_v4  ;;  %v1252_v12 = vpop.permute.xlu1 %1251 }
  0xb5   : > { %2131 = vrot.lane.b32.xlu1 %v2094_v45, %s4423_s27  ;;  %v632_v39 = vsel %vm625_vm3, %v4611_v47, %v484_v21  ;;  %v2003_v45 = vrot.slane %v5034_v42, 1  ;;  %v2099_v47 = vrot.slane %v5034_v42, 2  ;;  %v1397_v26 = vsel %vm625_vm3, %v4620_v52, %v1252_v12  ;;  %v5070_v52 = vld [vmem:[%s4892_s15 + $0x48] sm:$0xff] }
  0xb7   : > { %2037 = vrot.lane.b32.xlu0 %v2000_v59, %s4424_s28  ;;  %v2098_v59 = vsel %vm528_vm1, %v2095_v37, %v2097_v53  ;;  %v2005_v37 = vrot.slane %v5050_v28, 1  ;;  %v2100_v12 = vsel %vm528_vm1, %v2097_v53, %v2099_v47 }
  0xb8   : > { %v581_v60 = vpop.permute.xlu0 %580  ;;  %v1348_v21 = vpop.permute.xlu1 %1347 }
  0xb9   : > { %2133 = vrot.lane.b32.xlu1 %v2096_v51, %s4423_s27  ;;  %v5047_v46 = vsel %vm645_vm4, %v632_v39, %v581_v60  ;;  %v5062_v51 = vsel %vm645_vm4, %v1397_v26, %v1348_v21  ;;  %v2004_v60 = vsel %vm431_vm2, %v2001_v10, %v2003_v45  ;;  %v2006_v25 = vsel %vm431_vm2, %v2003_v45, %v2005_v37 }
  0xba   : > { %3631 = vmatmul.mubr.msk.f32.gmra.mrb[8].mxu1 %vm665_vm5, %v5047_v46  ;;  %6075 = vst [vmem:[#allocation8_spill] sm:$0xff] %v5062_v51  ;;  %3838 = vmatmul.mubr.msk.f32.gmra.mrb[10].mxu0 %vm665_vm5, %v5062_v51 }
  0xbb   : > { %2039 = vrot.lane.b32.xlu0 %v2002_v6, %s4424_s28  ;;  %3633 = vmatprep.mubr.msk.f32.mxu1 %vm4421_vm0, %v6052_v4  ;;  %v2101_v6 = vrot.slane %v5050_v28, 2 }
  0xbc   : > { %v486_v39 = vpop.permute.xlu0 %485  ;;  %3840 = vmatprep.mubr.msk.f32.mxu0 %vm4421_vm0, %v6052_v4  ;;  %v1254_v26 = vpop.permute.xlu1 %1253 }
  0xbd   : > { %2135 = vrot.lane.b32.xlu1 %v2098_v59, %s4423_s27  ;;  %v633_v10 = vsel %vm625_vm3, %v4629_v57, %v486_v39  ;;  %v2007_v59 = vrot.slane %v5070_v52, 1  ;;  %v2103_v57 = vrot.slane %v5070_v52, 2  ;;  %v1398_v45 = vsel %vm625_vm3, %v4638_v62, %v1254_v26  ;;  %v5106_v62 = vld [vmem:[%s4892_s15 + $0x58] sm:$0xff] }
  0xbe   : > { %v2105_v26 = vrot.slane %v5086_v54, 2 }
  0xbf   : > { %2041 = vrot.lane.b32.xlu0 %v2004_v60, %s4424_s28  ;;  %v2102_v60 = vsel %vm528_vm1, %v2099_v47, %v2101_v6  ;;  %v2009_v47 = vrot.slane %v5086_v54, 1 }
  0xc0   : > { %v583_v21 = vpop.permute.xlu0 %582  ;;  %v1350_v39 = vpop.permute.xlu1 %1349 }
  0xc1   : > { %2137 = vrot.lane.b32.xlu1 %v2100_v12, %s4423_s27  ;;  %v5083_v53 = vsel %vm645_vm4, %v633_v10, %v583_v21  ;;  %v5098_v12 = vsel %vm645_vm4, %v1398_v45, %v1350_v39  ;;  %v2008_v21 = vsel %vm431_vm2, %v2005_v37, %v2007_v59  ;;  %v2010_v1 = vsel %vm431_vm2, %v2007_v59, %v2009_v47 }
  0xc2   : > { %3634 = vmatmul.mubr.msk.f32.gmra.mrb[10].mxu1 %vm665_vm5, %v5083_v53  ;;  %6076 = vst [vmem:[#allocation9_spill] sm:$0xff] %v5098_v12  ;;  %3841 = vmatmul.mubr.msk.f32.gmra.mrb[12].mxu0 %vm665_vm5, %v5098_v12 }
  0xc3   : > { %2043 = vrot.lane.b32.xlu0 %v2006_v25, %s4424_s28  ;;  %3636 = vmatprep.mubr.msk.f32.mxu1 %vm4421_vm0, %v6052_v4  ;;  %v2104_v25 = vsel %vm528_vm1, %v2101_v6, %v2103_v57 }
  0xc4   : > { %v488_v10 = vpop.permute.xlu0 %487  ;;  %3843 = vmatprep.mubr.msk.f32.mxu0 %vm4421_vm0, %v6052_v4  ;;  %v1256_v45 = vpop.permute.xlu1 %1255 }
  0xc5   : > { %2139 = vrot.lane.b32.xlu1 %v2102_v60, %s4423_s27  ;;  %v634_v37 = vsel %vm625_vm3, %v4647_v5, %v488_v10  ;;  %v2011_v60 = vrot.slane %v5106_v62, 1  ;;  %v2107_v5 = vrot.slane %v5106_v62, 2  ;;  %v1399_v59 = vsel %vm625_vm3, %v4656_v16, %v1256_v45 }
  0xc7   : > { %2045 = vrot.lane.b32.xlu0 %v2008_v21, %s4424_s28  ;;  %v2106_v21 = vsel %vm528_vm1, %v2103_v57, %v2105_v26  ;;  %v382_v57 = vld [vmem:[%s6040_s3 + $0x90] sm:$0xff]  ;;  %v2108_v45 = vsel %vm528_vm1, %v2105_v26, %v2107_v5 }
  0xc8   : > { %v585_v39 = vpop.permute.xlu0 %584  ;;  %v1352_v10 = vpop.permute.xlu1 %1351 }
  0xc9   : > { %2141 = vrot.lane.b32.xlu1 %v2104_v25, %s4423_s27  ;;  %v5119_v6 = vsel %vm645_vm4, %v634_v37, %v585_v39  ;;  %v5134_v25 = vsel %vm645_vm4, %v1399_v59, %v1352_v10  ;;  %v2012_v39 = vsel %vm431_vm2, %v2009_v47, %v2011_v60  ;;  %v383_v47 = vld [vmem:[%s6040_s3 + $0x98] sm:$0xff] }
  0xca   : > { %3637 = vmatmul.mubr.msk.f32.gmra.mrb[12].mxu1 %vm665_vm5, %v5119_v6  ;;  %6077 = vst [vmem:[#allocation10_spill] sm:$0xff] %v5134_v25  ;;  %3844 = vmatmul.mubr.msk.f32.gmra.mrb[14].mxu0 %vm665_vm5, %v5134_v25  ;;  %v4090_v11 = vpack.c.bf16 %v383_v47, %v382_v57 }
  0xcb   : > { %2047 = vrot.lane.b32.xlu0 %v2010_v1, %s4424_s28  ;;  %3639 = vmatprep.mubr.msk.f32.mxu1 %vm4421_vm0, %v6052_v4  ;;  %v5144_v1 = vld [vmem:[%s4892_s15 + $0x68] sm:$0xff] }
  0xcc   : > { %v490_v37 = vpop.permute.xlu0 %489  ;;  %3873 = vmatprep.mubr.msk.f32.mxu0 %vm4421_vm0, %v6052_v4  ;;  %v587_v59 = vpop.permute.xlu1 %586  ;;  %v2015_v8 = vrot.slane %v5144_v1, 1  ;;  %v5168_v4 = vld [vmem:[%s4892_s15 + $0x70] sm:$0xff] }
  0xcd   : > { %2143 = vrot.lane.b32.xlu1 %v2106_v21, %s4423_s27  ;;  %v635_v16 = vsel %vm625_vm3, %v4665_v24, %v490_v37  ;;  %v2109_v21 = vrot.slane %v5122_v48, 2  ;;  %v2014_v37 = vsel %vm431_vm2, %v2011_v60, %v2013_v35 }
  0xce   : > { %v5158_v24 = vsel %vm645_vm4, %v635_v16, %v587_v59  ;;  %3874 = vmatmul.mubr.msk.f32.vlgmr.msra.gmra.mrb[0].mxu0 %vm665_vm5, %v4955_v17  ;;  %v2111_v16 = vrot.slane %v5144_v1, 2  ;;  %v2017_v59 = vrot.slane %v5168_v4, 1 }
  0xcf   : > { %2049 = vrot.lane.b32.xlu0 %v2012_v39, %s4424_s28  ;;  %3640 = vmatmul.mubr.msk.f32.gmra.mrb[14].mxu1 %vm665_vm5, %v5158_v24  ;;  %v6078_v39 = vmov 0.0   ;;  %v2110_v60 = vsel %vm528_vm1, %v2107_v5, %v2109_v21 }
  0xd0   : > { %v492_v10 = vpop.permute.xlu0 %491  ;;  %3876 = vmatprep.mubr.msk.f32.mxu0 %vm4421_vm0, %v6078_v39  ;;  %v589_v57 = vpop.permute.xlu1 %588  ;;  %3642 = vmatprep.mubr.msk.f32.mxu1 %vm4421_vm0, %v6078_v39 }
  0xd1   : > { %2145 = vrot.lane.b32.xlu1 %v2108_v45, %s4423_s27  ;;  %v636_v26 = vsel %vm625_vm3, %v4683_v38, %v492_v10  ;;  %v2016_v45 = vsel %vm431_vm2, %v2013_v35, %v2015_v8  ;;  %4091 = vmatpush3.bf16.msra.mxu0 %v4090_v11  ;;  %v5190_v10 = vld [vmem:[%s4892_s15 + $0x78] sm:$0xff]  ;;  %v2112_v35 = vsel %vm528_vm1, %v2109_v21, %v2111_v16  ;;  %v2113_v11 = vrot.slane %v5168_v4, 2 }
  0xd2   : > { %v5180_v38 = vsel %vm645_vm4, %v636_v26, %v589_v57  ;;  %3877 = vmatmul.mubr.msk.f32.gmra.mrb[2].mxu0 %vm665_vm5, %v4990_v40  ;;  %v6055_v57 = vrot.slane %v5190_v10, 1  ;;  %3922 = vmatprep.subr.mxu0 %v6078_v39 }
  0xd3   : > { %2051 = vrot.lane.b32.xlu0 %v2014_v37, %s4424_s28  ;;  %3643 = vmatmul.mubr.msk.f32.gmra.mrb[16].mxu1 %vm665_vm5, %v5180_v38 }
  0xd4   : > { %v494_v47 = vpop.permute.xlu0 %493  ;;  %3879 = vmatprep.mubr.msk.f32.mxu0 %vm4421_vm0, %v6078_v39  ;;  %v591_v37 = vpop.permute.xlu1 %590  ;;  %3645 = vmatprep.mubr.msk.f32.mxu1 %vm4421_vm0, %v6078_v39 }
  0xd5   : > { %2147 = vrot.lane.b32.xlu1 %v2110_v60, %s4423_s27  ;;  %v637_v5 = vsel %vm625_vm3, %v4694_v44, %v494_v47  ;;  %v2018_v60 = vsel %vm431_vm2, %v2015_v8, %v2017_v59  ;;  %v5213_v47 = vld [vmem:[%s4515_s14 + $0x90] sm:$0xff]  ;;  %v2114_v8 = vsel %vm528_vm1, %v2111_v16, %v2113_v11 }
  0xd6   : > { %v5202_v44 = vsel %vm645_vm4, %v637_v5, %v591_v37  ;;  %3880 = vmatmul.mubr.msk.f32.gmra.mrb[4].mxu0 %vm665_vm5, %v5026_v13  ;;  %v6057_v5 = vrot.slane %v5190_v10, 2  ;;  %v467_v13 = vrot.slane %v5213_v47, 1 }
  0xd7   : > { %2053 = vrot.lane.b32.xlu0 %v2016_v45, %s4424_s28  ;;  %v384_v45 = vld [vmem:[%s6040_s3 + $0xa0] sm:$0xff]  ;;  %3646 = vmatmul.mubr.msk.f32.gmra.mrb[18].mxu1 %vm665_vm5, %v5202_v44 }
  0xd8   : > { %v496_v26 = vpop.permute.xlu0 %495  ;;  %3882 = vmatprep.mubr.msk.f32.mxu0 %vm4421_vm0, %v6078_v39  ;;  %3648 = vmatprep.mubr.msk.f32.mxu1 %vm4421_vm0, %v6078_v39 }
  0xd9   : > { %2149 = vrot.lane.b32.xlu1 %v2112_v35, %s4423_s27  ;;  %v638_v21 = vsel %vm625_vm3, %v4705_v50, %v496_v26  ;;  %v593_v35 = vpop.permute.xlu1 %592  ;;  %v2020_v26 = vsel %vm431_vm2, %v2017_v59, %v6055_v57  ;;  %3923 = vmatpush3.msra.mxu0 %v384_v45  ;;  %v2116_v59 = vsel %vm528_vm1, %v2113_v11, %v6057_v5 }
  0xda   : > { %v5228_v50 = vsel %vm645_vm4, %v638_v21, %v593_v35  ;;  %3883 = vmatmul.mubr.msk.f32.gmra.mrb[6].mxu0 %vm665_vm5, %v5062_v51  ;;  %v564_v21 = vrot.slane %v5213_v47, 2  ;;  %v6079_v35 = vrot.slane %v4759_v41, 1  ;;  %v6080_v51 = vmov 0.0|0.0  }
  0xdb   : > { %2055 = vrot.lane.b32.xlu0 %v2018_v60, %s4424_s28  ;;  %v410_v60 = vld [vmem:[%s4515_s14 + $0x98] sm:$0xff]  ;;  %3649 = vmatmul.mubr.msk.f32.gmra.mrb[20].mxu1 %vm665_vm5, %v5228_v50 }
  0xdc   : > { %v498_v37 = vpop.permute.xlu0 %497  ;;  %3885 = vmatprep.mubr.msk.f32.mxu0 %vm4421_vm0, %v6078_v39  ;;  %3651 = vmatprep.mubr.msk.f32.mxu1 %vm4421_vm0, %v6078_v39  ;;  %v469_v57 = vrot.slane %v410_v60, 1  ;;  %v566_v5 = vrot.slane %v410_v60, 2 }
  0xdd   : > { %2151 = vrot.lane.b32.xlu1 %v2114_v8, %s4423_s27  ;;  %v639_v16 = vsel %vm625_vm3, %v4714_v56, %v498_v37  ;;  %v595_v45 = vpop.permute.xlu1 %594  ;;  %v468_v37 = vsel %vm431_vm2, %v6079_v35, %v467_v13  ;;  %4092 = vmatprep.subr.bf16.mxu0 %v6080_v51 }
  0xde   : > { %v5252_v56 = vsel %vm645_vm4, %v639_v16, %v595_v45  ;;  %3886 = vmatmul.mubr.msk.f32.gmra.mrb[8].mxu0 %vm665_vm5, %v5098_v12  ;;  %v5267_v16 = vld [vmem:[%s4555_s9 + $0x8] sm:$0xff]  ;;  %v6081_v45 = vrot.slane %v4759_v41, 2  ;;  %v567_v41 = vsel %vm528_vm1, %v564_v21, %v566_v5  ;;  %v5306_v5 = vld [vmem:[%s4892_s15 + $0x80] sm:$0xff] }
  0xdf   : > { %2057 = vrot.lane.b32.xlu0 %v2020_v26, %s4424_s28  ;;  %v5264_v26 = vld [vmem:[%s4555_s9] sm:$0xff]  ;;  %3652 = vmatmul.mubr.msk.f32.gmra.mrb[22].mxu1 %vm665_vm5, %v5252_v56  ;;  %v1199_v17 = vrot.slane %v5267_v16, 1  ;;  %6082 = vst [vmem:[#allocation11_spill] sm:$0xff] %v5306_v5  ;;  %s3312_s9 = sshll.u32 %s361_s7, 3 }
  0xe0   : > { %v500_v8 = vpop.permute.xlu0 %499  ;;  %3888 = vmatprep.mubr.msk.f32.mxu0 %vm4421_vm0, %v6078_v39  ;;  %v565_v35 = vsel %vm528_vm1, %v6081_v45, %v564_v21  ;;  %3654 = vmatprep.mubr.msk.f32.mxu1 %vm4421_vm0, %v6078_v39  ;;  %v1198_v40 = vrot.slane %v5264_v26, 1  ;;  %s363_s11 = scalar_lea.vmem %s6042_s5, %s3312_s9 }
  0xe1   : > { %2153 = vrot.lane.b32.xlu1 %v2116_v59, %s4423_s27  ;;  %v640_v11 = vsel %vm625_vm3, %v4723_v63, %v500_v8  ;;  %v597_v12 = vpop.permute.xlu1 %596  ;;  %v470_v8 = vsel %vm431_vm2, %v467_v13, %v469_v57  ;;  %v1294_v13 = vrot.slane %v5264_v26, 2 }
  0xe2   : > { %v5280_v63 = vsel %vm645_vm4, %v640_v11, %v597_v12  ;;  %3889 = vmatmul.mubr.msk.f32.gmra.mrb[10].mxu0 %vm665_vm5, %v5134_v25  ;;  %v1295_v12 = vrot.slane %v5267_v16, 2  ;;  %v1200_v11 = vsel %vm431_vm2, %v1198_v40, %v1199_v17 }
  0xe3   : > { %505 = vrot.lane.b32.xlu0 %v468_v37, %s4424_s28  ;;  %3655 = vmatmul.mubr.msk.f32.gmra.mrb[24].mxu1 %vm665_vm5, %v5280_v63 }
  0xe4   : > { %v502_v59 = vpop.permute.xlu0 %501  ;;  %3891 = vmatprep.mubr.msk.f32.mxu0 %vm4421_vm0, %v6078_v39  ;;  %3657 = vmatprep.mubr.msk.f32.mxu1 %vm4421_vm0, %v6078_v39  ;;  %v1296_v21 = vsel %vm528_vm1, %v1294_v13, %v1295_v12  ;;  %v6086_v13 = vrot.slane %v4564_v22, 2 }
  0xe5   : > { %602 = vrot.lane.b32.xlu1 %v565_v35, %s4423_s27  ;;  %v1258_v57 = vpop.permute.xlu1 %1257  ;;  %v641_v60 = vsel %vm625_vm3, %v4732_v7, %v502_v59 }
  0xe6   : > { %v1400_v35 = vsel %vm625_vm3, %v4674_v32, %v1258_v57  ;;  %v5327_v32 = vld [vmem:[%s4892_s15 + $0x88] sm:$0xff]  ;;  %v1298_v57 = vsel %vm528_vm1, %v1295_v12, %v6086_v13 }
  0xe7   : > { %507 = vrot.lane.b32.xlu0 %v470_v8, %s4424_s28  ;;  %v6084_v8 = vrot.slane %v4564_v22, 1  ;;  %6085 = vst [vmem:[#allocation13_spill] sm:$0xff] %v5327_v32  ;;  %v6088_v22 = vrot.slane %v5190_v10, 2 }
  0xe8   : > { %v599_v37 = vpop.permute.xlu0 %598 }
  0xe9   : > { %v5302_v45 = vsel %vm645_vm4, %v641_v60, %v599_v37  ;;  %604 = vrot.lane.b32.xlu1 %v567_v41, %s4423_s27  ;;  %v1354_v7 = vpop.permute.xlu1 %1353  ;;  %v1202_v41 = vsel %vm431_vm2, %v1199_v17, %v6084_v8  ;;  %v2021_v60 = vrot.slane %v5306_v5, 1  ;;  %v2117_v37 = vrot.slane %v5306_v5, 2 }
  0xea   : > { %3658 = vmatmul.mubr.msk.f32.gmra.mrb[26].mxu1 %vm665_vm5, %v5302_v45  ;;  %v5317_v40 = vsel %vm645_vm4, %v1400_v35, %v1354_v7  ;;  %v2023_v8 = vrot.slane %v5327_v32, 1 }
  0xeb   : > { %3660 = vmatprep.mubr.msk.f32.mxu1 %vm4421_vm0, %v6078_v39  ;;  %1237 = vrot.lane.b32.xlu0 %v1200_v11, %s4424_s28  ;;  %6083 = vst [vmem:[#allocation12_spill] sm:$0xff] %v5317_v40  ;;  %v2118_v12 = vsel %vm528_vm1, %v6088_v22, %v2117_v37 }
  0xec   : > { %v504_v59 = vpop.permute.xlu0 %503  ;;  %3892 = vmatmul.mubr.msk.f32.gmra.mrb[12].mxu0 %vm665_vm5, %v5317_v40 }
  0xed   : > { %1333 = vrot.lane.b32.xlu1 %v1296_v21, %s4423_s27  ;;  %3894 = vmatprep.mubr.msk.f32.mxu0 %vm4421_vm0, %v6078_v39  ;;  %v1260_v17 = vpop.permute.xlu1 %1259  ;;  %v642_v11 = vsel %vm625_vm3, %v4741_v19, %v504_v59  ;;  %v6087_v21 = vrot.slane %v5190_v10, 1  ;;  %v2119_v19 = vrot.slane %v5327_v32, 2  ;;  %v5353_v59 = vld [vmem:[%s4892_s15 + $0x90] sm:$0xff] }
  0xee   : > { %6089 = vst [vmem:[#allocation14_spill] sm:$0xff] %v5353_v59  ;;  %v2121_v22 = vrot.slane %v5353_v59, 2 }
  0xef   : > { %1239 = vrot.lane.b32.xlu0 %v1202_v41, %s4424_s28  ;;  %v2022_v7 = vsel %vm431_vm2, %v6087_v21, %v2021_v60  ;;  %v1401_v41 = vsel %vm625_vm3, %v4750_v31, %v1260_v17  ;;  %v371_v21 = vld [vmem:[%s6040_s3 + $0x38] sm:$0xff]  ;;  %v2024_v31 = vsel %vm431_vm2, %v2021_v60, %v2023_v8  ;;  %v2025_v17 = vrot.slane %v5353_v59, 1 }
  0xf0   : > { %v601_v35 = vpop.permute.xlu0 %600 }
  0xf1   : > { %v5343_v40 = vsel %vm645_vm4, %v642_v11, %v601_v35  ;;  %1335 = vrot.lane.b32.xlu1 %v1298_v57, %s4423_s27  ;;  %v1356_v13 = vpop.permute.xlu1 %1355  ;;  %v370_v35 = vld [vmem:[%s6040_s3 + $0x30] sm:$0xff]  ;;  %v2026_v25 = vsel %vm431_vm2, %v2023_v8, %v2025_v17  ;;  %v372_v8 = vld [vmem:[%s6040_s3 + $0x40] sm:$0xff] }
  0xf2   : > { %3661 = vmatmul.mubr.msk.f32.gmra.mrb[28].mxu1 %vm665_vm5, %v5343_v40  ;;  %v5361_v57 = vsel %vm645_vm4, %v1401_v41, %v1356_v13  ;;  %v1969_v41 = vld [vmem:[%s4892_s15 + $0x98] sm:$0xff]  ;;  %v4078_v32 = vpack.c.bf16 %v371_v21, %v370_v35  ;;  %s4332_s15 = smul.u32 120, %s6116_s19 }
  0xf3   : > { %3669 = vmatprep.mubr.msk.f32.mxu1 %vm4421_vm0, %v6078_v39  ;;  %2059 = vrot.lane.b32.xlu0 %v2022_v7, %s4424_s28  ;;  %6090 = vst [vmem:[#allocation15_spill] sm:$0xff] %v5361_v57  ;;  %v2120_v7 = vsel %vm528_vm1, %v2117_v37, %v2119_v19  ;;  %v2027_v5 = vrot.slane %v1969_v41, 1  ;;  %v2122_v37 = vsel %vm528_vm1, %v2119_v19, %v2121_v22  ;;  %v2123_v59 = vrot.slane %v1969_v41, 2 }
  0xf4   : > { %v472_v11 = vpop.permute.xlu0 %471  ;;  %3895 = vmatmul.mubr.msk.f32.gmra.mrb[14].mxu0 %vm665_vm5, %v5361_v57  ;;  %s353_s17 = sadd.s32 %s4332_s15, %s4331_s16 }
  0xf5   : > { %2155 = vrot.lane.b32.xlu1 %v2118_v12, %s4423_s27  ;;  %3897 = vmatprep.mubr.msk.f32.mxu0 %vm4421_vm0, %v6078_v39  ;;  %v1262_v13 = vpop.permute.xlu1 %1261  ;;  %v626_v60 = vsel %vm625_vm3, %v4783_v55, %v472_v11  ;;  %s3310_s25 = sshll.u32 %s353_s17, 3 }
  0xf6   : > { %v1402_v35 = vsel %vm625_vm3, %v4770_v49, %v1262_v13  ;;  %v2028_v49 = vsel %vm431_vm2, %v2025_v17, %v2027_v5  ;;  %s5968_s6 = scalar_lea.vmem %s6041_s4, %s3310_s25 }
  0xf7   : > { %2061 = vrot.lane.b32.xlu0 %v2024_v31, %s4424_s28 }
  0xf8   : > { %v569_v57 = vpop.permute.xlu0 %568 }
  0xf9   : > { %v646_v12 = vsel %vm645_vm4, %v626_v60, %v569_v57  ;;  %2157 = vrot.lane.b32.xlu1 %v2120_v7, %s4423_s27  ;;  %v1358_v21 = vpop.permute.xlu1 %1357 }
  0xfa   : > { %3670 = vmatmul.mubr.msk.f32.vlgmr.msra.gmra.mrb[0].mxu1 %vm665_vm5, %v646_v12  ;;  %v5392_v55 = vsel %vm645_vm4, %v1402_v35, %v1358_v21 }
  0xfb   : > { %4079 = vmatpush3.bf16.msra.mxu1 %v4078_v32  ;;  %3672 = vmatprep.mubr.msk.f32.mxu1 %vm4421_vm0, %v6078_v39  ;;  %v2124_v32 = vsel %vm528_vm1, %v2121_v22, %v2123_v59 }
  0xfc   : > { %v474_v57 = vpop.permute.xlu0 %473  ;;  %3718 = vmatprep.subr.mxu1 %v6078_v39  ;;  %2063 = vrot.lane.b32.xlu0 %v2026_v25, %s4424_s28 }
  0xfd   : > { %3898 = vmatmul.mubr.msk.f32.gmra.mrb[16].mxu0 %vm665_vm5, %v5392_v55  ;;  %2159 = vrot.lane.b32.xlu1 %v2122_v37, %s4423_s27  ;;  %v1264_v19 = vpop.permute.xlu1 %1263  ;;  %v627_v11 = vsel %vm625_vm3, %v4786_v58, %v474_v57 }
  0xfe   : > { %3900 = vmatprep.mubr.msk.f32.mxu0 %vm4421_vm0, %v6078_v39  ;;  %v1403_v5 = vsel %vm625_vm3, %v4796_v61, %v1264_v19 }
  0xff   : > { %3719 = vmatpush3.msra.mxu1 %v372_v8 }
 0x100   : > { %v571_v31 = vpop.permute.xlu0 %570  ;;  %4080 = vmatprep.subr.bf16.mxu1 %v6080_v51  ;;  %2065 = vrot.lane.b32.xlu0 %v2028_v49, %s4424_s28  ;;  %v385_v49 = vld [vmem:[%s6040_s3 + $0xa8] sm:$0xff] }
 0x101   : > { %v647_v25 = vsel %vm645_vm4, %v627_v11, %v571_v31  ;;  %2161 = vrot.lane.b32.xlu1 %v2124_v32, %s4423_s27  ;;  %v1360_v59 = vpop.permute.xlu1 %1359  ;;  %v386_v32 = vld [vmem:[%s6040_s3 + $0xb0] sm:$0xff] }
 0x102   : > { %3673 = vmatmul.mubr.msk.f32.gmra.mrb[2].mxu1 %vm665_vm5, %v647_v25  ;;  %v5418_v58 = vsel %vm645_vm4, %v1403_v5, %v1360_v59  ;;  %v4093_v31 = vpack.c.bf16 %v386_v32, %v385_v49 }
 0x103   : > { %3675 = vmatprep.mubr.msk.f32.mxu1 %vm4421_vm0, %v6078_v39  ;;  %3901 = vmatmul.mubr.msk.f32.gmra.mrb[18].mxu0 %vm665_vm5, %v5418_v58 }
 0x104   : > { %v1266_v17 = vpop.permute.xlu0 %1265  ;;  %3903 = vmatprep.mubr.msk.f32.mxu0 %vm4421_vm0, %v6078_v39 }
 0x105   : > { %v1404_v7 = vsel %vm625_vm3, %v4813_v27, %v1266_v17  ;;  %v1362_v61 = vpop.permute.xlu1 %1361 }
 0x106   : > { %3676 = vmatmul.mubr.msk.f32.gmra.mrb[4].mxu1 %vm665_vm5, %v4858_v15  ;;  %v5431_v22 = vsel %vm645_vm4, %v1404_v7, %v1362_v61  ;;  %v387_v61 = vld [vmem:[%s6040_s3 + $0xb8] sm:$0xff] }
 0x107   : > { %3678 = vmatprep.mubr.msk.f32.mxu1 %vm4421_vm0, %v6078_v39  ;;  %3904 = vmatmul.mubr.msk.f32.gmra.mrb[20].mxu0 %vm665_vm5, %v5431_v22 }
 0x108   : > { %v1268_v41 = vpop.permute.xlu0 %1267  ;;  %3906 = vmatprep.mubr.msk.f32.mxu0 %vm4421_vm0, %v6078_v39 }
 0x109   : > { %v1405_v27 = vsel %vm625_vm3, %v4824_v36, %v1268_v41  ;;  %v1364_v15 = vpop.permute.xlu1 %1363 }
 0x10a   : > { %3679 = vmatmul.mubr.msk.f32.gmra.mrb[6].mxu1 %vm665_vm5, %v4930_v34  ;;  %v5444_v13 = vsel %vm645_vm4, %v1405_v27, %v1364_v15 }
 0x10b   : > { %3681 = vmatprep.mubr.msk.f32.mxu1 %vm4421_vm0, %v6078_v39  ;;  %3907 = vmatmul.mubr.msk.f32.gmra.mrb[22].mxu0 %vm665_vm5, %v5444_v13 }
 0x10c   : > { %v1270_v60 = vpop.permute.xlu0 %1269  ;;  %3909 = vmatprep.mubr.msk.f32.mxu0 %vm4421_vm0, %v6078_v39 }
 0x10d   : > { %v1406_v36 = vsel %vm625_vm3, %v4835_v14, %v1270_v60  ;;  %v1366_v34 = vpop.permute.xlu1 %1365 }
 0x10e   : > { %3682 = vmatmul.mubr.msk.f32.gmra.mrb[8].mxu1 %vm665_vm5, %v4975_v9  ;;  %v5457_v12 = vsel %vm645_vm4, %v1406_v36, %v1366_v34 }
 0x10f   : > { %3684 = vmatprep.mubr.msk.f32.mxu1 %vm4421_vm0, %v6078_v39  ;;  %3910 = vmatmul.mubr.msk.f32.gmra.mrb[24].mxu0 %vm665_vm5, %v5457_v12 }
 0x110   : > { %v1272_v37 = vpop.permute.xlu0 %1271  ;;  %3912 = vmatprep.mubr.msk.f32.mxu0 %vm4421_vm0, %v6078_v39 }
 0x111   : > { %v1407_v14 = vsel %vm625_vm3, %v4850_v2, %v1272_v37 }
 0x112   : > { %3685 = vmatmul.mubr.msk.f32.gmra.mrb[10].mxu1 %vm665_vm5, %v5011_v43  ;;  %v1368_v35 = vpop.permute.xlu1 %1367 }
 0x113   : > { %3687 = vmatprep.mubr.msk.f32.mxu1 %vm4421_vm0, %v6078_v39  ;;  %v1426_v21 = vsel %vm645_vm4, %v1407_v14, %v1368_v35 }
 0x114   : > { %3913 = vmatmul.mubr.msk.f32.gmra.mrb[26].mxu0 %vm665_vm5, %v1426_v21 }
 0x115   : > { %v1274_v57 = vpop.permute.xlu0 %1273  ;;  %3915 = vmatprep.mubr.msk.f32.mxu0 %vm4421_vm0, %v6078_v39 }
 0x116   : > { %v1408_v8 = vsel %vm625_vm3, %v4867_v30, %v1274_v57  ;;  %3688 = vmatmul.mubr.msk.f32.gmra.mrb[12].mxu1 %vm665_vm5, %v5047_v46 }
 0x117   : > { %v1370_v2 = vpop.permute.xlu1 %1369  ;;  %3690 = vmatprep.mubr.msk.f32.mxu1 %vm4421_vm0, %v6078_v39 }
 0x118   : > { %v1427_v30 = vsel %vm645_vm4, %v1408_v8, %v1370_v2 }
 0x119   : > { %3916 = vmatmul.mubr.msk.f32.gmra.mrb[28].mxu0 %vm665_vm5, %v1427_v30  ;;  %v2030_v19 = vpop.permute.xlu0 %2029  ;;  %v373_v30 = vld [vmem:[%s6040_s3 + $0x48] sm:$0xff] }
 0x11a   : > { %v2182_v11 = vsel %vm625_vm3, %v4902_v18, %v2030_v19  ;;  %3691 = vmatmul.mubr.msk.f32.gmra.mrb[14].mxu1 %vm665_vm5, %v5083_v53  ;;  %3924 = vmatprep.mubr.msk.f32.mxu0 %vm4421_vm0, %v6078_v39 }
 0x11b   : > { %v2126_v25 = vpop.permute.xlu1 %2125  ;;  %3693 = vmatprep.mubr.msk.f32.mxu1 %vm4421_vm0, %v6078_v39 }
 0x11c   : > { %v2201_v5 = vsel %vm645_vm4, %v2182_v11, %v2126_v25 }
 0x11d   : > { %3925 = vmatmul.mubr.msk.f32.vlgmr.msra.gmra.mrb[0].mxu0 %vm665_vm5, %v2201_v5  ;;  %v2032_v59 = vpop.permute.xlu0 %2031 }
 0x11e   : > { %4094 = vmatpush3.bf16.msra.mxu0 %v4093_v31  ;;  %v2183_v18 = vsel %vm625_vm3, %v4909_v33, %v2032_v59  ;;  %3694 = vmatmul.mubr.msk.f32.gmra.mrb[16].mxu1 %vm665_vm5, %v5119_v6 }
 0x11f   : > { %v2128_v17 = vpop.permute.xlu1 %2127  ;;  %3927 = vmatprep.mubr.msk.f32.mxu0 %vm4421_vm0, %v6078_v39  ;;  %3696 = vmatprep.mubr.msk.f32.mxu1 %vm4421_vm0, %v6078_v39 }
 0x120   : > { %v2202_v7 = vsel %vm645_vm4, %v2183_v18, %v2128_v17  ;;  %3973 = vmatprep.subr.mxu0 %v6078_v39 }
 0x121   : > { %3928 = vmatmul.mubr.msk.f32.gmra.mrb[2].mxu0 %vm665_vm5, %v2202_v7  ;;  %v2034_v33 = vpop.permute.xlu0 %2033 }
 0x122   : > { %v2184_v41 = vsel %vm625_vm3, %v4933_v0, %v2034_v33  ;;  %3697 = vmatmul.mubr.msk.f32.gmra.mrb[18].mxu1 %vm665_vm5, %v5158_v24  ;;  %3930 = vmatprep.mubr.msk.f32.mxu0 %vm4421_vm0, %v6078_v39 }
 0x123   : > { %v2130_v27 = vpop.permute.xlu1 %2129  ;;  %3699 = vmatprep.mubr.msk.f32.mxu1 %vm4421_vm0, %v6078_v39  ;;  %3974 = vmatpush3.msra.mxu0 %v387_v61 }
 0x124   : > { %v5520_v15 = vsel %vm645_vm4, %v2184_v41, %v2130_v27  ;;  %4095 = vmatprep.subr.bf16.mxu0 %v6080_v51 }
 0x125   : > { %3931 = vmatmul.mubr.msk.f32.gmra.mrb[4].mxu0 %vm665_vm5, %v5520_v15  ;;  %v2036_v0 = vpop.permute.xlu0 %2035 }
 0x126   : > { %v2185_v60 = vsel %vm625_vm3, %v4959_v23, %v2036_v0  ;;  %3700 = vmatmul.mubr.msk.f32.gmra.mrb[20].mxu1 %vm665_vm5, %v5180_v38  ;;  %3933 = vmatprep.mubr.msk.f32.mxu0 %vm4421_vm0, %v6078_v39 }
 0x127   : > { %v2132_v36 = vpop.permute.xlu1 %2131  ;;  %3702 = vmatprep.mubr.msk.f32.mxu1 %vm4421_vm0, %v6078_v39 }
 0x128   : > { %v5534_v34 = vsel %vm645_vm4, %v2185_v60, %v2132_v36 }
 0x129   : > { %3934 = vmatmul.mubr.msk.f32.gmra.mrb[6].mxu0 %vm665_vm5, %v5534_v34  ;;  %v2038_v37 = vpop.permute.xlu0 %2037 }
 0x12a   : > { %v2186_v23 = vsel %vm625_vm3, %v4978_v20, %v2038_v37  ;;  %3703 = vmatmul.mubr.msk.f32.gmra.mrb[22].mxu1 %vm665_vm5, %v5202_v44  ;;  %3936 = vmatprep.mubr.msk.f32.mxu0 %vm4421_vm0, %v6078_v39 }
 0x12b   : > { %v2134_v14 = vpop.permute.xlu1 %2133  ;;  %3705 = vmatprep.mubr.msk.f32.mxu1 %vm4421_vm0, %v6078_v39 }
 0x12c   : > { %v5547_v35 = vsel %vm645_vm4, %v2186_v23, %v2134_v14 }
 0x12d   : > { %3937 = vmatmul.mubr.msk.f32.gmra.mrb[8].mxu0 %vm665_vm5, %v5547_v35  ;;  %v2040_v21 = vpop.permute.xlu0 %2039 }
 0x12e   : > { %v2187_v20 = vsel %vm625_vm3, %v4998_v29, %v2040_v21  ;;  %3706 = vmatmul.mubr.msk.f32.gmra.mrb[24].mxu1 %vm665_vm5, %v5228_v50  ;;  %3939 = vmatprep.mubr.msk.f32.mxu0 %vm4421_vm0, %v6078_v39  ;;  %v388_v21 = vld [vmem:[%s6040_s3 + $0xc0] sm:$0xff] }
 0x12f   : > { %v2136_v57 = vpop.permute.xlu1 %2135  ;;  %3708 = vmatprep.mubr.msk.f32.mxu1 %vm4421_vm0, %v6078_v39 }
 0x130   : > { %v5560_v8 = vsel %vm645_vm4, %v2187_v20, %v2136_v57  ;;  %v389_v20 = vld [vmem:[%s6040_s3 + $0xc8] sm:$0xff] }
 0x131   : > { %3940 = vmatmul.mubr.msk.f32.gmra.mrb[10].mxu0 %vm665_vm5, %v5560_v8  ;;  %v2042_v2 = vpop.permute.xlu0 %2041 }
 0x132   : > { %v2188_v29 = vsel %vm625_vm3, %v5014_v3, %v2042_v2  ;;  %3709 = vmatmul.mubr.msk.f32.gmra.mrb[26].mxu1 %vm665_vm5, %v5252_v56  ;;  %3942 = vmatprep.mubr.msk.f32.mxu0 %vm4421_vm0, %v6078_v39  ;;  %v374_v3 = vld [vmem:[%s6040_s3 + $0x50] sm:$0xff] }
 0x133   : > { %v2138_v49 = vpop.permute.xlu1 %2137  ;;  %3711 = vmatprep.mubr.msk.f32.mxu1 %vm4421_vm0, %v6078_v39  ;;  %v4081_v25 = vpack.c.bf16 %v374_v3, %v373_v30 }
 0x134   : > { %v5573_v32 = vsel %vm645_vm4, %v2188_v29, %v2138_v49 }
 0x135   : > { %3943 = vmatmul.mubr.msk.f32.gmra.mrb[12].mxu0 %vm665_vm5, %v5573_v32  ;;  %v2044_v19 = vpop.permute.xlu0 %2043 }
 0x136   : > { %v2189_v11 = vsel %vm625_vm3, %v5034_v42, %v2044_v19  ;;  %3712 = vmatmul.mubr.msk.f32.gmra.mrb[28].mxu1 %vm665_vm5, %v5280_v63  ;;  %3945 = vmatprep.mubr.msk.f32.mxu0 %vm4421_vm0, %v6078_v39 }
 0x137   : > { %v2140_v31 = vpop.permute.xlu1 %2139  ;;  %3720 = vmatprep.mubr.msk.f32.mxu1 %vm4421_vm0, %v6078_v39 }
 0x138   : > { %v5592_v5 = vsel %vm645_vm4, %v2189_v11, %v2140_v31 }
 0x139   : > { %3946 = vmatmul.mubr.msk.f32.gmra.mrb[14].mxu0 %vm665_vm5, %v5592_v5  ;;  %v2046_v59 = vpop.permute.xlu0 %2045 }
 0x13a   : > { %v2190_v42 = vsel %vm625_vm3, %v5050_v28, %v2046_v59  ;;  %3721 = vmatmul.mubr.msk.f32.vlgmr.msra.gmra.mrb[0].mxu1 %vm665_vm5, %v4975_v9  ;;  %3948 = vmatprep.mubr.msk.f32.mxu0 %vm4421_vm0, %v6078_v39  ;;  %v375_v28 = vld [vmem:[%s6040_s3 + $0x58] sm:$0xff]  ;;  %v6093_v59 = vld [vmem:[#allocation4_spill] sm:$0xff] }
 0x13b   : > { %v2142_v18 = vpop.permute.xlu1 %2141  ;;  %4082 = vmatpush3.bf16.msra.mxu1 %v4081_v25  ;;  %3723 = vmatprep.mubr.msk.f32.mxu1 %vm4421_vm0, %v6078_v39  ;;  %v6092_v25 = vld [vmem:[#allocation3_spill] sm:$0xff] }
 0x13c   : > { %v5605_v17 = vsel %vm645_vm4, %v2190_v42, %v2142_v18  ;;  %3769 = vmatprep.subr.mxu1 %v6078_v39 }
 0x13d   : > { %3949 = vmatmul.mubr.msk.f32.gmra.mrb[16].mxu0 %vm665_vm5, %v5605_v17  ;;  %v2048_v9 = vpop.permute.xlu0 %2047 }
 0x13e   : > { %v2191_v7 = vsel %vm625_vm3, %v5070_v52, %v2048_v9  ;;  %3724 = vmatmul.mubr.msk.f32.gmra.mrb[2].mxu1 %vm665_vm5, %v5011_v43  ;;  %3951 = vmatprep.mubr.msk.f32.mxu0 %vm4421_vm0, %v6078_v39 }
 0x13f   : > { %v2144_v61 = vpop.permute.xlu1 %2143  ;;  %3726 = vmatprep.mubr.msk.f32.mxu1 %vm4421_vm0, %v6078_v39  ;;  %3770 = vmatpush3.msra.mxu1 %v375_v28  ;;  %v6094_v28 = vld [vmem:[#allocation5_spill] sm:$0xff] }
 0x140   : > { %v5622_v33 = vsel %vm645_vm4, %v2191_v7, %v2144_v61  ;;  %4098 = vmatprep.subr.bf16.mxu1 %v6080_v51 }
 0x141   : > { %3952 = vmatmul.mubr.msk.f32.gmra.mrb[18].mxu0 %vm665_vm5, %v5622_v33  ;;  %v2050_v52 = vpop.permute.xlu0 %2049 }
 0x142   : > { %v2192_v43 = vsel %vm625_vm3, %v5086_v54, %v2050_v52  ;;  %3727 = vmatmul.mubr.msk.f32.gmra.mrb[4].mxu1 %vm665_vm5, %v5047_v46  ;;  %3954 = vmatprep.mubr.msk.f32.mxu0 %vm4421_vm0, %v6078_v39  ;;  %v6095_v52 = vld [vmem:[#allocation6_spill] sm:$0xff] }
 0x143   : > { %v2146_v41 = vpop.permute.xlu1 %2145  ;;  %3729 = vmatprep.mubr.msk.f32.mxu1 %vm4421_vm0, %v6078_v39 }
 0x144   : > { %v5636_v27 = vsel %vm645_vm4, %v2192_v43, %v2146_v41  ;;  %v6096_v43 = vld [vmem:[#allocation11_spill] sm:$0xff] }
 0x145   : > { %3955 = vmatmul.mubr.msk.f32.gmra.mrb[20].mxu0 %vm665_vm5, %v5636_v27  ;;  %v2052_v51 = vpop.permute.xlu0 %2051 }
 0x146   : > { %v2193_v54 = vsel %vm625_vm3, %v5106_v62, %v2052_v51  ;;  %3730 = vmatmul.mubr.msk.f32.gmra.mrb[6].mxu1 %vm665_vm5, %v5083_v53  ;;  %3957 = vmatprep.mubr.msk.f32.mxu0 %vm4421_vm0, %v6078_v39 }
 0x147   : > { %v2148_v46 = vpop.permute.xlu1 %2147  ;;  %3732 = vmatprep.mubr.msk.f32.mxu1 %vm4421_vm0, %v6078_v39 }
 0x148   : > { %v5649_v0 = vsel %vm645_vm4, %v2193_v54, %v2148_v46  ;;  %v6097_v54 = vld [vmem:[#allocation7_spill] sm:$0xff]  ;;  %v6098_v46 = vld [vmem:[#allocation8_spill] sm:$0xff] }
 0x149   : > { %3958 = vmatmul.mubr.msk.f32.gmra.mrb[22].mxu0 %vm665_vm5, %v5649_v0  ;;  %v2054_v60 = vpop.permute.xlu0 %2053 }
 0x14a   : > { %v2194_v62 = vsel %vm625_vm3, %v5122_v48, %v2054_v60  ;;  %3733 = vmatmul.mubr.msk.f32.gmra.mrb[8].mxu1 %vm665_vm5, %v5119_v6  ;;  %3960 = vmatprep.mubr.msk.f32.mxu0 %vm4421_vm0, %v6078_v39  ;;  %v6099_v60 = vld [vmem:[#allocation9_spill] sm:$0xff] }
 0x14b   : > { %v2150_v53 = vpop.permute.xlu1 %2149  ;;  %3735 = vmatprep.mubr.msk.f32.mxu1 %vm4421_vm0, %v6078_v39 }
 0x14c   : > { %v5662_v36 = vsel %vm645_vm4, %v2194_v62, %v2150_v53  ;;  %v6100_v62 = vld [vmem:[#allocation10_spill] sm:$0xff] }
 0x14d   : > { %3961 = vmatmul.mubr.msk.f32.gmra.mrb[24].mxu0 %vm665_vm5, %v5662_v36  ;;  %v2056_v37 = vpop.permute.xlu0 %2055 }
 0x14e   : > { %v2195_v48 = vsel %vm625_vm3, %v5144_v1, %v2056_v37  ;;  %3736 = vmatmul.mubr.msk.f32.gmra.mrb[10].mxu1 %vm665_vm5, %v5158_v24  ;;  %3963 = vmatprep.mubr.msk.f32.mxu0 %vm4421_vm0, %v6078_v39 }
 0x14f   : > { %v2152_v6 = vpop.permute.xlu1 %2151  ;;  %3738 = vmatprep.mubr.msk.f32.mxu1 %vm4421_vm0, %v6078_v39 }
 0x150   : > { %v5675_v23 = vsel %vm645_vm4, %v2195_v48, %v2152_v6 }
 0x151   : > { %3964 = vmatmul.mubr.msk.f32.gmra.mrb[26].mxu0 %vm665_vm5, %v5675_v23  ;;  %v2058_v14 = vpop.permute.xlu0 %2057 }
 0x152   : > { %v2196_v1 = vsel %vm625_vm3, %v5168_v4, %v2058_v14  ;;  %3739 = vmatmul.mubr.msk.f32.gmra.mrb[12].mxu1 %vm665_vm5, %v5180_v38  ;;  %3966 = vmatprep.mubr.msk.f32.mxu0 %vm4421_vm0, %v6078_v39  ;;  %v4096_v38 = vpack.c.bf16 %v389_v20, %v388_v21 }
 0x153   : > { %v2154_v24 = vpop.permute.xlu1 %2153  ;;  %3741 = vmatprep.mubr.msk.f32.mxu1 %vm4421_vm0, %v6078_v39 }
 0x154   : > { %v5694_v4 = vsel %vm645_vm4, %v2196_v1, %v2154_v24 }
 0x155   : > { %3967 = vmatmul.mubr.msk.f32.gmra.mrb[28].mxu0 %vm665_vm5, %v5694_v4 }
 0x156   : > { %3742 = vmatmul.mubr.msk.f32.gmra.mrb[14].mxu1 %vm665_vm5, %v5202_v44  ;;  %3975 = vmatprep.mubr.msk.f32.mxu0 %vm4421_vm0, %v6078_v39  ;;  %v390_v44 = vld [vmem:[%s6040_s3 + $0xd0] sm:$0xff] }
 0x157   : > { %3744 = vmatprep.mubr.msk.f32.mxu1 %vm4421_vm0, %v6078_v39 }
 0x159   : > { %3976 = vmatmul.mubr.msk.f32.vlgmr.msra.gmra.mrb[0].mxu0 %vm665_vm5, %v5520_v15  ;;  %v603_v15 = vpop.permute.xlu1 %602 }
 0x15a   : > { %4097 = vmatpush3.bf16.msra.mxu0 %v4096_v38  ;;  %3745 = vmatmul.mubr.msk.f32.gmra.mrb[16].mxu1 %vm665_vm5, %v5228_v50  ;;  %v506_v50 = vpop.permute.xlu0 %505 }
 0x15b   : > { %3978 = vmatprep.mubr.msk.f32.mxu0 %vm4421_vm0, %v6078_v39  ;;  %3747 = vmatprep.mubr.msk.f32.mxu1 %vm4421_vm0, %v6078_v39 }
 0x15c   : > { %4024 = vmatprep.subr.mxu0 %v6078_v39 }
 0x15d   : > { %3979 = vmatmul.mubr.msk.f32.gmra.mrb[2].mxu0 %vm665_vm5, %v5534_v34  ;;  %v605_v57 = vpop.permute.xlu1 %604 }
 0x15e   : > { %3748 = vmatmul.mubr.msk.f32.gmra.mrb[18].mxu1 %vm665_vm5, %v5252_v56  ;;  %3981 = vmatprep.mubr.msk.f32.mxu0 %vm4421_vm0, %v6078_v39  ;;  %v508_v56 = vpop.permute.xlu0 %507 }
 0x15f   : > { %3750 = vmatprep.mubr.msk.f32.mxu1 %vm4421_vm0, %v6078_v39  ;;  %4025 = vmatpush3.msra.mxu0 %v390_v44  ;;  %v644_v29 = vsel %vm625_vm3, %v5213_v47, %v508_v56 }
 0x160   : > { %v664_v49 = vsel %vm645_vm4, %v644_v29, %v605_v57 }
 0x161   : > { %3982 = vmatmul.mubr.msk.f32.gmra.mrb[4].mxu0 %vm665_vm5, %v5547_v35 }
 0x162   : > { %3751 = vmatmul.mubr.msk.f32.gmra.mrb[20].mxu1 %vm665_vm5, %v5280_v63  ;;  %3984 = vmatprep.mubr.msk.f32.mxu0 %vm4421_vm0, %v6078_v39  ;;  %v4378_v63 = vld [vmem:[%s4515_s14 + $0x88] sm:$0xff]  ;;  %v1238_v2 = vpop.permute.xlu0 %1237 }
 0x163   : > { %3753 = vmatprep.mubr.msk.f32.mxu1 %vm4421_vm0, %v6078_v39  ;;  %v643_v34 = vsel %vm625_vm3, %v4378_v63, %v506_v50  ;;  %v1390_v30 = vsel %vm625_vm3, %v5264_v26, %v1238_v2  ;;  %v6091_v26 = vld [vmem:[#allocation2_spill] sm:$0xff] }
 0x165   : > { %3985 = vmatmul.mubr.msk.f32.gmra.mrb[6].mxu0 %vm665_vm5, %v5560_v8 }
 0x166   : > { %3754 = vmatmul.mubr.msk.f32.gmra.mrb[22].mxu1 %vm665_vm5, %v5302_v45  ;;  %3987 = vmatprep.mubr.msk.f32.mxu0 %vm4421_vm0, %v6078_v39  ;;  %v663_v45 = vsel %vm645_vm4, %v643_v34, %v603_v15  ;;  %v1240_v47 = vpop.permute.xlu0 %1239 }
 0x167   : > { %3756 = vmatprep.mubr.msk.f32.mxu1 %vm4421_vm0, %v6078_v39  ;;  %v1391_v19 = vsel %vm625_vm3, %v5267_v16, %v1240_v47  ;;  %v4379_v16 = vld [vmem:[%s6040_s3 + $0x70] sm:$0xff] }
 0x169   : > { %3988 = vmatmul.mubr.msk.f32.gmra.mrb[8].mxu0 %vm665_vm5, %v5573_v32 }
 0x16a   : > { %3757 = vmatmul.mubr.msk.f32.gmra.mrb[24].mxu1 %vm665_vm5, %v5343_v40  ;;  %3990 = vmatprep.mubr.msk.f32.mxu0 %vm4421_vm0, %v6078_v39  ;;  %v1334_v40 = vpop.permute.xlu1 %1333  ;;  %v2060_v42 = vpop.permute.xlu0 %2059 }
 0x16b   : > { %3759 = vmatprep.mubr.msk.f32.mxu1 %vm4421_vm0, %v6078_v39  ;;  %v1409_v3 = vsel %vm645_vm4, %v1390_v30, %v1334_v40  ;;  %v2197_v9 = vsel %vm625_vm3, %v5190_v10, %v2060_v42 }
 0x16d   : > { %3991 = vmatmul.mubr.msk.f32.gmra.mrb[10].mxu0 %vm665_vm5, %v5592_v5 }
 0x16e   : > { %3760 = vmatmul.mubr.msk.f32.gmra.mrb[26].mxu1 %vm665_vm5, %v663_v45  ;;  %3993 = vmatprep.mubr.msk.f32.mxu0 %vm4421_vm0, %v6078_v39  ;;  %v1336_v11 = vpop.permute.xlu1 %1335  ;;  %v2062_v7 = vpop.permute.xlu0 %2061 }
 0x16f   : > { %3762 = vmatprep.mubr.msk.f32.mxu1 %vm4421_vm0, %v6078_v39  ;;  %v1410_v31 = vsel %vm645_vm4, %v1391_v19, %v1336_v11  ;;  %v2198_v41 = vsel %vm625_vm3, %v6096_v43, %v2062_v7 }
 0x171   : > { %3994 = vmatmul.mubr.msk.f32.gmra.mrb[12].mxu0 %vm665_vm5, %v5605_v17 }
 0x172   : > { %3763 = vmatmul.mubr.msk.f32.gmra.mrb[28].mxu1 %vm665_vm5, %v664_v49  ;;  %3996 = vmatprep.mubr.msk.f32.mxu0 %vm4421_vm0, %v6078_v39  ;;  %v2156_v18 = vpop.permute.xlu1 %2155 }
 0x173   : > { %3771 = vmatprep.mubr.msk.f32.mxu1 %vm4421_vm0, %v6078_v39  ;;  %v2216_v61 = vsel %vm645_vm4, %v2197_v9, %v2156_v18 }
 0x175   : > { %3997 = vmatmul.mubr.msk.f32.gmra.mrb[14].mxu0 %vm665_vm5, %v5622_v33 }
 0x176   : > { %3772 = vmatmul.mubr.msk.f32.vlgmr.msra.gmra.mrb[0].mxu1 %vm665_vm5, %v1409_v3  ;;  %3999 = vmatprep.mubr.msk.f32.mxu0 %vm4421_vm0, %v6078_v39  ;;  %v2158_v51 = vpop.permute.xlu1 %2157 }
 0x177   : > { %4100 = vmatpush3.bf16.msra.mxu1 %v6091_v26  ;;  %3774 = vmatprep.mubr.msk.f32.mxu1 %vm4421_vm0, %v6078_v39  ;;  %v2217_v10 = vsel %vm645_vm4, %v2198_v41, %v2158_v51 }
 0x178   : > { %4099 = vmatprep.subr.mxu1 %v6078_v39 }
 0x179   : > { %4000 = vmatmul.mubr.msk.f32.gmra.mrb[16].mxu0 %vm665_vm5, %v5636_v27 }
 0x17a   : > { %3775 = vmatmul.mubr.msk.f32.gmra.mrb[2].mxu1 %vm665_vm5, %v1410_v31  ;;  %4002 = vmatprep.mubr.msk.f32.mxu0 %vm4421_vm0, %v6078_v39 }
 0x17b   : > { %3777 = vmatprep.mubr.msk.f32.mxu1 %vm4421_vm0, %v6078_v39  ;;  %4101 = vmatpush3.msra.mxu1 %v4379_v16 }
 0x17d   : > { %4003 = vmatmul.mubr.msk.f32.gmra.mrb[18].mxu0 %vm665_vm5, %v5649_v0 }
 0x17e   : > { %3778 = vmatmul.mubr.msk.f32.gmra.mrb[4].mxu1 %vm665_vm5, %v6092_v25  ;;  %4005 = vmatprep.mubr.msk.f32.mxu0 %vm4421_vm0, %v6078_v39 }
 0x17f   : > { %3780 = vmatprep.mubr.msk.f32.mxu1 %vm4421_vm0, %v6078_v39 }
 0x181   : > { %4006 = vmatmul.mubr.msk.f32.gmra.mrb[20].mxu0 %vm665_vm5, %v5662_v36 }
 0x182   : > { %3781 = vmatmul.mubr.msk.f32.gmra.mrb[6].mxu1 %vm665_vm5, %v6093_v59  ;;  %4008 = vmatprep.mubr.msk.f32.mxu0 %vm4421_vm0, %v6078_v39 }
 0x183   : > { %3783 = vmatprep.mubr.msk.f32.mxu1 %vm4421_vm0, %v6078_v39 }
 0x185   : > { %4009 = vmatmul.mubr.msk.f32.gmra.mrb[22].mxu0 %vm665_vm5, %v5675_v23 }
 0x186   : > { %3784 = vmatmul.mubr.msk.f32.gmra.mrb[8].mxu1 %vm665_vm5, %v6094_v28  ;;  %4011 = vmatprep.mubr.msk.f32.mxu0 %vm4421_vm0, %v6078_v39 }
 0x187   : > { %3786 = vmatprep.mubr.msk.f32.mxu1 %vm4421_vm0, %v6078_v39 }
 0x189   : > { %4012 = vmatmul.mubr.msk.f32.gmra.mrb[24].mxu0 %vm665_vm5, %v5694_v4 }
 0x18a   : > { %3787 = vmatmul.mubr.msk.f32.gmra.mrb[10].mxu1 %vm665_vm5, %v6095_v52  ;;  %4014 = vmatprep.mubr.msk.f32.mxu0 %vm4421_vm0, %v6078_v39 }
 0x18b   : > { %3789 = vmatprep.mubr.msk.f32.mxu1 %vm4421_vm0, %v6078_v39 }
 0x18d   : > { %4015 = vmatmul.mubr.msk.f32.gmra.mrb[26].mxu0 %vm665_vm5, %v2216_v61 }
 0x18e   : > { %3790 = vmatmul.mubr.msk.f32.gmra.mrb[12].mxu1 %vm665_vm5, %v6097_v54  ;;  %4017 = vmatprep.mubr.msk.f32.mxu0 %vm4421_vm0, %v6078_v39 }
 0x18f   : > { %3792 = vmatprep.mubr.msk.f32.mxu1 %vm4421_vm0, %v6078_v39 }
 0x191   : > { %4018 = vmatmul.mubr.msk.f32.gmra.mrb[28].mxu0 %vm665_vm5, %v2217_v10 }
 0x192   : > { %3793 = vmatmul.mubr.msk.f32.gmra.mrb[14].mxu1 %vm665_vm5, %v6098_v46  ;;  %4026 = vmatprep.mubr.msk.f32.mxu0 %vm4421_vm0, %v6078_v39 }
 0x193   : > { %3795 = vmatprep.mubr.msk.f32.mxu1 %vm4421_vm0, %v6078_v39 }
 0x195   : > { %4027 = vmatmul.mubr.msk.f32.vlgmr.msra.gmra.mrb[0].mxu0 %vm665_vm5, %v5547_v35  ;;  %v6101_v35 = vld [vmem:[#allocation12_spill] sm:$0xff] }
 0x196   : > { %3796 = vmatmul.mubr.msk.f32.gmra.mrb[16].mxu1 %vm665_vm5, %v6099_v60  ;;  %4029 = vmatprep.mubr.msk.f32.mxu0 %vm4421_vm0, %v6078_v39 }
 0x197   : > { %3798 = vmatprep.mubr.msk.f32.mxu1 %vm4421_vm0, %v6078_v39 }
 0x199   : > { %4030 = vmatmul.mubr.msk.f32.gmra.mrb[2].mxu0 %vm665_vm5, %v5560_v8  ;;  %v6102_v8 = vld [vmem:[#allocation15_spill] sm:$0xff] }
 0x19a   : > { %3799 = vmatmul.mubr.msk.f32.gmra.mrb[18].mxu1 %vm665_vm5, %v6100_v62  ;;  %4032 = vmatprep.mubr.msk.f32.mxu0 %vm4421_vm0, %v6078_v39 }
 0x19b   : > { %3801 = vmatprep.mubr.msk.f32.mxu1 %vm4421_vm0, %v6078_v39 }
 0x19d   : > { %4033 = vmatmul.mubr.msk.f32.gmra.mrb[4].mxu0 %vm665_vm5, %v5573_v32  ;;  %v2064_v32 = vpop.permute.xlu0 %2063 }
 0x19e   : > { %3802 = vmatmul.mubr.msk.f32.gmra.mrb[20].mxu1 %vm665_vm5, %v6101_v35  ;;  %4035 = vmatprep.mubr.msk.f32.mxu0 %vm4421_vm0, %v6078_v39 }
 0x19f   : > { %3804 = vmatprep.mubr.msk.f32.mxu1 %vm4421_vm0, %v6078_v39 }
 0x1a1   : > { %4036 = vmatmul.mubr.msk.f32.gmra.mrb[6].mxu0 %vm665_vm5, %v5592_v5  ;;  %v6103_v5 = vld [vmem:[#allocation13_spill] sm:$0xff] }
 0x1a2   : > { %3805 = vmatmul.mubr.msk.f32.gmra.mrb[22].mxu1 %vm665_vm5, %v6102_v8  ;;  %4038 = vmatprep.mubr.msk.f32.mxu0 %vm4421_vm0, %v6078_v39 }
 0x1a3   : > { %3807 = vmatprep.mubr.msk.f32.mxu1 %vm4421_vm0, %v6078_v39 }
 0x1a5   : > { %4039 = vmatmul.mubr.msk.f32.gmra.mrb[8].mxu0 %vm665_vm5, %v5605_v17  ;;  %v2199_v17 = vsel %vm625_vm3, %v6103_v5, %v2064_v32 }
 0x1a6   : > { %3808 = vmatmul.mubr.msk.f32.gmra.mrb[24].mxu1 %vm665_vm5, %v5392_v55  ;;  %4041 = vmatprep.mubr.msk.f32.mxu0 %vm4421_vm0, %v6078_v39 }
 0x1a7   : > { %3810 = vmatprep.mubr.msk.f32.mxu1 %vm4421_vm0, %v6078_v39 }
 0x1a9   : > { %4042 = vmatmul.mubr.msk.f32.gmra.mrb[10].mxu0 %vm665_vm5, %v5622_v33 }
 0x1aa   : > { %3811 = vmatmul.mubr.msk.f32.gmra.mrb[26].mxu1 %vm665_vm5, %v5418_v58  ;;  %4044 = vmatprep.mubr.msk.f32.mxu0 %vm4421_vm0, %v6078_v39 }
 0x1ab   : > { %3813 = vmatprep.mubr.msk.f32.mxu1 %vm4421_vm0, %v6078_v39 }
 0x1ad   : > { %4045 = vmatmul.mubr.msk.f32.gmra.mrb[12].mxu0 %vm665_vm5, %v5636_v27 }
 0x1ae   : > { %3814 = vmatmul.mubr.msk.f32.gmra.mrb[28].mxu1 %vm665_vm5, %v5431_v22  ;;  %4047 = vmatprep.mubr.msk.f32.mxu0 %vm4421_vm0, %v6078_v39 }
 0x1af   : > { %3846 = vmatprep.mubr.msk.f32.mxu1 %vm4421_vm0, %v6078_v39 }
 0x1b1   : > { %4048 = vmatmul.mubr.msk.f32.gmra.mrb[14].mxu0 %vm665_vm5, %v5649_v0 }
 0x1b2   : > { %3847 = vmatmul.mubr.msk.f32.vlgmr.msra.gmra.mrb[16].mxu1 %vm665_vm5, %v6101_v35  ;;  %4050 = vmatprep.mubr.msk.f32.mxu0 %vm4421_vm0, %v6078_v39 }
 0x1b3   : > { %3849 = vmatprep.mubr.msk.f32.mxu1 %vm4421_vm0, %v6078_v39 }
 0x1b5   : > { %4051 = vmatmul.mubr.msk.f32.gmra.mrb[16].mxu0 %vm665_vm5, %v5662_v36 }
 0x1b6   : > { %3850 = vmatmul.mubr.msk.f32.gmra.mrb[18].mxu1 %vm665_vm5, %v6102_v8  ;;  %4053 = vmatprep.mubr.msk.f32.mxu0 %vm4421_vm0, %v6078_v39 }
 0x1b7   : > { %3852 = vmatprep.mubr.msk.f32.mxu1 %vm4421_vm0, %v6078_v39 }
 0x1b9   : > { %4054 = vmatmul.mubr.msk.f32.gmra.mrb[18].mxu0 %vm665_vm5, %v5675_v23 }
 0x1ba   : > { %3853 = vmatmul.mubr.msk.f32.gmra.mrb[20].mxu1 %vm665_vm5, %v5392_v55  ;;  %4056 = vmatprep.mubr.msk.f32.mxu0 %vm4421_vm0, %v6078_v39  ;;  %v2160_v55 = vpop.permute.xlu1 %2159 }
 0x1bb   : > { %3855 = vmatprep.mubr.msk.f32.mxu1 %vm4421_vm0, %v6078_v39  ;;  %v2218_v33 = vsel %vm645_vm4, %v2199_v17, %v2160_v55 }
 0x1bd   : > { %4057 = vmatmul.mubr.msk.f32.gmra.mrb[20].mxu0 %vm665_vm5, %v5694_v4 }
 0x1be   : > { %3856 = vmatmul.mubr.msk.f32.gmra.mrb[22].mxu1 %vm665_vm5, %v5418_v58  ;;  %4059 = vmatprep.mubr.msk.f32.mxu0 %vm4421_vm0, %v6078_v39  ;;  %v2066_v58 = vpop.permute.xlu0 %2065  ;;  %v2162_v0 = vpop.permute.xlu1 %2161 }
 0x1bf   : > { %3858 = vmatprep.mubr.msk.f32.mxu1 %vm4421_vm0, %v6078_v39 }
 0x1c1   : > { %4060 = vmatmul.mubr.msk.f32.gmra.mrb[22].mxu0 %vm665_vm5, %v2216_v61 }
 0x1c2   : > { %3859 = vmatmul.mubr.msk.f32.gmra.mrb[24].mxu1 %vm665_vm5, %v5431_v22  ;;  %4062 = vmatprep.mubr.msk.f32.mxu0 %vm4421_vm0, %v6078_v39  ;;  %v6104_v22 = vld [vmem:[#allocation14_spill] sm:$0xff] }
 0x1c3   : > { %3861 = vmatprep.mubr.msk.f32.mxu1 %vm4421_vm0, %v6078_v39  ;;  %v2200_v27 = vsel %vm625_vm3, %v6104_v22, %v2066_v58 }
 0x1c4   : > { %v2219_v53 = vsel %vm645_vm4, %v2200_v27, %v2162_v0 }
 0x1c5   : > { %4063 = vmatmul.mubr.msk.f32.gmra.mrb[24].mxu0 %vm665_vm5, %v2217_v10 }
 0x1c6   : > { %3862 = vmatmul.mubr.msk.f32.gmra.mrb[26].mxu1 %vm665_vm5, %v5444_v13  ;;  %4065 = vmatprep.mubr.msk.f32.mxu0 %vm4421_vm0, %v6078_v39 }
 0x1c7   : > { %3864 = vmatprep.mubr.msk.f32.mxu1 %vm4421_vm0, %v6078_v39 }
 0x1c9   : > { %4066 = vmatmul.mubr.msk.f32.gmra.mrb[26].mxu0 %vm665_vm5, %v2218_v33 }
 0x1ca   : > { %3865 = vmatmul.mubr.msk.f32.gmra.mrb[28].mxu1 %vm665_vm5, %v5457_v12  ;;  %4068 = vmatprep.mubr.msk.f32.mxu0 %vm4421_vm0, %v6078_v39 }
 0x1cd   : > { %4069 = vmatmul.mubr.msk.f32.gmra.mrb[28].mxu0 %vm665_vm5, %v2219_v53 }
 0x249   : > { %v1539_v13 = vpop.f32.mrb[0].mxu1 }
 0x24a   : > { %v3773_v36 = vpop.f32.mrb[1].mxu1 }
 0x24d   : > { %v1544_v37 = vpop.f32.mrb[2].mxu1 }
 0x24e   : > { %v3776_v48 = vpop.f32.mrb[3].mxu1 }
 0x251   : > { %v1549_v6 = vpop.f32.mrb[4].mxu1 }
 0x252   : > { %v3779_v23 = vpop.f32.mrb[5].mxu1 }
 0x255   : > { %v1554_v14 = vpop.f32.mrb[6].mxu1 }
 0x256   : > { %v3782_v1 = vpop.f32.mrb[7].mxu1 }
 0x259   : > { %v1559_v24 = vpop.f32.mrb[8].mxu1 }
 0x25a   : > { %v3785_v21 = vpop.f32.mrb[9].mxu1 }
 0x25d   : > { %v1564_v12 = vpop.f32.mrb[10].mxu1 }
 0x25e   : > { %v3788_v20 = vpop.f32.mrb[11].mxu1 }
 0x261   : > { %v1569_v39 = vpop.f32.mrb[12].mxu1 }
 0x262   : > { %v3791_v4 = vpop.f32.mrb[13].mxu1 }
 0x265   : > { %v1574_v38 = vpop.f32.mrb[14].mxu1 }
 0x266   : > { %v3794_v44 = vpop.f32.mrb[15].mxu1 }
 0x268   : > { %v2653_v50 = vpop.f32.mrb[0].mxu0 }
 0x269   : > { %v4102_v15 = vadd.f32 %v2653_v50, %v1539_v13  ;;  %v4028_v56 = vpop.f32.mrb[1].mxu0 }
 0x26b   : > { %v2742_v63 = vmax.f32 %v4102_v15, 0.0 }
 0x26c   : > { %v2658_v34 = vpop.f32.mrb[2].mxu0 }
 0x26d   : > { %2757 = vst.msk [vmem:[%s5968_s6] sm:$0xff] %vm625_vm3, %v2742_v63  ;;  %v4103_v57 = vadd.f32 %v2658_v34, %v1544_v37  ;;  %v4031_v45 = vpop.f32.mrb[3].mxu0  ;;  %v3063_v30 = vmul.f32 %v2742_v63, %v2742_v63  ;;  %v3028_v19 = vsel %vm625_vm3, %v2742_v63, 0.0 }
 0x26f   : > { %v2743_v2 = vmax.f32 %v4103_v57, 0.0  ;;  %v3078_v59 = vsel %vm625_vm3, %v3063_v30, 0.0 }
 0x270   : > { %v2663_v29 = vpop.f32.mrb[4].mxu0 }
 0x271   : > { %2758 = vst.msk [vmem:[%s5968_s6 + $0x8] sm:$0xff] %vm625_vm3, %v2743_v2  ;;  %v4104_v40 = vadd.f32 %v2663_v29, %v1549_v6  ;;  %v4034_v49 = vpop.f32.mrb[5].mxu0 }
 0x273   : > { %v2744_v47 = vmax.f32 %v4104_v40, 0.0 }
 0x274   : > { %v2668_v3 = vpop.f32.mrb[6].mxu0 }
 0x275   : > { %2759 = vst.msk [vmem:[%s5968_s6 + $0x10] sm:$0xff] %vm625_vm3, %v2744_v47  ;;  %v3031_v11 = vsel %vm625_vm3, %v2744_v47, 0.0  ;;  %v3065_v26 = vmul.f32 %v2744_v47, %v2744_v47  ;;  %v4105_v31 = vadd.f32 %v2668_v3, %v1554_v14  ;;  %v4037_v16 = vpop.f32.mrb[7].mxu0 }
 0x276   : > { %v3032_v25 = vadd.f32 %v3031_v11, %v3028_v19 }
 0x277   : > { %v3081_v42 = vsel %vm625_vm3, %v3065_v26, 0.0  ;;  %v2745_v18 = vmax.f32 %v4105_v31, 0.0 }
 0x278   : > { %v3082_v28 = vadd.f32 %v3081_v42, %v3078_v59  ;;  %v2673_v9 = vpop.f32.mrb[8].mxu0 }
 0x279   : > { %2760 = vst.msk [vmem:[%s5968_s6 + $0x18] sm:$0xff] %vm625_vm3, %v2745_v18  ;;  %v4106_v7 = vadd.f32 %v2673_v9, %v1559_v24  ;;  %v4040_v61 = vpop.f32.mrb[9].mxu0 }
 0x27b   : > { %v2746_v52 = vmax.f32 %v4106_v7, 0.0 }
 0x27c   : > { %v2678_v43 = vpop.f32.mrb[10].mxu0 }
 0x27d   : > { %2761 = vst.msk [vmem:[%s5968_s6 + $0x20] sm:$0xff] %vm625_vm3, %v2746_v52  ;;  %v3035_v41 = vsel %vm625_vm3, %v2746_v52, 0.0  ;;  %v3067_v51 = vmul.f32 %v2746_v52, %v2746_v52  ;;  %v4107_v10 = vadd.f32 %v2678_v43, %v1564_v12  ;;  %v4043_v54 = vpop.f32.mrb[11].mxu0 }
 0x27e   : > { %v3036_v46 = vadd.f32 %v3035_v41, %v3032_v25 }
 0x27f   : > { %v3085_v60 = vsel %vm625_vm3, %v3067_v51, 0.0  ;;  %v2747_v62 = vmax.f32 %v4107_v10, 0.0 }
 0x280   : > { %v3086_v35 = vadd.f32 %v3085_v60, %v3082_v28  ;;  %v2683_v8 = vpop.f32.mrb[12].mxu0 }
 0x281   : > { %2762 = vst.msk [vmem:[%s5968_s6 + $0x28] sm:$0xff] %vm625_vm3, %v2747_v62  ;;  %v4108_v32 = vadd.f32 %v2683_v8, %v1569_v39  ;;  %v4046_v55 = vpop.f32.mrb[13].mxu0 }
 0x283   : > { %v2748_v5 = vmax.f32 %v4108_v32, 0.0 }
 0x284   : > { %v2688_v17 = vpop.f32.mrb[14].mxu0 }
 0x285   : > { %2763 = vst.msk [vmem:[%s5968_s6 + $0x30] sm:$0xff] %vm625_vm3, %v2748_v5  ;;  %v3039_v58 = vsel %vm625_vm3, %v2748_v5, 0.0  ;;  %v3069_v33 = vmul.f32 %v2748_v5, %v2748_v5  ;;  %v4109_v22 = vadd.f32 %v2688_v17, %v1574_v38  ;;  %v4049_v27 = vpop.f32.mrb[15].mxu0  ;;  %v1740_v0 = vpop.f32.mrb[16].mxu1 }
 0x286   : > { %v3040_v53 = vadd.f32 %v3039_v58, %v3036_v46  ;;  %v3848_v13 = vpop.f32.mrb[17].mxu1 }
 0x287   : > { %v3089_v36 = vsel %vm625_vm3, %v3069_v33, 0.0  ;;  %v2749_v37 = vmax.f32 %v4109_v22, 0.0 }
 0x288   : > { %v3090_v48 = vadd.f32 %v3089_v36, %v3086_v35  ;;  %v2693_v6 = vpop.f32.mrb[16].mxu0 }
 0x289   : > { %2764 = vst.msk [vmem:[%s5968_s6 + $0x38] sm:$0xff] %vm625_vm3, %v2749_v37  ;;  %v4110_v23 = vadd.f32 %v2693_v6, %v1740_v0  ;;  %v4052_v14 = vpop.f32.mrb[17].mxu0  ;;  %v1745_v1 = vpop.f32.mrb[18].mxu1 }
 0x28a   : > { %v3851_v24 = vpop.f32.mrb[19].mxu1 }
 0x28b   : > { %v2750_v21 = vmax.f32 %v4110_v23, 0.0 }
 0x28c   : > { %v2698_v12 = vpop.f32.mrb[18].mxu0 }
 0x28d   : > { %2765 = vst.msk [vmem:[%s5968_s6 + $0x40] sm:$0xff] %vm625_vm3, %v2750_v21  ;;  %v3043_v20 = vsel %vm625_vm3, %v2750_v21, 0.0  ;;  %v3071_v39 = vmul.f32 %v2750_v21, %v2750_v21  ;;  %v4111_v4 = vadd.f32 %v2698_v12, %v1745_v1  ;;  %v4055_v38 = vpop.f32.mrb[19].mxu0  ;;  %v1750_v44 = vpop.f32.mrb[20].mxu1 }
 0x28e   : > { %v3044_v50 = vadd.f32 %v3043_v20, %v3040_v53  ;;  %v3854_v15 = vpop.f32.mrb[21].mxu1 }
 0x28f   : > { %v3093_v56 = vsel %vm625_vm3, %v3071_v39, 0.0  ;;  %v2751_v63 = vmax.f32 %v4111_v4, 0.0 }
 0x290   : > { %v3094_v34 = vadd.f32 %v3093_v56, %v3090_v48  ;;  %v2703_v57 = vpop.f32.mrb[20].mxu0 }
 0x291   : > { %2766 = vst.msk [vmem:[%s5968_s6 + $0x48] sm:$0xff] %vm625_vm3, %v2751_v63  ;;  %v4112_v45 = vadd.f32 %v2703_v57, %v1750_v44  ;;  %v4058_v2 = vpop.f32.mrb[21].mxu0  ;;  %v1755_v29 = vpop.f32.mrb[22].mxu1 }
 0x292   : > { %v3857_v40 = vpop.f32.mrb[23].mxu1 }
 0x293   : > { %v2752_v49 = vmax.f32 %v4112_v45, 0.0 }
 0x294   : > { %v2708_v30 = vpop.f32.mrb[22].mxu0 }
 0x295   : > { %2767 = vst.msk [vmem:[%s5968_s6 + $0x50] sm:$0xff] %vm625_vm3, %v2752_v49  ;;  %v3047_v47 = vsel %vm625_vm3, %v2752_v49, 0.0  ;;  %v3073_v3 = vmul.f32 %v2752_v49, %v2752_v49  ;;  %v4113_v19 = vadd.f32 %v2708_v30, %v1755_v29  ;;  %v4061_v11 = vpop.f32.mrb[23].mxu0  ;;  %v1760_v26 = vpop.f32.mrb[24].mxu1 }
 0x296   : > { %v3048_v31 = vadd.f32 %v3047_v47, %v3044_v50  ;;  %v3860_v16 = vpop.f32.mrb[25].mxu1 }
 0x297   : > { %v3097_v25 = vsel %vm625_vm3, %v3073_v3, 0.0  ;;  %v2753_v59 = vmax.f32 %v4113_v19, 0.0 }
 0x298   : > { %v3098_v42 = vadd.f32 %v3097_v25, %v3094_v34  ;;  %v2713_v18 = vpop.f32.mrb[24].mxu0 }
 0x299   : > { %2768 = vst.msk [vmem:[%s5968_s6 + $0x58] sm:$0xff] %vm625_vm3, %v2753_v59  ;;  %v4114_v28 = vadd.f32 %v2713_v18, %v1760_v26  ;;  %v4064_v9 = vpop.f32.mrb[25].mxu0  ;;  %v1765_v7 = vpop.f32.mrb[26].mxu1 }
 0x29a   : > { %v3863_v61 = vpop.f32.mrb[27].mxu1 }
 0x29b   : > { %v2754_v52 = vmax.f32 %v4114_v28, 0.0 }
 0x29c   : > { %v2718_v43 = vpop.f32.mrb[26].mxu0 }
 0x29d   : > { %2769 = vst.msk [vmem:[%s5968_s6 + $0x60] sm:$0xff] %vm625_vm3, %v2754_v52  ;;  %v3051_v41 = vsel %vm625_vm3, %v2754_v52, 0.0  ;;  %v3075_v51 = vmul.f32 %v2754_v52, %v2754_v52  ;;  %v4115_v10 = vadd.f32 %v2718_v43, %v1765_v7  ;;  %v4067_v54 = vpop.f32.mrb[27].mxu0  ;;  %v1770_v46 = vpop.f32.mrb[28].mxu1 }
 0x29e   : > { %v3052_v60 = vadd.f32 %v3051_v41, %v3048_v31  ;;  %v3866_v62 = vpop.f32.mrb[29].mxu1 }
 0x29f   : > { %v3101_v35 = vsel %vm625_vm3, %v3075_v51, 0.0  ;;  %v2755_v8 = vmax.f32 %v4115_v10, 0.0 }
 0x2a0   : > { %v3102_v32 = vadd.f32 %v3101_v35, %v3098_v42  ;;  %v2723_v55 = vpop.f32.mrb[28].mxu0 }
 0x2a1   : > { %2770 = vst.msk [vmem:[%s5968_s6 + $0x68] sm:$0xff] %vm625_vm3, %v2755_v8  ;;  %v4116_v5 = vadd.f32 %v2723_v55, %v1770_v46  ;;  %v4070_v17 = vpop.f32.mrb[29].mxu0 }
 0x2a3   : > { %v2756_v58 = vmax.f32 %v4116_v5, 0.0 }
 0x2a5   : > { %2771 = vst.msk [vmem:[%s5968_s6 + $0x70] sm:$0xff] %vm625_vm3, %v2756_v58  ;;  %v3055_v33 = vsel %vm625_vm3, %v2756_v58, 0.0  ;;  %v3077_v22 = vmul.f32 %v2756_v58, %v2756_v58 }
 0x2a6   : > { %v3056_v27 = vadd.f32 %v3055_v33, %v3052_v60 }
 0x2a7   : > { %v3105_v0 = vsel %vm625_vm3, %v3077_v22, 0.0 }
 0x2a8   : > { %v3057_v53 = vrot.slane %v3056_v27, 4  ;;  %v3106_v13 = vadd.f32 %v3105_v0, %v3102_v32 }
 0x2aa   : > { %v3058_v36 = vadd.f32 %v3057_v53, %v3056_v27  ;;  %v3107_v37 = vrot.slane %v3106_v13, 4 }
 0x2ac   : > { %v3059_v48 = vrot.slane %v3058_v36, 2  ;;  %v3108_v6 = vadd.f32 %v3107_v37, %v3106_v13 }
 0x2ae   : > { %v3060_v23 = vadd.f32 %v3059_v48, %v3058_v36  ;;  %v3109_v14 = vrot.slane %v3108_v6, 2 }
 0x2b0   : > { %v3061_v1 = vrot.slane %v3060_v23, 1  ;;  %v3110_v24 = vadd.f32 %v3109_v14, %v3108_v6 }
 0x2b2   : > { %v3111_v21 = vrot.slane %v3110_v24, 1  ;;  %v3062_v12 = vadd.f32 %v3061_v1, %v3060_v23 }
 0x2b4   : > { %v3112_v20 = vadd.f32 %v3111_v21, %v3110_v24 }
 0x2b6   : > { %v3114_v39 = vsel %vm3113_vm6, %v3062_v12, %v3112_v20 }
 0x2b7   : > { %v3116_v4 = vsel %vm3115_vm7, %v3114_v39, 0.0 }
 0x2b8   : > { %3117 = vst.msk [vmem:[%s363_s11] sm:$0xff] %vm625_vm3, %v3116_v4 }
 0x2b9 PF: > { %s16_s22 = sadd.s32 1, %s4418_s22   ;;  %s6105_s18 = smov %s4410_s20 }
 0x2ba   : > { %p13_p10 = scmp.ge.s32.totalorder %s16_s22, 18   ;;  %s6106_s19 = smov %s4414_s21 }
 0x2bb   : > { %s6107_s20 = smov %s6110_s23  ;;  %s6108_s21 = smov %s6114_s24 }
 0x2bc   :  { %15 = sbr.rel (!%p13_p10) target bundleno = 3 (0x3), region = 84 }

// kernel: module_a_forward.7
= control target key start
LH: loop header
LB: loop body
LE: loop exit
PB: predicated region body
PF: predicated region fallthrough
CT: control target
= control target key end

     0   :  { %11 = vsyncpa [#allocation3], 0  ;;  %s6205_s0 = inlined_call_operand.vmem [shape: f32[2,10,160,8], index: 0, kind: input, shape index: {}, may-alias: {0,1,2}]   ;;  %s6206_s1 = inlined_call_operand.vmem [shape: f32[2,10,160,8], index: 1, kind: input, shape index: {}, may-alias: {0,1,2}]   ;;  %s6207_s2 = inlined_call_operand.vmem [shape: f32[2,10,160,8], index: 2, kind: input, shape index: {}, may-alias: {0,1,2}]   ;;  %s6208_s3 = inlined_call_operand.vmem [shape: f32[3,3,24,12], index: 3, kind: input, shape index: {}]   ;;  %s6209_s4 = inlined_call_operand.vmem [shape: f32[2,8,120,12], index: 4, kind: output, shape index: {0}]   ;;  %s6210_s5 = inlined_call_operand.hbm [shape: f32[2,8,8,12], index: 5, kind: output, shape index: {1}]  }
   0x1   :  { %13 = vsyncpa [#allocation3 + $0x1], 0  ;;  %s4546_s18 = smov 0   ;;  %s4548_s19 = smov 0  }
   0x2   :  { %s4550_s20 = smov 0   ;;  %s4552_s21 = smov 0  }
   0x3   :  { %s4554_s22 = smov 0   ;;  %s4556_s23 = smov 0  }
   0x4   :  { %s4558_s24 = smov 0   ;;  %s4560_s25 = smov 0  }
   0x5 LB: > { %6240 = sst [smem:[#allocation5_spill]] %s4504_s24  ;;  %s3303_s26 = sadd.s32 4294967295, %s4508_s25   ;;  %s4508_s25 = sphi %s4560_s25, %s19_s25   ;;  %s4504_s24 = sphi %s4558_s24, %s6283_s24   ;;  %s4500_s23 = sphi %s4556_s23, %s6288_s23   ;;  %s4496_s22 = sphi %s4554_s22, %s6281_s22   ;;  %s4492_s21 = sphi %s4552_s21, %s6287_s21   ;;  %s4488_s20 = sphi %s4550_s20, %s6286_s20   ;;  %s4484_s19 = sphi %s4548_s19, %s6285_s19   ;;  %s4480_s18 = sphi %s4546_s18, %s6284_s18  }
   0x6   : > { %s3304_s27 = sadd.s32 4294967294, %s4508_s25   ;;  %s28_s28 = sadd.s32 1, %s4500_s23 }
   0x7   : > { %p29_p0 = scmp.ge.s32.totalorder %s28_s28, 8  ;;  %s31_s29 = sadd.s32 1, %s4504_s24 }
   0x8   : > { %p187_p1 = scmp.ne.s32.totalorder %s4488_s20, %s4484_s19  ;;  %p188_p2 = scmp.eq.s32.totalorder %s3303_s26, 15 }
   0x9   : > { %s6290_s28 = smov (%p29_p0, %s28_s28), 0  ;;  %s6292_s29 = smov (!%p29_p0, %s31_s29), %s4504_s24 }
   0xa   : > { %6241 = sst [smem:[#allocation6_spill]] %s6290_s28  ;;  %s173_s30 = ssub.s32 %s4500_s23, %s6290_s28 }
   0xb   : > { %p4597_p3 = por %p188_p2, %p187_p1  ;;  %p33_p4 = scmp.ge.s32.totalorder %s6292_s29, 2 }
   0xc   : > { %p193_p5 = scmp.ne.s32.totalorder %s4484_s19, %s4480_s18  ;;  %p194_p6 = scmp.eq.s32.totalorder %s3304_s27, 15 }
   0xd   : > { %p3307_p7 = scmp.ge.s32.totalorder %s4508_s25, 1  ;;  %s6294_s29 = smov (%p33_p4, %s6292_s29), 0 }
   0xe   : > { %6243 = sst [smem:[#allocation7_spill]] %s6294_s29  ;;  %p4606_p8 = por %p194_p6, %p193_p5 }
   0xf   : > { %p255_p9 = scmp.lt.s32.totalorder %s4508_s25, 17  ;;  %s172_s8 = ssub.s32 %s4504_s24, %s6294_s29 }
  0x10   : > { %s177_s9 = sadd.s32 1, %s4488_s20  ;;  %s174_s10 = sor.u32 %s173_s30, %s172_s8 }
  0x11   : > { %p256_p10 = pnand %p3307_p7, %p255_p9  ;;  %p175_p11 = scmp.eq.s32.totalorder %s174_s10, 0 }
  0x13   : > { %s4615_s11 = scalar_select %p175_p11, %s4488_s20, %s177_s9  }
  0x14   : > { %259 = sbr.rel (%p256_p10) target bundleno = 721 (0x2d1), region = 36 }
  0x1b   : > { %p316_p12 = scmp.lt.s32.totalorder %s4496_s22, 1  ;;  %p318_p13 = scmp.lt.s32.totalorder %s4492_s21, 9  ;;  %v359_v0 = vld [vmem:[%s6208_s3 + $0x18] sm:$0xff]  ;;  %v6217_v1 = vmov 0.0|0.0   ;;  %v360_v2 = vld [vmem:[%s6208_s3 + $0x20] sm:$0xff]  ;;  %vm4511_vm0 = vmmov 0  }
  0x1c   : > { %4074 = vmatprep.subr.bf16.mxu1 %v6217_v1  ;;  %4086 = vmatprep.subr.bf16.mxu0 %v6217_v1  ;;  %v4075_v3 = vpack.c.bf16 %v360_v2, %v359_v0  ;;  %v6223_v4 = vmov 0.0   ;;  %s325_s27 = sadd.s32 1, %s4492_s21  ;;  %v361_v5 = vld [vmem:[%s6208_s3 + $0x28] sm:$0xff]  ;;  %v368_v6 = vld [vmem:[%s6208_s3 + $0x60] sm:$0xff]  ;;  %vm520_vm1 = vcmask 1045504   ;;  %vm423_vm2 = vcmask 1046528  }
  0x1d   : > { %s4628_s16 = scalar_select %p316_p12, %s4496_s22, 1  ;;  %3621 = vmatprep.mubr.msk.f32.mxu1 %vm4511_vm0, %v6223_v4  ;;  %3825 = vmatprep.mubr.msk.f32.mxu0 %vm4511_vm0, %v6223_v4  ;;  %v369_v7 = vld [vmem:[%s6208_s3 + $0x68] sm:$0xff]  ;;  %v370_v36 = vld [vmem:[%s6208_s3 + $0x70] sm:$0xff]  ;;  %vm617_vm3 = vcmask 64512   ;;  %vm637_vm4 = vcmask 130048   ;;  %vm657_vm5 = vcmask 195584  }
  0x1e   : > { %s319_s17 = scalar_select %p318_p13, %s4492_s21, 9  ;;  %4076 = vmatpush3.bf16.msra.mxu1 %v4075_v3  ;;  %v4665_v11 = vpack.c.bf16 %v369_v7, %v368_v6  ;;  %vm2749_vm6 = vcmask 97280   ;;  %vm3106_vm7 = vcmask 1040384   ;;  %vm3108_vm8 = vcmask 1041408  }
  0x1f   : > { %s4636_s26 = smul.u32 200, %s4628_s16  ;;  %3619 = vmatprep.subr.mxu1 %v6223_v4  ;;  %p328_p0 = scmp.lt.s32.totalorder %s325_s27, 9 }
  0x20   : > { %s4330_s30 = smul.u32 20, %s319_s17  ;;  %6245 = vst [vmem:[#allocation8_spill] sm:$0xff] %v4665_v11  ;;  %4088 = vmatpush3.bf16.msra.mxu0 %v4665_v11  ;;  %s4513_s28 = smov 16  }
  0x21   : > { %s6296_s27 = smov (!%p328_p0, %s325_s27), 9  ;;  %3823 = vmatprep.subr.mxu0 %v6223_v4  ;;  %s4514_s29 = smov 8  }
  0x22   : > { %s322_s10 = sadd.s32 %s4636_s26, %s4330_s30  ;;  %3620 = vmatpush3.msra.mxu1 %v361_v5  ;;  %s4332_s24 = smul.u32 20, %s6296_s27 }
  0x23   : > { %s3309_s12 = sshll.u32 %s322_s10, 3  ;;  %4077 = vmatprep.subr.bf16.mxu1 %v6217_v1  ;;  %s336_s14 = sadd.s32 2, %s4492_s21 }
  0x24   : > { %s4647_s15 = scalar_lea.vmem %s6205_s0, %s3309_s12  ;;  %s332_s30 = sadd.s32 %s4332_s24, %s4636_s26  ;;  %3824 = vmatpush3.msra.mxu0 %v370_v36 }
  0x25   : > { %v4657_v8 = vld [vmem:[%s4647_s15 + $0x10] sm:$0xff]  ;;  %v4660_v9 = vld [vmem:[%s4647_s15 + $0x18] sm:$0xff]  ;;  %v4663_v10 = vld [vmem:[%s4647_s15 + $0x20] sm:$0xff]  ;;  %s3310_s27 = sshll.u32 %s332_s30, 3  ;;  %4089 = vmatprep.subr.bf16.mxu0 %v6217_v1  ;;  %p339_p1 = scmp.lt.s32.totalorder %s336_s14, 9 }
  0x26   : > { %v524_v12 = vrot.slane %v4657_v8, 2  ;;  %v526_v13 = vrot.slane %v4660_v9, 2  ;;  %v427_v14 = vrot.slane %v4657_v8, 1  ;;  %v429_v15 = vrot.slane %v4660_v9, 1  ;;  %s4687_s10 = scalar_lea.vmem %s6206_s1, %s3310_s27  ;;  %v4724_v37 = vld [vmem:[%s4647_s15 + $0x28] sm:$0xff]  ;;  %v4743_v47 = vld [vmem:[%s4647_s15 + $0x30] sm:$0xff] }
  0x27   : > { %v431_v16 = vrot.slane %v4663_v10, 1  ;;  %v4690_v20 = vld [vmem:[%s4687_s10 + $0x18] sm:$0xff]  ;;  %v4693_v21 = vld [vmem:[%s4687_s10 + $0x20] sm:$0xff]  ;;  %v4696_v22 = vld [vmem:[%s4687_s10 + $0x10] sm:$0xff]  ;;  %v528_v35 = vrot.slane %v4663_v10, 2  ;;  %v433_v41 = vrot.slane %v4724_v37, 1 }
  0x28   : > { %v527_v17 = vsel %vm520_vm1, %v524_v12, %v526_v13  ;;  %v430_v18 = vsel %vm423_vm2, %v427_v14, %v429_v15  ;;  %v1195_v23 = vrot.slane %v4690_v20, 1  ;;  %v1197_v24 = vrot.slane %v4693_v21, 1  ;;  %v4706_v29 = vld [vmem:[%s4687_s10 + $0x28] sm:$0xff]  ;;  %v4734_v42 = vld [vmem:[%s4687_s10 + $0x30] sm:$0xff]  ;;  %v4752_v52 = vld [vmem:[%s4687_s10 + $0x38] sm:$0xff]  ;;  %s6298_s14 = smov (!%p339_p1, %s336_s14), 9 }
  0x29   : > { %564 = vrot.lane.b32.xlu0 %v527_v17, %s4513_s28  ;;  %467 = vrot.lane.b32.xlu1 %v430_v18, %s4514_s29  ;;  %v432_v19 = vsel %vm423_vm2, %v429_v15, %v431_v16  ;;  %v6215_v25 = vrot.slane %v4696_v22, 1  ;;  %v1291_v26 = vrot.slane %v4690_v20, 2  ;;  %v1293_v27 = vrot.slane %v4693_v21, 2  ;;  %v4761_v57 = vld [vmem:[%s4647_s15 + $0x38] sm:$0xff]  ;;  %v4770_v62 = vld [vmem:[%s4687_s10 + $0x40] sm:$0xff]  ;;  %s4333_s8 = smul.u32 20, %s6298_s14 }
  0x2a   : > { %v6214_v28 = vrot.slane %v4696_v22, 2  ;;  %v1198_v30 = vsel %vm423_vm2, %v1195_v23, %v1197_v24  ;;  %v1199_v33 = vrot.slane %v4706_v29, 1  ;;  %v1295_v39 = vrot.slane %v4706_v29, 2  ;;  %v4779_v5 = vld [vmem:[%s4647_s15 + $0x40] sm:$0xff]  ;;  %p349_p2 = scmp.lt.s32.totalorder %s4492_s21, 7  ;;  %s3449_s14 = sshll.u32 %s4496_s22, 3 }
  0x2b   : > { %v1196_v31 = vsel %vm423_vm2, %v6215_v25, %v1195_v23  ;;  %v1294_v32 = vsel %vm520_vm1, %v1291_v26, %v1293_v27  ;;  %v529_v40 = vsel %vm520_vm1, %v526_v13, %v528_v35  ;;  %v1201_v44 = vrot.slane %v4734_v42, 1  ;;  %s343_s9 = sadd.s32 %s4333_s8, %s4636_s26  ;;  %s3135_s17 = sadd.s32 %s4492_s21, %s3449_s14 }
  0x2c   : > { %v1292_v34 = vsel %vm520_vm1, %v6214_v28, %v1291_v26  ;;  %v1200_v38 = vsel %vm423_vm2, %v1197_v24, %v1199_v33  ;;  %v1296_v43 = vsel %vm520_vm1, %v1293_v27, %v1295_v39  ;;  %v434_v45 = vsel %vm423_vm2, %v431_v16, %v433_v41  ;;  %v4788_v16 = vld [vmem:[%s4687_s10 + $0x48] sm:$0xff]  ;;  %s3311_s26 = sshll.u32 %s343_s9, 3  ;;  %s3450_s24 = sshll.u32 %s3135_s17, 7 }
  0x2d   : > { %469 = vrot.lane.b32.xlu0 %v432_v19, %s4514_s29  ;;  %1235 = vrot.lane.b32.xlu1 %v1198_v30, %s4514_s29  ;;  %v530_v46 = vrot.slane %v4724_v37, 2  ;;  %v1202_v48 = vsel %vm423_vm2, %v1199_v33, %v1201_v44  ;;  %v1297_v49 = vrot.slane %v4734_v42, 2  ;;  %v435_v51 = vrot.slane %v4743_v47, 1  ;;  %v4797_v24 = vld [vmem:[%s4647_s15 + $0x48] sm:$0xff]  ;;  %s5024_s9 = scalar_lea.vmem %s6207_s2, %s3311_s26 }
  0x2e   : > { %v1203_v54 = vrot.slane %v4752_v52, 1  ;;  %v532_v56 = vrot.slane %v4743_v47, 2  ;;  %v1299_v59 = vrot.slane %v4752_v52, 2  ;;  %v437_v61 = vrot.slane %v4761_v57, 1  ;;  %v5182_v28 = vld [vmem:[%s5024_s9 + $0x40] sm:$0xff]  ;;  %s350_s27 = scalar_select %p349_p2, %s4492_s21, 7 }
  0x2f   : > { %v531_v50 = vsel %vm520_vm1, %v528_v35, %v530_v46  ;;  %v1298_v53 = vsel %vm520_vm1, %v1295_v39, %v1297_v49  ;;  %v436_v55 = vsel %vm423_vm2, %v433_v41, %v435_v51  ;;  %v1205_v0 = vrot.slane %v4770_v62, 1 }
  0x30   : > { %v1204_v58 = vsel %vm423_vm2, %v1201_v44, %v1203_v54  ;;  %v533_v60 = vsel %vm520_vm1, %v530_v46, %v532_v56  ;;  %v1300_v63 = vsel %vm520_vm1, %v1297_v49, %v1299_v59  ;;  %v438_v2 = vsel %vm423_vm2, %v435_v51, %v437_v61  ;;  %v4826_v44 = vld [vmem:[%s4647_s15 + $0x58] sm:$0xff]  ;;  %s4334_s8 = smul.u32 15, %s350_s27 }
  0x31   : > { %1233 = vrot.lane.b32.xlu0 %v1196_v31, %s4514_s29  ;;  %1331 = vrot.lane.b32.xlu1 %v1294_v32, %s4513_s28  ;;  %v534_v3 = vrot.slane %v4761_v57, 2  ;;  %v1206_v6 = vsel %vm423_vm2, %v1203_v54, %v1205_v0  ;;  %v1301_v7 = vrot.slane %v4770_v62, 2  ;;  %v439_v15 = vrot.slane %v4779_v5, 1  ;;  %v4806_v32 = vld [vmem:[%s4687_s10 + $0x50] sm:$0xff] }
  0x32   : > { %v1207_v18 = vrot.slane %v4788_v16, 1  ;;  %v536_v23 = vrot.slane %v4779_v5, 2  ;;  %v1303_v27 = vrot.slane %v4788_v16, 2  ;;  %v441_v31 = vrot.slane %v4797_v24, 1 }
  0x33   : > { %v535_v13 = vsel %vm520_vm1, %v532_v56, %v534_v3  ;;  %v1302_v17 = vsel %vm520_vm1, %v1299_v59, %v1301_v7  ;;  %v440_v19 = vsel %vm423_vm2, %v437_v61, %v439_v15  ;;  %v538_v36 = vrot.slane %v4797_v24, 2  ;;  %v4846_v56 = vld [vmem:[%s4647_s15 + $0x68] sm:$0xff] }
  0x34   : > { %v1208_v26 = vsel %vm423_vm2, %v1205_v0, %v1207_v18  ;;  %v537_v30 = vsel %vm520_vm1, %v534_v3, %v536_v23  ;;  %v1304_v33 = vsel %vm520_vm1, %v1301_v7, %v1303_v27  ;;  %v442_v35 = vsel %vm423_vm2, %v439_v15, %v441_v31  ;;  %v4864_v7 = vld [vmem:[%s4647_s15 + $0x78] sm:$0xff] }
  0x35   : > { %1329 = vrot.lane.b32.xlu0 %v1292_v34, %s4513_s28  ;;  %1237 = vrot.lane.b32.xlu1 %v1200_v38, %s4514_s29  ;;  %v1209_v34 = vrot.slane %v4806_v32, 1  ;;  %v4815_v38 = vld [vmem:[%s4647_s15 + $0x50] sm:$0xff]  ;;  %v539_v41 = vsel %vm520_vm1, %v536_v23, %v538_v36  ;;  %v445_v49 = vrot.slane %v4826_v44, 1  ;;  %v449_v61 = vrot.slane %v4846_v56, 1 }
  0x36   : > { %v540_v46 = vrot.slane %v4815_v38, 2 }
  0x37   : > { %v1210_v39 = vsel %vm423_vm2, %v1207_v18, %v1209_v34  ;;  %v453_v18 = vrot.slane %v4864_v7, 1 }
  0x38   : > { %v541_v51 = vsel %vm520_vm1, %v538_v36, %v540_v46 }
  0x39   : > { %566 = vrot.lane.b32.xlu0 %v529_v40, %s4513_s28  ;;  %1333 = vrot.lane.b32.xlu1 %v1296_v43, %s4513_s28  ;;  %v1305_v40 = vrot.slane %v4806_v32, 2  ;;  %v443_v43 = vrot.slane %v4815_v38, 1 }
  0x3b   : > { %v446_v54 = vsel %vm423_vm2, %v443_v43, %v445_v49 }
  0x3d   : > { %471 = vrot.lane.b32.xlu0 %v434_v45, %s4514_s29  ;;  %1239 = vrot.lane.b32.xlu1 %v1202_v48, %s4514_s29  ;;  %v1306_v45 = vsel %vm520_vm1, %v1303_v27, %v1305_v40  ;;  %v444_v48 = vsel %vm423_vm2, %v441_v31, %v443_v43  ;;  %v4882_v31 = vld [vmem:[%s4687_s10 + $0x58] sm:$0xff] }
  0x41   : > { %568 = vrot.lane.b32.xlu0 %v531_v50, %s4513_s28  ;;  %1335 = vrot.lane.b32.xlu1 %v1298_v53, %s4513_s28  ;;  %v4837_v50 = vld [vmem:[%s4647_s15 + $0x60] sm:$0xff]  ;;  %v542_v53 = vrot.slane %v4826_v44, 2 }
  0x42   : > { %v544_v59 = vrot.slane %v4837_v50, 2 }
  0x44   : > { %v545_v0 = vsel %vm520_vm1, %v542_v53, %v544_v59 }
  0x45   : > { %473 = vrot.lane.b32.xlu0 %v436_v55, %s4514_s29  ;;  %1241 = vrot.lane.b32.xlu1 %v1204_v58, %s4514_s29  ;;  %v447_v55 = vrot.slane %v4837_v50, 1  ;;  %v543_v58 = vsel %vm520_vm1, %v540_v46, %v542_v53 }
  0x47   : > { %v450_v3 = vsel %vm423_vm2, %v447_v55, %v449_v61 }
  0x49   : > { %570 = vrot.lane.b32.xlu0 %v533_v60, %s4513_s28  ;;  %1337 = vrot.lane.b32.xlu1 %v1300_v63, %s4513_s28  ;;  %v448_v60 = vsel %vm423_vm2, %v445_v49, %v447_v55  ;;  %v4855_v63 = vld [vmem:[%s4647_s15 + $0x70] sm:$0xff]  ;;  %v4902_v49 = vld [vmem:[%s4687_s10 + $0x60] sm:$0xff] }
  0x4a   : > { %v548_v15 = vrot.slane %v4855_v63, 2  ;;  %v1213_v53 = vrot.slane %v4902_v49, 1  ;;  %v4915_v55 = vld [vmem:[%s4647_s15] sm:$0xff] }
  0x4d   : > { %475 = vrot.lane.b32.xlu0 %v438_v2, %s4514_s29  ;;  %1243 = vrot.lane.b32.xlu1 %v1206_v6, %s4514_s29  ;;  %v546_v2 = vrot.slane %v4846_v56, 2  ;;  %v451_v6 = vrot.slane %v4855_v63, 1 }
  0x4f   : > { %v549_v23 = vsel %vm520_vm1, %v546_v2, %v548_v15  ;;  %v454_v27 = vsel %vm423_vm2, %v451_v6, %v453_v18 }
  0x51   : > { %572 = vrot.lane.b32.xlu0 %v535_v13, %s4513_s28  ;;  %1339 = vrot.lane.b32.xlu1 %v1302_v17, %s4513_s28  ;;  %v547_v13 = vsel %vm520_vm1, %v544_v59, %v546_v2  ;;  %v452_v17 = vsel %vm423_vm2, %v449_v61, %v451_v6  ;;  %v4928_v61 = vld [vmem:[%s4687_s10 + $0x68] sm:$0xff] }
  0x52   : > { %v1215_v6 = vrot.slane %v4928_v61, 1 }
  0x55   : > { %477 = vrot.lane.b32.xlu0 %v440_v19, %s4514_s29  ;;  %1245 = vrot.lane.b32.xlu1 %v1208_v26, %s4514_s29  ;;  %v4873_v19 = vld [vmem:[%s4647_s15 + $0x80] sm:$0xff]  ;;  %v550_v26 = vrot.slane %v4864_v7, 2 }
  0x59   : > { %574 = vrot.lane.b32.xlu0 %v537_v30, %s4513_s28  ;;  %1341 = vrot.lane.b32.xlu1 %v1304_v33, %s4513_s28  ;;  %v455_v30 = vrot.slane %v4873_v19, 1  ;;  %v551_v33 = vsel %vm520_vm1, %v548_v15, %v550_v26  ;;  %v521_v15 = vrot.slane %v4915_v55, 2 }
  0x5b   : > { %v456_v36 = vsel %vm423_vm2, %v453_v18, %v455_v30  ;;  %v1216_v18 = vsel %vm423_vm2, %v1213_v53, %v1215_v6 }
  0x5d   : > { %479 = vrot.lane.b32.xlu0 %v442_v35, %s4514_s29  ;;  %1247 = vrot.lane.b32.xlu1 %v1210_v39, %s4514_s29  ;;  %v1211_v35 = vrot.slane %v4882_v31, 1  ;;  %v552_v39 = vrot.slane %v4873_v19, 2 }
  0x5f   : > { %v1212_v43 = vsel %vm423_vm2, %v1209_v34, %v1211_v35  ;;  %v553_v46 = vsel %vm520_vm1, %v550_v26, %v552_v39  ;;  %v1214_v59 = vsel %vm423_vm2, %v1211_v35, %v1213_v53  ;;  %v357_v53 = vld [vmem:[%s6208_s3 + $0x8] sm:$0xff] }
  0x61   : > { %576 = vrot.lane.b32.xlu0 %v539_v41, %s4513_s28  ;;  %1343 = vrot.lane.b32.xlu1 %v1306_v45, %s4513_s28  ;;  %v4891_v41 = vld [vmem:[%s4647_s15 + $0x88] sm:$0xff]  ;;  %v1307_v45 = vrot.slane %v4882_v31, 2 }
  0x65   : > { %481 = vrot.lane.b32.xlu0 %v444_v48, %s4514_s29  ;;  %578 = vrot.lane.b32.xlu1 %v541_v51, %s4513_s28  ;;  %v6219_v48 = vrot.slane %v4891_v41, 1  ;;  %v1308_v51 = vsel %vm520_vm1, %v1305_v40, %v1307_v45  ;;  %v1309_v40 = vrot.slane %v4902_v49, 2 }
  0x67   : > { %v458_v34 = vsel %vm423_vm2, %v455_v30, %v6219_v48  ;;  %v5254_v48 = vld [vmem:[%s5024_s9 + $0x60] sm:$0xff] }
  0x69   : > { %483 = vrot.lane.b32.xlu0 %v446_v54, %s4514_s29  ;;  %580 = vrot.lane.b32.xlu1 %v543_v58, %s4513_s28  ;;  %v6216_v54 = vrot.slane %v4891_v41, 2  ;;  %v4918_v58 = vld [vmem:[%s4647_s15 + $0x8] sm:$0xff] }
  0x6a   : > { %v425_v2 = vrot.slane %v4918_v58, 1 }
  0x6c   : > { %v428_v35 = vsel %vm423_vm2, %v425_v2, %v427_v14  ;;  %v4967_v14 = vld [vmem:[%s4687_s10 + $0x80] sm:$0xff] }
  0x6d   : > { %485 = vrot.lane.b32.xlu0 %v448_v60, %s4514_s29  ;;  %582 = vrot.lane.b32.xlu1 %v545_v0, %s4513_s28  ;;  %v555_v60 = vsel %vm520_vm1, %v552_v39, %v6216_v54  ;;  %v424_v0 = vrot.slane %v4915_v55, 1  ;;  %v5218_v54 = vld [vmem:[%s5024_s9 + $0x50] sm:$0xff] }
  0x71   : > { %487 = vrot.lane.b32.xlu0 %v450_v3, %s4514_s29  ;;  %584 = vrot.lane.b32.xlu1 %v547_v13, %s4513_s28  ;;  %v1310_v3 = vsel %vm520_vm1, %v1307_v45, %v1309_v40  ;;  %v426_v13 = vsel %vm423_vm2, %v424_v0, %v425_v2  ;;  %v4982_v2 = vld [vmem:[%s4687_s10 + $0x88] sm:$0xff] }
  0x75   : > { %489 = vrot.lane.b32.xlu0 %v452_v17, %s4514_s29  ;;  %586 = vrot.lane.b32.xlu1 %v549_v23, %s4513_s28  ;;  %v522_v17 = vrot.slane %v4918_v58, 2  ;;  %v1311_v23 = vrot.slane %v4928_v61, 2 }
  0x77   : > { %v523_v26 = vsel %vm520_vm1, %v521_v15, %v522_v17  ;;  %v1312_v30 = vsel %vm520_vm1, %v1309_v40, %v1311_v23  ;;  %v525_v45 = vsel %vm520_vm1, %v522_v17, %v524_v12  ;;  %v1221_v40 = vrot.slane %v4967_v14, 1 }
  0x78   : > { %v1317_v17 = vrot.slane %v4967_v14, 2 }
  0x79   : > { %491 = vrot.lane.b32.xlu0 %v454_v27, %s4514_s29  ;;  %588 = vrot.lane.b32.xlu1 %v551_v33, %s4513_s28  ;;  %v4945_v27 = vld [vmem:[%s4687_s10 + $0x70] sm:$0xff] }
  0x7a   : > { %v1217_v33 = vrot.slane %v4945_v27, 1 }
  0x7c   : > { %v1218_v39 = vsel %vm423_vm2, %v1215_v6, %v1217_v33 }
  0x7d   : > { %493 = vrot.lane.b32.xlu0 %v456_v36, %s4514_s29  ;;  %1249 = vrot.lane.b32.xlu1 %v1212_v43, %s4514_s29  ;;  %v4956_v36 = vld [vmem:[%s4687_s10 + $0x78] sm:$0xff]  ;;  %v1313_v43 = vrot.slane %v4945_v27, 2 }
  0x7e   : > { %v1315_v12 = vrot.slane %v4956_v36, 2 }
  0x81   : > { %590 = vrot.lane.b32.xlu0 %v553_v46, %s4513_s28  ;;  %1345 = vrot.lane.b32.xlu1 %v1308_v51, %s4513_s28  ;;  %v1219_v46 = vrot.slane %v4956_v36, 1  ;;  %v356_v51 = vld [vmem:[%s6208_s3] sm:$0xff] }
  0x85   : > { %495 = vrot.lane.b32.xlu0 %v458_v34, %s4514_s29  ;;  %1251 = vrot.lane.b32.xlu1 %v1214_v59, %s4514_s29  ;;  %v1314_v34 = vsel %vm520_vm1, %v1311_v23, %v1313_v43  ;;  %v1220_v59 = vsel %vm423_vm2, %v1217_v33, %v1219_v46  ;;  %v1223_v23 = vrot.slane %v4982_v2, 1  ;;  %v1318_v33 = vsel %vm520_vm1, %v1315_v12, %v1317_v17 }
  0x89   : > { %592 = vrot.lane.b32.xlu0 %v555_v60, %s4513_s28  ;;  %1347 = vrot.lane.b32.xlu1 %v1310_v3, %s4513_s28  ;;  %v4078_v3 = vpack.c.bf16 %v357_v53, %v356_v51  ;;  %v371_v51 = vld [vmem:[%s6208_s3 + $0x78] sm:$0xff]  ;;  %v372_v53 = vld [vmem:[%s6208_s3 + $0x80] sm:$0xff] }
  0x8d   : > { %463 = vrot.lane.b32.xlu0 %v426_v13, %s4514_s29  ;;  %1253 = vrot.lane.b32.xlu1 %v1216_v18, %s4514_s29  ;;  %v1316_v13 = vsel %vm520_vm1, %v1313_v43, %v1315_v12  ;;  %v1222_v18 = vsel %vm423_vm2, %v1219_v46, %v1221_v40  ;;  %v1224_v43 = vsel %vm423_vm2, %v1221_v40, %v1223_v23 }
  0x91   : > { %560 = vrot.lane.b32.xlu0 %v523_v26, %s4513_s28  ;;  %1349 = vrot.lane.b32.xlu1 %v1312_v30, %s4513_s28  ;;  %v4999_v30 = vld [vmem:[%s4687_s10 + $0x90] sm:$0xff] }
  0x95   : > { %465 = vrot.lane.b32.xlu0 %v428_v35, %s4514_s29  ;;  %1255 = vrot.lane.b32.xlu1 %v1218_v39, %s4514_s29  ;;  %v1319_v35 = vrot.slane %v4982_v2, 2 }
  0x97   : > { %v1320_v12 = vsel %vm520_vm1, %v1317_v17, %v1319_v35 }
  0x99   : > { %562 = vrot.lane.b32.xlu0 %v525_v45, %s4513_s28  ;;  %1351 = vrot.lane.b32.xlu1 %v1314_v34, %s4513_s28  ;;  %v1225_v45 = vrot.slane %v4999_v30, 1  ;;  %v1169_v34 = vld [vmem:[%s4687_s10 + $0x98] sm:$0xff] }
  0x9b   : > { %v565_v60 = vpop.permute.xlu0 %564  ;;  %v468_v0 = vpop.permute.xlu1 %467 }
  0x9c   : > { %v620_v6 = vsel %vm617_vm3, %v4657_v8, %v468_v0  ;;  %v358_v8 = vld [vmem:[%s6208_s3 + $0x10] sm:$0xff]  ;;  %v4090_v0 = vpack.c.bf16 %v372_v53, %v371_v51 }
  0x9d   : > { %1257 = vrot.lane.b32.xlu0 %v1220_v59, %s4514_s29  ;;  %v4990_v15 = vsel %vm637_vm4, %v620_v6, %v565_v60  ;;  %1353 = vrot.lane.b32.xlu1 %v1316_v13, %s4513_s28  ;;  %v1321_v59 = vrot.slane %v4999_v30, 2  ;;  %v1226_v60 = vsel %vm423_vm2, %v1223_v23, %v1225_v45  ;;  %v1227_v13 = vrot.slane %v1169_v34, 1 }
  0x9e   : > { %3622 = vmatmul.mubr.msk.f32.vlgmr.msra.gmra.mrb[0].mxu1 %vm657_vm5, %v4990_v15  ;;  %v1323_v23 = vrot.slane %v1169_v34, 2 }
  0x9f   : > { %v470_v26 = vpop.permute.xlu0 %469  ;;  %3624 = vmatprep.mubr.msk.f32.mxu1 %vm4511_vm0, %v6223_v4  ;;  %4079 = vmatpush3.bf16.msra.mxu1 %v4078_v3  ;;  %v1236_v39 = vpop.permute.xlu1 %1235  ;;  %v1322_v17 = vsel %vm520_vm1, %v1319_v35, %v1321_v59 }
  0xa0   : > { %3670 = vmatprep.subr.mxu1 %v6223_v4  ;;  %v621_v51 = vsel %vm617_vm3, %v4660_v9, %v470_v26  ;;  %v1385_v53 = vsel %vm617_vm3, %v4690_v20, %v1236_v39  ;;  %v373_v9 = vld [vmem:[%s6208_s3 + $0x88] sm:$0xff]  ;;  %v1324_v20 = vsel %vm520_vm1, %v1321_v59, %v1323_v23  ;;  %v5091_v23 = vld [vmem:[%s5024_s9 + $0x18] sm:$0xff] }
  0xa1   : > { %1259 = vrot.lane.b32.xlu0 %v1222_v18, %s4514_s29  ;;  %1355 = vrot.lane.b32.xlu1 %v1318_v33, %s4513_s28  ;;  %v5034_v18 = vld [vmem:[%s5024_s9] sm:$0xff]  ;;  %v5041_v33 = vld [vmem:[%s5024_s9 + $0x8] sm:$0xff] }
  0xa2   : > { %v2078_v26 = vrot.slane %v5034_v18, 2  ;;  %v2079_v39 = vrot.slane %v5041_v33, 2 }
  0xa3   : > { %v1234_v46 = vpop.permute.xlu0 %1233  ;;  %3671 = vmatpush3.msra.mxu1 %v358_v8  ;;  %v1332_v40 = vpop.permute.xlu1 %1331 }
  0xa4   : > { %4080 = vmatprep.subr.bf16.mxu1 %v6217_v1  ;;  %v1384_v3 = vsel %vm617_vm3, %v4696_v22, %v1234_v46  ;;  %v1982_v46 = vrot.slane %v5034_v18, 1  ;;  %v5058_v35 = vsel %vm637_vm4, %v1385_v53, %v1332_v40 }
  0xa5   : > { %1261 = vrot.lane.b32.xlu0 %v1224_v43, %s4514_s29  ;;  %1357 = vrot.lane.b32.xlu1 %v1320_v12, %s4513_s28  ;;  %6247 = vst [vmem:[#allocation10_spill] sm:$0xff] %v5058_v35 }
  0xa7   : > { %v1330_v6 = vpop.permute.xlu0 %1329  ;;  %v1238_v43 = vpop.permute.xlu1 %1237 }
  0xa8   : > { %v5038_v8 = vsel %vm637_vm4, %v1384_v3, %v1330_v6  ;;  %v1983_v3 = vrot.slane %v5041_v33, 1  ;;  %v1386_v40 = vsel %vm617_vm3, %v4693_v21, %v1238_v43  ;;  %v2080_v21 = vsel %vm520_vm1, %v2078_v26, %v2079_v39 }
  0xa9   : > { %6246 = vst [vmem:[#allocation9_spill] sm:$0xff] %v5038_v8  ;;  %3826 = vmatmul.mubr.msk.f32.vlgmr.msra.gmra.mrb[0].mxu0 %vm657_vm5, %v5038_v8  ;;  %1263 = vrot.lane.b32.xlu0 %v1226_v60, %s4514_s29  ;;  %v1228_v60 = vsel %vm423_vm2, %v1225_v45, %v1227_v13 }
  0xaa   : > { %3828 = vmatprep.mubr.msk.f32.mxu0 %vm4511_vm0, %v6223_v4  ;;  %4091 = vmatpush3.bf16.msra.mxu0 %v4090_v0  ;;  %v5065_v0 = vld [vmem:[%s5024_s9 + $0x10] sm:$0xff]  ;;  %v1984_v13 = vsel %vm423_vm2, %v1982_v46, %v1983_v3 }
  0xab   : > { %v567_v12 = vpop.permute.xlu0 %566  ;;  %3874 = vmatprep.subr.mxu0 %v6223_v4  ;;  %1359 = vrot.lane.b32.xlu1 %v1322_v17, %s4513_s28  ;;  %v1334_v45 = vpop.permute.xlu1 %1333  ;;  %v1985_v59 = vrot.slane %v5065_v0, 1  ;;  %v2081_v43 = vrot.slane %v5065_v0, 2 }
  0xac   : > { %v5062_v34 = vsel %vm637_vm4, %v621_v51, %v567_v12  ;;  %v5087_v17 = vsel %vm637_vm4, %v1386_v40, %v1334_v45 }
  0xad   : > { %3625 = vmatmul.mubr.msk.f32.gmra.mrb[2].mxu1 %vm657_vm5, %v5062_v34  ;;  %3829 = vmatmul.mubr.msk.f32.gmra.mrb[2].mxu0 %vm657_vm5, %v5058_v35  ;;  %6248 = vst [vmem:[#allocation11_spill] sm:$0xff] %v5087_v17  ;;  %v1986_v12 = vsel %vm423_vm2, %v1983_v3, %v1985_v59  ;;  %v2082_v26 = vsel %vm520_vm1, %v2079_v39, %v2081_v43  ;;  %v2005_v35 = vrot.slane %v5254_v48, 1 }
  0xae   : > { %1265 = vrot.lane.b32.xlu0 %v1228_v60, %s4514_s29  ;;  %3831 = vmatprep.mubr.msk.f32.mxu0 %vm4511_vm0, %v6223_v4  ;;  %v1987_v60 = vrot.slane %v5091_v23, 1 }
  0xaf   : > { %v472_v6 = vpop.permute.xlu0 %471  ;;  %3627 = vmatprep.mubr.msk.f32.mxu1 %vm4511_vm0, %v6223_v4  ;;  %3875 = vmatpush3.msra.mxu0 %v373_v9  ;;  %v1240_v46 = vpop.permute.xlu1 %1239 }
  0xb0   : > { %1361 = vrot.lane.b32.xlu1 %v1324_v20, %s4513_s28  ;;  %4092 = vmatprep.subr.bf16.mxu0 %v6217_v1  ;;  %v622_v51 = vsel %vm617_vm3, %v4663_v10, %v472_v6  ;;  %v5110_v20 = vld [vmem:[%s5024_s9 + $0x20] sm:$0xff]  ;;  %v2083_v10 = vrot.slane %v5091_v23, 2  ;;  %v1387_v3 = vsel %vm617_vm3, %v4706_v29, %v1240_v46  ;;  %v5130_v29 = vld [vmem:[%s5024_s9 + $0x28] sm:$0xff] }
  0xb1   : > { %3832 = vmatmul.mubr.msk.f32.gmra.mrb[4].mxu0 %vm657_vm5, %v5087_v17  ;;  %v1989_v39 = vrot.slane %v5110_v20, 1  ;;  %v2085_v46 = vrot.slane %v5110_v20, 2 }
  0xb2   : > { %2021 = vrot.lane.b32.xlu0 %v1984_v13, %s4514_s29  ;;  %3834 = vmatprep.mubr.msk.f32.mxu0 %vm4511_vm0, %v6223_v4  ;;  %v1988_v13 = vsel %vm423_vm2, %v1985_v59, %v1987_v60 }
  0xb3   : > { %v569_v53 = vpop.permute.xlu0 %568  ;;  %v1336_v45 = vpop.permute.xlu1 %1335 }
  0xb4   : > { %2117 = vrot.lane.b32.xlu1 %v2080_v21, %s4513_s28  ;;  %v5107_v9 = vsel %vm637_vm4, %v622_v51, %v569_v53  ;;  %v5122_v40 = vsel %vm637_vm4, %v1387_v3, %v1336_v45  ;;  %v2084_v21 = vsel %vm520_vm1, %v2081_v43, %v2083_v10  ;;  %v5146_v3 = vld [vmem:[%s5024_s9 + $0x30] sm:$0xff]  ;;  %v2086_v45 = vsel %vm520_vm1, %v2083_v10, %v2085_v46 }
  0xb5   : > { %3628 = vmatmul.mubr.msk.f32.gmra.mrb[4].mxu1 %vm657_vm5, %v5107_v9  ;;  %6249 = vst [vmem:[#allocation12_spill] sm:$0xff] %v5122_v40  ;;  %3835 = vmatmul.mubr.msk.f32.gmra.mrb[6].mxu0 %vm657_vm5, %v5122_v40  ;;  %v1993_v10 = vrot.slane %v5146_v3, 1 }
  0xb6   : > { %2023 = vrot.lane.b32.xlu0 %v1986_v12, %s4514_s29  ;;  %3630 = vmatprep.mubr.msk.f32.mxu1 %vm4511_vm0, %v6223_v4  ;;  %v1990_v12 = vsel %vm423_vm2, %v1987_v60, %v1989_v39 }
  0xb7   : > { %v474_v6 = vpop.permute.xlu0 %473  ;;  %3837 = vmatprep.mubr.msk.f32.mxu0 %vm4511_vm0, %v6223_v4  ;;  %v1242_v51 = vpop.permute.xlu1 %1241 }
  0xb8   : > { %2119 = vrot.lane.b32.xlu1 %v2082_v26, %s4513_s28  ;;  %v623_v59 = vsel %vm617_vm3, %v4724_v37, %v474_v6  ;;  %v1991_v26 = vrot.slane %v5130_v29, 1  ;;  %v2087_v37 = vrot.slane %v5130_v29, 2  ;;  %v1388_v60 = vsel %vm617_vm3, %v4734_v42, %v1242_v51  ;;  %v5166_v42 = vld [vmem:[%s5024_s9 + $0x38] sm:$0xff] }
  0xba   : > { %2025 = vrot.lane.b32.xlu0 %v1988_v13, %s4514_s29  ;;  %v2088_v51 = vsel %vm520_vm1, %v2085_v46, %v2087_v37 }
  0xbb   : > { %v571_v53 = vpop.permute.xlu0 %570  ;;  %v1338_v6 = vpop.permute.xlu1 %1337 }
  0xbc   : > { %2121 = vrot.lane.b32.xlu1 %v2084_v21, %s4513_s28  ;;  %v5143_v43 = vsel %vm637_vm4, %v623_v59, %v571_v53  ;;  %v5158_v13 = vsel %vm637_vm4, %v1388_v60, %v1338_v6  ;;  %v1992_v59 = vsel %vm423_vm2, %v1989_v39, %v1991_v26  ;;  %v2089_v53 = vrot.slane %v5146_v3, 2 }
  0xbd   : > { %3631 = vmatmul.mubr.msk.f32.gmra.mrb[6].mxu1 %vm657_vm5, %v5143_v43  ;;  %6250 = vst [vmem:[#allocation13_spill] sm:$0xff] %v5158_v13  ;;  %3838 = vmatmul.mubr.msk.f32.gmra.mrb[8].mxu0 %vm657_vm5, %v5158_v13  ;;  %v1994_v6 = vsel %vm423_vm2, %v1991_v26, %v1993_v10 }
  0xbe   : > { %2027 = vrot.lane.b32.xlu0 %v1990_v12, %s4514_s29  ;;  %3633 = vmatprep.mubr.msk.f32.mxu1 %vm4511_vm0, %v6223_v4 }
  0xbf   : > { %v476_v21 = vpop.permute.xlu0 %475  ;;  %3840 = vmatprep.mubr.msk.f32.mxu0 %vm4511_vm0, %v6223_v4  ;;  %v1244_v12 = vpop.permute.xlu1 %1243 }
  0xc0   : > { %2123 = vrot.lane.b32.xlu1 %v2086_v45, %s4513_s28  ;;  %v624_v39 = vsel %vm617_vm3, %v4743_v47, %v476_v21  ;;  %v1995_v45 = vrot.slane %v5166_v42, 1  ;;  %v2091_v47 = vrot.slane %v5166_v42, 2  ;;  %v1389_v26 = vsel %vm617_vm3, %v4752_v52, %v1244_v12  ;;  %v5202_v52 = vld [vmem:[%s5024_s9 + $0x48] sm:$0xff] }
  0xc2   : > { %2029 = vrot.lane.b32.xlu0 %v1992_v59, %s4514_s29  ;;  %v2090_v59 = vsel %vm520_vm1, %v2087_v37, %v2089_v53  ;;  %v1997_v37 = vrot.slane %v5182_v28, 1  ;;  %v2092_v12 = vsel %vm520_vm1, %v2089_v53, %v2091_v47 }
  0xc3   : > { %v573_v60 = vpop.permute.xlu0 %572  ;;  %v1340_v21 = vpop.permute.xlu1 %1339 }
  0xc4   : > { %2125 = vrot.lane.b32.xlu1 %v2088_v51, %s4513_s28  ;;  %v5179_v46 = vsel %vm637_vm4, %v624_v39, %v573_v60  ;;  %v5194_v51 = vsel %vm637_vm4, %v1389_v26, %v1340_v21  ;;  %v1996_v60 = vsel %vm423_vm2, %v1993_v10, %v1995_v45  ;;  %v1998_v25 = vsel %vm423_vm2, %v1995_v45, %v1997_v37 }
  0xc5   : > { %3634 = vmatmul.mubr.msk.f32.gmra.mrb[8].mxu1 %vm657_vm5, %v5179_v46  ;;  %6251 = vst [vmem:[#allocation14_spill] sm:$0xff] %v5194_v51  ;;  %3841 = vmatmul.mubr.msk.f32.gmra.mrb[10].mxu0 %vm657_vm5, %v5194_v51 }
  0xc6   : > { %2031 = vrot.lane.b32.xlu0 %v1994_v6, %s4514_s29  ;;  %3636 = vmatprep.mubr.msk.f32.mxu1 %vm4511_vm0, %v6223_v4  ;;  %v2093_v6 = vrot.slane %v5182_v28, 2 }
  0xc7   : > { %v478_v39 = vpop.permute.xlu0 %477  ;;  %3843 = vmatprep.mubr.msk.f32.mxu0 %vm4511_vm0, %v6223_v4  ;;  %v1246_v26 = vpop.permute.xlu1 %1245 }
  0xc8   : > { %2127 = vrot.lane.b32.xlu1 %v2090_v59, %s4513_s28  ;;  %v625_v10 = vsel %vm617_vm3, %v4761_v57, %v478_v39  ;;  %v1999_v59 = vrot.slane %v5202_v52, 1  ;;  %v2095_v57 = vrot.slane %v5202_v52, 2  ;;  %v1390_v45 = vsel %vm617_vm3, %v4770_v62, %v1246_v26  ;;  %v5238_v62 = vld [vmem:[%s5024_s9 + $0x58] sm:$0xff] }
  0xc9   : > { %v2097_v26 = vrot.slane %v5218_v54, 2 }
  0xca   : > { %2033 = vrot.lane.b32.xlu0 %v1996_v60, %s4514_s29  ;;  %v2094_v60 = vsel %vm520_vm1, %v2091_v47, %v2093_v6  ;;  %v2001_v47 = vrot.slane %v5218_v54, 1 }
  0xcb   : > { %v575_v21 = vpop.permute.xlu0 %574  ;;  %v1342_v39 = vpop.permute.xlu1 %1341 }
  0xcc   : > { %2129 = vrot.lane.b32.xlu1 %v2092_v12, %s4513_s28  ;;  %v5215_v53 = vsel %vm637_vm4, %v625_v10, %v575_v21  ;;  %v5230_v12 = vsel %vm637_vm4, %v1390_v45, %v1342_v39  ;;  %v2000_v21 = vsel %vm423_vm2, %v1997_v37, %v1999_v59  ;;  %v2002_v1 = vsel %vm423_vm2, %v1999_v59, %v2001_v47 }
  0xcd   : > { %3637 = vmatmul.mubr.msk.f32.gmra.mrb[10].mxu1 %vm657_vm5, %v5215_v53  ;;  %6252 = vst [vmem:[#allocation15_spill] sm:$0xff] %v5230_v12  ;;  %3844 = vmatmul.mubr.msk.f32.gmra.mrb[12].mxu0 %vm657_vm5, %v5230_v12 }
  0xce   : > { %2035 = vrot.lane.b32.xlu0 %v1998_v25, %s4514_s29  ;;  %3639 = vmatprep.mubr.msk.f32.mxu1 %vm4511_vm0, %v6223_v4  ;;  %v2096_v25 = vsel %vm520_vm1, %v2093_v6, %v2095_v57 }
  0xcf   : > { %v480_v10 = vpop.permute.xlu0 %479  ;;  %3846 = vmatprep.mubr.msk.f32.mxu0 %vm4511_vm0, %v6223_v4  ;;  %v1248_v45 = vpop.permute.xlu1 %1247 }
  0xd0   : > { %2131 = vrot.lane.b32.xlu1 %v2094_v60, %s4513_s28  ;;  %v626_v37 = vsel %vm617_vm3, %v4779_v5, %v480_v10  ;;  %v2003_v60 = vrot.slane %v5238_v62, 1  ;;  %v2099_v5 = vrot.slane %v5238_v62, 2  ;;  %v1391_v59 = vsel %vm617_vm3, %v4788_v16, %v1248_v45 }
  0xd2   : > { %2037 = vrot.lane.b32.xlu0 %v2000_v21, %s4514_s29  ;;  %v2098_v21 = vsel %vm520_vm1, %v2095_v57, %v2097_v26  ;;  %v374_v57 = vld [vmem:[%s6208_s3 + $0x90] sm:$0xff]  ;;  %v2100_v45 = vsel %vm520_vm1, %v2097_v26, %v2099_v5 }
  0xd3   : > { %v577_v39 = vpop.permute.xlu0 %576  ;;  %v1344_v10 = vpop.permute.xlu1 %1343 }
  0xd4   : > { %2133 = vrot.lane.b32.xlu1 %v2096_v25, %s4513_s28  ;;  %v5251_v6 = vsel %vm637_vm4, %v626_v37, %v577_v39  ;;  %v5266_v25 = vsel %vm637_vm4, %v1391_v59, %v1344_v10  ;;  %v2004_v39 = vsel %vm423_vm2, %v2001_v47, %v2003_v60  ;;  %v375_v47 = vld [vmem:[%s6208_s3 + $0x98] sm:$0xff] }
  0xd5   : > { %3640 = vmatmul.mubr.msk.f32.gmra.mrb[12].mxu1 %vm657_vm5, %v5251_v6  ;;  %6253 = vst [vmem:[#allocation16_spill] sm:$0xff] %v5266_v25  ;;  %3847 = vmatmul.mubr.msk.f32.gmra.mrb[14].mxu0 %vm657_vm5, %v5266_v25  ;;  %v4093_v11 = vpack.c.bf16 %v375_v47, %v374_v57 }
  0xd6   : > { %2039 = vrot.lane.b32.xlu0 %v2002_v1, %s4514_s29  ;;  %3642 = vmatprep.mubr.msk.f32.mxu1 %vm4511_vm0, %v6223_v4  ;;  %v5276_v1 = vld [vmem:[%s5024_s9 + $0x68] sm:$0xff] }
  0xd7   : > { %v482_v37 = vpop.permute.xlu0 %481  ;;  %3876 = vmatprep.mubr.msk.f32.mxu0 %vm4511_vm0, %v6223_v4  ;;  %v579_v59 = vpop.permute.xlu1 %578  ;;  %v2007_v8 = vrot.slane %v5276_v1, 1  ;;  %v5300_v4 = vld [vmem:[%s5024_s9 + $0x70] sm:$0xff] }
  0xd8   : > { %2135 = vrot.lane.b32.xlu1 %v2098_v21, %s4513_s28  ;;  %v627_v16 = vsel %vm617_vm3, %v4797_v24, %v482_v37  ;;  %v2101_v21 = vrot.slane %v5254_v48, 2  ;;  %v2006_v37 = vsel %vm423_vm2, %v2003_v60, %v2005_v35 }
  0xd9   : > { %v5290_v24 = vsel %vm637_vm4, %v627_v16, %v579_v59  ;;  %3877 = vmatmul.mubr.msk.f32.vlgmr.msra.gmra.mrb[0].mxu0 %vm657_vm5, %v5087_v17  ;;  %v2103_v16 = vrot.slane %v5276_v1, 2  ;;  %v2009_v59 = vrot.slane %v5300_v4, 1 }
  0xda   : > { %2041 = vrot.lane.b32.xlu0 %v2004_v39, %s4514_s29  ;;  %3643 = vmatmul.mubr.msk.f32.gmra.mrb[14].mxu1 %vm657_vm5, %v5290_v24  ;;  %v6254_v39 = vmov 0.0   ;;  %v2102_v60 = vsel %vm520_vm1, %v2099_v5, %v2101_v21 }
  0xdb   : > { %v484_v10 = vpop.permute.xlu0 %483  ;;  %3879 = vmatprep.mubr.msk.f32.mxu0 %vm4511_vm0, %v6254_v39  ;;  %v581_v57 = vpop.permute.xlu1 %580  ;;  %3645 = vmatprep.mubr.msk.f32.mxu1 %vm4511_vm0, %v6254_v39 }
  0xdc   : > { %2137 = vrot.lane.b32.xlu1 %v2100_v45, %s4513_s28  ;;  %v628_v26 = vsel %vm617_vm3, %v4815_v38, %v484_v10  ;;  %v2008_v45 = vsel %vm423_vm2, %v2005_v35, %v2007_v8  ;;  %4094 = vmatpush3.bf16.msra.mxu0 %v4093_v11  ;;  %v5322_v10 = vld [vmem:[%s5024_s9 + $0x78] sm:$0xff]  ;;  %v2104_v35 = vsel %vm520_vm1, %v2101_v21, %v2103_v16  ;;  %v2105_v11 = vrot.slane %v5300_v4, 2 }
  0xdd   : > { %v5312_v38 = vsel %vm637_vm4, %v628_v26, %v581_v57  ;;  %3880 = vmatmul.mubr.msk.f32.gmra.mrb[2].mxu0 %vm657_vm5, %v5122_v40  ;;  %v6226_v57 = vrot.slane %v5322_v10, 1  ;;  %3925 = vmatprep.subr.mxu0 %v6254_v39 }
  0xde   : > { %2043 = vrot.lane.b32.xlu0 %v2006_v37, %s4514_s29  ;;  %3646 = vmatmul.mubr.msk.f32.gmra.mrb[16].mxu1 %vm657_vm5, %v5312_v38 }
  0xdf   : > { %v486_v47 = vpop.permute.xlu0 %485  ;;  %3882 = vmatprep.mubr.msk.f32.mxu0 %vm4511_vm0, %v6254_v39  ;;  %v583_v37 = vpop.permute.xlu1 %582  ;;  %3648 = vmatprep.mubr.msk.f32.mxu1 %vm4511_vm0, %v6254_v39 }
  0xe0   : > { %2139 = vrot.lane.b32.xlu1 %v2102_v60, %s4513_s28  ;;  %v629_v5 = vsel %vm617_vm3, %v4826_v44, %v486_v47  ;;  %v2010_v60 = vsel %vm423_vm2, %v2007_v8, %v2009_v59  ;;  %v5345_v47 = vld [vmem:[%s4647_s15 + $0x90] sm:$0xff]  ;;  %v2106_v8 = vsel %vm520_vm1, %v2103_v16, %v2105_v11 }
  0xe1   : > { %v5334_v44 = vsel %vm637_vm4, %v629_v5, %v583_v37  ;;  %3883 = vmatmul.mubr.msk.f32.gmra.mrb[4].mxu0 %vm657_vm5, %v5158_v13  ;;  %v6228_v5 = vrot.slane %v5322_v10, 2  ;;  %v459_v13 = vrot.slane %v5345_v47, 1 }
  0xe2   : > { %2045 = vrot.lane.b32.xlu0 %v2008_v45, %s4514_s29  ;;  %v376_v45 = vld [vmem:[%s6208_s3 + $0xa0] sm:$0xff]  ;;  %3649 = vmatmul.mubr.msk.f32.gmra.mrb[18].mxu1 %vm657_vm5, %v5334_v44 }
  0xe3   : > { %v488_v26 = vpop.permute.xlu0 %487  ;;  %3885 = vmatprep.mubr.msk.f32.mxu0 %vm4511_vm0, %v6254_v39  ;;  %3651 = vmatprep.mubr.msk.f32.mxu1 %vm4511_vm0, %v6254_v39 }
  0xe4   : > { %2141 = vrot.lane.b32.xlu1 %v2104_v35, %s4513_s28  ;;  %v630_v21 = vsel %vm617_vm3, %v4837_v50, %v488_v26  ;;  %v585_v35 = vpop.permute.xlu1 %584  ;;  %v2012_v26 = vsel %vm423_vm2, %v2009_v59, %v6226_v57  ;;  %3926 = vmatpush3.msra.mxu0 %v376_v45  ;;  %v2108_v59 = vsel %vm520_vm1, %v2105_v11, %v6228_v5 }
  0xe5   : > { %v5360_v50 = vsel %vm637_vm4, %v630_v21, %v585_v35  ;;  %3886 = vmatmul.mubr.msk.f32.gmra.mrb[6].mxu0 %vm657_vm5, %v5194_v51  ;;  %v556_v21 = vrot.slane %v5345_v47, 2  ;;  %v6255_v35 = vrot.slane %v4891_v41, 1  ;;  %v6256_v51 = vmov 0.0|0.0  }
  0xe6   : > { %2047 = vrot.lane.b32.xlu0 %v2010_v60, %s4514_s29  ;;  %v402_v60 = vld [vmem:[%s4647_s15 + $0x98] sm:$0xff]  ;;  %3652 = vmatmul.mubr.msk.f32.gmra.mrb[20].mxu1 %vm657_vm5, %v5360_v50 }
  0xe7   : > { %v490_v37 = vpop.permute.xlu0 %489  ;;  %3888 = vmatprep.mubr.msk.f32.mxu0 %vm4511_vm0, %v6254_v39  ;;  %3654 = vmatprep.mubr.msk.f32.mxu1 %vm4511_vm0, %v6254_v39  ;;  %v461_v57 = vrot.slane %v402_v60, 1  ;;  %v558_v5 = vrot.slane %v402_v60, 2 }
  0xe8   : > { %2143 = vrot.lane.b32.xlu1 %v2106_v8, %s4513_s28  ;;  %v631_v16 = vsel %vm617_vm3, %v4846_v56, %v490_v37  ;;  %v587_v45 = vpop.permute.xlu1 %586  ;;  %v460_v37 = vsel %vm423_vm2, %v6255_v35, %v459_v13  ;;  %4095 = vmatprep.subr.bf16.mxu0 %v6256_v51 }
  0xe9   : > { %v5384_v56 = vsel %vm637_vm4, %v631_v16, %v587_v45  ;;  %3889 = vmatmul.mubr.msk.f32.gmra.mrb[8].mxu0 %vm657_vm5, %v5230_v12  ;;  %v5399_v16 = vld [vmem:[%s4687_s10 + $0x8] sm:$0xff]  ;;  %v6257_v45 = vrot.slane %v4891_v41, 2  ;;  %v559_v41 = vsel %vm520_vm1, %v556_v21, %v558_v5  ;;  %v5438_v5 = vld [vmem:[%s5024_s9 + $0x80] sm:$0xff] }
  0xea   : > { %2049 = vrot.lane.b32.xlu0 %v2012_v26, %s4514_s29  ;;  %v5396_v26 = vld [vmem:[%s4687_s10] sm:$0xff]  ;;  %3655 = vmatmul.mubr.msk.f32.gmra.mrb[22].mxu1 %vm657_vm5, %v5384_v56  ;;  %v1191_v17 = vrot.slane %v5399_v16, 1  ;;  %6258 = vst [vmem:[#allocation17_spill] sm:$0xff] %v5438_v5  ;;  %s4335_s10 = smul.u32 120, %s4628_s16  ;;  %s313_s16 = sand.u32 1, %s4484_s19  }
  0xeb   : > { %v492_v8 = vpop.permute.xlu0 %491  ;;  %3891 = vmatprep.mubr.msk.f32.mxu0 %vm4511_vm0, %v6254_v39  ;;  %v557_v35 = vsel %vm520_vm1, %v6257_v45, %v556_v21  ;;  %3657 = vmatprep.mubr.msk.f32.mxu1 %vm4511_vm0, %v6254_v39  ;;  %v1190_v40 = vrot.slane %v5396_v26, 1  ;;  %s3121_s21 = scalar_lea.sflag [#allocation3], %s313_s16 }
  0xec   : > { %2145 = vrot.lane.b32.xlu1 %v2108_v59, %s4513_s28  ;;  %v632_v11 = vsel %vm617_vm3, %v4855_v63, %v492_v8  ;;  %v589_v12 = vpop.permute.xlu1 %588  ;;  %v462_v8 = vsel %vm423_vm2, %v459_v13, %v461_v57  ;;  %v1286_v13 = vrot.slane %v5396_v26, 2  ;;  %s353_s12 = sadd.s32 %s4335_s10, %s4334_s8  ;;  %s6151_s8 = scalar_lea.hbm %s6210_s5, %s3450_s24 }
  0xed   : > { %v5412_v63 = vsel %vm637_vm4, %v632_v11, %v589_v12  ;;  %3892 = vmatmul.mubr.msk.f32.gmra.mrb[10].mxu0 %vm657_vm5, %v5266_v25  ;;  %v1287_v12 = vrot.slane %v5399_v16, 2  ;;  %v1192_v11 = vsel %vm423_vm2, %v1190_v40, %v1191_v17  ;;  %s3312_s13 = sshll.u32 %s353_s12, 3  ;;  %s4515_s12 = smov [#allocation2]  }
  0xee   : > { %497 = vrot.lane.b32.xlu0 %v460_v37, %s4514_s29  ;;  %3658 = vmatmul.mubr.msk.f32.gmra.mrb[24].mxu1 %vm657_vm5, %v5412_v63 }
  0xef   : > { %v494_v59 = vpop.permute.xlu0 %493  ;;  %3894 = vmatprep.mubr.msk.f32.mxu0 %vm4511_vm0, %v6254_v39  ;;  %3660 = vmatprep.mubr.msk.f32.mxu1 %vm4511_vm0, %v6254_v39  ;;  %v1288_v21 = vsel %vm520_vm1, %v1286_v13, %v1287_v12  ;;  %v6262_v13 = vrot.slane %v4696_v22, 2 }
  0xf0   : > { %594 = vrot.lane.b32.xlu1 %v557_v35, %s4513_s28  ;;  %v1250_v57 = vpop.permute.xlu1 %1249  ;;  %v633_v60 = vsel %vm617_vm3, %v4864_v7, %v494_v59 }
  0xf1   : > { %v1392_v35 = vsel %vm617_vm3, %v4806_v32, %v1250_v57  ;;  %v5459_v32 = vld [vmem:[%s5024_s9 + $0x88] sm:$0xff]  ;;  %v1290_v57 = vsel %vm520_vm1, %v1287_v12, %v6262_v13 }
  0xf2   : > { %499 = vrot.lane.b32.xlu0 %v462_v8, %s4514_s29  ;;  %v6260_v8 = vrot.slane %v4696_v22, 1  ;;  %6261 = vst [vmem:[#allocation19_spill] sm:$0xff] %v5459_v32  ;;  %v6264_v22 = vrot.slane %v5322_v10, 2 }
  0xf3   : > { %v591_v37 = vpop.permute.xlu0 %590 }
  0xf4   : > { %v5434_v45 = vsel %vm637_vm4, %v633_v60, %v591_v37  ;;  %596 = vrot.lane.b32.xlu1 %v559_v41, %s4513_s28  ;;  %v1346_v7 = vpop.permute.xlu1 %1345  ;;  %v1194_v41 = vsel %vm423_vm2, %v1191_v17, %v6260_v8  ;;  %v2013_v60 = vrot.slane %v5438_v5, 1  ;;  %v2109_v37 = vrot.slane %v5438_v5, 2 }
  0xf5   : > { %3661 = vmatmul.mubr.msk.f32.gmra.mrb[26].mxu1 %vm657_vm5, %v5434_v45  ;;  %v5449_v40 = vsel %vm637_vm4, %v1392_v35, %v1346_v7  ;;  %v2015_v8 = vrot.slane %v5459_v32, 1 }
  0xf6   : > { %3663 = vmatprep.mubr.msk.f32.mxu1 %vm4511_vm0, %v6254_v39  ;;  %1229 = vrot.lane.b32.xlu0 %v1192_v11, %s4514_s29  ;;  %6259 = vst [vmem:[#allocation18_spill] sm:$0xff] %v5449_v40  ;;  %v2110_v12 = vsel %vm520_vm1, %v6264_v22, %v2109_v37 }
  0xf7   : > { %v496_v59 = vpop.permute.xlu0 %495  ;;  %3895 = vmatmul.mubr.msk.f32.gmra.mrb[12].mxu0 %vm657_vm5, %v5449_v40 }
  0xf8   : > { %1325 = vrot.lane.b32.xlu1 %v1288_v21, %s4513_s28  ;;  %3897 = vmatprep.mubr.msk.f32.mxu0 %vm4511_vm0, %v6254_v39  ;;  %v1252_v17 = vpop.permute.xlu1 %1251  ;;  %v634_v11 = vsel %vm617_vm3, %v4873_v19, %v496_v59  ;;  %v6263_v21 = vrot.slane %v5322_v10, 1  ;;  %v2111_v19 = vrot.slane %v5459_v32, 2  ;;  %v5485_v59 = vld [vmem:[%s5024_s9 + $0x90] sm:$0xff] }
  0xf9   : > { %6265 = vst [vmem:[#allocation20_spill] sm:$0xff] %v5485_v59  ;;  %v2113_v22 = vrot.slane %v5485_v59, 2 }
  0xfa   : > { %1231 = vrot.lane.b32.xlu0 %v1194_v41, %s4514_s29  ;;  %v2014_v7 = vsel %vm423_vm2, %v6263_v21, %v2013_v60  ;;  %v1393_v41 = vsel %vm617_vm3, %v4882_v31, %v1252_v17  ;;  %v363_v21 = vld [vmem:[%s6208_s3 + $0x38] sm:$0xff]  ;;  %v2016_v31 = vsel %vm423_vm2, %v2013_v60, %v2015_v8  ;;  %v2017_v17 = vrot.slane %v5485_v59, 1 }
  0xfb   : > { %v593_v35 = vpop.permute.xlu0 %592 }
  0xfc   : > { %v5475_v40 = vsel %vm637_vm4, %v634_v11, %v593_v35  ;;  %1327 = vrot.lane.b32.xlu1 %v1290_v57, %s4513_s28  ;;  %v1348_v13 = vpop.permute.xlu1 %1347  ;;  %v362_v35 = vld [vmem:[%s6208_s3 + $0x30] sm:$0xff]  ;;  %v2018_v25 = vsel %vm423_vm2, %v2015_v8, %v2017_v17  ;;  %v364_v8 = vld [vmem:[%s6208_s3 + $0x40] sm:$0xff] }
  0xfd   : > { %3664 = vmatmul.mubr.msk.f32.gmra.mrb[28].mxu1 %vm657_vm5, %v5475_v40  ;;  %v5493_v57 = vsel %vm637_vm4, %v1393_v41, %v1348_v13  ;;  %v1961_v41 = vld [vmem:[%s5024_s9 + $0x98] sm:$0xff]  ;;  %v4081_v32 = vpack.c.bf16 %v363_v21, %v362_v35 }
  0xfe   : > { %3672 = vmatprep.mubr.msk.f32.mxu1 %vm4511_vm0, %v6254_v39  ;;  %2051 = vrot.lane.b32.xlu0 %v2014_v7, %s4514_s29  ;;  %6266 = vst [vmem:[#allocation21_spill] sm:$0xff] %v5493_v57  ;;  %v2112_v7 = vsel %vm520_vm1, %v2109_v37, %v2111_v19  ;;  %v2019_v5 = vrot.slane %v1961_v41, 1  ;;  %v2114_v37 = vsel %vm520_vm1, %v2111_v19, %v2113_v22  ;;  %v2115_v59 = vrot.slane %v1961_v41, 2 }
  0xff   : > { %v464_v11 = vpop.permute.xlu0 %463  ;;  %3898 = vmatmul.mubr.msk.f32.gmra.mrb[14].mxu0 %vm657_vm5, %v5493_v57 }
 0x100   : > { %2147 = vrot.lane.b32.xlu1 %v2110_v12, %s4513_s28  ;;  %3900 = vmatprep.mubr.msk.f32.mxu0 %vm4511_vm0, %v6254_v39  ;;  %v1254_v13 = vpop.permute.xlu1 %1253  ;;  %v618_v60 = vsel %vm617_vm3, %v4915_v55, %v464_v11 }
 0x101   : > { %v1394_v35 = vsel %vm617_vm3, %v4902_v49, %v1254_v13  ;;  %v2020_v49 = vsel %vm423_vm2, %v2017_v17, %v2019_v5 }
 0x102   : > { %2053 = vrot.lane.b32.xlu0 %v2016_v31, %s4514_s29 }
 0x103   : > { %v561_v57 = vpop.permute.xlu0 %560 }
 0x104   : > { %v638_v12 = vsel %vm637_vm4, %v618_v60, %v561_v57  ;;  %2149 = vrot.lane.b32.xlu1 %v2112_v7, %s4513_s28  ;;  %v1350_v21 = vpop.permute.xlu1 %1349 }
 0x105   : > { %3673 = vmatmul.mubr.msk.f32.vlgmr.msra.gmra.mrb[0].mxu1 %vm657_vm5, %v638_v12  ;;  %v5524_v55 = vsel %vm637_vm4, %v1394_v35, %v1350_v21 }
 0x106   : > { %4082 = vmatpush3.bf16.msra.mxu1 %v4081_v32  ;;  %3675 = vmatprep.mubr.msk.f32.mxu1 %vm4511_vm0, %v6254_v39  ;;  %v2116_v32 = vsel %vm520_vm1, %v2113_v22, %v2115_v59 }
 0x107   : > { %v466_v57 = vpop.permute.xlu0 %465  ;;  %3721 = vmatprep.subr.mxu1 %v6254_v39  ;;  %2055 = vrot.lane.b32.xlu0 %v2018_v25, %s4514_s29 }
 0x108   : > { %3901 = vmatmul.mubr.msk.f32.gmra.mrb[16].mxu0 %vm657_vm5, %v5524_v55  ;;  %2151 = vrot.lane.b32.xlu1 %v2114_v37, %s4513_s28  ;;  %v1256_v19 = vpop.permute.xlu1 %1255  ;;  %v619_v11 = vsel %vm617_vm3, %v4918_v58, %v466_v57 }
 0x109   : > { %3903 = vmatprep.mubr.msk.f32.mxu0 %vm4511_vm0, %v6254_v39  ;;  %v1395_v5 = vsel %vm617_vm3, %v4928_v61, %v1256_v19 }
 0x10a   : > { %3722 = vmatpush3.msra.mxu1 %v364_v8 }
 0x10b   : > { %v563_v31 = vpop.permute.xlu0 %562  ;;  %4083 = vmatprep.subr.bf16.mxu1 %v6256_v51  ;;  %2057 = vrot.lane.b32.xlu0 %v2020_v49, %s4514_s29  ;;  %v377_v49 = vld [vmem:[%s6208_s3 + $0xa8] sm:$0xff]  ;;  %s3308_s29 = sshll.u32 %s313_s16, 3 }
 0x10c   : > { %v639_v25 = vsel %vm637_vm4, %v619_v11, %v563_v31  ;;  %2153 = vrot.lane.b32.xlu1 %v2116_v32, %s4513_s28  ;;  %v1352_v59 = vpop.permute.xlu1 %1351  ;;  %v378_v32 = vld [vmem:[%s6208_s3 + $0xb0] sm:$0xff]  ;;  %s6097_s28 = scalar_lea.vmem %s6209_s4, %s3312_s13  ;;  %s4418_s13 = sshll.u32 %s4515_s12, 4  ;;  %s4419_s13 = int_to_ptr.vmem [resolvable:$false] %s4418_s13 }
 0x10d   : > { %3676 = vmatmul.mubr.msk.f32.gmra.mrb[2].mxu1 %vm657_vm5, %v639_v25  ;;  %v5550_v58 = vsel %vm637_vm4, %v1395_v5, %v1352_v59  ;;  %v4096_v31 = vpack.c.bf16 %v378_v32, %v377_v49  ;;  %s4420_s9 = scalar_lea.vmem %s4419_s13, 256 }
 0x10e   : > { %3678 = vmatprep.mubr.msk.f32.mxu1 %vm4511_vm0, %v6254_v39  ;;  %3904 = vmatmul.mubr.msk.f32.gmra.mrb[18].mxu0 %vm657_vm5, %v5550_v58 }
 0x10f   : > { %v1258_v17 = vpop.permute.xlu0 %1257  ;;  %3906 = vmatprep.mubr.msk.f32.mxu0 %vm4511_vm0, %v6254_v39 }
 0x110   : > { %v1396_v7 = vsel %vm617_vm3, %v4945_v27, %v1258_v17  ;;  %v1354_v61 = vpop.permute.xlu1 %1353 }
 0x111   : > { %3679 = vmatmul.mubr.msk.f32.gmra.mrb[4].mxu1 %vm657_vm5, %v4990_v15  ;;  %v5563_v22 = vsel %vm637_vm4, %v1396_v7, %v1354_v61  ;;  %v379_v61 = vld [vmem:[%s6208_s3 + $0xb8] sm:$0xff] }
 0x112   : > { %3681 = vmatprep.mubr.msk.f32.mxu1 %vm4511_vm0, %v6254_v39  ;;  %3907 = vmatmul.mubr.msk.f32.gmra.mrb[20].mxu0 %vm657_vm5, %v5563_v22 }
 0x113   : > { %v1260_v41 = vpop.permute.xlu0 %1259  ;;  %3909 = vmatprep.mubr.msk.f32.mxu0 %vm4511_vm0, %v6254_v39 }
 0x114   : > { %v1397_v27 = vsel %vm617_vm3, %v4956_v36, %v1260_v41  ;;  %v1356_v15 = vpop.permute.xlu1 %1355 }
 0x115   : > { %3682 = vmatmul.mubr.msk.f32.gmra.mrb[6].mxu1 %vm657_vm5, %v5062_v34  ;;  %v5576_v13 = vsel %vm637_vm4, %v1397_v27, %v1356_v15 }
 0x116   : > { %3684 = vmatprep.mubr.msk.f32.mxu1 %vm4511_vm0, %v6254_v39  ;;  %3910 = vmatmul.mubr.msk.f32.gmra.mrb[22].mxu0 %vm657_vm5, %v5576_v13 }
 0x117   : > { %v1262_v60 = vpop.permute.xlu0 %1261  ;;  %3912 = vmatprep.mubr.msk.f32.mxu0 %vm4511_vm0, %v6254_v39 }
 0x118   : > { %v1398_v36 = vsel %vm617_vm3, %v4967_v14, %v1262_v60  ;;  %v1358_v34 = vpop.permute.xlu1 %1357 }
 0x119   : > { %3685 = vmatmul.mubr.msk.f32.gmra.mrb[8].mxu1 %vm657_vm5, %v5107_v9  ;;  %v5589_v12 = vsel %vm637_vm4, %v1398_v36, %v1358_v34 }
 0x11a   : > { %3687 = vmatprep.mubr.msk.f32.mxu1 %vm4511_vm0, %v6254_v39  ;;  %3913 = vmatmul.mubr.msk.f32.gmra.mrb[24].mxu0 %vm657_vm5, %v5589_v12 }
 0x11b   : > { %v1264_v37 = vpop.permute.xlu0 %1263  ;;  %3915 = vmatprep.mubr.msk.f32.mxu0 %vm4511_vm0, %v6254_v39 }
 0x11c   : > { %v1399_v14 = vsel %vm617_vm3, %v4982_v2, %v1264_v37 }
 0x11d   : > { %3688 = vmatmul.mubr.msk.f32.gmra.mrb[10].mxu1 %vm657_vm5, %v5143_v43  ;;  %v1360_v35 = vpop.permute.xlu1 %1359 }
 0x11e   : > { %3690 = vmatprep.mubr.msk.f32.mxu1 %vm4511_vm0, %v6254_v39  ;;  %v1418_v21 = vsel %vm637_vm4, %v1399_v14, %v1360_v35 }
 0x11f   : > { %3916 = vmatmul.mubr.msk.f32.gmra.mrb[26].mxu0 %vm657_vm5, %v1418_v21 }
 0x120   : > { %v1266_v57 = vpop.permute.xlu0 %1265  ;;  %3918 = vmatprep.mubr.msk.f32.mxu0 %vm4511_vm0, %v6254_v39 }
 0x121   : > { %v1400_v8 = vsel %vm617_vm3, %v4999_v30, %v1266_v57  ;;  %3691 = vmatmul.mubr.msk.f32.gmra.mrb[12].mxu1 %vm657_vm5, %v5179_v46 }
 0x122   : > { %v1362_v2 = vpop.permute.xlu1 %1361  ;;  %3693 = vmatprep.mubr.msk.f32.mxu1 %vm4511_vm0, %v6254_v39 }
 0x123   : > { %v1419_v30 = vsel %vm637_vm4, %v1400_v8, %v1362_v2 }
 0x124   : > { %3919 = vmatmul.mubr.msk.f32.gmra.mrb[28].mxu0 %vm657_vm5, %v1419_v30  ;;  %v2022_v19 = vpop.permute.xlu0 %2021  ;;  %v365_v30 = vld [vmem:[%s6208_s3 + $0x48] sm:$0xff] }
 0x125   : > { %v2174_v11 = vsel %vm617_vm3, %v5034_v18, %v2022_v19  ;;  %3694 = vmatmul.mubr.msk.f32.gmra.mrb[14].mxu1 %vm657_vm5, %v5215_v53  ;;  %3927 = vmatprep.mubr.msk.f32.mxu0 %vm4511_vm0, %v6254_v39 }
 0x126   : > { %v2118_v25 = vpop.permute.xlu1 %2117  ;;  %3696 = vmatprep.mubr.msk.f32.mxu1 %vm4511_vm0, %v6254_v39 }
 0x127   : > { %v2193_v5 = vsel %vm637_vm4, %v2174_v11, %v2118_v25 }
 0x128   : > { %3928 = vmatmul.mubr.msk.f32.vlgmr.msra.gmra.mrb[0].mxu0 %vm657_vm5, %v2193_v5  ;;  %v2024_v59 = vpop.permute.xlu0 %2023 }
 0x129   : > { %4097 = vmatpush3.bf16.msra.mxu0 %v4096_v31  ;;  %v2175_v18 = vsel %vm617_vm3, %v5041_v33, %v2024_v59  ;;  %3697 = vmatmul.mubr.msk.f32.gmra.mrb[16].mxu1 %vm657_vm5, %v5251_v6 }
 0x12a   : > { %v2120_v17 = vpop.permute.xlu1 %2119  ;;  %3930 = vmatprep.mubr.msk.f32.mxu0 %vm4511_vm0, %v6254_v39  ;;  %3699 = vmatprep.mubr.msk.f32.mxu1 %vm4511_vm0, %v6254_v39 }
 0x12b   : > { %v2194_v7 = vsel %vm637_vm4, %v2175_v18, %v2120_v17  ;;  %3976 = vmatprep.subr.mxu0 %v6254_v39 }
 0x12c   : > { %3931 = vmatmul.mubr.msk.f32.gmra.mrb[2].mxu0 %vm657_vm5, %v2194_v7  ;;  %v2026_v33 = vpop.permute.xlu0 %2025 }
 0x12d   : > { %v2176_v41 = vsel %vm617_vm3, %v5065_v0, %v2026_v33  ;;  %3700 = vmatmul.mubr.msk.f32.gmra.mrb[18].mxu1 %vm657_vm5, %v5290_v24  ;;  %3933 = vmatprep.mubr.msk.f32.mxu0 %vm4511_vm0, %v6254_v39 }
 0x12e   : > { %v2122_v27 = vpop.permute.xlu1 %2121  ;;  %3702 = vmatprep.mubr.msk.f32.mxu1 %vm4511_vm0, %v6254_v39  ;;  %3977 = vmatpush3.msra.mxu0 %v379_v61 }
 0x12f   : > { %v5652_v15 = vsel %vm637_vm4, %v2176_v41, %v2122_v27  ;;  %4098 = vmatprep.subr.bf16.mxu0 %v6256_v51 }
 0x130   : > { %3934 = vmatmul.mubr.msk.f32.gmra.mrb[4].mxu0 %vm657_vm5, %v5652_v15  ;;  %v2028_v0 = vpop.permute.xlu0 %2027 }
 0x131   : > { %v2177_v60 = vsel %vm617_vm3, %v5091_v23, %v2028_v0  ;;  %3703 = vmatmul.mubr.msk.f32.gmra.mrb[20].mxu1 %vm657_vm5, %v5312_v38  ;;  %3936 = vmatprep.mubr.msk.f32.mxu0 %vm4511_vm0, %v6254_v39 }
 0x132   : > { %v2124_v36 = vpop.permute.xlu1 %2123  ;;  %3705 = vmatprep.mubr.msk.f32.mxu1 %vm4511_vm0, %v6254_v39 }
 0x133   : > { %v5666_v34 = vsel %vm637_vm4, %v2177_v60, %v2124_v36 }
 0x134   : > { %3937 = vmatmul.mubr.msk.f32.gmra.mrb[6].mxu0 %vm657_vm5, %v5666_v34  ;;  %v2030_v37 = vpop.permute.xlu0 %2029 }
 0x135   : > { %v2178_v23 = vsel %vm617_vm3, %v5110_v20, %v2030_v37  ;;  %3706 = vmatmul.mubr.msk.f32.gmra.mrb[22].mxu1 %vm657_vm5, %v5334_v44  ;;  %3939 = vmatprep.mubr.msk.f32.mxu0 %vm4511_vm0, %v6254_v39 }
 0x136   : > { %v2126_v14 = vpop.permute.xlu1 %2125  ;;  %3708 = vmatprep.mubr.msk.f32.mxu1 %vm4511_vm0, %v6254_v39 }
 0x137   : > { %v5679_v35 = vsel %vm637_vm4, %v2178_v23, %v2126_v14 }
 0x138   : > { %3940 = vmatmul.mubr.msk.f32.gmra.mrb[8].mxu0 %vm657_vm5, %v5679_v35  ;;  %v2032_v21 = vpop.permute.xlu0 %2031 }
 0x139   : > { %v2179_v20 = vsel %vm617_vm3, %v5130_v29, %v2032_v21  ;;  %3709 = vmatmul.mubr.msk.f32.gmra.mrb[24].mxu1 %vm657_vm5, %v5360_v50  ;;  %3942 = vmatprep.mubr.msk.f32.mxu0 %vm4511_vm0, %v6254_v39  ;;  %v380_v21 = vld [vmem:[%s6208_s3 + $0xc0] sm:$0xff] }
 0x13a   : > { %v2128_v57 = vpop.permute.xlu1 %2127  ;;  %3711 = vmatprep.mubr.msk.f32.mxu1 %vm4511_vm0, %v6254_v39 }
 0x13b   : > { %v5692_v8 = vsel %vm637_vm4, %v2179_v20, %v2128_v57  ;;  %v381_v20 = vld [vmem:[%s6208_s3 + $0xc8] sm:$0xff] }
 0x13c   : > { %3943 = vmatmul.mubr.msk.f32.gmra.mrb[10].mxu0 %vm657_vm5, %v5692_v8  ;;  %v2034_v2 = vpop.permute.xlu0 %2033 }
 0x13d   : > { %v2180_v29 = vsel %vm617_vm3, %v5146_v3, %v2034_v2  ;;  %3712 = vmatmul.mubr.msk.f32.gmra.mrb[26].mxu1 %vm657_vm5, %v5384_v56  ;;  %3945 = vmatprep.mubr.msk.f32.mxu0 %vm4511_vm0, %v6254_v39  ;;  %v366_v3 = vld [vmem:[%s6208_s3 + $0x50] sm:$0xff] }
 0x13e   : > { %v2130_v49 = vpop.permute.xlu1 %2129  ;;  %3714 = vmatprep.mubr.msk.f32.mxu1 %vm4511_vm0, %v6254_v39  ;;  %v4084_v25 = vpack.c.bf16 %v366_v3, %v365_v30 }
 0x13f   : > { %v5705_v32 = vsel %vm637_vm4, %v2180_v29, %v2130_v49 }
 0x140   : > { %3946 = vmatmul.mubr.msk.f32.gmra.mrb[12].mxu0 %vm657_vm5, %v5705_v32  ;;  %v2036_v19 = vpop.permute.xlu0 %2035 }
 0x141   : > { %v2181_v11 = vsel %vm617_vm3, %v5166_v42, %v2036_v19  ;;  %3715 = vmatmul.mubr.msk.f32.gmra.mrb[28].mxu1 %vm657_vm5, %v5412_v63  ;;  %3948 = vmatprep.mubr.msk.f32.mxu0 %vm4511_vm0, %v6254_v39 }
 0x142   : > { %v2132_v31 = vpop.permute.xlu1 %2131  ;;  %3723 = vmatprep.mubr.msk.f32.mxu1 %vm4511_vm0, %v6254_v39 }
 0x143   : > { %v5724_v5 = vsel %vm637_vm4, %v2181_v11, %v2132_v31 }
 0x144   : > { %3949 = vmatmul.mubr.msk.f32.gmra.mrb[14].mxu0 %vm657_vm5, %v5724_v5  ;;  %v2038_v59 = vpop.permute.xlu0 %2037 }
 0x145   : > { %v2182_v42 = vsel %vm617_vm3, %v5182_v28, %v2038_v59  ;;  %3724 = vmatmul.mubr.msk.f32.vlgmr.msra.gmra.mrb[0].mxu1 %vm657_vm5, %v5107_v9  ;;  %3951 = vmatprep.mubr.msk.f32.mxu0 %vm4511_vm0, %v6254_v39  ;;  %v367_v28 = vld [vmem:[%s6208_s3 + $0x58] sm:$0xff]  ;;  %v6269_v59 = vld [vmem:[#allocation10_spill] sm:$0xff] }
 0x146   : > { %v2134_v18 = vpop.permute.xlu1 %2133  ;;  %4085 = vmatpush3.bf16.msra.mxu1 %v4084_v25  ;;  %3726 = vmatprep.mubr.msk.f32.mxu1 %vm4511_vm0, %v6254_v39  ;;  %v6268_v25 = vld [vmem:[#allocation9_spill] sm:$0xff] }
 0x147   : > { %v5737_v17 = vsel %vm637_vm4, %v2182_v42, %v2134_v18  ;;  %3772 = vmatprep.subr.mxu1 %v6254_v39 }
 0x148   : > { %3952 = vmatmul.mubr.msk.f32.gmra.mrb[16].mxu0 %vm657_vm5, %v5737_v17  ;;  %v2040_v9 = vpop.permute.xlu0 %2039 }
 0x149   : > { %v2183_v7 = vsel %vm617_vm3, %v5202_v52, %v2040_v9  ;;  %3727 = vmatmul.mubr.msk.f32.gmra.mrb[2].mxu1 %vm657_vm5, %v5143_v43  ;;  %3954 = vmatprep.mubr.msk.f32.mxu0 %vm4511_vm0, %v6254_v39 }
 0x14a   : > { %v2136_v61 = vpop.permute.xlu1 %2135  ;;  %3729 = vmatprep.mubr.msk.f32.mxu1 %vm4511_vm0, %v6254_v39  ;;  %3773 = vmatpush3.msra.mxu1 %v367_v28  ;;  %v6270_v28 = vld [vmem:[#allocation11_spill] sm:$0xff] }
 0x14b   : > { %v5754_v33 = vsel %vm637_vm4, %v2183_v7, %v2136_v61  ;;  %4101 = vmatprep.subr.bf16.mxu1 %v6256_v51 }
 0x14c   : > { %3955 = vmatmul.mubr.msk.f32.gmra.mrb[18].mxu0 %vm657_vm5, %v5754_v33  ;;  %v2042_v52 = vpop.permute.xlu0 %2041 }
 0x14d   : > { %v2184_v43 = vsel %vm617_vm3, %v5218_v54, %v2042_v52  ;;  %3730 = vmatmul.mubr.msk.f32.gmra.mrb[4].mxu1 %vm657_vm5, %v5179_v46  ;;  %3957 = vmatprep.mubr.msk.f32.mxu0 %vm4511_vm0, %v6254_v39  ;;  %v6271_v52 = vld [vmem:[#allocation12_spill] sm:$0xff] }
 0x14e   : > { %v2138_v41 = vpop.permute.xlu1 %2137  ;;  %3732 = vmatprep.mubr.msk.f32.mxu1 %vm4511_vm0, %v6254_v39 }
 0x14f   : > { %v5768_v27 = vsel %vm637_vm4, %v2184_v43, %v2138_v41  ;;  %v6272_v43 = vld [vmem:[#allocation17_spill] sm:$0xff] }
 0x150   : > { %3958 = vmatmul.mubr.msk.f32.gmra.mrb[20].mxu0 %vm657_vm5, %v5768_v27  ;;  %v2044_v51 = vpop.permute.xlu0 %2043 }
 0x151   : > { %v2185_v54 = vsel %vm617_vm3, %v5238_v62, %v2044_v51  ;;  %3733 = vmatmul.mubr.msk.f32.gmra.mrb[6].mxu1 %vm657_vm5, %v5215_v53  ;;  %3960 = vmatprep.mubr.msk.f32.mxu0 %vm4511_vm0, %v6254_v39 }
 0x152   : > { %v2140_v46 = vpop.permute.xlu1 %2139  ;;  %3735 = vmatprep.mubr.msk.f32.mxu1 %vm4511_vm0, %v6254_v39 }
 0x153   : > { %v5781_v0 = vsel %vm637_vm4, %v2185_v54, %v2140_v46  ;;  %v6273_v54 = vld [vmem:[#allocation13_spill] sm:$0xff]  ;;  %v6274_v46 = vld [vmem:[#allocation14_spill] sm:$0xff] }
 0x154   : > { %3961 = vmatmul.mubr.msk.f32.gmra.mrb[22].mxu0 %vm657_vm5, %v5781_v0  ;;  %v2046_v60 = vpop.permute.xlu0 %2045 }
 0x155   : > { %v2186_v62 = vsel %vm617_vm3, %v5254_v48, %v2046_v60  ;;  %3736 = vmatmul.mubr.msk.f32.gmra.mrb[8].mxu1 %vm657_vm5, %v5251_v6  ;;  %3963 = vmatprep.mubr.msk.f32.mxu0 %vm4511_vm0, %v6254_v39  ;;  %v6275_v60 = vld [vmem:[#allocation15_spill] sm:$0xff] }
 0x156   : > { %v2142_v53 = vpop.permute.xlu1 %2141  ;;  %3738 = vmatprep.mubr.msk.f32.mxu1 %vm4511_vm0, %v6254_v39 }
 0x157   : > { %v5794_v36 = vsel %vm637_vm4, %v2186_v62, %v2142_v53  ;;  %v6276_v62 = vld [vmem:[#allocation16_spill] sm:$0xff] }
 0x158   : > { %3964 = vmatmul.mubr.msk.f32.gmra.mrb[24].mxu0 %vm657_vm5, %v5794_v36  ;;  %v2048_v37 = vpop.permute.xlu0 %2047 }
 0x159   : > { %v2187_v48 = vsel %vm617_vm3, %v5276_v1, %v2048_v37  ;;  %3739 = vmatmul.mubr.msk.f32.gmra.mrb[10].mxu1 %vm657_vm5, %v5290_v24  ;;  %3966 = vmatprep.mubr.msk.f32.mxu0 %vm4511_vm0, %v6254_v39 }
 0x15a   : > { %v2144_v6 = vpop.permute.xlu1 %2143  ;;  %3741 = vmatprep.mubr.msk.f32.mxu1 %vm4511_vm0, %v6254_v39 }
 0x15b   : > { %v5807_v23 = vsel %vm637_vm4, %v2187_v48, %v2144_v6 }
 0x15c   : > { %3967 = vmatmul.mubr.msk.f32.gmra.mrb[26].mxu0 %vm657_vm5, %v5807_v23  ;;  %v2050_v14 = vpop.permute.xlu0 %2049 }
 0x15d   : > { %v2188_v1 = vsel %vm617_vm3, %v5300_v4, %v2050_v14  ;;  %3742 = vmatmul.mubr.msk.f32.gmra.mrb[12].mxu1 %vm657_vm5, %v5312_v38  ;;  %3969 = vmatprep.mubr.msk.f32.mxu0 %vm4511_vm0, %v6254_v39  ;;  %v4099_v38 = vpack.c.bf16 %v381_v20, %v380_v21 }
 0x15e   : > { %v2146_v24 = vpop.permute.xlu1 %2145  ;;  %3744 = vmatprep.mubr.msk.f32.mxu1 %vm4511_vm0, %v6254_v39 }
 0x15f   : > { %v5826_v4 = vsel %vm637_vm4, %v2188_v1, %v2146_v24 }
 0x160   : > { %3970 = vmatmul.mubr.msk.f32.gmra.mrb[28].mxu0 %vm657_vm5, %v5826_v4 }
 0x161   : > { %3745 = vmatmul.mubr.msk.f32.gmra.mrb[14].mxu1 %vm657_vm5, %v5334_v44  ;;  %3978 = vmatprep.mubr.msk.f32.mxu0 %vm4511_vm0, %v6254_v39  ;;  %v382_v44 = vld [vmem:[%s6208_s3 + $0xd0] sm:$0xff] }
 0x162   : > { %3747 = vmatprep.mubr.msk.f32.mxu1 %vm4511_vm0, %v6254_v39 }
 0x164   : > { %3979 = vmatmul.mubr.msk.f32.vlgmr.msra.gmra.mrb[0].mxu0 %vm657_vm5, %v5652_v15  ;;  %v595_v15 = vpop.permute.xlu1 %594 }
 0x165   : > { %4100 = vmatpush3.bf16.msra.mxu0 %v4099_v38  ;;  %3748 = vmatmul.mubr.msk.f32.gmra.mrb[16].mxu1 %vm657_vm5, %v5360_v50  ;;  %v498_v50 = vpop.permute.xlu0 %497 }
 0x166   : > { %3981 = vmatprep.mubr.msk.f32.mxu0 %vm4511_vm0, %v6254_v39  ;;  %3750 = vmatprep.mubr.msk.f32.mxu1 %vm4511_vm0, %v6254_v39 }
 0x167   : > { %4027 = vmatprep.subr.mxu0 %v6254_v39 }
 0x168   : > { %3982 = vmatmul.mubr.msk.f32.gmra.mrb[2].mxu0 %vm657_vm5, %v5666_v34  ;;  %v597_v57 = vpop.permute.xlu1 %596 }
 0x169   : > { %3751 = vmatmul.mubr.msk.f32.gmra.mrb[18].mxu1 %vm657_vm5, %v5384_v56  ;;  %3984 = vmatprep.mubr.msk.f32.mxu0 %vm4511_vm0, %v6254_v39  ;;  %v500_v56 = vpop.permute.xlu0 %499 }
 0x16a   : > { %3753 = vmatprep.mubr.msk.f32.mxu1 %vm4511_vm0, %v6254_v39  ;;  %4028 = vmatpush3.msra.mxu0 %v382_v44  ;;  %v636_v29 = vsel %vm617_vm3, %v5345_v47, %v500_v56 }
 0x16b   : > { %v656_v49 = vsel %vm637_vm4, %v636_v29, %v597_v57 }
 0x16c   : > { %3985 = vmatmul.mubr.msk.f32.gmra.mrb[4].mxu0 %vm657_vm5, %v5679_v35 }
 0x16d   : > { %3754 = vmatmul.mubr.msk.f32.gmra.mrb[20].mxu1 %vm657_vm5, %v5412_v63  ;;  %3987 = vmatprep.mubr.msk.f32.mxu0 %vm4511_vm0, %v6254_v39  ;;  %v4412_v63 = vld [vmem:[%s4647_s15 + $0x88] sm:$0xff]  ;;  %v1230_v2 = vpop.permute.xlu0 %1229  ;;  %s315_s15 = scalar_lea.vmem [#allocation2], %s3308_s29 }
 0x16e   : > { %3756 = vmatprep.mubr.msk.f32.mxu1 %vm4511_vm0, %v6254_v39  ;;  %v635_v34 = vsel %vm617_vm3, %v4412_v63, %v498_v50  ;;  %v1382_v30 = vsel %vm617_vm3, %v5396_v26, %v1230_v2  ;;  %v6267_v26 = vld [vmem:[#allocation8_spill] sm:$0xff]  ;;  %s3139_s30 = sshll.u32 %s315_s15, 4  ;;  %s6153_s30 = int_to_ptr.vmem [resolvable:$true] %s3139_s30 }
 0x16f   : > { %s4414_s22 = scalar_lea.vmem %s6153_s30, 128  ;;  %p4421_p7 = scmp.lt.s32.totalorder %s6153_s30, %s4419_s13 }
 0x170   : > { %3988 = vmatmul.mubr.msk.f32.gmra.mrb[6].mxu0 %vm657_vm5, %v5692_v8  ;;  %p4415_p4 = scmp.ne.s32.totalorder %s6153_s30, %s4414_s22  ;;  %p4422_p9 = scmp.lt.s32.totalorder %s4420_s9, %s4414_s22 }
 0x171   : > { %3757 = vmatmul.mubr.msk.f32.gmra.mrb[22].mxu1 %vm657_vm5, %v5434_v45  ;;  %3990 = vmatprep.mubr.msk.f32.mxu0 %vm4511_vm0, %v6254_v39  ;;  %v655_v45 = vsel %vm637_vm4, %v635_v34, %v595_v15  ;;  %v1232_v47 = vpop.permute.xlu0 %1231 }
 0x172   : > { %3759 = vmatprep.mubr.msk.f32.mxu1 %vm4511_vm0, %v6254_v39  ;;  %v1383_v19 = vsel %vm617_vm3, %v5399_v16, %v1232_v47  ;;  %v4413_v16 = vld [vmem:[%s6208_s3 + $0x70] sm:$0xff]  ;;  %p4416_p5 = pnand %p4415_p4, %p4597_p3  ;;  %p4423_p10 = por %p4422_p9, %p4421_p7 }
 0x174   : > { %3991 = vmatmul.mubr.msk.f32.gmra.mrb[8].mxu0 %vm657_vm5, %v5705_v32  ;;  %p4417_p6 = pneg %p4416_p5 }
 0x175   : > { %3760 = vmatmul.mubr.msk.f32.gmra.mrb[24].mxu1 %vm657_vm5, %v5475_v40  ;;  %3993 = vmatprep.mubr.msk.f32.mxu0 %vm4511_vm0, %v6254_v39  ;;  %v1326_v40 = vpop.permute.xlu1 %1325  ;;  %v2052_v42 = vpop.permute.xlu0 %2051 }
 0x176   : > { %3762 = vmatprep.mubr.msk.f32.mxu1 %vm4511_vm0, %v6254_v39  ;;  %v1401_v3 = vsel %vm637_vm4, %v1382_v30, %v1326_v40  ;;  %v2189_v9 = vsel %vm617_vm3, %v5322_v10, %v2052_v42  ;;  %p4424_p11 = pnand %p4423_p10, %p4417_p6 }
 0x178   : > { %3994 = vmatmul.mubr.msk.f32.gmra.mrb[10].mxu0 %vm657_vm5, %v5724_v5 }
 0x179   : > { %3763 = vmatmul.mubr.msk.f32.gmra.mrb[26].mxu1 %vm657_vm5, %v655_v45  ;;  %3996 = vmatprep.mubr.msk.f32.mxu0 %vm4511_vm0, %v6254_v39  ;;  %v1328_v11 = vpop.permute.xlu1 %1327  ;;  %v2054_v7 = vpop.permute.xlu0 %2053 }
 0x17a   : > { %3765 = vmatprep.mubr.msk.f32.mxu1 %vm4511_vm0, %v6254_v39  ;;  %v1402_v31 = vsel %vm637_vm4, %v1383_v19, %v1328_v11  ;;  %v2190_v41 = vsel %vm617_vm3, %v6272_v43, %v2054_v7 }
 0x17c   : > { %3997 = vmatmul.mubr.msk.f32.gmra.mrb[12].mxu0 %vm657_vm5, %v5737_v17 }
 0x17d   : > { %3766 = vmatmul.mubr.msk.f32.gmra.mrb[28].mxu1 %vm657_vm5, %v656_v49  ;;  %3999 = vmatprep.mubr.msk.f32.mxu0 %vm4511_vm0, %v6254_v39  ;;  %v2148_v18 = vpop.permute.xlu1 %2147 }
 0x17e   : > { %3774 = vmatprep.mubr.msk.f32.mxu1 %vm4511_vm0, %v6254_v39  ;;  %v2208_v61 = vsel %vm637_vm4, %v2189_v9, %v2148_v18 }
 0x180   : > { %4000 = vmatmul.mubr.msk.f32.gmra.mrb[14].mxu0 %vm657_vm5, %v5754_v33 }
 0x181   : > { %3775 = vmatmul.mubr.msk.f32.vlgmr.msra.gmra.mrb[0].mxu1 %vm657_vm5, %v1401_v3  ;;  %4002 = vmatprep.mubr.msk.f32.mxu0 %vm4511_vm0, %v6254_v39  ;;  %v2150_v51 = vpop.permute.xlu1 %2149 }
 0x182   : > { %4103 = vmatpush3.bf16.msra.mxu1 %v6267_v26  ;;  %3777 = vmatprep.mubr.msk.f32.mxu1 %vm4511_vm0, %v6254_v39  ;;  %v2209_v10 = vsel %vm637_vm4, %v2190_v41, %v2150_v51 }
 0x183   : > { %4102 = vmatprep.subr.mxu1 %v6254_v39 }
 0x184   : > { %4003 = vmatmul.mubr.msk.f32.gmra.mrb[16].mxu0 %vm657_vm5, %v5768_v27 }
 0x185   : > { %3778 = vmatmul.mubr.msk.f32.gmra.mrb[2].mxu1 %vm657_vm5, %v1402_v31  ;;  %4005 = vmatprep.mubr.msk.f32.mxu0 %vm4511_vm0, %v6254_v39 }
 0x186   : > { %3780 = vmatprep.mubr.msk.f32.mxu1 %vm4511_vm0, %v6254_v39  ;;  %4104 = vmatpush3.msra.mxu1 %v4413_v16 }
 0x188   : > { %4006 = vmatmul.mubr.msk.f32.gmra.mrb[18].mxu0 %vm657_vm5, %v5781_v0 }
 0x189   : > { %3781 = vmatmul.mubr.msk.f32.gmra.mrb[4].mxu1 %vm657_vm5, %v6268_v25  ;;  %4008 = vmatprep.mubr.msk.f32.mxu0 %vm4511_vm0, %v6254_v39 }
 0x18a   : > { %3783 = vmatprep.mubr.msk.f32.mxu1 %vm4511_vm0, %v6254_v39 }
 0x18c   : > { %4009 = vmatmul.mubr.msk.f32.gmra.mrb[20].mxu0 %vm657_vm5, %v5794_v36 }
 0x18d   : > { %3784 = vmatmul.mubr.msk.f32.gmra.mrb[6].mxu1 %vm657_vm5, %v6269_v59  ;;  %4011 = vmatprep.mubr.msk.f32.mxu0 %vm4511_vm0, %v6254_v39 }
 0x18e   : > { %3786 = vmatprep.mubr.msk.f32.mxu1 %vm4511_vm0, %v6254_v39 }
 0x190   : > { %4012 = vmatmul.mubr.msk.f32.gmra.mrb[22].mxu0 %vm657_vm5, %v5807_v23 }
 0x191   : > { %3787 = vmatmul.mubr.msk.f32.gmra.mrb[8].mxu1 %vm657_vm5, %v6270_v28  ;;  %4014 = vmatprep.mubr.msk.f32.mxu0 %vm4511_vm0, %v6254_v39 }
 0x192   : > { %3789 = vmatprep.mubr.msk.f32.mxu1 %vm4511_vm0, %v6254_v39 }
 0x194   : > { %4015 = vmatmul.mubr.msk.f32.gmra.mrb[24].mxu0 %vm657_vm5, %v5826_v4 }
 0x195   : > { %3790 = vmatmul.mubr.msk.f32.gmra.mrb[10].mxu1 %vm657_vm5, %v6271_v52  ;;  %4017 = vmatprep.mubr.msk.f32.mxu0 %vm4511_vm0, %v6254_v39 }
 0x196   : > { %3792 = vmatprep.mubr.msk.f32.mxu1 %vm4511_vm0, %v6254_v39 }
 0x198   : > { %4018 = vmatmul.mubr.msk.f32.gmra.mrb[26].mxu0 %vm657_vm5, %v2208_v61 }
 0x199   : > { %3793 = vmatmul.mubr.msk.f32.gmra.mrb[12].mxu1 %vm657_vm5, %v6273_v54  ;;  %4020 = vmatprep.mubr.msk.f32.mxu0 %vm4511_vm0, %v6254_v39 }
 0x19a   : > { %3795 = vmatprep.mubr.msk.f32.mxu1 %vm4511_vm0, %v6254_v39 }
 0x19c   : > { %4021 = vmatmul.mubr.msk.f32.gmra.mrb[28].mxu0 %vm657_vm5, %v2209_v10 }
 0x19d   : > { %3796 = vmatmul.mubr.msk.f32.gmra.mrb[14].mxu1 %vm657_vm5, %v6274_v46  ;;  %4029 = vmatprep.mubr.msk.f32.mxu0 %vm4511_vm0, %v6254_v39 }
 0x19e   : > { %3798 = vmatprep.mubr.msk.f32.mxu1 %vm4511_vm0, %v6254_v39 }
 0x1a0   : > { %4030 = vmatmul.mubr.msk.f32.vlgmr.msra.gmra.mrb[0].mxu0 %vm657_vm5, %v5679_v35  ;;  %v6277_v35 = vld [vmem:[#allocation18_spill] sm:$0xff] }
 0x1a1   : > { %3799 = vmatmul.mubr.msk.f32.gmra.mrb[16].mxu1 %vm657_vm5, %v6275_v60  ;;  %4032 = vmatprep.mubr.msk.f32.mxu0 %vm4511_vm0, %v6254_v39 }
 0x1a2   : > { %3801 = vmatprep.mubr.msk.f32.mxu1 %vm4511_vm0, %v6254_v39 }
 0x1a4   : > { %4033 = vmatmul.mubr.msk.f32.gmra.mrb[2].mxu0 %vm657_vm5, %v5692_v8  ;;  %v6278_v8 = vld [vmem:[#allocation21_spill] sm:$0xff] }
 0x1a5   : > { %3802 = vmatmul.mubr.msk.f32.gmra.mrb[18].mxu1 %vm657_vm5, %v6276_v62  ;;  %4035 = vmatprep.mubr.msk.f32.mxu0 %vm4511_vm0, %v6254_v39 }
 0x1a6   : > { %3804 = vmatprep.mubr.msk.f32.mxu1 %vm4511_vm0, %v6254_v39 }
 0x1a8   : > { %4036 = vmatmul.mubr.msk.f32.gmra.mrb[4].mxu0 %vm657_vm5, %v5705_v32  ;;  %v2056_v32 = vpop.permute.xlu0 %2055 }
 0x1a9   : > { %3805 = vmatmul.mubr.msk.f32.gmra.mrb[20].mxu1 %vm657_vm5, %v6277_v35  ;;  %4038 = vmatprep.mubr.msk.f32.mxu0 %vm4511_vm0, %v6254_v39 }
 0x1aa   : > { %3807 = vmatprep.mubr.msk.f32.mxu1 %vm4511_vm0, %v6254_v39 }
 0x1ac   : > { %4039 = vmatmul.mubr.msk.f32.gmra.mrb[6].mxu0 %vm657_vm5, %v5724_v5  ;;  %v6279_v5 = vld [vmem:[#allocation19_spill] sm:$0xff] }
 0x1ad   : > { %3808 = vmatmul.mubr.msk.f32.gmra.mrb[22].mxu1 %vm657_vm5, %v6278_v8  ;;  %4041 = vmatprep.mubr.msk.f32.mxu0 %vm4511_vm0, %v6254_v39 }
 0x1ae   : > { %3810 = vmatprep.mubr.msk.f32.mxu1 %vm4511_vm0, %v6254_v39 }
 0x1b0   : > { %4042 = vmatmul.mubr.msk.f32.gmra.mrb[8].mxu0 %vm657_vm5, %v5737_v17  ;;  %v2191_v17 = vsel %vm617_vm3, %v6279_v5, %v2056_v32 }
 0x1b1   : > { %3811 = vmatmul.mubr.msk.f32.gmra.mrb[24].mxu1 %vm657_vm5, %v5524_v55  ;;  %4044 = vmatprep.mubr.msk.f32.mxu0 %vm4511_vm0, %v6254_v39 }
 0x1b2   : > { %3813 = vmatprep.mubr.msk.f32.mxu1 %vm4511_vm0, %v6254_v39 }
 0x1b4   : > { %4045 = vmatmul.mubr.msk.f32.gmra.mrb[10].mxu0 %vm657_vm5, %v5754_v33 }
 0x1b5   : > { %3814 = vmatmul.mubr.msk.f32.gmra.mrb[26].mxu1 %vm657_vm5, %v5550_v58  ;;  %4047 = vmatprep.mubr.msk.f32.mxu0 %vm4511_vm0, %v6254_v39 }
 0x1b6   : > { %3816 = vmatprep.mubr.msk.f32.mxu1 %vm4511_vm0, %v6254_v39 }
 0x1b8   : > { %4048 = vmatmul.mubr.msk.f32.gmra.mrb[12].mxu0 %vm657_vm5, %v5768_v27 }
 0x1b9   : > { %3817 = vmatmul.mubr.msk.f32.gmra.mrb[28].mxu1 %vm657_vm5, %v5563_v22  ;;  %4050 = vmatprep.mubr.msk.f32.mxu0 %vm4511_vm0, %v6254_v39 }
 0x1ba   : > { %3849 = vmatprep.mubr.msk.f32.mxu1 %vm4511_vm0, %v6254_v39 }
 0x1bc   : > { %4051 = vmatmul.mubr.msk.f32.gmra.mrb[14].mxu0 %vm657_vm5, %v5781_v0 }
 0x1bd   : > { %3850 = vmatmul.mubr.msk.f32.vlgmr.msra.gmra.mrb[16].mxu1 %vm657_vm5, %v6277_v35  ;;  %4053 = vmatprep.mubr.msk.f32.mxu0 %vm4511_vm0, %v6254_v39 }
 0x1be   : > { %3852 = vmatprep.mubr.msk.f32.mxu1 %vm4511_vm0, %v6254_v39 }
 0x1c0   : > { %4054 = vmatmul.mubr.msk.f32.gmra.mrb[16].mxu0 %vm657_vm5, %v5794_v36 }
 0x1c1   : > { %3853 = vmatmul.mubr.msk.f32.gmra.mrb[18].mxu1 %vm657_vm5, %v6278_v8  ;;  %4056 = vmatprep.mubr.msk.f32.mxu0 %vm4511_vm0, %v6254_v39 }
 0x1c2   : > { %3855 = vmatprep.mubr.msk.f32.mxu1 %vm4511_vm0, %v6254_v39 }
 0x1c4   : > { %4057 = vmatmul.mubr.msk.f32.gmra.mrb[18].mxu0 %vm657_vm5, %v5807_v23 }
 0x1c5   : > { %3856 = vmatmul.mubr.msk.f32.gmra.mrb[20].mxu1 %vm657_vm5, %v5524_v55  ;;  %4059 = vmatprep.mubr.msk.f32.mxu0 %vm4511_vm0, %v6254_v39  ;;  %v2152_v55 = vpop.permute.xlu1 %2151 }
 0x1c6   : > { %3858 = vmatprep.mubr.msk.f32.mxu1 %vm4511_vm0, %v6254_v39  ;;  %v2210_v33 = vsel %vm637_vm4, %v2191_v17, %v2152_v55 }
 0x1c8   : > { %4060 = vmatmul.mubr.msk.f32.gmra.mrb[20].mxu0 %vm657_vm5, %v5826_v4 }
 0x1c9   : > { %3859 = vmatmul.mubr.msk.f32.gmra.mrb[22].mxu1 %vm657_vm5, %v5550_v58  ;;  %4062 = vmatprep.mubr.msk.f32.mxu0 %vm4511_vm0, %v6254_v39  ;;  %v2058_v58 = vpop.permute.xlu0 %2057  ;;  %v2154_v0 = vpop.permute.xlu1 %2153 }
 0x1ca   : > { %3861 = vmatprep.mubr.msk.f32.mxu1 %vm4511_vm0, %v6254_v39 }
 0x1cc   : > { %4063 = vmatmul.mubr.msk.f32.gmra.mrb[22].mxu0 %vm657_vm5, %v2208_v61 }
 0x1cd   : > { %3862 = vmatmul.mubr.msk.f32.gmra.mrb[24].mxu1 %vm657_vm5, %v5563_v22  ;;  %4065 = vmatprep.mubr.msk.f32.mxu0 %vm4511_vm0, %v6254_v39  ;;  %v6280_v22 = vld [vmem:[#allocation20_spill] sm:$0xff] }
 0x1ce   : > { %3864 = vmatprep.mubr.msk.f32.mxu1 %vm4511_vm0, %v6254_v39  ;;  %v2192_v27 = vsel %vm617_vm3, %v6280_v22, %v2058_v58 }
 0x1cf   : > { %v2211_v53 = vsel %vm637_vm4, %v2192_v27, %v2154_v0 }
 0x1d0   : > { %4066 = vmatmul.mubr.msk.f32.gmra.mrb[24].mxu0 %vm657_vm5, %v2209_v10 }
 0x1d1   : > { %3865 = vmatmul.mubr.msk.f32.gmra.mrb[26].mxu1 %vm657_vm5, %v5576_v13  ;;  %4068 = vmatprep.mubr.msk.f32.mxu0 %vm4511_vm0, %v6254_v39 }
 0x1d2   : > { %3867 = vmatprep.mubr.msk.f32.mxu1 %vm4511_vm0, %v6254_v39 }
 0x1d4   : > { %4069 = vmatmul.mubr.msk.f32.gmra.mrb[26].mxu0 %vm657_vm5, %v2210_v33 }
 0x1d5   : > { %3868 = vmatmul.mubr.msk.f32.gmra.mrb[28].mxu1 %vm657_vm5, %v5589_v12  ;;  %4071 = vmatprep.mubr.msk.f32.mxu0 %vm4511_vm0, %v6254_v39 }
 0x1d8   : > { %4072 = vmatmul.mubr.msk.f32.gmra.mrb[28].mxu0 %vm657_vm5, %v2211_v53 }
 0x254   : > { %v1531_v13 = vpop.f32.mrb[0].mxu1 }
 0x255   : > { %v3776_v36 = vpop.f32.mrb[1].mxu1 }
 0x258   : > { %v1536_v37 = vpop.f32.mrb[2].mxu1 }
 0x259   : > { %v3779_v48 = vpop.f32.mrb[3].mxu1 }
 0x25c   : > { %v1541_v6 = vpop.f32.mrb[4].mxu1 }
 0x25d   : > { %v3782_v23 = vpop.f32.mrb[5].mxu1 }
 0x260   : > { %v1546_v14 = vpop.f32.mrb[6].mxu1 }
 0x261   : > { %v3785_v1 = vpop.f32.mrb[7].mxu1 }
 0x264   : > { %v1551_v24 = vpop.f32.mrb[8].mxu1 }
 0x265   : > { %v3788_v21 = vpop.f32.mrb[9].mxu1 }
 0x268   : > { %v1556_v20 = vpop.f32.mrb[10].mxu1 }
 0x269   : > { %v3791_v12 = vpop.f32.mrb[11].mxu1 }
 0x26c   : > { %v1561_v39 = vpop.f32.mrb[12].mxu1 }
 0x26d   : > { %v3794_v4 = vpop.f32.mrb[13].mxu1 }
 0x270   : > { %v1566_v38 = vpop.f32.mrb[14].mxu1 }
 0x271   : > { %v3797_v44 = vpop.f32.mrb[15].mxu1 }
 0x273   : > { %v2645_v50 = vpop.f32.mrb[0].mxu0 }
 0x274   : > { %v4105_v15 = vadd.f32 %v2645_v50, %v1531_v13  ;;  %v4031_v56 = vpop.f32.mrb[1].mxu0 }
 0x276   : > { %v2734_v63 = vmax.f32 %v4105_v15, 0.0 }
 0x277   : > { %v2650_v34 = vpop.f32.mrb[2].mxu0 }
 0x278   : > { %2750 = vst.msk [vmem:[%s6097_s28] sm:$0xff] %vm2749_vm6, %v2734_v63  ;;  %v4106_v57 = vadd.f32 %v2650_v34, %v1536_v37  ;;  %v4034_v45 = vpop.f32.mrb[3].mxu0  ;;  %v3056_v30 = vmul.f32 %v2734_v63, %v2734_v63  ;;  %v3021_v19 = vsel %vm2749_vm6, %v2734_v63, 0.0 }
 0x27a   : > { %v2735_v2 = vmax.f32 %v4106_v57, 0.0  ;;  %v3071_v59 = vsel %vm2749_vm6, %v3056_v30, 0.0 }
 0x27b   : > { %v2655_v29 = vpop.f32.mrb[4].mxu0 }
 0x27c   : > { %2751 = vst.msk [vmem:[%s6097_s28 + $0x8] sm:$0xff] %vm2749_vm6, %v2735_v2  ;;  %v4107_v40 = vadd.f32 %v2655_v29, %v1541_v6  ;;  %v4037_v49 = vpop.f32.mrb[5].mxu0 }
 0x27e   : > { %v2736_v47 = vmax.f32 %v4107_v40, 0.0 }
 0x27f   : > { %v2660_v3 = vpop.f32.mrb[6].mxu0 }
 0x280   : > { %2752 = vst.msk [vmem:[%s6097_s28 + $0x10] sm:$0xff] %vm2749_vm6, %v2736_v47  ;;  %v3024_v11 = vsel %vm2749_vm6, %v2736_v47, 0.0  ;;  %v3058_v26 = vmul.f32 %v2736_v47, %v2736_v47  ;;  %v4108_v31 = vadd.f32 %v2660_v3, %v1546_v14  ;;  %v4040_v16 = vpop.f32.mrb[7].mxu0 }
 0x281   : > { %v3025_v25 = vadd.f32 %v3024_v11, %v3021_v19 }
 0x282   : > { %v3074_v42 = vsel %vm2749_vm6, %v3058_v26, 0.0  ;;  %v2737_v18 = vmax.f32 %v4108_v31, 0.0 }
 0x283   : > { %v3075_v28 = vadd.f32 %v3074_v42, %v3071_v59  ;;  %v2665_v9 = vpop.f32.mrb[8].mxu0 }
 0x284   : > { %2753 = vst.msk [vmem:[%s6097_s28 + $0x18] sm:$0xff] %vm2749_vm6, %v2737_v18  ;;  %v4109_v7 = vadd.f32 %v2665_v9, %v1551_v24  ;;  %v4043_v61 = vpop.f32.mrb[9].mxu0 }
 0x286   : > { %v2738_v52 = vmax.f32 %v4109_v7, 0.0 }
 0x287   : > { %v2670_v43 = vpop.f32.mrb[10].mxu0 }
 0x288   : > { %2754 = vst.msk [vmem:[%s6097_s28 + $0x20] sm:$0xff] %vm2749_vm6, %v2738_v52  ;;  %v3028_v41 = vsel %vm2749_vm6, %v2738_v52, 0.0  ;;  %v3060_v51 = vmul.f32 %v2738_v52, %v2738_v52  ;;  %v4110_v10 = vadd.f32 %v2670_v43, %v1556_v20  ;;  %v4046_v54 = vpop.f32.mrb[11].mxu0 }
 0x289   : > { %v3029_v46 = vadd.f32 %v3028_v41, %v3025_v25 }
 0x28a   : > { %v3078_v60 = vsel %vm2749_vm6, %v3060_v51, 0.0  ;;  %v2739_v62 = vmax.f32 %v4110_v10, 0.0 }
 0x28b   : > { %v3079_v35 = vadd.f32 %v3078_v60, %v3075_v28  ;;  %v2675_v8 = vpop.f32.mrb[12].mxu0 }
 0x28c   : > { %2755 = vst.msk [vmem:[%s6097_s28 + $0x28] sm:$0xff] %vm2749_vm6, %v2739_v62  ;;  %v4111_v32 = vadd.f32 %v2675_v8, %v1561_v39  ;;  %v4049_v55 = vpop.f32.mrb[13].mxu0 }
 0x28e   : > { %v2740_v5 = vmax.f32 %v4111_v32, 0.0 }
 0x28f   : > { %v2680_v17 = vpop.f32.mrb[14].mxu0 }
 0x290   : > { %2756 = vst.msk [vmem:[%s6097_s28 + $0x30] sm:$0xff] %vm2749_vm6, %v2740_v5  ;;  %v3032_v58 = vsel %vm2749_vm6, %v2740_v5, 0.0  ;;  %v3062_v33 = vmul.f32 %v2740_v5, %v2740_v5  ;;  %v4112_v22 = vadd.f32 %v2680_v17, %v1566_v38  ;;  %v4052_v27 = vpop.f32.mrb[15].mxu0  ;;  %v1732_v0 = vpop.f32.mrb[16].mxu1 }
 0x291   : > { %v3033_v53 = vadd.f32 %v3032_v58, %v3029_v46  ;;  %v3851_v13 = vpop.f32.mrb[17].mxu1 }
 0x292   : > { %v3082_v36 = vsel %vm2749_vm6, %v3062_v33, 0.0  ;;  %v2741_v37 = vmax.f32 %v4112_v22, 0.0 }
 0x293   : > { %v3083_v48 = vadd.f32 %v3082_v36, %v3079_v35  ;;  %v2685_v6 = vpop.f32.mrb[16].mxu0 }
 0x294   : > { %2757 = vst.msk [vmem:[%s6097_s28 + $0x38] sm:$0xff] %vm2749_vm6, %v2741_v37  ;;  %v4113_v23 = vadd.f32 %v2685_v6, %v1732_v0  ;;  %v4055_v14 = vpop.f32.mrb[17].mxu0  ;;  %v1737_v1 = vpop.f32.mrb[18].mxu1 }
 0x295   : > { %v3854_v24 = vpop.f32.mrb[19].mxu1 }
 0x296   : > { %v2742_v21 = vmax.f32 %v4113_v23, 0.0 }
 0x297   : > { %v2690_v20 = vpop.f32.mrb[18].mxu0 }
 0x298   : > { %2758 = vst.msk [vmem:[%s6097_s28 + $0x40] sm:$0xff] %vm2749_vm6, %v2742_v21  ;;  %v3036_v12 = vsel %vm2749_vm6, %v2742_v21, 0.0  ;;  %v3064_v39 = vmul.f32 %v2742_v21, %v2742_v21  ;;  %v4114_v4 = vadd.f32 %v2690_v20, %v1737_v1  ;;  %v4058_v38 = vpop.f32.mrb[19].mxu0  ;;  %v1742_v44 = vpop.f32.mrb[20].mxu1 }
 0x299   : > { %v3037_v50 = vadd.f32 %v3036_v12, %v3033_v53  ;;  %v3857_v15 = vpop.f32.mrb[21].mxu1 }
 0x29a   : > { %v3086_v56 = vsel %vm2749_vm6, %v3064_v39, 0.0  ;;  %v2743_v63 = vmax.f32 %v4114_v4, 0.0 }
 0x29b   : > { %v3087_v34 = vadd.f32 %v3086_v56, %v3083_v48  ;;  %v2695_v57 = vpop.f32.mrb[20].mxu0 }
 0x29c   : > { %2759 = vst.msk [vmem:[%s6097_s28 + $0x48] sm:$0xff] %vm2749_vm6, %v2743_v63  ;;  %v4115_v45 = vadd.f32 %v2695_v57, %v1742_v44  ;;  %v4061_v2 = vpop.f32.mrb[21].mxu0  ;;  %v1747_v29 = vpop.f32.mrb[22].mxu1 }
 0x29d   : > { %v3860_v40 = vpop.f32.mrb[23].mxu1 }
 0x29e   : > { %v2744_v49 = vmax.f32 %v4115_v45, 0.0 }
 0x29f   : > { %v2700_v30 = vpop.f32.mrb[22].mxu0 }
 0x2a0   : > { %2760 = vst.msk [vmem:[%s6097_s28 + $0x50] sm:$0xff] %vm2749_vm6, %v2744_v49  ;;  %v3040_v47 = vsel %vm2749_vm6, %v2744_v49, 0.0  ;;  %v3066_v3 = vmul.f32 %v2744_v49, %v2744_v49  ;;  %v4116_v19 = vadd.f32 %v2700_v30, %v1747_v29  ;;  %v4064_v11 = vpop.f32.mrb[23].mxu0  ;;  %v1752_v26 = vpop.f32.mrb[24].mxu1 }
 0x2a1   : > { %v3041_v31 = vadd.f32 %v3040_v47, %v3037_v50  ;;  %v3863_v16 = vpop.f32.mrb[25].mxu1 }
 0x2a2   : > { %v3090_v25 = vsel %vm2749_vm6, %v3066_v3, 0.0  ;;  %v2745_v59 = vmax.f32 %v4116_v19, 0.0 }
 0x2a3   : > { %v3091_v42 = vadd.f32 %v3090_v25, %v3087_v34  ;;  %v2705_v18 = vpop.f32.mrb[24].mxu0 }
 0x2a4   : > { %2761 = vst.msk [vmem:[%s6097_s28 + $0x58] sm:$0xff] %vm2749_vm6, %v2745_v59  ;;  %v4117_v28 = vadd.f32 %v2705_v18, %v1752_v26  ;;  %v4067_v9 = vpop.f32.mrb[25].mxu0  ;;  %v1757_v7 = vpop.f32.mrb[26].mxu1 }
 0x2a5   : > { %v3866_v61 = vpop.f32.mrb[27].mxu1 }
 0x2a6   : > { %v2746_v52 = vmax.f32 %v4117_v28, 0.0 }
 0x2a7   : > { %v2710_v43 = vpop.f32.mrb[26].mxu0 }
 0x2a8   : > { %2762 = vst.msk [vmem:[%s6097_s28 + $0x60] sm:$0xff] %vm2749_vm6, %v2746_v52  ;;  %v3044_v41 = vsel %vm2749_vm6, %v2746_v52, 0.0  ;;  %v3068_v51 = vmul.f32 %v2746_v52, %v2746_v52  ;;  %v4118_v10 = vadd.f32 %v2710_v43, %v1757_v7  ;;  %v4070_v54 = vpop.f32.mrb[27].mxu0  ;;  %v1762_v46 = vpop.f32.mrb[28].mxu1 }
 0x2a9   : > { %v3045_v60 = vadd.f32 %v3044_v41, %v3041_v31  ;;  %v3869_v62 = vpop.f32.mrb[29].mxu1 }
 0x2aa   : > { %v3094_v35 = vsel %vm2749_vm6, %v3068_v51, 0.0  ;;  %v2747_v8 = vmax.f32 %v4118_v10, 0.0 }
 0x2ab   : > { %v3095_v32 = vadd.f32 %v3094_v35, %v3091_v42  ;;  %v2715_v55 = vpop.f32.mrb[28].mxu0 }
 0x2ac   : > { %2763 = vst.msk [vmem:[%s6097_s28 + $0x68] sm:$0xff] %vm2749_vm6, %v2747_v8  ;;  %v4119_v5 = vadd.f32 %v2715_v55, %v1762_v46  ;;  %v4073_v17 = vpop.f32.mrb[29].mxu0 }
 0x2ae   : > { %v2748_v58 = vmax.f32 %v4119_v5, 0.0 }
 0x2b0   : > { %2764 = vst.msk [vmem:[%s6097_s28 + $0x70] sm:$0xff] %vm2749_vm6, %v2748_v58  ;;  %v3048_v33 = vsel %vm2749_vm6, %v2748_v58, 0.0  ;;  %v3070_v22 = vmul.f32 %v2748_v58, %v2748_v58 }
 0x2b1   : > { %v3049_v27 = vadd.f32 %v3048_v33, %v3045_v60 }
 0x2b2   : > { %v3098_v0 = vsel %vm2749_vm6, %v3070_v22, 0.0 }
 0x2b3   : > { %v3050_v53 = vrot.slane %v3049_v27, 4  ;;  %v3099_v13 = vadd.f32 %v3098_v0, %v3095_v32 }
 0x2b5   : > { %v3051_v36 = vadd.f32 %v3050_v53, %v3049_v27  ;;  %v3100_v37 = vrot.slane %v3099_v13, 4 }
 0x2b7   : > { %v3052_v48 = vrot.slane %v3051_v36, 2  ;;  %v3101_v6 = vadd.f32 %v3100_v37, %v3099_v13 }
 0x2b9   : > { %v3053_v23 = vadd.f32 %v3052_v48, %v3051_v36  ;;  %v3102_v14 = vrot.slane %v3101_v6, 2 }
 0x2bb   : > { %v3054_v1 = vrot.slane %v3053_v23, 1  ;;  %v3103_v24 = vadd.f32 %v3102_v14, %v3101_v6 }
 0x2bd   : > { %v3104_v21 = vrot.slane %v3103_v24, 1  ;;  %v3055_v20 = vadd.f32 %v3054_v1, %v3053_v23 }
 0x2bf   : > { %v3105_v12 = vadd.f32 %v3104_v21, %v3103_v24 }
 0x2c1   : > { %v3107_v39 = vsel %vm3106_vm7, %v3055_v20, %v3105_v12 }
 0x2c2   : > { %v3109_v4 = vsel %vm3108_vm8, %v3107_v39, 0.0 }
 0x2c3   : > { %3110 = vst.msk [vmem:[%s315_s15] sm:$0xff] %vm2749_vm6, %v3109_v4 }
 0x2c4   : > { %4427 = shalt.err (!%p4424_p11)
}
 0x2c5   : > { %s4428_s26 = scalar_lea.hbm %s6151_s8, 128  ;;  %s4432_s29 = scalar_lea.hbm %s6210_s5, 2048 }
 0x2c6   : > { %p4429_p12 = scmp.ne.s32.totalorder %s6151_s8, %s4428_s26  ;;  %p4433_p1 = scmp.lt.u32.totalorder %s6151_s8, %s6210_s5 }
 0x2c7   : > { %p4434_p2 = scmp.lt.u32.totalorder %s4432_s29, %s4428_s26  ;;  %p4436_p5 = scmp.lt.u32.totalorder %s4428_s26, %s6151_s8 }
 0x2c8   : > { %p4430_p13 = pnand %p4429_p12, %p4597_p3 }
 0x2c9   : > { %p4435_p4 = por %p4434_p2, %p4433_p1 }
 0x2ca   : > { %p4431_p0 = pneg %p4430_p13 }
 0x2cb   : > { %p4437_p6 = por %p4436_p5, %p4435_p4 }
 0x2cd   : > { %p4438_p7 = pnand %p4437_p6, %p4431_p0 }
 0x2cf   : > { %4441 = shalt.err (!%p4438_p7)
}
 0x2d0   : > { %4336 = dma.vmem_to_hbm [thread:$0]  (%p4597_p3), %s6153_s30, 128, %s6151_s8, %s3121_s21  }
 0x2d1 PF: > { %p4342_p9 = scmp.ge.s32.totalorder %s4508_s25, 2  ;;  %s3163_s24 = sand.u32 1, %s4480_s18  }
 0x2d2   : > { %s3164_s15 = scalar_lea.sflag [#allocation3], %s3163_s24 }
 0x2d3   : > { %p4339_p10 = pnand %p4342_p9, %p4606_p8 }
 0x2d5   : > { %4475 = dma.done.wait (!%p4339_p10), %s3164_s15, 128  }
 0x2d6   : > { %4477 = vsyncadd (!%p4339_p10), %s3164_s15, 4294967168  ;;  %s19_s25 = sadd.s32 1, %s4508_s25   ;;  %s6281_s22 = sld [smem:[#allocation5_spill]] }
 0x2d7   : > { %p16_p11 = scmp.ge.s32.totalorder %s19_s25, 18   ;;  %s6282_s6 = sld [smem:[#allocation6_spill]] }
 0x2d8   : > { %s6283_s24 = sld [smem:[#allocation7_spill]]  ;;  %s6284_s18 = smov %s4484_s19 }
 0x2d9   : > { %s6285_s19 = smov %s4488_s20  ;;  %s6286_s20 = smov %s4615_s11 }
 0x2da   : > { %s6287_s21 = smov %s4500_s23  ;;  %18 = sbr.rel (!%p16_p11) target bundleno = 5 (0x5), region = 89 }
 0x2dd   : > { %s6288_s23 = smov %s6282_s6 }
 0x2e1   :  { %3169 = vsyncpa [#allocation3], 1 }
 0x2e2   :  { %3171 = vsyncpa [#allocation3 + $0x1], 1 }

// kernel: module_a_forward.8
= control target key start
LH: loop header
LB: loop body
LE: loop exit
PB: predicated region body
PF: predicated region fallthrough
CT: control target
= control target key end

     0   :  { %s4594_s18 = smov 0   ;;  %s4596_s19 = smov 0   ;;  %s6263_s0 = inlined_call_operand.vmem [shape: f32[2,10,160,12], index: 0, kind: input, shape index: {}, may-alias: {0,1,2}]   ;;  %s6264_s1 = inlined_call_operand.vmem [shape: f32[2,10,160,12], index: 1, kind: input, shape index: {}, may-alias: {0,1,2}]   ;;  %s6265_s2 = inlined_call_operand.vmem [shape: f32[2,10,160,12], index: 2, kind: input, shape index: {}, may-alias: {0,1,2}]   ;;  %s6266_s3 = inlined_call_operand.vmem [shape: f32[3,3,36,16], index: 3, kind: input, shape index: {}]   ;;  %s6267_s4 = inlined_call_operand.vmem [shape: f32[2,8,120,16], index: 4, kind: output, shape index: {0}]   ;;  %s6268_s5 = inlined_call_operand.vmem [shape: f32[2,8,8,16], index: 5, kind: output, shape index: {1}]  }
   0x1   :  { %s4598_s20 = smov 0   ;;  %s4600_s21 = smov 0  }
   0x2   :  { %s4602_s22 = smov 0  }
   0x3 LB: > { %s25_s23 = sadd.s32 1, %s4549_s20  ;;  %s28_s24 = sadd.s32 1, %s4553_s21  ;;  %s4557_s22 = sphi %s4602_s22, %s16_s22   ;;  %s4553_s21 = sphi %s4600_s21, %s6338_s21   ;;  %s4549_s20 = sphi %s4598_s20, %s6337_s20   ;;  %s4545_s19 = sphi %s4596_s19, %s6336_s19   ;;  %s4541_s18 = sphi %s4594_s18, %s6335_s18  }
   0x4   : > { %p26_p0 = scmp.ge.s32.totalorder %s25_s23, 8  ;;  %p3353_p1 = scmp.ge.s32.totalorder %s4557_s22, 1 }
   0x5   : > { %p252_p2 = scmp.lt.s32.totalorder %s4557_s22, 17 }
   0x6   : > { %s6340_s23 = smov (%p26_p0, %s25_s23), 0  ;;  %s6342_s24 = smov (!%p26_p0, %s28_s24), %s4553_s21 }
   0x7   : > { %p253_p3 = pnand %p3353_p1, %p252_p2  ;;  %p30_p4 = scmp.ge.s32.totalorder %s6342_s24, 2 }
   0x9   : > { %s6344_s24 = smov (%p30_p4, %s6342_s24), 0  ;;  %256 = sbr.rel (%p253_p3) target bundleno = 697 (0x2b9), region = 36 }
  0x10   : > { %p316_p5 = scmp.lt.s32.totalorder %s4545_s19, 1  ;;  %p318_p6 = scmp.lt.s32.totalorder %s4541_s18, 9  ;;  %v369_v0 = vld [vmem:[%s6266_s3 + $0x28] sm:$0xff]  ;;  %v6273_v1 = vmov 0.0|0.0   ;;  %v370_v2 = vld [vmem:[%s6266_s3 + $0x30] sm:$0xff]  ;;  %v371_v3 = vld [vmem:[%s6266_s3 + $0x38] sm:$0xff] }
  0x11   : > { %4181 = vmatprep.subr.bf16.mxu1 %v6273_v1  ;;  %v372_v4 = vld [vmem:[%s6266_s3 + $0x40] sm:$0xff]  ;;  %4205 = vmatprep.subr.bf16.mxu0 %v6273_v1  ;;  %v4182_v5 = vpack.c.bf16 %v370_v2, %v369_v0  ;;  %s325_s10 = sadd.s32 1, %s4541_s18  ;;  %vm4560_vm0 = vmmov 0   ;;  %v6275_v7 = vmov 0.0   ;;  %v385_v9 = vld [vmem:[%s6266_s3 + $0xa8] sm:$0xff]  ;;  %vm729_vm1 = vcmask 1043456  }
  0x12   : > { %s6346_s19 = smov (!%p316_p5, %s4545_s19), 1  ;;  %v4185_v6 = vpack.c.bf16 %v372_v4, %v371_v3  ;;  %3696 = vmatprep.mubr.msk.f32.mxu1 %vm4560_vm0, %v6275_v7  ;;  %v384_v8 = vld [vmem:[%s6266_s3 + $0xa0] sm:$0xff]  ;;  %3916 = vmatprep.mubr.msk.f32.mxu0 %vm4560_vm0, %v6275_v7  ;;  %p4659_p7 = scmp.lt.s32.totalorder %s325_s10, 9  ;;  %v373_v11 = vld [vmem:[%s6266_s3 + $0x48] sm:$0xf]  ;;  %v386_v12 = vld [vmem:[%s6266_s3 + $0xb0] sm:$0xff] }
  0x13   : > { %s319_s8 = scalar_select %p318_p6, %s4541_s18, 9  ;;  %4183 = vmatpush3.bf16.msra.mxu1 %v4182_v5  ;;  %v4663_v10 = vpack.c.bf16 %v385_v9, %v384_v8  ;;  %v387_v13 = vld [vmem:[%s6266_s3 + $0xb8] sm:$0xff]  ;;  %vm546_vm2 = vcmask 1045504   ;;  %vm449_vm3 = vcmask 1046528   ;;  %v388_v42 = vld [vmem:[%s6266_s3 + $0xc0] sm:$0xf] }
  0x14   : > { %s4645_s9 = smul.u32 200, %s6346_s19  ;;  %4184 = vmatprep.subr.bf16.mxu1 %v6273_v1  ;;  %s6348_s10 = smov (!%p4659_p7, %s325_s10), 9  ;;  %v4694_v17 = vpack.c.bf16 %v387_v13, %v386_v12  ;;  %vm643_vm4 = vcmask 97280   ;;  %vm663_vm5 = vcmask 195584   ;;  %vm683_vm6 = vcmask 293888  }
  0x15   : > { %s4466_s11 = smul.u32 20, %s319_s8  ;;  %6297 = vst [vmem:[#allocation2_spill] sm:$0xff] %v4663_v10  ;;  %4207 = vmatpush3.bf16.msra.mxu0 %v4663_v10  ;;  %s4562_s13 = smov 24   ;;  %vm2803_vm7 = vcmask 130048   ;;  %vm3160_vm8 = vcmask 1040384   ;;  %vm3162_vm9 = vcmask 1041408  }
  0x16   : > { %4208 = vmatprep.subr.bf16.mxu0 %v6273_v1  ;;  %6298 = vst [vmem:[#allocation3_spill] sm:$0xff] %v4694_v17  ;;  %s4468_s12 = smul.u32 20, %s6348_s10  ;;  %s4563_s10 = smov 12  }
  0x17   : > { %s322_s17 = sadd.s32 %s4645_s9, %s4466_s11  ;;  %4186 = vmatpush3.bf16.msra.mxu1 %v4185_v6  ;;  %s336_s29 = sadd.s32 2, %s4541_s18 }
  0x18   : > { %s3354_s25 = sshll.u32 %s322_s17, 3  ;;  %3694 = vmatprep.subr.mxu1 %v6275_v7  ;;  %s332_s14 = sadd.s32 %s4468_s12, %s4645_s9 }
  0x19   : > { %s4670_s28 = scalar_lea.vmem %s6263_s0, %s3354_s25  ;;  %4210 = vmatpush3.bf16.msra.mxu0 %v4694_v17  ;;  %s3355_s15 = sshll.u32 %s332_s14, 3 }
  0x1a   : > { %v4684_v14 = vld [vmem:[%s4670_s28 + $0x10] sm:$0xff]  ;;  %v4687_v15 = vld [vmem:[%s4670_s28 + $0x18] sm:$0xff]  ;;  %v4690_v16 = vld [vmem:[%s4670_s28 + $0x20] sm:$0xff]  ;;  %3914 = vmatprep.subr.mxu0 %v6275_v7  ;;  %s4718_s25 = scalar_lea.vmem %s6264_s1, %s3355_s15  ;;  %p339_p8 = scmp.lt.s32.totalorder %s336_s29, 9 }
  0x1b   : > { %v550_v18 = vrot.slane %v4684_v14, 2  ;;  %v552_v19 = vrot.slane %v4687_v15, 2  ;;  %v453_v20 = vrot.slane %v4684_v14, 1  ;;  %v455_v21 = vrot.slane %v4687_v15, 1  ;;  %3695 = vmatpush3.msk.msra.mxu1 %vm729_vm1, %v373_v11  ;;  %v4721_v26 = vld [vmem:[%s4718_s25 + $0x18] sm:$0xff]  ;;  %v4724_v27 = vld [vmem:[%s4718_s25 + $0x20] sm:$0xff] }
  0x1c   : > { %v457_v22 = vrot.slane %v4690_v16, 1  ;;  %4187 = vmatprep.subr.bf16.mxu1 %v6273_v1  ;;  %v4727_v28 = vld [vmem:[%s4718_s25 + $0x10] sm:$0xff]  ;;  %v1231_v29 = vrot.slane %v4721_v26, 1  ;;  %v1233_v30 = vrot.slane %v4724_v27, 1  ;;  %v1327_v32 = vrot.slane %v4721_v26, 2  ;;  %v4737_v35 = vld [vmem:[%s4718_s25 + $0x28] sm:$0xff] }
  0x1d   : > { %v553_v23 = vsel %vm546_vm2, %v550_v18, %v552_v19  ;;  %v456_v24 = vsel %vm449_vm3, %v453_v20, %v455_v21  ;;  %v6270_v31 = vrot.slane %v4727_v28, 1  ;;  %v1329_v33 = vrot.slane %v4724_v27, 2  ;;  %v4755_v43 = vld [vmem:[%s4670_s28 + $0x28] sm:$0xff]  ;;  %3915 = vmatpush3.msk.msra.mxu0 %vm729_vm1, %v388_v42  ;;  %v4766_v48 = vld [vmem:[%s4718_s25 + $0x30] sm:$0xff]  ;;  %v4784_v58 = vld [vmem:[%s4718_s25 + $0x38] sm:$0xff]  ;;  %s6350_s29 = smov (!%p339_p8, %s336_s29), 9 }
  0x1e   : > { %590 = vrot.lane.b32.xlu0 %v553_v23, %s4562_s13  ;;  %493 = vrot.lane.b32.xlu1 %v456_v24, %s4563_s10  ;;  %v458_v25 = vsel %vm449_vm3, %v455_v21, %v457_v22  ;;  %v6269_v34 = vrot.slane %v4727_v28, 2  ;;  %v1234_v36 = vsel %vm449_vm3, %v1231_v29, %v1233_v30  ;;  %v1235_v39 = vrot.slane %v4737_v35, 1  ;;  %v4775_v53 = vld [vmem:[%s4670_s28 + $0x30] sm:$0xff]  ;;  %v4793_v63 = vld [vmem:[%s4670_s28 + $0x38] sm:$0xff]  ;;  %s4469_s11 = smul.u32 20, %s6350_s29  ;;  %p349_p9 = scmp.lt.s32.totalorder %s4541_s18, 7 }
  0x1f   : > { %v1232_v37 = vsel %vm449_vm3, %v6270_v31, %v1231_v29  ;;  %v1330_v38 = vsel %vm546_vm2, %v1327_v32, %v1329_v33  ;;  %v554_v41 = vrot.slane %v4690_v16, 2  ;;  %v1331_v45 = vrot.slane %v4737_v35, 2  ;;  %4211 = vmatprep.subr.bf16.mxu0 %v6273_v1  ;;  %v4802_v5 = vld [vmem:[%s4718_s25 + $0x40] sm:$0xff]  ;;  %v4820_v23 = vld [vmem:[%s4718_s25 + $0x48] sm:$0xff]  ;;  %s4471_s6 = smul.u32 120, %s6346_s19  ;;  %s3358_s14 = sshll.u32 %s6346_s19, 3 }
  0x20   : > { %v1328_v40 = vsel %vm546_vm2, %v6269_v34, %v1327_v32  ;;  %v1236_v44 = vsel %vm449_vm3, %v1233_v30, %v1235_v39  ;;  %v459_v47 = vrot.slane %v4755_v43, 1  ;;  %v1237_v50 = vrot.slane %v4766_v48, 1  ;;  %v4811_v12 = vld [vmem:[%s4670_s28 + $0x40] sm:$0xff]  ;;  %v4829_v32 = vld [vmem:[%s4670_s28 + $0x48] sm:$0xff]  ;;  %s343_s17 = sadd.s32 %s4469_s11, %s4645_s9  ;;  %s6352_s18 = smov (!%p349_p9, %s4541_s18), 7 }
  0x21   : > { %v555_v46 = vsel %vm546_vm2, %v552_v19, %v554_v41  ;;  %v1332_v49 = vsel %vm546_vm2, %v1329_v33, %v1331_v45  ;;  %v556_v52 = vrot.slane %v4755_v43, 2  ;;  %v1333_v55 = vrot.slane %v4766_v48, 2  ;;  %s3356_s9 = sshll.u32 %s343_s17, 3  ;;  %s361_s15 = sadd.s32 %s3358_s14, %s6352_s18 }
  0x22   : > { %495 = vrot.lane.b32.xlu0 %v458_v25, %s4563_s10  ;;  %1271 = vrot.lane.b32.xlu1 %v1234_v36, %s4563_s10  ;;  %v460_v51 = vsel %vm449_vm3, %v457_v22, %v459_v47  ;;  %v1238_v54 = vsel %vm449_vm3, %v1235_v39, %v1237_v50  ;;  %v461_v57 = vrot.slane %v4775_v53, 1  ;;  %v1239_v60 = vrot.slane %v4784_v58, 1  ;;  %v4838_v39 = vld [vmem:[%s4718_s25 + $0x50] sm:$0xff]  ;;  %s5062_s8 = scalar_lea.vmem %s6265_s2, %s3356_s9  ;;  %s3359_s16 = sshll.u32 %s361_s15, 3 }
  0x23   : > { %v557_v56 = vsel %vm546_vm2, %v554_v41, %v556_v52  ;;  %v1334_v59 = vsel %vm546_vm2, %v1331_v45, %v1333_v55  ;;  %v558_v62 = vrot.slane %v4775_v53, 2  ;;  %v1335_v2 = vrot.slane %v4784_v58, 2  ;;  %v4847_v45 = vld [vmem:[%s4670_s28 + $0x50] sm:$0xff]  ;;  %v5078_v34 = vld [vmem:[%s5062_s8 + $0x8] sm:$0xff]  ;;  %s363_s9 = scalar_lea.vmem %s6268_s5, %s3359_s16 }
  0x24   : > { %v462_v61 = vsel %vm449_vm3, %v459_v47, %v461_v57  ;;  %v1240_v0 = vsel %vm449_vm3, %v1237_v50, %v1239_v60  ;;  %v463_v4 = vrot.slane %v4793_v63, 1  ;;  %v1241_v8 = vrot.slane %v4802_v5, 1 }
  0x25   : > { %v559_v3 = vsel %vm546_vm2, %v556_v52, %v558_v62  ;;  %v1336_v6 = vsel %vm546_vm2, %v1333_v55, %v1335_v2  ;;  %v560_v11 = vrot.slane %v4793_v63, 2  ;;  %v1337_v19 = vrot.slane %v4802_v5, 2 }
  0x26   : > { %1269 = vrot.lane.b32.xlu0 %v1232_v37, %s4563_s10  ;;  %1367 = vrot.lane.b32.xlu1 %v1330_v38, %s4562_s13  ;;  %v464_v9 = vsel %vm449_vm3, %v461_v57, %v463_v4  ;;  %v1242_v13 = vsel %vm449_vm3, %v1239_v60, %v1241_v8  ;;  %v465_v22 = vrot.slane %v4811_v12, 1  ;;  %v1243_v25 = vrot.slane %v4820_v23, 1  ;;  %v4869_v57 = vld [vmem:[%s4670_s28 + $0x60] sm:$0xff] }
  0x27   : > { %v561_v21 = vsel %vm546_vm2, %v558_v62, %v560_v11  ;;  %v1338_v24 = vsel %vm546_vm2, %v1335_v2, %v1337_v19  ;;  %v562_v30 = vrot.slane %v4811_v12, 2  ;;  %v1339_v36 = vrot.slane %v4820_v23, 2 }
  0x28   : > { %v466_v29 = vsel %vm449_vm3, %v463_v4, %v465_v22  ;;  %v1244_v33 = vsel %vm449_vm3, %v1241_v8, %v1243_v25  ;;  %v467_v38 = vrot.slane %v4829_v32, 1  ;;  %v1245_v41 = vrot.slane %v4838_v39, 1  ;;  %v4887_v8 = vld [vmem:[%s4670_s28 + $0x70] sm:$0xff] }
  0x29   : > { %v563_v37 = vsel %vm546_vm2, %v560_v11, %v562_v30  ;;  %v1341_v47 = vrot.slane %v4838_v39, 2  ;;  %v469_v50 = vrot.slane %v4847_v45, 1  ;;  %v473_v62 = vrot.slane %v4869_v57, 1 }
  0x2a   : > { %1365 = vrot.lane.b32.xlu0 %v1328_v40, %s4562_s13  ;;  %1273 = vrot.lane.b32.xlu1 %v1236_v44, %s4563_s10  ;;  %v1340_v40 = vsel %vm546_vm2, %v1337_v19, %v1339_v36  ;;  %v468_v42 = vsel %vm449_vm3, %v465_v22, %v467_v38  ;;  %v564_v44 = vrot.slane %v4829_v32, 2  ;;  %v477_v19 = vrot.slane %v4887_v8, 1 }
  0x2b   : > { %v1342_v52 = vsel %vm546_vm2, %v1339_v36, %v1341_v47  ;;  %v470_v55 = vsel %vm449_vm3, %v467_v38, %v469_v50 }
  0x2e   : > { %592 = vrot.lane.b32.xlu0 %v555_v46, %s4562_s13  ;;  %1369 = vrot.lane.b32.xlu1 %v1332_v49, %s4562_s13  ;;  %v1246_v46 = vsel %vm449_vm3, %v1243_v25, %v1245_v41  ;;  %v565_v49 = vsel %vm546_vm2, %v562_v30, %v564_v44  ;;  %v4905_v30 = vld [vmem:[%s4670_s28 + $0x80] sm:$0xff] }
  0x2f   : > { %v481_v38 = vrot.slane %v4905_v30, 1 }
  0x32   : > { %497 = vrot.lane.b32.xlu0 %v460_v51, %s4563_s10  ;;  %1275 = vrot.lane.b32.xlu1 %v1238_v54, %s4563_s10  ;;  %v4858_v51 = vld [vmem:[%s4670_s28 + $0x58] sm:$0xff]  ;;  %v566_v54 = vrot.slane %v4847_v45, 2 }
  0x33   : > { %v568_v60 = vrot.slane %v4858_v51, 2 }
  0x35   : > { %v569_v2 = vsel %vm546_vm2, %v566_v54, %v568_v60 }
  0x36   : > { %594 = vrot.lane.b32.xlu0 %v557_v56, %s4562_s13  ;;  %1371 = vrot.lane.b32.xlu1 %v1334_v59, %s4562_s13  ;;  %v471_v56 = vrot.slane %v4858_v51, 1  ;;  %v567_v59 = vsel %vm546_vm2, %v564_v44, %v566_v54 }
  0x38   : > { %v474_v4 = vsel %vm449_vm3, %v471_v56, %v473_v62 }
  0x3a   : > { %499 = vrot.lane.b32.xlu0 %v462_v61, %s4563_s10  ;;  %1277 = vrot.lane.b32.xlu1 %v1240_v0, %s4563_s10  ;;  %v472_v61 = vsel %vm449_vm3, %v469_v50, %v471_v56  ;;  %v4878_v0 = vld [vmem:[%s4670_s28 + $0x68] sm:$0xff] }
  0x3b   : > { %v572_v11 = vrot.slane %v4878_v0, 2  ;;  %v4923_v50 = vld [vmem:[%s4670_s28 + $0x88] sm:$0xff] }
  0x3c   : > { %v6272_v56 = vrot.slane %v4923_v50, 1 }
  0x3e   : > { %596 = vrot.lane.b32.xlu0 %v559_v3, %s4562_s13  ;;  %1373 = vrot.lane.b32.xlu1 %v1336_v6, %s4562_s13  ;;  %v570_v3 = vrot.slane %v4869_v57, 2  ;;  %v475_v6 = vrot.slane %v4878_v0, 1 }
  0x40   : > { %v573_v22 = vsel %vm546_vm2, %v570_v3, %v572_v11  ;;  %v478_v25 = vsel %vm449_vm3, %v475_v6, %v477_v19 }
  0x42   : > { %501 = vrot.lane.b32.xlu0 %v464_v9, %s4563_s10  ;;  %1279 = vrot.lane.b32.xlu1 %v1242_v13, %s4563_s10  ;;  %v571_v9 = vsel %vm546_vm2, %v568_v60, %v570_v3  ;;  %v476_v13 = vsel %vm449_vm3, %v473_v62, %v475_v6  ;;  %v6271_v62 = vrot.slane %v4923_v50, 2  ;;  %v4950_v3 = vld [vmem:[%s4670_s28 + $0x8] sm:$0xff] }
  0x46   : > { %598 = vrot.lane.b32.xlu0 %v561_v21, %s4562_s13  ;;  %1375 = vrot.lane.b32.xlu1 %v1338_v24, %s4562_s13  ;;  %v4896_v21 = vld [vmem:[%s4670_s28 + $0x78] sm:$0xff]  ;;  %v574_v24 = vrot.slane %v4887_v8, 2 }
  0x47   : > { %v576_v36 = vrot.slane %v4896_v21, 2 }
  0x4a   : > { %503 = vrot.lane.b32.xlu0 %v466_v29, %s4563_s10  ;;  %1281 = vrot.lane.b32.xlu1 %v1244_v33, %s4563_s10  ;;  %v479_v29 = vrot.slane %v4896_v21, 1  ;;  %v575_v33 = vsel %vm546_vm2, %v572_v11, %v574_v24 }
  0x4e   : > { %600 = vrot.lane.b32.xlu0 %v563_v37, %s4562_s13  ;;  %1377 = vrot.lane.b32.xlu1 %v1340_v40, %s4562_s13  ;;  %v480_v37 = vsel %vm449_vm3, %v477_v19, %v479_v29  ;;  %v4914_v40 = vld [vmem:[%s4718_s25 + $0x58] sm:$0xff] }
  0x4f   : > { %v1247_v44 = vrot.slane %v4914_v40, 1  ;;  %v1343_v54 = vrot.slane %v4914_v40, 2 }
  0x51   : > { %v1344_v60 = vsel %vm546_vm2, %v1341_v47, %v1343_v54 }
  0x52   : > { %505 = vrot.lane.b32.xlu0 %v468_v42, %s4563_s10  ;;  %1283 = vrot.lane.b32.xlu1 %v1246_v46, %s4563_s10  ;;  %v577_v42 = vsel %vm546_vm2, %v574_v24, %v576_v36  ;;  %v482_v46 = vsel %vm449_vm3, %v479_v29, %v481_v38  ;;  %v548_v29 = vrot.slane %v4950_v3, 2 }
  0x56   : > { %602 = vrot.lane.b32.xlu0 %v565_v49, %s4562_s13  ;;  %1379 = vrot.lane.b32.xlu1 %v1342_v52, %s4562_s13  ;;  %v578_v49 = vrot.slane %v4905_v30, 2  ;;  %v1248_v52 = vsel %vm449_vm3, %v1245_v41, %v1247_v44  ;;  %v484_v41 = vsel %vm449_vm3, %v481_v38, %v6272_v56  ;;  %v4977_v38 = vld [vmem:[%s4718_s25 + $0x70] sm:$0xff] }
  0x57   : > { %v5269_v56 = vld [vmem:[%s5062_s8 + $0x50] sm:$0xff] }
  0x58   : > { %v581_v6 = vsel %vm546_vm2, %v578_v49, %v6271_v62 }
  0x5a   : > { %507 = vrot.lane.b32.xlu0 %v470_v55, %s4563_s10  ;;  %604 = vrot.lane.b32.xlu1 %v567_v59, %s4562_s13  ;;  %v579_v55 = vsel %vm546_vm2, %v576_v36, %v578_v49  ;;  %v4934_v59 = vld [vmem:[%s4718_s25 + $0x60] sm:$0xff]  ;;  %v4988_v49 = vld [vmem:[%s4718_s25 + $0x78] sm:$0xff] }
  0x5b   : > { %v1345_v47 = vrot.slane %v4934_v59, 2 }
  0x5d   : > { %v1346_v19 = vsel %vm546_vm2, %v1343_v54, %v1345_v47  ;;  %v1349_v54 = vrot.slane %v4977_v38, 2 }
  0x5e   : > { %509 = vrot.lane.b32.xlu0 %v472_v61, %s4563_s10  ;;  %606 = vrot.lane.b32.xlu1 %v569_v2, %s4562_s13  ;;  %v1249_v61 = vrot.slane %v4934_v59, 1  ;;  %v4947_v2 = vld [vmem:[%s4670_s28] sm:$0xff] }
  0x5f   : > { %v450_v11 = vrot.slane %v4947_v2, 1 }
  0x62   : > { %511 = vrot.lane.b32.xlu0 %v474_v4, %s4563_s10  ;;  %608 = vrot.lane.b32.xlu1 %v571_v9, %s4562_s13  ;;  %v1250_v4 = vsel %vm449_vm3, %v1247_v44, %v1249_v61  ;;  %v4960_v9 = vld [vmem:[%s4718_s25 + $0x68] sm:$0xff]  ;;  %v1253_v44 = vrot.slane %v4977_v38, 1 }
  0x63   : > { %v1347_v36 = vrot.slane %v4960_v9, 2 }
  0x66   : > { %513 = vrot.lane.b32.xlu0 %v476_v13, %s4563_s10  ;;  %610 = vrot.lane.b32.xlu1 %v573_v22, %s4562_s13  ;;  %v451_v13 = vrot.slane %v4950_v3, 1  ;;  %v1251_v22 = vrot.slane %v4960_v9, 1 }
  0x68   : > { %v452_v24 = vsel %vm449_vm3, %v450_v11, %v451_v13 }
  0x6a   : > { %515 = vrot.lane.b32.xlu0 %v478_v25, %s4563_s10  ;;  %612 = vrot.lane.b32.xlu1 %v575_v33, %s4562_s13  ;;  %v547_v25 = vrot.slane %v4947_v2, 2  ;;  %v1252_v33 = vsel %vm449_vm3, %v1249_v61, %v1251_v22  ;;  %v364_v61 = vld [vmem:[%s6266_s3] sm:$0xff] }
  0x6e   : > { %517 = vrot.lane.b32.xlu0 %v480_v37, %s4563_s10  ;;  %614 = vrot.lane.b32.xlu1 %v577_v42, %s4562_s13  ;;  %v549_v37 = vsel %vm546_vm2, %v547_v25, %v548_v29  ;;  %v1348_v42 = vsel %vm546_vm2, %v1345_v47, %v1347_v36  ;;  %v366_v25 = vld [vmem:[%s6266_s3 + $0x10] sm:$0xff] }
  0x72   : > { %519 = vrot.lane.b32.xlu0 %v482_v46, %s4563_s10  ;;  %1285 = vrot.lane.b32.xlu1 %v1248_v52, %s4563_s10  ;;  %v454_v46 = vsel %vm449_vm3, %v451_v13, %v453_v20  ;;  %v1254_v52 = vsel %vm449_vm3, %v1251_v22, %v1253_v44  ;;  %v5001_v20 = vld [vmem:[%s4718_s25 + $0x80] sm:$0xff] }
  0x76   : > { %616 = vrot.lane.b32.xlu0 %v579_v55, %s4562_s13  ;;  %1381 = vrot.lane.b32.xlu1 %v1344_v60, %s4562_s13  ;;  %v551_v55 = vsel %vm546_vm2, %v548_v29, %v550_v18  ;;  %v1255_v60 = vrot.slane %v4988_v49, 1  ;;  %v1350_v18 = vsel %vm546_vm2, %v1347_v36, %v1349_v54  ;;  %v367_v29 = vld [vmem:[%s6266_s3 + $0x18] sm:$0xff] }
  0x78   : > { %v1256_v47 = vsel %vm449_vm3, %v1253_v44, %v1255_v60 }
  0x7a   : > { %521 = vrot.lane.b32.xlu0 %v484_v41, %s4563_s10  ;;  %1287 = vrot.lane.b32.xlu1 %v1250_v4, %s4563_s10  ;;  %v365_v41 = vld [vmem:[%s6266_s3 + $0x8] sm:$0xff]  ;;  %v1351_v4 = vrot.slane %v4988_v49, 2 }
  0x7b   : > { %v4188_v22 = vpack.c.bf16 %v365_v41, %v364_v61 }
  0x7e   : > { %618 = vrot.lane.b32.xlu0 %v581_v6, %s4562_s13  ;;  %1383 = vrot.lane.b32.xlu1 %v1346_v19, %s4562_s13  ;;  %v1257_v6 = vrot.slane %v5001_v20, 1  ;;  %v5017_v19 = vld [vmem:[%s4718_s25 + $0x88] sm:$0xff] }
  0x82   : > { %489 = vrot.lane.b32.xlu0 %v452_v24, %s4563_s10  ;;  %1289 = vrot.lane.b32.xlu1 %v1252_v33, %s4563_s10  ;;  %v1352_v33 = vsel %vm546_vm2, %v1349_v54, %v1351_v4 }
  0x86   : > { %586 = vrot.lane.b32.xlu0 %v549_v37, %s4562_s13  ;;  %1385 = vrot.lane.b32.xlu1 %v1348_v42, %s4562_s13  ;;  %v1353_v37 = vrot.slane %v5001_v20, 2  ;;  %v1259_v42 = vrot.slane %v5017_v19, 1 }
  0x88   : > { %v1354_v54 = vsel %vm546_vm2, %v1351_v4, %v1353_v37  ;;  %v1260_v61 = vsel %vm449_vm3, %v1257_v6, %v1259_v42  ;;  %v1205_v4 = vld [vmem:[%s4718_s25 + $0x98] sm:$0xff] }
  0x8a   : > { %491 = vrot.lane.b32.xlu0 %v454_v46, %s4563_s10  ;;  %1291 = vrot.lane.b32.xlu1 %v1254_v52, %s4563_s10  ;;  %v5040_v46 = vld [vmem:[%s4718_s25 + $0x90] sm:$0xff]  ;;  %v4191_v52 = vpack.c.bf16 %v367_v29, %v366_v25 }
  0x8b   : > { %v1261_v41 = vrot.slane %v5040_v46, 1 }
  0x8d   : > { %v1262_v25 = vsel %vm449_vm3, %v1259_v42, %v1261_v41  ;;  %v391_v42 = vld [vmem:[%s6266_s3 + $0xd8] sm:$0xff] }
  0x8e   : > { %588 = vrot.lane.b32.xlu0 %v551_v55, %s4562_s13  ;;  %1387 = vrot.lane.b32.xlu1 %v1350_v18, %s4562_s13  ;;  %v1355_v55 = vrot.slane %v5017_v19, 2 }
  0x90   : > { %v591_v11 = vpop.permute.xlu0 %590  ;;  %v494_v13 = vpop.permute.xlu1 %493 }
  0x91   : > { %v646_v24 = vsel %vm643_vm4, %v4684_v14, %v494_v13  ;;  %v1258_v14 = vsel %vm449_vm3, %v1255_v60, %v1257_v6  ;;  %v368_v6 = vld [vmem:[%s6266_s3 + $0x20] sm:$0xf]  ;;  %v1356_v13 = vsel %vm546_vm2, %v1353_v37, %v1355_v55 }
  0x92   : > { %1293 = vrot.lane.b32.xlu0 %v1256_v47, %s4563_s10  ;;  %v5031_v36 = vsel %vm663_vm5, %v646_v24, %v591_v11  ;;  %1389 = vrot.lane.b32.xlu1 %v1352_v33, %s4562_s13  ;;  %v389_v47 = vld [vmem:[%s6266_s3 + $0xc8] sm:$0xff]  ;;  %v390_v11 = vld [vmem:[%s6266_s3 + $0xd0] sm:$0xff] }
  0x93   : > { %3697 = vmatmul.mubr.msk.f32.vlgmr.msra.gmra.mrb[0].mxu1 %vm683_vm6, %v5031_v36  ;;  %v4212_v29 = vpack.c.bf16 %v390_v11, %v389_v47  ;;  %v1359_v47 = vrot.slane %v1205_v4, 2 }
  0x94   : > { %v496_v44 = vpop.permute.xlu0 %495  ;;  %3699 = vmatprep.mubr.msk.f32.mxu1 %vm4560_vm0, %v6275_v7  ;;  %4189 = vmatpush3.bf16.msra.mxu1 %v4188_v22  ;;  %v1272_v60 = vpop.permute.xlu1 %1271  ;;  %v1357_v22 = vrot.slane %v5040_v46, 2 }
  0x95   : > { %4190 = vmatprep.subr.bf16.mxu1 %v6273_v1 }
  0x96   : > { %1295 = vrot.lane.b32.xlu0 %v1258_v14, %s4563_s10  ;;  %1391 = vrot.lane.b32.xlu1 %v1354_v54, %s4562_s13  ;;  %v5075_v54 = vld [vmem:[%s5062_s8] sm:$0xff] }
  0x98   : > { %v1270_v18 = vpop.permute.xlu0 %1269  ;;  %4192 = vmatpush3.bf16.msra.mxu1 %v4191_v52  ;;  %v1368_v24 = vpop.permute.xlu1 %1367  ;;  %v1263_v52 = vrot.slane %v1205_v4, 1 }
  0x99   : > { %3749 = vmatprep.subr.mxu1 %v6275_v7  ;;  %v1420_v33 = vsel %vm643_vm4, %v4727_v28, %v1270_v18  ;;  %v1358_v18 = vsel %vm546_vm2, %v1355_v55, %v1357_v22 }
  0x9a   : > { %1297 = vrot.lane.b32.xlu0 %v1260_v61, %s4563_s10  ;;  %1393 = vrot.lane.b32.xlu1 %v1356_v13, %s4562_s13  ;;  %v392_v61 = vld [vmem:[%s6266_s3 + $0xe0] sm:$0xff]  ;;  %v2028_v13 = vrot.slane %v5078_v34, 1  ;;  %v1264_v55 = vsel %vm449_vm3, %v1261_v41, %v1263_v52 }
  0x9b   : > { %v4215_v4 = vpack.c.bf16 %v392_v61, %v391_v42  ;;  %v5137_v61 = vld [vmem:[%s5062_s8 + $0x18] sm:$0xff] }
  0x9c   : > { %v1366_v14 = vpop.permute.xlu0 %1365  ;;  %3750 = vmatpush3.msk.msra.mxu1 %vm729_vm1, %v368_v6  ;;  %v1274_v11 = vpop.permute.xlu1 %1273  ;;  %v2027_v6 = vrot.slane %v5075_v54, 1 }
  0x9d   : > { %v5083_v37 = vsel %vm663_vm5, %v1420_v33, %v1366_v14  ;;  %4193 = vmatprep.subr.bf16.mxu1 %v6273_v1  ;;  %v647_v33 = vsel %vm643_vm4, %v4687_v15, %v496_v44  ;;  %v1421_v14 = vsel %vm643_vm4, %v4721_v26, %v1272_v60  ;;  %v1360_v15 = vsel %vm546_vm2, %v1357_v22, %v1359_v47 }
  0x9e   : > { %6299 = vst [vmem:[#allocation4_spill] sm:$0xff] %v5083_v37  ;;  %3917 = vmatmul.mubr.msk.f32.vlgmr.msra.gmra.mrb[0].mxu0 %vm683_vm6, %v5083_v37  ;;  %1299 = vrot.lane.b32.xlu0 %v1262_v25, %s4563_s10  ;;  %v5107_v31 = vsel %vm663_vm5, %v1421_v14, %v1368_v24  ;;  %v2123_v26 = vrot.slane %v5075_v54, 2  ;;  %v2124_v44 = vrot.slane %v5078_v34, 2  ;;  %v1422_v41 = vsel %vm643_vm4, %v4724_v27, %v1274_v11  ;;  %v393_v27 = vld [vmem:[%s6266_s3 + $0xe8] sm:$0xf] }
  0x9f   : > { %3919 = vmatprep.mubr.msk.f32.mxu0 %vm4560_vm0, %v6275_v7  ;;  %4213 = vmatpush3.bf16.msra.mxu0 %v4212_v29  ;;  %6300 = vst [vmem:[#allocation5_spill] sm:$0xff] %v5107_v31  ;;  %v5114_v29 = vld [vmem:[%s5062_s8 + $0x10] sm:$0xff]  ;;  %v2029_v52 = vsel %vm449_vm3, %v2027_v6, %v2028_v13 }
  0xa0   : > { %v593_v25 = vpop.permute.xlu0 %592  ;;  %4214 = vmatprep.subr.bf16.mxu0 %v6273_v1  ;;  %1395 = vrot.lane.b32.xlu1 %v1358_v18, %s4562_s13  ;;  %v1370_v60 = vpop.permute.xlu1 %1369  ;;  %v2030_v22 = vrot.slane %v5114_v29, 1  ;;  %v2125_v18 = vsel %vm546_vm2, %v2123_v26, %v2124_v44  ;;  %v2126_v47 = vrot.slane %v5114_v29, 2 }
  0xa1   : > { %v5111_v62 = vsel %vm663_vm5, %v647_v33, %v593_v25  ;;  %v5133_v42 = vsel %vm663_vm5, %v1422_v41, %v1370_v60  ;;  %v2032_v25 = vrot.slane %v5137_v61, 1 }
  0xa2   : > { %3700 = vmatmul.mubr.msk.f32.gmra.mrb[2].mxu1 %vm683_vm6, %v5111_v62  ;;  %3920 = vmatmul.mubr.msk.f32.gmra.mrb[2].mxu0 %vm683_vm6, %v5107_v31  ;;  %6301 = vst [vmem:[#allocation6_spill] sm:$0xff] %v5133_v42  ;;  %v2031_v14 = vsel %vm449_vm3, %v2028_v13, %v2030_v22  ;;  %v2128_v13 = vrot.slane %v5137_v61, 2 }
  0xa3   : > { %1301 = vrot.lane.b32.xlu0 %v1264_v55, %s4563_s10  ;;  %3922 = vmatprep.mubr.msk.f32.mxu0 %vm4560_vm0, %v6275_v7 }
  0xa4   : > { %v498_v24 = vpop.permute.xlu0 %497  ;;  %3702 = vmatprep.mubr.msk.f32.mxu1 %vm4560_vm0, %v6275_v7  ;;  %4216 = vmatpush3.bf16.msra.mxu0 %v4215_v4  ;;  %v1276_v11 = vpop.permute.xlu1 %1275  ;;  %v5160_v4 = vld [vmem:[%s5062_s8 + $0x20] sm:$0xff] }
  0xa5   : > { %1397 = vrot.lane.b32.xlu1 %v1360_v15, %s4562_s13  ;;  %3969 = vmatprep.subr.mxu0 %v6275_v7  ;;  %v648_v6 = vsel %vm643_vm4, %v4690_v16, %v498_v24  ;;  %v2127_v16 = vsel %vm546_vm2, %v2124_v44, %v2126_v47  ;;  %v1423_v15 = vsel %vm643_vm4, %v4737_v35, %v1276_v11  ;;  %v2034_v44 = vrot.slane %v5160_v4, 1  ;;  %v5181_v35 = vld [vmem:[%s5062_s8 + $0x28] sm:$0xff] }
  0xa6   : > { %3923 = vmatmul.mubr.msk.f32.gmra.mrb[4].mxu0 %vm683_vm6, %v5133_v42  ;;  %v2033_v24 = vsel %vm449_vm3, %v2030_v22, %v2032_v25 }
  0xa7   : > { %2066 = vrot.lane.b32.xlu0 %v2029_v52, %s4563_s10  ;;  %3925 = vmatprep.mubr.msk.f32.mxu0 %vm4560_vm0, %v6275_v7  ;;  %v2129_v52 = vsel %vm546_vm2, %v2126_v47, %v2128_v13 }
  0xa8   : > { %v595_v33 = vpop.permute.xlu0 %594  ;;  %3970 = vmatpush3.msk.msra.mxu0 %vm729_vm1, %v393_v27  ;;  %v1372_v26 = vpop.permute.xlu1 %1371  ;;  %v2130_v27 = vrot.slane %v5160_v4, 2 }
  0xa9   : > { %2162 = vrot.lane.b32.xlu1 %v2125_v18, %s4562_s13  ;;  %v5157_v55 = vsel %vm663_vm5, %v648_v6, %v595_v33  ;;  %4217 = vmatprep.subr.bf16.mxu0 %v6273_v1  ;;  %v5173_v60 = vsel %vm663_vm5, %v1423_v15, %v1372_v26  ;;  %v2035_v6 = vsel %vm449_vm3, %v2032_v25, %v2034_v44  ;;  %v2036_v33 = vrot.slane %v5181_v35, 1 }
  0xaa   : > { %3703 = vmatmul.mubr.msk.f32.gmra.mrb[4].mxu1 %vm683_vm6, %v5157_v55  ;;  %6302 = vst [vmem:[#allocation7_spill] sm:$0xff] %v5173_v60  ;;  %3926 = vmatmul.mubr.msk.f32.gmra.mrb[6].mxu0 %vm683_vm6, %v5173_v60 }
  0xab   : > { %2068 = vrot.lane.b32.xlu0 %v2031_v14, %s4563_s10  ;;  %3705 = vmatprep.mubr.msk.f32.mxu1 %vm4560_vm0, %v6275_v7  ;;  %v5197_v14 = vld [vmem:[%s5062_s8 + $0x30] sm:$0xff] }
  0xac   : > { %v500_v41 = vpop.permute.xlu0 %499  ;;  %3928 = vmatprep.mubr.msk.f32.mxu0 %vm4560_vm0, %v6275_v7  ;;  %v1278_v18 = vpop.permute.xlu1 %1277 }
  0xad   : > { %2164 = vrot.lane.b32.xlu1 %v2127_v16, %s4562_s13  ;;  %v649_v22 = vsel %vm643_vm4, %v4755_v43, %v500_v41  ;;  %v2131_v16 = vsel %vm546_vm2, %v2128_v13, %v2130_v27  ;;  %v2132_v43 = vrot.slane %v5181_v35, 2  ;;  %v1424_v25 = vsel %vm643_vm4, %v4766_v48, %v1278_v18  ;;  %v5217_v48 = vld [vmem:[%s5062_s8 + $0x38] sm:$0xff] }
  0xae   : > { %v2038_v13 = vrot.slane %v5197_v14, 1  ;;  %v2134_v18 = vrot.slane %v5197_v14, 2 }
  0xaf   : > { %2070 = vrot.lane.b32.xlu0 %v2033_v24, %s4563_s10  ;;  %v2037_v24 = vsel %vm449_vm3, %v2034_v44, %v2036_v33 }
  0xb0   : > { %v597_v11 = vpop.permute.xlu0 %596  ;;  %v1374_v15 = vpop.permute.xlu1 %1373 }
  0xb1   : > { %2166 = vrot.lane.b32.xlu1 %v2129_v52, %s4562_s13  ;;  %v5194_v47 = vsel %vm663_vm5, %v649_v22, %v597_v11  ;;  %v5209_v26 = vsel %vm663_vm5, %v1424_v25, %v1374_v15  ;;  %v2133_v52 = vsel %vm546_vm2, %v2130_v27, %v2132_v43  ;;  %v5233_v25 = vld [vmem:[%s5062_s8 + $0x40] sm:$0xff]  ;;  %v2135_v15 = vsel %vm546_vm2, %v2132_v43, %v2134_v18 }
  0xb2   : > { %3706 = vmatmul.mubr.msk.f32.gmra.mrb[6].mxu1 %vm683_vm6, %v5194_v47  ;;  %6303 = vst [vmem:[#allocation8_spill] sm:$0xff] %v5209_v26  ;;  %3929 = vmatmul.mubr.msk.f32.gmra.mrb[8].mxu0 %vm683_vm6, %v5209_v26  ;;  %v2042_v43 = vrot.slane %v5233_v25, 1 }
  0xb3   : > { %2072 = vrot.lane.b32.xlu0 %v2035_v6, %s4563_s10  ;;  %3708 = vmatprep.mubr.msk.f32.mxu1 %vm4560_vm0, %v6275_v7  ;;  %v2039_v6 = vsel %vm449_vm3, %v2036_v33, %v2038_v13 }
  0xb4   : > { %v502_v41 = vpop.permute.xlu0 %501  ;;  %3931 = vmatprep.mubr.msk.f32.mxu0 %vm4560_vm0, %v6275_v7  ;;  %v1280_v22 = vpop.permute.xlu1 %1279 }
  0xb5   : > { %2168 = vrot.lane.b32.xlu1 %v2131_v16, %s4562_s13  ;;  %v650_v44 = vsel %vm643_vm4, %v4775_v53, %v502_v41  ;;  %v2040_v16 = vrot.slane %v5217_v48, 1  ;;  %v2136_v53 = vrot.slane %v5217_v48, 2  ;;  %v1425_v33 = vsel %vm643_vm4, %v4784_v58, %v1280_v22  ;;  %v5253_v58 = vld [vmem:[%s5062_s8 + $0x48] sm:$0xff] }
  0xb7   : > { %2074 = vrot.lane.b32.xlu0 %v2037_v24, %s4563_s10  ;;  %v2137_v22 = vsel %vm546_vm2, %v2134_v18, %v2136_v53 }
  0xb8   : > { %v599_v11 = vpop.permute.xlu0 %598  ;;  %v1376_v41 = vpop.permute.xlu1 %1375 }
  0xb9   : > { %2170 = vrot.lane.b32.xlu1 %v2133_v52, %s4562_s13  ;;  %v5230_v27 = vsel %vm663_vm5, %v650_v44, %v599_v11  ;;  %v5245_v24 = vsel %vm663_vm5, %v1425_v33, %v1376_v41  ;;  %v2041_v44 = vsel %vm449_vm3, %v2038_v13, %v2040_v16  ;;  %v2138_v11 = vrot.slane %v5233_v25, 2 }
  0xba   : > { %3709 = vmatmul.mubr.msk.f32.gmra.mrb[8].mxu1 %vm683_vm6, %v5230_v27  ;;  %6304 = vst [vmem:[#allocation9_spill] sm:$0xff] %v5245_v24  ;;  %3932 = vmatmul.mubr.msk.f32.gmra.mrb[10].mxu0 %vm683_vm6, %v5245_v24  ;;  %v2043_v41 = vsel %vm449_vm3, %v2040_v16, %v2042_v43 }
  0xbb   : > { %2076 = vrot.lane.b32.xlu0 %v2039_v6, %s4563_s10  ;;  %3711 = vmatprep.mubr.msk.f32.mxu1 %vm4560_vm0, %v6275_v7 }
  0xbc   : > { %v504_v52 = vpop.permute.xlu0 %503  ;;  %3934 = vmatprep.mubr.msk.f32.mxu0 %vm4560_vm0, %v6275_v7  ;;  %v1282_v6 = vpop.permute.xlu1 %1281 }
  0xbd   : > { %2172 = vrot.lane.b32.xlu1 %v2135_v15, %s4562_s13  ;;  %v651_v13 = vsel %vm643_vm4, %v4793_v63, %v504_v52  ;;  %v2044_v15 = vrot.slane %v5253_v58, 1  ;;  %v2140_v63 = vrot.slane %v5253_v58, 2  ;;  %v1426_v16 = vsel %vm643_vm4, %v4802_v5, %v1282_v6  ;;  %v5289_v5 = vld [vmem:[%s5062_s8 + $0x58] sm:$0xff] }
  0xbf   : > { %2078 = vrot.lane.b32.xlu0 %v2041_v44, %s4563_s10  ;;  %v2139_v44 = vsel %vm546_vm2, %v2136_v53, %v2138_v11  ;;  %v2046_v53 = vrot.slane %v5269_v56, 1  ;;  %v2141_v6 = vsel %vm546_vm2, %v2138_v11, %v2140_v63 }
  0xc0   : > { %v601_v33 = vpop.permute.xlu0 %600  ;;  %v1378_v52 = vpop.permute.xlu1 %1377 }
  0xc1   : > { %2174 = vrot.lane.b32.xlu1 %v2137_v22, %s4562_s13  ;;  %v5266_v18 = vsel %vm663_vm5, %v651_v13, %v601_v33  ;;  %v5281_v22 = vsel %vm663_vm5, %v1426_v16, %v1378_v52  ;;  %v2045_v33 = vsel %vm449_vm3, %v2042_v43, %v2044_v15  ;;  %v2047_v1 = vsel %vm449_vm3, %v2044_v15, %v2046_v53 }
  0xc2   : > { %3712 = vmatmul.mubr.msk.f32.gmra.mrb[10].mxu1 %vm683_vm6, %v5266_v18  ;;  %6305 = vst [vmem:[#allocation10_spill] sm:$0xff] %v5281_v22  ;;  %3935 = vmatmul.mubr.msk.f32.gmra.mrb[12].mxu0 %vm683_vm6, %v5281_v22 }
  0xc3   : > { %2080 = vrot.lane.b32.xlu0 %v2043_v41, %s4563_s10  ;;  %3714 = vmatprep.mubr.msk.f32.mxu1 %vm4560_vm0, %v6275_v7  ;;  %v2142_v41 = vrot.slane %v5269_v56, 2 }
  0xc4   : > { %v506_v13 = vpop.permute.xlu0 %505  ;;  %3937 = vmatprep.mubr.msk.f32.mxu0 %vm4560_vm0, %v6275_v7  ;;  %v1284_v16 = vpop.permute.xlu1 %1283  ;;  %v5305_v7 = vld [vmem:[%s5062_s8 + $0x60] sm:$0xff] }
  0xc5   : > { %2176 = vrot.lane.b32.xlu1 %v2139_v44, %s4562_s13  ;;  %v652_v43 = vsel %vm643_vm4, %v4811_v12, %v506_v13  ;;  %v2048_v44 = vrot.slane %v5289_v5, 1  ;;  %6306 = vst [vmem:[#allocation11_spill] sm:$0xff] %v5305_v7  ;;  %v2144_v12 = vrot.slane %v5289_v5, 2  ;;  %v1427_v15 = vsel %vm643_vm4, %v4820_v23, %v1284_v16 }
  0xc6   : > { %v2050_v37 = vrot.slane %v5305_v7, 1 }
  0xc7   : > { %2082 = vrot.lane.b32.xlu0 %v2045_v33, %s4563_s10  ;;  %v2143_v33 = vsel %vm546_vm2, %v2140_v63, %v2142_v41  ;;  %v2049_v31 = vsel %vm449_vm3, %v2046_v53, %v2048_v44  ;;  %v394_v63 = vld [vmem:[%s6266_s3 + $0xf0] sm:$0xff]  ;;  %v395_v53 = vld [vmem:[%s6266_s3 + $0xf8] sm:$0xff]  ;;  %v2145_v16 = vsel %vm546_vm2, %v2142_v41, %v2144_v12 }
  0xc8   : > { %v603_v52 = vpop.permute.xlu0 %602  ;;  %v1380_v13 = vpop.permute.xlu1 %1379  ;;  %v4218_v10 = vpack.c.bf16 %v395_v53, %v394_v63 }
  0xc9   : > { %2178 = vrot.lane.b32.xlu1 %v2141_v6, %s4562_s13  ;;  %v5302_v11 = vsel %vm663_vm5, %v652_v43, %v603_v52  ;;  %v6307_v6 = vmov 0.0   ;;  %v5317_v43 = vsel %vm663_vm5, %v1427_v15, %v1380_v13 }
  0xca   : > { %3715 = vmatmul.mubr.msk.f32.gmra.mrb[12].mxu1 %vm683_vm6, %v5302_v11  ;;  %6308 = vst [vmem:[#allocation12_spill] sm:$0xff] %v5317_v43  ;;  %3938 = vmatmul.mubr.msk.f32.gmra.mrb[14].mxu0 %vm683_vm6, %v5317_v43 }
  0xcb   : > { %2084 = vrot.lane.b32.xlu0 %v2047_v1, %s4563_s10  ;;  %3717 = vmatprep.mubr.msk.f32.mxu1 %vm4560_vm0, %v6307_v6  ;;  %v5327_v1 = vld [vmem:[%s5062_s8 + $0x68] sm:$0xff] }
  0xcc   : > { %v508_v52 = vpop.permute.xlu0 %507  ;;  %3971 = vmatprep.mubr.msk.f32.mxu0 %vm4560_vm0, %v6307_v6  ;;  %v605_v15 = vpop.permute.xlu1 %604  ;;  %v2052_v17 = vrot.slane %v5327_v1, 1 }
  0xcd   : > { %2180 = vrot.lane.b32.xlu1 %v2143_v33, %s4562_s13  ;;  %v653_v23 = vsel %vm643_vm4, %v4829_v32, %v508_v52  ;;  %v2146_v33 = vrot.slane %v5305_v7, 2  ;;  %v2051_v52 = vsel %vm449_vm3, %v2048_v44, %v2050_v37  ;;  %v5351_v7 = vld [vmem:[%s5062_s8 + $0x70] sm:$0xff]  ;;  %v2148_v44 = vrot.slane %v5327_v1, 2 }
  0xce   : > { %v5341_v32 = vsel %vm663_vm5, %v653_v23, %v605_v15  ;;  %3972 = vmatmul.mubr.msk.f32.vlgmr.msra.gmra.mrb[0].mxu0 %vm683_vm6, %v5133_v42  ;;  %v2053_v53 = vsel %vm449_vm3, %v2050_v37, %v2052_v17  ;;  %v5373_v15 = vld [vmem:[%s5062_s8 + $0x78] sm:$0xff]  ;;  %v397_v37 = vld [vmem:[%s6266_s3 + $0x108] sm:$0xff] }
  0xcf   : > { %2086 = vrot.lane.b32.xlu0 %v2049_v31, %s4563_s10  ;;  %3718 = vmatmul.mubr.msk.f32.gmra.mrb[14].mxu1 %vm683_vm6, %v5341_v32  ;;  %v2147_v31 = vsel %vm546_vm2, %v2144_v12, %v2146_v33 }
  0xd0   : > { %v510_v13 = vpop.permute.xlu0 %509  ;;  %3974 = vmatprep.mubr.msk.f32.mxu0 %vm4560_vm0, %v6307_v6  ;;  %v607_v23 = vpop.permute.xlu1 %606  ;;  %3720 = vmatprep.mubr.msk.f32.mxu1 %vm4560_vm0, %v6307_v6 }
  0xd1   : > { %2182 = vrot.lane.b32.xlu1 %v2145_v16, %s4562_s13  ;;  %v654_v41 = vsel %vm643_vm4, %v4847_v45, %v510_v13  ;;  %v2054_v16 = vrot.slane %v5351_v7, 1  ;;  %4219 = vmatpush3.bf16.msra.mxu0 %v4218_v10  ;;  %v396_v13 = vld [vmem:[%s6266_s3 + $0x100] sm:$0xff]  ;;  %v2149_v10 = vsel %vm546_vm2, %v2146_v33, %v2148_v44 }
  0xd2   : > { %v5363_v45 = vsel %vm663_vm5, %v654_v41, %v607_v23  ;;  %3975 = vmatmul.mubr.msk.f32.gmra.mrb[2].mxu0 %vm683_vm6, %v5173_v60  ;;  %v6309_v60 = vmov 0.0|0.0   ;;  %v4221_v42 = vpack.c.bf16 %v397_v37, %v396_v13 }
  0xd3   : > { %2088 = vrot.lane.b32.xlu0 %v2051_v52, %s4563_s10  ;;  %3721 = vmatmul.mubr.msk.f32.gmra.mrb[16].mxu1 %vm683_vm6, %v5363_v45  ;;  %v2055_v23 = vsel %vm449_vm3, %v2052_v17, %v2054_v16 }
  0xd4   : > { %v512_v63 = vpop.permute.xlu0 %511  ;;  %3977 = vmatprep.mubr.msk.f32.mxu0 %vm4560_vm0, %v6307_v6  ;;  %v609_v52 = vpop.permute.xlu1 %608  ;;  %3723 = vmatprep.mubr.msk.f32.mxu1 %vm4560_vm0, %v6307_v6 }
  0xd5   : > { %2184 = vrot.lane.b32.xlu1 %v2147_v31, %s4562_s13  ;;  %v655_v12 = vsel %vm643_vm4, %v4858_v51, %v512_v63  ;;  %v2150_v51 = vrot.slane %v5351_v7, 2  ;;  %v6285_v63 = vrot.slane %v5373_v15, 1  ;;  %4220 = vmatprep.subr.bf16.mxu0 %v6309_v60 }
  0xd6   : > { %v5391_v41 = vsel %vm663_vm5, %v655_v12, %v609_v52  ;;  %3978 = vmatmul.mubr.msk.f32.gmra.mrb[4].mxu0 %vm683_vm6, %v5209_v26  ;;  %v6284_v12 = vrot.slane %v5373_v15, 2 }
  0xd7   : > { %2090 = vrot.lane.b32.xlu0 %v2053_v53, %s4563_s10  ;;  %v5402_v53 = vld [vmem:[%s4670_s28 + $0x90] sm:$0xff]  ;;  %3724 = vmatmul.mubr.msk.f32.gmra.mrb[18].mxu1 %vm683_vm6, %v5391_v41  ;;  %v2151_v17 = vsel %vm546_vm2, %v2148_v44, %v2150_v51 }
  0xd8   : > { %v514_v31 = vpop.permute.xlu0 %513  ;;  %3980 = vmatprep.mubr.msk.f32.mxu0 %vm4560_vm0, %v6307_v6  ;;  %v611_v13 = vpop.permute.xlu1 %610  ;;  %3726 = vmatprep.mubr.msk.f32.mxu1 %vm4560_vm0, %v6307_v6  ;;  %v485_v52 = vrot.slane %v5402_v53, 1 }
  0xd9   : > { %2186 = vrot.lane.b32.xlu1 %v2149_v10, %s4562_s13  ;;  %v656_v33 = vsel %vm643_vm4, %v4869_v57, %v514_v31  ;;  %v2057_v10 = vsel %vm449_vm3, %v2054_v16, %v6285_v63  ;;  %4222 = vmatpush3.bf16.msra.mxu0 %v4221_v42  ;;  %v428_v31 = vld [vmem:[%s4670_s28 + $0x98] sm:$0xff]  ;;  %v2153_v42 = vsel %vm546_vm2, %v2150_v51, %v6284_v12  ;;  %v582_v16 = vrot.slane %v5402_v53, 2 }
  0xda   : > { %v5414_v57 = vsel %vm663_vm5, %v656_v33, %v611_v13  ;;  %3981 = vmatmul.mubr.msk.f32.gmra.mrb[6].mxu0 %vm683_vm6, %v5245_v24  ;;  %4024 = vmatprep.subr.mxu0 %v6307_v6  ;;  %v584_v12 = vrot.slane %v428_v31, 2 }
  0xdb   : > { %2092 = vrot.lane.b32.xlu0 %v2055_v23, %s4563_s10  ;;  %3727 = vmatmul.mubr.msk.f32.gmra.mrb[20].mxu1 %vm683_vm6, %v5414_v57 }
  0xdc   : > { %v516_v37 = vpop.permute.xlu0 %515  ;;  %3983 = vmatprep.mubr.msk.f32.mxu0 %vm4560_vm0, %v6307_v6  ;;  %v613_v23 = vpop.permute.xlu1 %612  ;;  %3729 = vmatprep.mubr.msk.f32.mxu1 %vm4560_vm0, %v6307_v6 }
  0xdd   : > { %2188 = vrot.lane.b32.xlu1 %v2151_v17, %s4562_s13  ;;  %v657_v44 = vsel %vm643_vm4, %v4878_v0, %v516_v37  ;;  %v6310_v17 = vrot.slane %v4923_v50, 1  ;;  %v487_v37 = vrot.slane %v428_v31, 1 }
  0xde   : > { %v5438_v0 = vsel %vm663_vm5, %v657_v44, %v613_v23  ;;  %3984 = vmatmul.mubr.msk.f32.gmra.mrb[8].mxu0 %vm683_vm6, %v5281_v22  ;;  %v5453_v44 = vld [vmem:[%s4718_s25 + $0x8] sm:$0xff]  ;;  %v398_v23 = vld [vmem:[%s6266_s3 + $0x110] sm:$0xf] }
  0xdf   : > { %2094 = vrot.lane.b32.xlu0 %v2057_v10, %s4563_s10  ;;  %v486_v13 = vsel %vm449_vm3, %v6310_v17, %v485_v52  ;;  %v5450_v10 = vld [vmem:[%s4718_s25] sm:$0xff]  ;;  %3730 = vmatmul.mubr.msk.f32.gmra.mrb[22].mxu1 %vm683_vm6, %v5438_v0  ;;  %v6311_v17 = vrot.slane %v4923_v50, 2  ;;  %v488_v22 = vsel %vm449_vm3, %v485_v52, %v487_v37  ;;  %v1227_v26 = vrot.slane %v5453_v44, 1 }
  0xe0   : > { %v518_v33 = vpop.permute.xlu0 %517  ;;  %3986 = vmatprep.mubr.msk.f32.mxu0 %vm4560_vm0, %v6307_v6  ;;  %3732 = vmatprep.mubr.msk.f32.mxu1 %vm4560_vm0, %v6307_v6  ;;  %v1226_v24 = vrot.slane %v5450_v10, 1  ;;  %v585_v50 = vsel %vm546_vm2, %v582_v16, %v584_v12  ;;  %v1322_v52 = vrot.slane %v5450_v10, 2  ;;  %v1323_v31 = vrot.slane %v5453_v44, 2 }
  0xe1   : > { %2190 = vrot.lane.b32.xlu1 %v2153_v42, %s4562_s13  ;;  %v658_v51 = vsel %vm643_vm4, %v4887_v8, %v518_v33  ;;  %v583_v42 = vsel %vm546_vm2, %v6311_v17, %v582_v16  ;;  %v615_v8 = vpop.permute.xlu1 %614  ;;  %4025 = vmatpush3.msk.msra.mxu0 %vm729_vm1, %v398_v23  ;;  %v5497_v16 = vld [vmem:[%s5062_s8 + $0x80] sm:$0xff] }
  0xe2   : > { %v5469_v33 = vsel %vm663_vm5, %v658_v51, %v615_v8  ;;  %3987 = vmatmul.mubr.msk.f32.gmra.mrb[10].mxu0 %vm683_vm6, %v5317_v43  ;;  %v1228_v23 = vsel %vm449_vm3, %v1226_v24, %v1227_v26  ;;  %4223 = vmatprep.subr.bf16.mxu0 %v6309_v60 }
  0xe3   : > { %523 = vrot.lane.b32.xlu0 %v486_v13, %s4563_s10  ;;  %3733 = vmatmul.mubr.msk.f32.gmra.mrb[24].mxu1 %vm683_vm6, %v5469_v33 }
  0xe4   : > { %v520_v63 = vpop.permute.xlu0 %519  ;;  %3989 = vmatprep.mubr.msk.f32.mxu0 %vm4560_vm0, %v6307_v6  ;;  %3735 = vmatprep.mubr.msk.f32.mxu1 %vm4560_vm0, %v6307_v6 }
  0xe5   : > { %620 = vrot.lane.b32.xlu1 %v583_v42, %s4562_s13  ;;  %v1286_v13 = vpop.permute.xlu1 %1285  ;;  %v659_v37 = vsel %vm643_vm4, %v4896_v21, %v520_v63  ;;  %v6313_v42 = vrot.slane %v4727_v28, 1 }
  0xe6   : > { %v1428_v21 = vsel %vm643_vm4, %v4838_v39, %v1286_v13  ;;  %v5518_v39 = vld [vmem:[%s5062_s8 + $0x88] sm:$0xff] }
  0xe7   : > { %525 = vrot.lane.b32.xlu0 %v488_v22, %s4563_s10  ;;  %v1324_v22 = vsel %vm546_vm2, %v1322_v52, %v1323_v31  ;;  %v1230_v8 = vsel %vm449_vm3, %v1227_v26, %v6313_v42  ;;  %6314 = vst [vmem:[#allocation14_spill] sm:$0xff] %v5518_v39  ;;  %v6315_v52 = vrot.slane %v4727_v28, 2  ;;  %v6317_v28 = vrot.slane %v5373_v15, 2 }
  0xe8   : > { %v617_v51 = vpop.permute.xlu0 %616 }
  0xe9   : > { %v5493_v12 = vsel %vm663_vm5, %v659_v37, %v617_v51  ;;  %622 = vrot.lane.b32.xlu1 %v585_v50, %s4562_s13  ;;  %v1382_v63 = vpop.permute.xlu1 %1381  ;;  %v2058_v50 = vrot.slane %v5497_v16, 1  ;;  %v1326_v13 = vsel %vm546_vm2, %v1323_v31, %v6315_v52  ;;  %v2154_v37 = vrot.slane %v5497_v16, 2 }
  0xea   : > { %3736 = vmatmul.mubr.msk.f32.gmra.mrb[26].mxu1 %vm683_vm6, %v5493_v12  ;;  %v5508_v24 = vsel %vm663_vm5, %v1428_v21, %v1382_v63  ;;  %v2060_v63 = vrot.slane %v5518_v39, 1 }
  0xeb   : > { %3738 = vmatprep.mubr.msk.f32.mxu1 %vm4560_vm0, %v6307_v6  ;;  %1265 = vrot.lane.b32.xlu0 %v1228_v23, %s4563_s10  ;;  %6312 = vst [vmem:[#allocation13_spill] sm:$0xff] %v5508_v24  ;;  %v2155_v31 = vsel %vm546_vm2, %v6317_v28, %v2154_v37 }
  0xec   : > { %v522_v17 = vpop.permute.xlu0 %521  ;;  %3990 = vmatmul.mubr.msk.f32.gmra.mrb[12].mxu0 %vm683_vm6, %v5508_v24  ;;  %v377_v24 = vld [vmem:[%s6266_s3 + $0x68] sm:$0xff] }
  0xed   : > { %1361 = vrot.lane.b32.xlu1 %v1324_v22, %s4562_s13  ;;  %3992 = vmatprep.mubr.msk.f32.mxu0 %vm4560_vm0, %v6307_v6  ;;  %v1288_v26 = vpop.permute.xlu1 %1287  ;;  %v660_v51 = vsel %vm643_vm4, %v4905_v30, %v522_v17  ;;  %v6316_v22 = vrot.slane %v5373_v15, 1  ;;  %v2156_v30 = vrot.slane %v5518_v39, 2  ;;  %v5544_v17 = vld [vmem:[%s5062_s8 + $0x90] sm:$0xff] }
  0xee   : > { %6318 = vst [vmem:[#allocation15_spill] sm:$0xff] %v5544_v17  ;;  %v2158_v28 = vrot.slane %v5544_v17, 2 }
  0xef   : > { %1267 = vrot.lane.b32.xlu0 %v1230_v8, %s4563_s10  ;;  %v2059_v21 = vsel %vm449_vm3, %v6316_v22, %v2058_v50  ;;  %v1429_v8 = vsel %vm643_vm4, %v4914_v40, %v1288_v26  ;;  %v375_v22 = vld [vmem:[%s6266_s3 + $0x58] sm:$0xff]  ;;  %v2061_v40 = vsel %vm449_vm3, %v2058_v50, %v2060_v63  ;;  %v2062_v26 = vrot.slane %v5544_v17, 1 }
  0xf0   : > { %v619_v23 = vpop.permute.xlu0 %618 }
  0xf1   : > { %v5534_v42 = vsel %vm663_vm5, %v660_v51, %v619_v23  ;;  %1363 = vrot.lane.b32.xlu1 %v1326_v13, %s4562_s13  ;;  %v1384_v52 = vpop.permute.xlu1 %1383  ;;  %v374_v23 = vld [vmem:[%s6266_s3 + $0x50] sm:$0xff] }
  0xf2   : > { %3739 = vmatmul.mubr.msk.f32.gmra.mrb[28].mxu1 %vm683_vm6, %v5534_v42  ;;  %v5552_v13 = vsel %vm663_vm5, %v1429_v8, %v1384_v52  ;;  %v2006_v8 = vld [vmem:[%s5062_s8 + $0x98] sm:$0xff]  ;;  %v4194_v39 = vpack.c.bf16 %v375_v22, %v374_v23  ;;  %v2063_v23 = vsel %vm449_vm3, %v2060_v63, %v2062_v26  ;;  %s4470_s8 = smul.u32 15, %s6352_s18 }
  0xf3   : > { %3751 = vmatprep.mubr.msk.f32.mxu1 %vm4560_vm0, %v6307_v6  ;;  %2096 = vrot.lane.b32.xlu0 %v2059_v21, %s4563_s10  ;;  %6319 = vst [vmem:[#allocation16_spill] sm:$0xff] %v5552_v13  ;;  %v2157_v21 = vsel %vm546_vm2, %v2154_v37, %v2156_v30  ;;  %v2064_v22 = vrot.slane %v2006_v8, 1 }
  0xf4   : > { %v490_v51 = vpop.permute.xlu0 %489  ;;  %3993 = vmatmul.mubr.msk.f32.gmra.mrb[14].mxu0 %vm683_vm6, %v5552_v13  ;;  %s353_s7 = sadd.s32 %s4471_s6, %s4470_s8 }
  0xf5   : > { %2192 = vrot.lane.b32.xlu1 %v2155_v31, %s4562_s13  ;;  %3995 = vmatprep.mubr.msk.f32.mxu0 %vm4560_vm0, %v6307_v6  ;;  %v1290_v52 = vpop.permute.xlu1 %1289  ;;  %v644_v50 = vsel %vm643_vm4, %v4947_v2, %v490_v51  ;;  %v376_v31 = vld [vmem:[%s6266_s3 + $0x60] sm:$0xff]  ;;  %v2159_v2 = vsel %vm546_vm2, %v2156_v30, %v2158_v28  ;;  %v2160_v51 = vrot.slane %v2006_v8, 2 }
  0xf6   : > { %v4197_v43 = vpack.c.bf16 %v377_v24, %v376_v31 }
  0xf7   : > { %2098 = vrot.lane.b32.xlu0 %v2061_v40, %s4563_s10  ;;  %v1430_v40 = vsel %vm643_vm4, %v4934_v59, %v1290_v52  ;;  %v2065_v59 = vsel %vm449_vm3, %v2062_v26, %v2064_v22  ;;  %v2161_v24 = vsel %vm546_vm2, %v2158_v28, %v2160_v51 }
  0xf8   : > { %v587_v13 = vpop.permute.xlu0 %586 }
  0xf9   : > { %v664_v37 = vsel %vm663_vm5, %v644_v50, %v587_v13  ;;  %2194 = vrot.lane.b32.xlu1 %v2157_v21, %s4562_s13  ;;  %v1386_v17 = vpop.permute.xlu1 %1385 }
  0xfa   : > { %3752 = vmatmul.mubr.msk.f32.vlgmr.msra.gmra.mrb[0].mxu1 %vm683_vm6, %v664_v37  ;;  %v5589_v13 = vsel %vm663_vm5, %v1430_v40, %v1386_v17  ;;  %v378_v17 = vld [vmem:[%s6266_s3 + $0x70] sm:$0xf] }
  0xfb   : > { %4195 = vmatpush3.bf16.msra.mxu1 %v4194_v39  ;;  %3754 = vmatprep.mubr.msk.f32.mxu1 %vm4560_vm0, %v6307_v6 }
  0xfc   : > { %v492_v21 = vpop.permute.xlu0 %491  ;;  %4196 = vmatprep.subr.bf16.mxu1 %v6309_v60  ;;  %2100 = vrot.lane.b32.xlu0 %v2063_v23, %s4563_s10 }
  0xfd   : > { %3996 = vmatmul.mubr.msk.f32.gmra.mrb[16].mxu0 %vm683_vm6, %v5589_v13  ;;  %2196 = vrot.lane.b32.xlu1 %v2159_v2, %s4562_s13  ;;  %v1292_v39 = vpop.permute.xlu1 %1291  ;;  %v645_v63 = vsel %vm643_vm4, %v4950_v3, %v492_v21 }
  0xfe   : > { %3998 = vmatprep.mubr.msk.f32.mxu0 %vm4560_vm0, %v6307_v6 }
  0xff   : > { %4198 = vmatpush3.bf16.msra.mxu1 %v4197_v43  ;;  %v1431_v43 = vsel %vm643_vm4, %v4960_v9, %v1292_v39  ;;  %v400_v39 = vld [vmem:[%s6266_s3 + $0x120] sm:$0xff] }
 0x100   : > { %v589_v30 = vpop.permute.xlu0 %588  ;;  %3804 = vmatprep.subr.mxu1 %v6307_v6  ;;  %2102 = vrot.lane.b32.xlu0 %v2065_v59, %s4563_s10 }
 0x101   : > { %v665_v26 = vsel %vm663_vm5, %v645_v63, %v589_v30  ;;  %2198 = vrot.lane.b32.xlu1 %v2161_v24, %s4562_s13  ;;  %v1388_v28 = vpop.permute.xlu1 %1387  ;;  %v399_v24 = vld [vmem:[%s6266_s3 + $0x118] sm:$0xff]  ;;  %s3357_s13 = sshll.u32 %s353_s7, 3 }
 0x102   : > { %3755 = vmatmul.mubr.msk.f32.gmra.mrb[2].mxu1 %vm683_vm6, %v665_v26  ;;  %v5616_v3 = vsel %vm663_vm5, %v1431_v43, %v1388_v28  ;;  %v401_v28 = vld [vmem:[%s6266_s3 + $0x128] sm:$0xff]  ;;  %s6194_s12 = scalar_lea.vmem %s6267_s4, %s3357_s13 }
 0x103   : > { %3757 = vmatprep.mubr.msk.f32.mxu1 %vm4560_vm0, %v6307_v6  ;;  %3805 = vmatpush3.msk.msra.mxu1 %vm729_vm1, %v378_v17  ;;  %v4224_v17 = vpack.c.bf16 %v400_v39, %v399_v24 }
 0x104   : > { %v1294_v8 = vpop.permute.xlu0 %1293  ;;  %4199 = vmatprep.subr.bf16.mxu1 %v6309_v60  ;;  %3999 = vmatmul.mubr.msk.f32.gmra.mrb[18].mxu0 %vm683_vm6, %v5616_v3 }
 0x105   : > { %v1432_v52 = vsel %vm643_vm4, %v4977_v38, %v1294_v8  ;;  %4001 = vmatprep.mubr.msk.f32.mxu0 %vm4560_vm0, %v6307_v6  ;;  %v1390_v9 = vpop.permute.xlu1 %1389 }
 0x106   : > { %3758 = vmatmul.mubr.msk.f32.gmra.mrb[4].mxu1 %vm683_vm6, %v5031_v36  ;;  %v5630_v50 = vsel %vm663_vm5, %v1432_v52, %v1390_v9 }
 0x107   : > { %3760 = vmatprep.mubr.msk.f32.mxu1 %vm4560_vm0, %v6307_v6 }
 0x108   : > { %v1296_v31 = vpop.permute.xlu0 %1295  ;;  %4002 = vmatmul.mubr.msk.f32.gmra.mrb[20].mxu0 %vm683_vm6, %v5630_v50 }
 0x109   : > { %v1433_v38 = vsel %vm643_vm4, %v4988_v49, %v1296_v31  ;;  %4004 = vmatprep.mubr.msk.f32.mxu0 %vm4560_vm0, %v6307_v6  ;;  %v1392_v36 = vpop.permute.xlu1 %1391 }
 0x10a   : > { %3761 = vmatmul.mubr.msk.f32.gmra.mrb[6].mxu1 %vm683_vm6, %v5111_v62  ;;  %v5643_v37 = vsel %vm663_vm5, %v1433_v38, %v1392_v36 }
 0x10b   : > { %3763 = vmatprep.mubr.msk.f32.mxu1 %vm4560_vm0, %v6307_v6 }
 0x10c   : > { %v1298_v23 = vpop.permute.xlu0 %1297  ;;  %4005 = vmatmul.mubr.msk.f32.gmra.mrb[22].mxu0 %vm683_vm6, %v5643_v37 }
 0x10d   : > { %v1434_v49 = vsel %vm643_vm4, %v5001_v20, %v1298_v23  ;;  %4007 = vmatprep.mubr.msk.f32.mxu0 %vm4560_vm0, %v6307_v6  ;;  %v1394_v62 = vpop.permute.xlu1 %1393 }
 0x10e   : > { %3764 = vmatmul.mubr.msk.f32.gmra.mrb[8].mxu1 %vm683_vm6, %v5157_v55  ;;  %v5656_v22 = vsel %vm663_vm5, %v1434_v49, %v1394_v62 }
 0x10f   : > { %3766 = vmatprep.mubr.msk.f32.mxu1 %vm4560_vm0, %v6307_v6 }
 0x110   : > { %v1300_v2 = vpop.permute.xlu0 %1299  ;;  %4008 = vmatmul.mubr.msk.f32.gmra.mrb[24].mxu0 %vm683_vm6, %v5656_v22 }
 0x111   : > { %v1435_v20 = vsel %vm643_vm4, %v5017_v19, %v1300_v2  ;;  %4010 = vmatprep.mubr.msk.f32.mxu0 %vm4560_vm0, %v6307_v6 }
 0x112   : > { %3767 = vmatmul.mubr.msk.f32.gmra.mrb[10].mxu1 %vm683_vm6, %v5194_v47  ;;  %v1396_v51 = vpop.permute.xlu1 %1395 }
 0x113   : > { %3769 = vmatprep.mubr.msk.f32.mxu1 %vm4560_vm0, %v6307_v6  ;;  %v1454_v40 = vsel %vm663_vm5, %v1435_v20, %v1396_v51 }
 0x114   : > { %4011 = vmatmul.mubr.msk.f32.gmra.mrb[26].mxu0 %vm683_vm6, %v1454_v40 }
 0x115   : > { %v1302_v21 = vpop.permute.xlu0 %1301  ;;  %4013 = vmatprep.mubr.msk.f32.mxu0 %vm4560_vm0, %v6307_v6 }
 0x116   : > { %v1436_v59 = vsel %vm643_vm4, %v5040_v46, %v1302_v21  ;;  %3770 = vmatmul.mubr.msk.f32.gmra.mrb[12].mxu1 %vm683_vm6, %v5230_v27 }
 0x117   : > { %v1398_v19 = vpop.permute.xlu1 %1397  ;;  %3772 = vmatprep.mubr.msk.f32.mxu1 %vm4560_vm0, %v6307_v6 }
 0x118   : > { %v1455_v46 = vsel %vm663_vm5, %v1436_v59, %v1398_v19 }
 0x119   : > { %4014 = vmatmul.mubr.msk.f32.gmra.mrb[28].mxu0 %vm683_vm6, %v1455_v46  ;;  %v2067_v63 = vpop.permute.xlu0 %2066 }
 0x11a   : > { %v2219_v30 = vsel %vm643_vm4, %v5075_v54, %v2067_v63  ;;  %3773 = vmatmul.mubr.msk.f32.gmra.mrb[14].mxu1 %vm683_vm6, %v5266_v18  ;;  %4026 = vmatprep.mubr.msk.f32.mxu0 %vm4560_vm0, %v6307_v6  ;;  %v402_v54 = vld [vmem:[%s6266_s3 + $0x130] sm:$0xff] }
 0x11b   : > { %v2163_v26 = vpop.permute.xlu1 %2162  ;;  %3775 = vmatprep.mubr.msk.f32.mxu1 %vm4560_vm0, %v6307_v6  ;;  %v4227_v31 = vpack.c.bf16 %v402_v54, %v401_v28 }
 0x11c   : > { %v2238_v43 = vsel %vm663_vm5, %v2219_v30, %v2163_v26 }
 0x11d   : > { %4027 = vmatmul.mubr.msk.f32.vlgmr.msra.gmra.mrb[0].mxu0 %vm683_vm6, %v2238_v43  ;;  %v2069_v8 = vpop.permute.xlu0 %2068 }
 0x11e   : > { %4225 = vmatpush3.bf16.msra.mxu0 %v4224_v17  ;;  %v2220_v52 = vsel %vm643_vm4, %v5078_v34, %v2069_v8  ;;  %3776 = vmatmul.mubr.msk.f32.gmra.mrb[16].mxu1 %vm683_vm6, %v5302_v11  ;;  %v379_v17 = vld [vmem:[%s6266_s3 + $0x78] sm:$0xff] }
 0x11f   : > { %v2165_v9 = vpop.permute.xlu1 %2164  ;;  %4029 = vmatprep.mubr.msk.f32.mxu0 %vm4560_vm0, %v6307_v6  ;;  %3778 = vmatprep.mubr.msk.f32.mxu1 %vm4560_vm0, %v6307_v6 }
 0x120   : > { %v2239_v38 = vsel %vm663_vm5, %v2220_v52, %v2165_v9  ;;  %4226 = vmatprep.subr.bf16.mxu0 %v6309_v60  ;;  %v381_v52 = vld [vmem:[%s6266_s3 + $0x88] sm:$0xff] }
 0x121   : > { %4030 = vmatmul.mubr.msk.f32.gmra.mrb[2].mxu0 %vm683_vm6, %v2239_v38  ;;  %v2071_v36 = vpop.permute.xlu0 %2070 }
 0x122   : > { %v2221_v34 = vsel %vm643_vm4, %v5114_v29, %v2071_v36  ;;  %3779 = vmatmul.mubr.msk.f32.gmra.mrb[18].mxu1 %vm683_vm6, %v5341_v32  ;;  %4032 = vmatprep.mubr.msk.f32.mxu0 %vm4560_vm0, %v6307_v6  ;;  %v403_v29 = vld [vmem:[%s6266_s3 + $0x138] sm:$0xf] }
 0x123   : > { %v2167_v23 = vpop.permute.xlu1 %2166  ;;  %3781 = vmatprep.mubr.msk.f32.mxu1 %vm4560_vm0, %v6307_v6  ;;  %4228 = vmatpush3.bf16.msra.mxu0 %v4227_v31 }
 0x124   : > { %v5722_v49 = vsel %vm663_vm5, %v2221_v34, %v2167_v23  ;;  %4079 = vmatprep.subr.mxu0 %v6307_v6 }
 0x125   : > { %4033 = vmatmul.mubr.msk.f32.gmra.mrb[4].mxu0 %vm683_vm6, %v5722_v49  ;;  %v2073_v62 = vpop.permute.xlu0 %2072 }
 0x126   : > { %v2222_v2 = vsel %vm643_vm4, %v5137_v61, %v2073_v62  ;;  %3782 = vmatmul.mubr.msk.f32.gmra.mrb[20].mxu1 %vm683_vm6, %v5363_v45  ;;  %4035 = vmatprep.mubr.msk.f32.mxu0 %vm4560_vm0, %v6307_v6 }
 0x127   : > { %v2169_v20 = vpop.permute.xlu1 %2168  ;;  %3784 = vmatprep.mubr.msk.f32.mxu1 %vm4560_vm0, %v6307_v6  ;;  %4080 = vmatpush3.msk.msra.mxu0 %vm729_vm1, %v403_v29 }
 0x128   : > { %v5740_v51 = vsel %vm663_vm5, %v2222_v2, %v2169_v20  ;;  %4229 = vmatprep.subr.bf16.mxu0 %v6309_v60 }
 0x129   : > { %4036 = vmatmul.mubr.msk.f32.gmra.mrb[6].mxu0 %vm683_vm6, %v5740_v51  ;;  %v2075_v61 = vpop.permute.xlu0 %2074 }
 0x12a   : > { %v2223_v40 = vsel %vm643_vm4, %v5160_v4, %v2075_v61  ;;  %3785 = vmatmul.mubr.msk.f32.gmra.mrb[22].mxu1 %vm683_vm6, %v5391_v41  ;;  %4038 = vmatprep.mubr.msk.f32.mxu0 %vm4560_vm0, %v6307_v6 }
 0x12b   : > { %v2171_v21 = vpop.permute.xlu1 %2170  ;;  %3787 = vmatprep.mubr.msk.f32.mxu1 %vm4560_vm0, %v6307_v6 }
 0x12c   : > { %v5754_v59 = vsel %vm663_vm5, %v2223_v40, %v2171_v21 }
 0x12d   : > { %4039 = vmatmul.mubr.msk.f32.gmra.mrb[8].mxu0 %vm683_vm6, %v5754_v59  ;;  %v2077_v19 = vpop.permute.xlu0 %2076 }
 0x12e   : > { %v2224_v4 = vsel %vm643_vm4, %v5181_v35, %v2077_v19  ;;  %3788 = vmatmul.mubr.msk.f32.gmra.mrb[24].mxu1 %vm683_vm6, %v5414_v57  ;;  %4041 = vmatprep.mubr.msk.f32.mxu0 %vm4560_vm0, %v6307_v6  ;;  %v6320_v19 = vld [vmem:[#allocation11_spill] sm:$0xff] }
 0x12f   : > { %v2173_v24 = vpop.permute.xlu1 %2172  ;;  %3790 = vmatprep.mubr.msk.f32.mxu1 %vm4560_vm0, %v6307_v6 }
 0x130   : > { %v5767_v39 = vsel %vm663_vm5, %v2224_v4, %v2173_v24 }
 0x131   : > { %4042 = vmatmul.mubr.msk.f32.gmra.mrb[10].mxu0 %vm683_vm6, %v5767_v39  ;;  %v2079_v46 = vpop.permute.xlu0 %2078 }
 0x132   : > { %v2225_v35 = vsel %vm643_vm4, %v5197_v14, %v2079_v46  ;;  %3791 = vmatmul.mubr.msk.f32.gmra.mrb[26].mxu1 %vm683_vm6, %v5438_v0  ;;  %4044 = vmatprep.mubr.msk.f32.mxu0 %vm4560_vm0, %v6307_v6  ;;  %v380_v14 = vld [vmem:[%s6266_s3 + $0x80] sm:$0xff] }
 0x133   : > { %v2175_v63 = vpop.permute.xlu1 %2174  ;;  %3793 = vmatprep.mubr.msk.f32.mxu1 %vm4560_vm0, %v6307_v6  ;;  %v4200_v54 = vpack.c.bf16 %v380_v14, %v379_v17  ;;  %v404_v17 = vld [vmem:[%s6266_s3 + $0x140] sm:$0xff]  ;;  %v405_v14 = vld [vmem:[%s6266_s3 + $0x148] sm:$0xff] }
 0x134   : > { %v5780_v30 = vsel %vm663_vm5, %v2225_v35, %v2175_v63 }
 0x135   : > { %4045 = vmatmul.mubr.msk.f32.gmra.mrb[12].mxu0 %vm683_vm6, %v5780_v30  ;;  %v2081_v26 = vpop.permute.xlu0 %2080 }
 0x136   : > { %v2226_v43 = vsel %vm643_vm4, %v5217_v48, %v2081_v26  ;;  %3794 = vmatmul.mubr.msk.f32.gmra.mrb[28].mxu1 %vm683_vm6, %v5469_v33  ;;  %4047 = vmatprep.mubr.msk.f32.mxu0 %vm4560_vm0, %v6307_v6  ;;  %v382_v48 = vld [vmem:[%s6266_s3 + $0x90] sm:$0xff] }
 0x137   : > { %v2177_v28 = vpop.permute.xlu1 %2176  ;;  %3806 = vmatprep.mubr.msk.f32.mxu1 %vm4560_vm0, %v6307_v6  ;;  %v4203_v36 = vpack.c.bf16 %v382_v48, %v381_v52  ;;  %v406_v26 = vld [vmem:[%s6266_s3 + $0x150] sm:$0xff] }
 0x138   : > { %v5799_v8 = vsel %vm663_vm5, %v2226_v43, %v2177_v28  ;;  %v407_v43 = vld [vmem:[%s6266_s3 + $0x158] sm:$0xff] }
 0x139   : > { %4048 = vmatmul.mubr.msk.f32.gmra.mrb[14].mxu0 %vm683_vm6, %v5799_v8  ;;  %v2083_v9 = vpop.permute.xlu0 %2082 }
 0x13a   : > { %v2227_v31 = vsel %vm643_vm4, %v5233_v25, %v2083_v9  ;;  %3807 = vmatmul.mubr.msk.f32.vlgmr.msra.gmra.mrb[0].mxu1 %vm683_vm6, %v5157_v55  ;;  %4050 = vmatprep.mubr.msk.f32.mxu0 %vm4560_vm0, %v6307_v6 }
 0x13b   : > { %v2179_v38 = vpop.permute.xlu1 %2178  ;;  %4201 = vmatpush3.bf16.msra.mxu1 %v4200_v54  ;;  %3809 = vmatprep.mubr.msk.f32.mxu1 %vm4560_vm0, %v6307_v6 }
 0x13c   : > { %v5818_v34 = vsel %vm663_vm5, %v2227_v31, %v2179_v38  ;;  %4202 = vmatprep.subr.bf16.mxu1 %v6309_v60 }
 0x13d   : > { %4051 = vmatmul.mubr.msk.f32.gmra.mrb[16].mxu0 %vm683_vm6, %v5818_v34  ;;  %v2085_v25 = vpop.permute.xlu0 %2084 }
 0x13e   : > { %v2228_v55 = vsel %vm643_vm4, %v5253_v58, %v2085_v25  ;;  %3810 = vmatmul.mubr.msk.f32.gmra.mrb[2].mxu1 %vm683_vm6, %v5194_v47  ;;  %4053 = vmatprep.mubr.msk.f32.mxu0 %vm4560_vm0, %v6307_v6  ;;  %v383_v58 = vld [vmem:[%s6266_s3 + $0x98] sm:$0xf] }
 0x13f   : > { %v2181_v23 = vpop.permute.xlu1 %2180  ;;  %3812 = vmatprep.mubr.msk.f32.mxu1 %vm4560_vm0, %v6307_v6  ;;  %4204 = vmatpush3.bf16.msra.mxu1 %v4203_v36 }
 0x140   : > { %v5832_v29 = vsel %vm663_vm5, %v2228_v55, %v2181_v23  ;;  %3859 = vmatprep.subr.mxu1 %v6307_v6  ;;  %v6323_v23 = vld [vmem:[#allocation4_spill] sm:$0xff] }
 0x141   : > { %4054 = vmatmul.mubr.msk.f32.gmra.mrb[18].mxu0 %vm683_vm6, %v5832_v29  ;;  %v2087_v47 = vpop.permute.xlu0 %2086 }
 0x142   : > { %v2229_v62 = vsel %vm643_vm4, %v5269_v56, %v2087_v47  ;;  %3813 = vmatmul.mubr.msk.f32.gmra.mrb[4].mxu1 %vm683_vm6, %v5230_v27  ;;  %4056 = vmatprep.mubr.msk.f32.mxu0 %vm4560_vm0, %v6307_v6 }
 0x143   : > { %v2183_v2 = vpop.permute.xlu1 %2182  ;;  %3815 = vmatprep.mubr.msk.f32.mxu1 %vm4560_vm0, %v6307_v6  ;;  %3860 = vmatpush3.msk.msra.mxu1 %vm729_vm1, %v383_v58  ;;  %v6324_v58 = vld [vmem:[#allocation5_spill] sm:$0xff] }
 0x144   : > { %v5850_v20 = vsel %vm663_vm5, %v2229_v62, %v2183_v2  ;;  %4235 = vmatprep.subr.bf16.mxu1 %v6309_v60  ;;  %v6325_v2 = vld [vmem:[#allocation6_spill] sm:$0xff] }
 0x145   : > { %4057 = vmatmul.mubr.msk.f32.gmra.mrb[20].mxu0 %vm683_vm6, %v5850_v20  ;;  %v2089_v56 = vpop.permute.xlu0 %2088 }
 0x146   : > { %v2230_v27 = vsel %vm643_vm4, %v5289_v5, %v2089_v56  ;;  %3816 = vmatmul.mubr.msk.f32.gmra.mrb[6].mxu1 %vm683_vm6, %v5266_v18  ;;  %4059 = vmatprep.mubr.msk.f32.mxu0 %vm4560_vm0, %v6307_v6 }
 0x147   : > { %v2185_v61 = vpop.permute.xlu1 %2184  ;;  %3818 = vmatprep.mubr.msk.f32.mxu1 %vm4560_vm0, %v6307_v6 }
 0x148   : > { %v5864_v40 = vsel %vm663_vm5, %v2230_v27, %v2185_v61 }
 0x149   : > { %4060 = vmatmul.mubr.msk.f32.gmra.mrb[22].mxu0 %vm683_vm6, %v5864_v40  ;;  %v2091_v21 = vpop.permute.xlu0 %2090 }
 0x14a   : > { %v2231_v5 = vsel %vm643_vm4, %v6320_v19, %v2091_v21  ;;  %3819 = vmatmul.mubr.msk.f32.gmra.mrb[8].mxu1 %vm683_vm6, %v5302_v11  ;;  %4062 = vmatprep.mubr.msk.f32.mxu0 %vm4560_vm0, %v6307_v6  ;;  %v6326_v21 = vld [vmem:[#allocation7_spill] sm:$0xff] }
 0x14b   : > { %v2187_v18 = vpop.permute.xlu1 %2186  ;;  %3821 = vmatprep.mubr.msk.f32.mxu1 %vm4560_vm0, %v6307_v6 }
 0x14c   : > { %v5877_v4 = vsel %vm663_vm5, %v2231_v5, %v2187_v18  ;;  %v6327_v18 = vld [vmem:[#allocation8_spill] sm:$0xff] }
 0x14d   : > { %4063 = vmatmul.mubr.msk.f32.gmra.mrb[24].mxu0 %vm683_vm6, %v5877_v4  ;;  %v2093_v24 = vpop.permute.xlu0 %2092 }
 0x14e   : > { %v2232_v46 = vsel %vm643_vm4, %v5327_v1, %v2093_v24  ;;  %3822 = vmatmul.mubr.msk.f32.gmra.mrb[10].mxu1 %vm683_vm6, %v5341_v32  ;;  %4065 = vmatprep.mubr.msk.f32.mxu0 %vm4560_vm0, %v6307_v6  ;;  %v6329_v24 = vld [vmem:[#allocation10_spill] sm:$0xff] }
 0x14f   : > { %v2189_v11 = vpop.permute.xlu1 %2188  ;;  %3824 = vmatprep.mubr.msk.f32.mxu1 %vm4560_vm0, %v6307_v6 }
 0x150   : > { %v5890_v35 = vsel %vm663_vm5, %v2232_v46, %v2189_v11  ;;  %v6330_v46 = vld [vmem:[#allocation12_spill] sm:$0xff] }
 0x151   : > { %4066 = vmatmul.mubr.msk.f32.gmra.mrb[26].mxu0 %vm683_vm6, %v5890_v35  ;;  %v2095_v63 = vpop.permute.xlu0 %2094 }
 0x152   : > { %v2233_v1 = vsel %vm643_vm4, %v5351_v7, %v2095_v63  ;;  %3825 = vmatmul.mubr.msk.f32.gmra.mrb[12].mxu1 %vm683_vm6, %v5363_v45  ;;  %4068 = vmatprep.mubr.msk.f32.mxu0 %vm4560_vm0, %v6307_v6  ;;  %v4230_v45 = vpack.c.bf16 %v405_v14, %v404_v17 }
 0x153   : > { %v2191_v32 = vpop.permute.xlu1 %2190  ;;  %3827 = vmatprep.mubr.msk.f32.mxu1 %vm4560_vm0, %v6307_v6 }
 0x154   : > { %v5909_v7 = vsel %vm663_vm5, %v2233_v1, %v2191_v32 }
 0x155   : > { %4069 = vmatmul.mubr.msk.f32.gmra.mrb[28].mxu0 %vm683_vm6, %v5909_v7 }
 0x156   : > { %3828 = vmatmul.mubr.msk.f32.gmra.mrb[14].mxu1 %vm683_vm6, %v5391_v41  ;;  %4081 = vmatprep.mubr.msk.f32.mxu0 %vm4560_vm0, %v6307_v6  ;;  %v4233_v41 = vpack.c.bf16 %v407_v43, %v406_v26 }
 0x157   : > { %3830 = vmatprep.mubr.msk.f32.mxu1 %vm4560_vm0, %v6307_v6 }
 0x159   : > { %4082 = vmatmul.mubr.msk.f32.vlgmr.msra.gmra.mrb[0].mxu0 %vm683_vm6, %v5722_v49  ;;  %v408_v49 = vld [vmem:[%s6266_s3 + $0x160] sm:$0xf] }
 0x15a   : > { %4231 = vmatpush3.bf16.msra.mxu0 %v4230_v45  ;;  %3831 = vmatmul.mubr.msk.f32.gmra.mrb[16].mxu1 %vm683_vm6, %v5414_v57  ;;  %v524_v57 = vpop.permute.xlu0 %523 }
 0x15b   : > { %4084 = vmatprep.mubr.msk.f32.mxu0 %vm4560_vm0, %v6307_v6  ;;  %3833 = vmatprep.mubr.msk.f32.mxu1 %vm4560_vm0, %v6307_v6 }
 0x15c   : > { %4232 = vmatprep.subr.bf16.mxu0 %v6309_v60 }
 0x15d   : > { %4085 = vmatmul.mubr.msk.f32.gmra.mrb[2].mxu0 %vm683_vm6, %v5740_v51 }
 0x15e   : > { %3834 = vmatmul.mubr.msk.f32.gmra.mrb[18].mxu1 %vm683_vm6, %v5438_v0  ;;  %4087 = vmatprep.mubr.msk.f32.mxu0 %vm4560_vm0, %v6307_v6  ;;  %v621_v0 = vpop.permute.xlu1 %620  ;;  %v526_v51 = vpop.permute.xlu0 %525 }
 0x15f   : > { %3836 = vmatprep.mubr.msk.f32.mxu1 %vm4560_vm0, %v6307_v6  ;;  %4234 = vmatpush3.bf16.msra.mxu0 %v4233_v41  ;;  %v662_v48 = vsel %vm643_vm4, %v5402_v53, %v526_v51 }
 0x160   : > { %4134 = vmatprep.subr.mxu0 %v6307_v6 }
 0x161   : > { %4088 = vmatmul.mubr.msk.f32.gmra.mrb[4].mxu0 %vm683_vm6, %v5754_v59 }
 0x162   : > { %3837 = vmatmul.mubr.msk.f32.gmra.mrb[20].mxu1 %vm683_vm6, %v5469_v33  ;;  %4090 = vmatprep.mubr.msk.f32.mxu0 %vm4560_vm0, %v6307_v6  ;;  %v4517_v33 = vld [vmem:[%s4670_s28 + $0x88] sm:$0xff]  ;;  %v623_v54 = vpop.permute.xlu1 %622  ;;  %v1266_v52 = vpop.permute.xlu0 %1265 }
 0x163   : > { %3839 = vmatprep.mubr.msk.f32.mxu1 %vm4560_vm0, %v6307_v6  ;;  %4135 = vmatpush3.msk.msra.mxu0 %vm729_vm1, %v408_v49  ;;  %v661_v28 = vsel %vm643_vm4, %v4517_v33, %v524_v57  ;;  %v682_v9 = vsel %vm663_vm5, %v662_v48, %v623_v54  ;;  %v1418_v31 = vsel %vm643_vm4, %v5450_v10, %v1266_v52  ;;  %v6321_v10 = vld [vmem:[#allocation2_spill] sm:$0xff] }
 0x165   : > { %4091 = vmatmul.mubr.msk.f32.gmra.mrb[6].mxu0 %vm683_vm6, %v5767_v39 }
 0x166   : > { %3840 = vmatmul.mubr.msk.f32.gmra.mrb[22].mxu1 %vm683_vm6, %v5493_v12  ;;  %4093 = vmatprep.mubr.msk.f32.mxu0 %vm4560_vm0, %v6307_v6  ;;  %v681_v12 = vsel %vm663_vm5, %v661_v28, %v621_v0  ;;  %v1268_v53 = vpop.permute.xlu0 %1267 }
 0x167   : > { %3842 = vmatprep.mubr.msk.f32.mxu1 %vm4560_vm0, %v6307_v6  ;;  %v1419_v36 = vsel %vm643_vm4, %v5453_v44, %v1268_v53  ;;  %v6322_v44 = vld [vmem:[#allocation3_spill] sm:$0xff] }
 0x169   : > { %4094 = vmatmul.mubr.msk.f32.gmra.mrb[8].mxu0 %vm683_vm6, %v5780_v30 }
 0x16a   : > { %3843 = vmatmul.mubr.msk.f32.gmra.mrb[24].mxu1 %vm683_vm6, %v5534_v42  ;;  %4096 = vmatprep.mubr.msk.f32.mxu0 %vm4560_vm0, %v6307_v6  ;;  %v1362_v42 = vpop.permute.xlu1 %1361  ;;  %v2097_v47 = vpop.permute.xlu0 %2096 }
 0x16b   : > { %3845 = vmatprep.mubr.msk.f32.mxu1 %vm4560_vm0, %v6307_v6  ;;  %v1437_v38 = vsel %vm663_vm5, %v1418_v31, %v1362_v42  ;;  %v2234_v56 = vsel %vm643_vm4, %v5373_v15, %v2097_v47 }
 0x16d   : > { %4097 = vmatmul.mubr.msk.f32.gmra.mrb[10].mxu0 %vm683_vm6, %v5799_v8 }
 0x16e   : > { %3846 = vmatmul.mubr.msk.f32.gmra.mrb[26].mxu1 %vm683_vm6, %v681_v12  ;;  %4099 = vmatprep.mubr.msk.f32.mxu0 %vm4560_vm0, %v6307_v6  ;;  %v1364_v25 = vpop.permute.xlu1 %1363  ;;  %v2099_v27 = vpop.permute.xlu0 %2098 }
 0x16f   : > { %3848 = vmatprep.mubr.msk.f32.mxu1 %vm4560_vm0, %v6307_v6  ;;  %v1438_v55 = vsel %vm663_vm5, %v1419_v36, %v1364_v25  ;;  %v2235_v19 = vsel %vm643_vm4, %v5497_v16, %v2099_v27  ;;  %v6328_v16 = vld [vmem:[#allocation9_spill] sm:$0xff] }
 0x171   : > { %4100 = vmatmul.mubr.msk.f32.gmra.mrb[12].mxu0 %vm683_vm6, %v5818_v34 }
 0x172   : > { %3849 = vmatmul.mubr.msk.f32.gmra.mrb[28].mxu1 %vm683_vm6, %v682_v9  ;;  %4102 = vmatprep.mubr.msk.f32.mxu0 %vm4560_vm0, %v6307_v6  ;;  %v2193_v62 = vpop.permute.xlu1 %2192 }
 0x173   : > { %3861 = vmatprep.mubr.msk.f32.mxu1 %vm4560_vm0, %v6307_v6  ;;  %v2253_v61 = vsel %vm663_vm5, %v2234_v56, %v2193_v62 }
 0x175   : > { %4103 = vmatmul.mubr.msk.f32.gmra.mrb[14].mxu0 %vm683_vm6, %v5832_v29 }
 0x176   : > { %3862 = vmatmul.mubr.msk.f32.vlgmr.msra.gmra.mrb[0].mxu1 %vm683_vm6, %v1437_v38  ;;  %4105 = vmatprep.mubr.msk.f32.mxu0 %vm4560_vm0, %v6307_v6  ;;  %v2195_v5 = vpop.permute.xlu1 %2194 }
 0x177   : > { %4238 = vmatpush3.bf16.msra.mxu1 %v6321_v10  ;;  %3864 = vmatprep.mubr.msk.f32.mxu1 %vm4560_vm0, %v6307_v6  ;;  %v2254_v15 = vsel %vm663_vm5, %v2235_v19, %v2195_v5 }
 0x178   : > { %4236 = vmatprep.subr.bf16.mxu1 %v6309_v60  ;;  %v4518_v60 = vld [vmem:[%s6266_s3 + $0xc0] sm:$0xf] }
 0x179   : > { %4106 = vmatmul.mubr.msk.f32.gmra.mrb[16].mxu0 %vm683_vm6, %v5850_v20 }
 0x17a   : > { %3865 = vmatmul.mubr.msk.f32.gmra.mrb[2].mxu1 %vm683_vm6, %v1438_v55  ;;  %4108 = vmatprep.mubr.msk.f32.mxu0 %vm4560_vm0, %v6307_v6 }
 0x17b   : > { %3867 = vmatprep.mubr.msk.f32.mxu1 %vm4560_vm0, %v6307_v6  ;;  %4239 = vmatpush3.bf16.msra.mxu1 %v6322_v44 }
 0x17c   : > { %4237 = vmatprep.subr.mxu1 %v6307_v6 }
 0x17d   : > { %4109 = vmatmul.mubr.msk.f32.gmra.mrb[18].mxu0 %vm683_vm6, %v5864_v40 }
 0x17e   : > { %3868 = vmatmul.mubr.msk.f32.gmra.mrb[4].mxu1 %vm683_vm6, %v6323_v23  ;;  %4111 = vmatprep.mubr.msk.f32.mxu0 %vm4560_vm0, %v6307_v6 }
 0x17f   : > { %3870 = vmatprep.mubr.msk.f32.mxu1 %vm4560_vm0, %v6307_v6  ;;  %4240 = vmatpush3.msk.msra.mxu1 %vm729_vm1, %v4518_v60 }
 0x181   : > { %4112 = vmatmul.mubr.msk.f32.gmra.mrb[20].mxu0 %vm683_vm6, %v5877_v4 }
 0x182   : > { %3871 = vmatmul.mubr.msk.f32.gmra.mrb[6].mxu1 %vm683_vm6, %v6324_v58  ;;  %4114 = vmatprep.mubr.msk.f32.mxu0 %vm4560_vm0, %v6307_v6 }
 0x183   : > { %3873 = vmatprep.mubr.msk.f32.mxu1 %vm4560_vm0, %v6307_v6 }
 0x185   : > { %4115 = vmatmul.mubr.msk.f32.gmra.mrb[22].mxu0 %vm683_vm6, %v5890_v35 }
 0x186   : > { %3874 = vmatmul.mubr.msk.f32.gmra.mrb[8].mxu1 %vm683_vm6, %v6325_v2  ;;  %4117 = vmatprep.mubr.msk.f32.mxu0 %vm4560_vm0, %v6307_v6 }
 0x187   : > { %3876 = vmatprep.mubr.msk.f32.mxu1 %vm4560_vm0, %v6307_v6 }
 0x189   : > { %4118 = vmatmul.mubr.msk.f32.gmra.mrb[24].mxu0 %vm683_vm6, %v5909_v7 }
 0x18a   : > { %3877 = vmatmul.mubr.msk.f32.gmra.mrb[10].mxu1 %vm683_vm6, %v6326_v21  ;;  %4120 = vmatprep.mubr.msk.f32.mxu0 %vm4560_vm0, %v6307_v6 }
 0x18b   : > { %3879 = vmatprep.mubr.msk.f32.mxu1 %vm4560_vm0, %v6307_v6 }
 0x18d   : > { %4121 = vmatmul.mubr.msk.f32.gmra.mrb[26].mxu0 %vm683_vm6, %v2253_v61 }
 0x18e   : > { %3880 = vmatmul.mubr.msk.f32.gmra.mrb[12].mxu1 %vm683_vm6, %v6327_v18  ;;  %4123 = vmatprep.mubr.msk.f32.mxu0 %vm4560_vm0, %v6307_v6 }
 0x18f   : > { %3882 = vmatprep.mubr.msk.f32.mxu1 %vm4560_vm0, %v6307_v6 }
 0x191   : > { %4124 = vmatmul.mubr.msk.f32.gmra.mrb[28].mxu0 %vm683_vm6, %v2254_v15 }
 0x192   : > { %3883 = vmatmul.mubr.msk.f32.gmra.mrb[14].mxu1 %vm683_vm6, %v6328_v16  ;;  %4136 = vmatprep.mubr.msk.f32.mxu0 %vm4560_vm0, %v6307_v6 }
 0x193   : > { %3885 = vmatprep.mubr.msk.f32.mxu1 %vm4560_vm0, %v6307_v6 }
 0x195   : > { %4137 = vmatmul.mubr.msk.f32.vlgmr.msra.gmra.mrb[0].mxu0 %vm683_vm6, %v5754_v59  ;;  %v6331_v59 = vld [vmem:[#allocation13_spill] sm:$0xff] }
 0x196   : > { %3886 = vmatmul.mubr.msk.f32.gmra.mrb[16].mxu1 %vm683_vm6, %v6329_v24  ;;  %4139 = vmatprep.mubr.msk.f32.mxu0 %vm4560_vm0, %v6307_v6 }
 0x197   : > { %3888 = vmatprep.mubr.msk.f32.mxu1 %vm4560_vm0, %v6307_v6 }
 0x199   : > { %4140 = vmatmul.mubr.msk.f32.gmra.mrb[2].mxu0 %vm683_vm6, %v5767_v39  ;;  %v6332_v39 = vld [vmem:[#allocation16_spill] sm:$0xff] }
 0x19a   : > { %3889 = vmatmul.mubr.msk.f32.gmra.mrb[18].mxu1 %vm683_vm6, %v6330_v46  ;;  %4142 = vmatprep.mubr.msk.f32.mxu0 %vm4560_vm0, %v6307_v6 }
 0x19b   : > { %3891 = vmatprep.mubr.msk.f32.mxu1 %vm4560_vm0, %v6307_v6 }
 0x19d   : > { %4143 = vmatmul.mubr.msk.f32.gmra.mrb[4].mxu0 %vm683_vm6, %v5780_v30  ;;  %v2101_v30 = vpop.permute.xlu0 %2100 }
 0x19e   : > { %3892 = vmatmul.mubr.msk.f32.gmra.mrb[20].mxu1 %vm683_vm6, %v6331_v59  ;;  %4145 = vmatprep.mubr.msk.f32.mxu0 %vm4560_vm0, %v6307_v6 }
 0x19f   : > { %3894 = vmatprep.mubr.msk.f32.mxu1 %vm4560_vm0, %v6307_v6 }
 0x1a1   : > { %4146 = vmatmul.mubr.msk.f32.gmra.mrb[6].mxu0 %vm683_vm6, %v5799_v8  ;;  %v6333_v8 = vld [vmem:[#allocation14_spill] sm:$0xff] }
 0x1a2   : > { %3895 = vmatmul.mubr.msk.f32.gmra.mrb[22].mxu1 %vm683_vm6, %v6332_v39  ;;  %4148 = vmatprep.mubr.msk.f32.mxu0 %vm4560_vm0, %v6307_v6 }
 0x1a3   : > { %3897 = vmatprep.mubr.msk.f32.mxu1 %vm4560_vm0, %v6307_v6 }
 0x1a5   : > { %4149 = vmatmul.mubr.msk.f32.gmra.mrb[8].mxu0 %vm683_vm6, %v5818_v34  ;;  %v2236_v34 = vsel %vm643_vm4, %v6333_v8, %v2101_v30 }
 0x1a6   : > { %3898 = vmatmul.mubr.msk.f32.gmra.mrb[24].mxu1 %vm683_vm6, %v5589_v13  ;;  %4151 = vmatprep.mubr.msk.f32.mxu0 %vm4560_vm0, %v6307_v6 }
 0x1a7   : > { %3900 = vmatprep.mubr.msk.f32.mxu1 %vm4560_vm0, %v6307_v6 }
 0x1a9   : > { %4152 = vmatmul.mubr.msk.f32.gmra.mrb[10].mxu0 %vm683_vm6, %v5832_v29 }
 0x1aa   : > { %3901 = vmatmul.mubr.msk.f32.gmra.mrb[26].mxu1 %vm683_vm6, %v5616_v3  ;;  %4154 = vmatprep.mubr.msk.f32.mxu0 %vm4560_vm0, %v6307_v6 }
 0x1ab   : > { %3903 = vmatprep.mubr.msk.f32.mxu1 %vm4560_vm0, %v6307_v6 }
 0x1ad   : > { %4155 = vmatmul.mubr.msk.f32.gmra.mrb[12].mxu0 %vm683_vm6, %v5850_v20 }
 0x1ae   : > { %3904 = vmatmul.mubr.msk.f32.gmra.mrb[28].mxu1 %vm683_vm6, %v5630_v50  ;;  %4157 = vmatprep.mubr.msk.f32.mxu0 %vm4560_vm0, %v6307_v6 }
 0x1af   : > { %3940 = vmatprep.mubr.msk.f32.mxu1 %vm4560_vm0, %v6307_v6 }
 0x1b1   : > { %4158 = vmatmul.mubr.msk.f32.gmra.mrb[14].mxu0 %vm683_vm6, %v5864_v40 }
 0x1b2   : > { %3941 = vmatmul.mubr.msk.f32.vlgmr.msra.gmra.mrb[16].mxu1 %vm683_vm6, %v6331_v59  ;;  %4160 = vmatprep.mubr.msk.f32.mxu0 %vm4560_vm0, %v6307_v6 }
 0x1b3   : > { %3943 = vmatprep.mubr.msk.f32.mxu1 %vm4560_vm0, %v6307_v6 }
 0x1b5   : > { %4161 = vmatmul.mubr.msk.f32.gmra.mrb[16].mxu0 %vm683_vm6, %v5877_v4 }
 0x1b6   : > { %3944 = vmatmul.mubr.msk.f32.gmra.mrb[18].mxu1 %vm683_vm6, %v6332_v39  ;;  %4163 = vmatprep.mubr.msk.f32.mxu0 %vm4560_vm0, %v6307_v6 }
 0x1b7   : > { %3946 = vmatprep.mubr.msk.f32.mxu1 %vm4560_vm0, %v6307_v6 }
 0x1b9   : > { %4164 = vmatmul.mubr.msk.f32.gmra.mrb[18].mxu0 %vm683_vm6, %v5890_v35 }
 0x1ba   : > { %3947 = vmatmul.mubr.msk.f32.gmra.mrb[20].mxu1 %vm683_vm6, %v5589_v13  ;;  %4166 = vmatprep.mubr.msk.f32.mxu0 %vm4560_vm0, %v6307_v6  ;;  %v2197_v13 = vpop.permute.xlu1 %2196 }
 0x1bb   : > { %3949 = vmatprep.mubr.msk.f32.mxu1 %vm4560_vm0, %v6307_v6  ;;  %v2255_v29 = vsel %vm663_vm5, %v2236_v34, %v2197_v13 }
 0x1bd   : > { %4167 = vmatmul.mubr.msk.f32.gmra.mrb[20].mxu0 %vm683_vm6, %v5909_v7 }
 0x1be   : > { %3950 = vmatmul.mubr.msk.f32.gmra.mrb[22].mxu1 %vm683_vm6, %v5616_v3  ;;  %4169 = vmatprep.mubr.msk.f32.mxu0 %vm4560_vm0, %v6307_v6  ;;  %v2103_v3 = vpop.permute.xlu0 %2102  ;;  %v2199_v40 = vpop.permute.xlu1 %2198 }
 0x1bf   : > { %3952 = vmatprep.mubr.msk.f32.mxu1 %vm4560_vm0, %v6307_v6 }
 0x1c1   : > { %4170 = vmatmul.mubr.msk.f32.gmra.mrb[22].mxu0 %vm683_vm6, %v2253_v61 }
 0x1c2   : > { %3953 = vmatmul.mubr.msk.f32.gmra.mrb[24].mxu1 %vm683_vm6, %v5630_v50  ;;  %4172 = vmatprep.mubr.msk.f32.mxu0 %vm4560_vm0, %v6307_v6  ;;  %v6334_v50 = vld [vmem:[#allocation15_spill] sm:$0xff] }
 0x1c3   : > { %3955 = vmatprep.mubr.msk.f32.mxu1 %vm4560_vm0, %v6307_v6  ;;  %v2237_v20 = vsel %vm643_vm4, %v6334_v50, %v2103_v3 }
 0x1c4   : > { %v2256_v4 = vsel %vm663_vm5, %v2237_v20, %v2199_v40 }
 0x1c5   : > { %4173 = vmatmul.mubr.msk.f32.gmra.mrb[24].mxu0 %vm683_vm6, %v2254_v15 }
 0x1c6   : > { %3956 = vmatmul.mubr.msk.f32.gmra.mrb[26].mxu1 %vm683_vm6, %v5643_v37  ;;  %4175 = vmatprep.mubr.msk.f32.mxu0 %vm4560_vm0, %v6307_v6 }
 0x1c7   : > { %3958 = vmatprep.mubr.msk.f32.mxu1 %vm4560_vm0, %v6307_v6 }
 0x1c9   : > { %4176 = vmatmul.mubr.msk.f32.gmra.mrb[26].mxu0 %vm683_vm6, %v2255_v29 }
 0x1ca   : > { %3959 = vmatmul.mubr.msk.f32.gmra.mrb[28].mxu1 %vm683_vm6, %v5656_v22  ;;  %4178 = vmatprep.mubr.msk.f32.mxu0 %vm4560_vm0, %v6307_v6 }
 0x1cd   : > { %4179 = vmatmul.mubr.msk.f32.gmra.mrb[28].mxu0 %vm683_vm6, %v2256_v4 }
 0x249   : > { %v1570_v37 = vpop.f32.mrb[0].mxu1 }
 0x24a   : > { %v3863_v11 = vpop.f32.mrb[1].mxu1 }
 0x24d   : > { %v1575_v35 = vpop.f32.mrb[2].mxu1 }
 0x24e   : > { %v3866_v63 = vpop.f32.mrb[3].mxu1 }
 0x251   : > { %v1580_v1 = vpop.f32.mrb[4].mxu1 }
 0x252   : > { %v3869_v32 = vpop.f32.mrb[5].mxu1 }
 0x255   : > { %v1585_v17 = vpop.f32.mrb[6].mxu1 }
 0x256   : > { %v3872_v14 = vpop.f32.mrb[7].mxu1 }
 0x259   : > { %v1590_v7 = vpop.f32.mrb[8].mxu1 }
 0x25a   : > { %v3875_v45 = vpop.f32.mrb[9].mxu1 }
 0x25d   : > { %v1595_v22 = vpop.f32.mrb[10].mxu1 }
 0x25e   : > { %v3878_v26 = vpop.f32.mrb[11].mxu1 }
 0x261   : > { %v1600_v6 = vpop.f32.mrb[12].mxu1 }
 0x262   : > { %v3881_v43 = vpop.f32.mrb[13].mxu1 }
 0x265   : > { %v1605_v41 = vpop.f32.mrb[14].mxu1 }
 0x266   : > { %v3884_v57 = vpop.f32.mrb[15].mxu1 }
 0x268   : > { %v2699_v49 = vpop.f32.mrb[0].mxu0 }
 0x269   : > { %v4241_v0 = vadd.f32 %v2699_v49, %v1570_v37  ;;  %v4138_v51 = vpop.f32.mrb[1].mxu0 }
 0x26b   : > { %v2788_v33 = vmax.f32 %v4241_v0, 0.0 }
 0x26c   : > { %v2704_v28 = vpop.f32.mrb[2].mxu0 }
 0x26d   : > { %2804 = vst.msk [vmem:[%s6194_s12] sm:$0xff] %vm2803_vm7, %v2788_v33  ;;  %v4242_v54 = vadd.f32 %v2704_v28, %v1575_v35  ;;  %v4141_v12 = vpop.f32.mrb[3].mxu0  ;;  %v3110_v31 = vmul.f32 %v2788_v33, %v2788_v33  ;;  %v3075_v36 = vsel %vm2803_vm7, %v2788_v33, 0.0 }
 0x26f   : > { %v2789_v52 = vmax.f32 %v4242_v54, 0.0  ;;  %v3125_v60 = vsel %vm2803_vm7, %v3110_v31, 0.0 }
 0x270   : > { %v2709_v48 = vpop.f32.mrb[4].mxu0 }
 0x271   : > { %2805 = vst.msk [vmem:[%s6194_s12 + $0x8] sm:$0xff] %vm2803_vm7, %v2789_v52  ;;  %v4243_v42 = vadd.f32 %v2709_v48, %v1580_v1  ;;  %v4144_v9 = vpop.f32.mrb[5].mxu0 }
 0x273   : > { %v2790_v53 = vmax.f32 %v4243_v42, 0.0 }
 0x274   : > { %v2714_v38 = vpop.f32.mrb[6].mxu0 }
 0x275   : > { %2806 = vst.msk [vmem:[%s6194_s12 + $0x10] sm:$0xff] %vm2803_vm7, %v2790_v53  ;;  %v3078_v25 = vsel %vm2803_vm7, %v2790_v53, 0.0  ;;  %v3112_v10 = vmul.f32 %v2790_v53, %v2790_v53  ;;  %v4244_v55 = vadd.f32 %v2714_v38, %v1585_v17  ;;  %v4147_v44 = vpop.f32.mrb[7].mxu0 }
 0x276   : > { %v3079_v23 = vadd.f32 %v3078_v25, %v3075_v36 }
 0x277   : > { %v3128_v58 = vsel %vm2803_vm7, %v3112_v10, 0.0  ;;  %v2791_v47 = vmax.f32 %v4244_v55, 0.0 }
 0x278   : > { %v3129_v62 = vadd.f32 %v3128_v58, %v3125_v60  ;;  %v2719_v2 = vpop.f32.mrb[8].mxu0 }
 0x279   : > { %2807 = vst.msk [vmem:[%s6194_s12 + $0x18] sm:$0xff] %vm2803_vm7, %v2791_v47  ;;  %v4245_v56 = vadd.f32 %v2719_v2, %v1590_v7  ;;  %v4150_v27 = vpop.f32.mrb[9].mxu0 }
 0x27b   : > { %v2792_v61 = vmax.f32 %v4245_v56, 0.0 }
 0x27c   : > { %v2724_v21 = vpop.f32.mrb[10].mxu0 }
 0x27d   : > { %2808 = vst.msk [vmem:[%s6194_s12 + $0x20] sm:$0xff] %vm2803_vm7, %v2792_v61  ;;  %v3082_v19 = vsel %vm2803_vm7, %v2792_v61, 0.0  ;;  %v3114_v5 = vmul.f32 %v2792_v61, %v2792_v61  ;;  %v4246_v15 = vadd.f32 %v2724_v21, %v1595_v22  ;;  %v4153_v18 = vpop.f32.mrb[11].mxu0 }
 0x27e   : > { %v3083_v16 = vadd.f32 %v3082_v19, %v3079_v23 }
 0x27f   : > { %v3132_v24 = vsel %vm2803_vm7, %v3114_v5, 0.0  ;;  %v2793_v46 = vmax.f32 %v4246_v15, 0.0 }
 0x280   : > { %v3133_v59 = vadd.f32 %v3132_v24, %v3129_v62  ;;  %v2729_v39 = vpop.f32.mrb[12].mxu0 }
 0x281   : > { %2809 = vst.msk [vmem:[%s6194_s12 + $0x28] sm:$0xff] %vm2803_vm7, %v2793_v46  ;;  %v4247_v30 = vadd.f32 %v2729_v39, %v1600_v6  ;;  %v4156_v13 = vpop.f32.mrb[13].mxu0 }
 0x283   : > { %v2794_v8 = vmax.f32 %v4247_v30, 0.0 }
 0x284   : > { %v2734_v34 = vpop.f32.mrb[14].mxu0 }
 0x285   : > { %2810 = vst.msk [vmem:[%s6194_s12 + $0x30] sm:$0xff] %vm2803_vm7, %v2794_v8  ;;  %v3086_v3 = vsel %vm2803_vm7, %v2794_v8, 0.0  ;;  %v3116_v29 = vmul.f32 %v2794_v8, %v2794_v8  ;;  %v4248_v50 = vadd.f32 %v2734_v34, %v1605_v41  ;;  %v4159_v20 = vpop.f32.mrb[15].mxu0  ;;  %v1774_v40 = vpop.f32.mrb[16].mxu1 }
 0x286   : > { %v3087_v4 = vadd.f32 %v3086_v3, %v3083_v16  ;;  %v3942_v37 = vpop.f32.mrb[17].mxu1 }
 0x287   : > { %v3136_v11 = vsel %vm2803_vm7, %v3116_v29, 0.0  ;;  %v2795_v35 = vmax.f32 %v4248_v50, 0.0 }
 0x288   : > { %v3137_v63 = vadd.f32 %v3136_v11, %v3133_v59  ;;  %v2739_v1 = vpop.f32.mrb[16].mxu0 }
 0x289   : > { %2811 = vst.msk [vmem:[%s6194_s12 + $0x38] sm:$0xff] %vm2803_vm7, %v2795_v35  ;;  %v4249_v32 = vadd.f32 %v2739_v1, %v1774_v40  ;;  %v4162_v17 = vpop.f32.mrb[17].mxu0  ;;  %v1779_v14 = vpop.f32.mrb[18].mxu1 }
 0x28a   : > { %v3945_v7 = vpop.f32.mrb[19].mxu1 }
 0x28b   : > { %v2796_v45 = vmax.f32 %v4249_v32, 0.0 }
 0x28c   : > { %v2744_v22 = vpop.f32.mrb[18].mxu0 }
 0x28d   : > { %2812 = vst.msk [vmem:[%s6194_s12 + $0x40] sm:$0xff] %vm2803_vm7, %v2796_v45  ;;  %v3090_v26 = vsel %vm2803_vm7, %v2796_v45, 0.0  ;;  %v3118_v6 = vmul.f32 %v2796_v45, %v2796_v45  ;;  %v4250_v43 = vadd.f32 %v2744_v22, %v1779_v14  ;;  %v4165_v41 = vpop.f32.mrb[19].mxu0  ;;  %v1784_v57 = vpop.f32.mrb[20].mxu1 }
 0x28e   : > { %v3091_v49 = vadd.f32 %v3090_v26, %v3087_v4  ;;  %v3948_v0 = vpop.f32.mrb[21].mxu1 }
 0x28f   : > { %v3140_v51 = vsel %vm2803_vm7, %v3118_v6, 0.0  ;;  %v2797_v33 = vmax.f32 %v4250_v43, 0.0 }
 0x290   : > { %v3141_v28 = vadd.f32 %v3140_v51, %v3137_v63  ;;  %v2749_v54 = vpop.f32.mrb[20].mxu0 }
 0x291   : > { %2813 = vst.msk [vmem:[%s6194_s12 + $0x48] sm:$0xff] %vm2803_vm7, %v2797_v33  ;;  %v4251_v12 = vadd.f32 %v2749_v54, %v1784_v57  ;;  %v4168_v52 = vpop.f32.mrb[21].mxu0  ;;  %v1789_v48 = vpop.f32.mrb[22].mxu1 }
 0x292   : > { %v3951_v42 = vpop.f32.mrb[23].mxu1 }
 0x293   : > { %v2798_v9 = vmax.f32 %v4251_v12, 0.0 }
 0x294   : > { %v2754_v31 = vpop.f32.mrb[22].mxu0 }
 0x295   : > { %2814 = vst.msk [vmem:[%s6194_s12 + $0x50] sm:$0xff] %vm2803_vm7, %v2798_v9  ;;  %v3094_v53 = vsel %vm2803_vm7, %v2798_v9, 0.0  ;;  %v3120_v38 = vmul.f32 %v2798_v9, %v2798_v9  ;;  %v4252_v36 = vadd.f32 %v2754_v31, %v1789_v48  ;;  %v4171_v25 = vpop.f32.mrb[23].mxu0  ;;  %v1794_v10 = vpop.f32.mrb[24].mxu1 }
 0x296   : > { %v3095_v55 = vadd.f32 %v3094_v53, %v3091_v49  ;;  %v3954_v44 = vpop.f32.mrb[25].mxu1 }
 0x297   : > { %v3144_v23 = vsel %vm2803_vm7, %v3120_v38, 0.0  ;;  %v2799_v60 = vmax.f32 %v4252_v36, 0.0 }
 0x298   : > { %v3145_v58 = vadd.f32 %v3144_v23, %v3141_v28  ;;  %v2759_v47 = vpop.f32.mrb[24].mxu0 }
 0x299   : > { %2815 = vst.msk [vmem:[%s6194_s12 + $0x58] sm:$0xff] %vm2803_vm7, %v2799_v60  ;;  %v4253_v62 = vadd.f32 %v2759_v47, %v1794_v10  ;;  %v4174_v2 = vpop.f32.mrb[25].mxu0  ;;  %v1799_v56 = vpop.f32.mrb[26].mxu1 }
 0x29a   : > { %v3957_v27 = vpop.f32.mrb[27].mxu1 }
 0x29b   : > { %v2800_v61 = vmax.f32 %v4253_v62, 0.0 }
 0x29c   : > { %v2764_v21 = vpop.f32.mrb[26].mxu0 }
 0x29d   : > { %2816 = vst.msk [vmem:[%s6194_s12 + $0x60] sm:$0xff] %vm2803_vm7, %v2800_v61  ;;  %v3098_v19 = vsel %vm2803_vm7, %v2800_v61, 0.0  ;;  %v3122_v5 = vmul.f32 %v2800_v61, %v2800_v61  ;;  %v4254_v15 = vadd.f32 %v2764_v21, %v1799_v56  ;;  %v4177_v18 = vpop.f32.mrb[27].mxu0  ;;  %v1804_v16 = vpop.f32.mrb[28].mxu1 }
 0x29e   : > { %v3099_v24 = vadd.f32 %v3098_v19, %v3095_v55  ;;  %v3960_v46 = vpop.f32.mrb[29].mxu1 }
 0x29f   : > { %v3148_v59 = vsel %vm2803_vm7, %v3122_v5, 0.0  ;;  %v2801_v39 = vmax.f32 %v4254_v15, 0.0 }
 0x2a0   : > { %v3149_v30 = vadd.f32 %v3148_v59, %v3145_v58  ;;  %v2769_v13 = vpop.f32.mrb[28].mxu0 }
 0x2a1   : > { %2817 = vst.msk [vmem:[%s6194_s12 + $0x68] sm:$0xff] %vm2803_vm7, %v2801_v39  ;;  %v4255_v8 = vadd.f32 %v2769_v13, %v1804_v16  ;;  %v4180_v34 = vpop.f32.mrb[29].mxu0 }
 0x2a3   : > { %v2802_v3 = vmax.f32 %v4255_v8, 0.0 }
 0x2a5   : > { %2818 = vst.msk [vmem:[%s6194_s12 + $0x70] sm:$0xff] %vm2803_vm7, %v2802_v3  ;;  %v3102_v29 = vsel %vm2803_vm7, %v2802_v3, 0.0  ;;  %v3124_v50 = vmul.f32 %v2802_v3, %v2802_v3 }
 0x2a6   : > { %v3103_v20 = vadd.f32 %v3102_v29, %v3099_v24 }
 0x2a7   : > { %v3152_v40 = vsel %vm2803_vm7, %v3124_v50, 0.0 }
 0x2a8   : > { %v3104_v4 = vrot.slane %v3103_v20, 4  ;;  %v3153_v37 = vadd.f32 %v3152_v40, %v3149_v30 }
 0x2aa   : > { %v3105_v11 = vadd.f32 %v3104_v4, %v3103_v20  ;;  %v3154_v35 = vrot.slane %v3153_v37, 4 }
 0x2ac   : > { %v3106_v63 = vrot.slane %v3105_v11, 2  ;;  %v3155_v1 = vadd.f32 %v3154_v35, %v3153_v37 }
 0x2ae   : > { %v3107_v32 = vadd.f32 %v3106_v63, %v3105_v11  ;;  %v3156_v17 = vrot.slane %v3155_v1, 2 }
 0x2b0   : > { %v3108_v14 = vrot.slane %v3107_v32, 1  ;;  %v3157_v7 = vadd.f32 %v3156_v17, %v3155_v1 }
 0x2b2   : > { %v3158_v45 = vrot.slane %v3157_v7, 1  ;;  %v3109_v22 = vadd.f32 %v3108_v14, %v3107_v32 }
 0x2b4   : > { %v3159_v26 = vadd.f32 %v3158_v45, %v3157_v7 }
 0x2b6   : > { %v3161_v6 = vsel %vm3160_vm8, %v3109_v22, %v3159_v26 }
 0x2b7   : > { %v3163_v43 = vsel %vm3162_vm9, %v3161_v6, 0.0 }
 0x2b8   : > { %3164 = vst.msk [vmem:[%s363_s9] sm:$0xff] %vm2803_vm7, %v3163_v43 }
 0x2b9 PF: > { %s16_s22 = sadd.s32 1, %s4557_s22   ;;  %s6335_s18 = smov %s4549_s20 }
 0x2ba   : > { %p13_p10 = scmp.ge.s32.totalorder %s16_s22, 18   ;;  %s6336_s19 = smov %s4553_s21 }
 0x2bb   : > { %s6337_s20 = smov %s6340_s23  ;;  %s6338_s21 = smov %s6344_s24 }
 0x2bc   :  { %15 = sbr.rel (!%p13_p10) target bundleno = 3 (0x3), region = 84 }

// kernel: module_a_forward.9
= control target key start
LH: loop header
LB: loop body
LE: loop exit
PB: predicated region body
PF: predicated region fallthrough
CT: control target
= control target key end

     0   :  { %s2478_s21 = smov 0   ;;  %s3306_s0 = inlined_call_operand.vmem [shape: f32[1024,8], index: 0, kind: input, shape index: {}]   ;;  %s3307_s1 = inlined_call_operand.vmem [shape: f32[1024,8], index: 1, kind: input, shape index: {}]   ;;  %s3308_s2 = inlined_call_operand.vmem [shape: f32[1024,16], index: 2, kind: input, shape index: {}]   ;;  %s3309_s3 = inlined_call_operand.vmem [shape: f32[1024,4], index: 3, kind: input, shape index: {}]   ;;  %s3310_s4 = inlined_call_operand.vmem [shape: f32[32,4], index: 4, kind: input, shape index: {}]   ;;  %s3311_s5 = inlined_call_operand.vmem [shape: f32[1,4], index: 5, kind: input, shape index: {}]   ;;  %s3312_s6 = inlined_call_operand.vmem [shape: f32[1024,4], index: 6, kind: output, shape index: {}]  }
   0x1 LB: > { %s2157_s22 = sadd.s32 4294967295, %s2439_s21   ;;  %p2161_p0 = scmp.ge.s32.totalorder %s2439_s21, 1  ;;  %s2439_s21 = sphi %s2478_s21, %s16_s21  }
   0x2   : > { %p246_p1 = scmp.lt.s32.totalorder %s2439_s21, 3 }
   0x4   : > { %p247_p2 = pnand %p2161_p0, %p246_p1 }
   0x5   : > { %s2162_s23 = sshll.u32 (!%p247_p2), %s2157_s22, 6  ;;  %v1155_v0 = vld [vmem:[%s3310_s4] sm:$0xff] (!%p247_p2)  ;;  %v1156_v1 = vld [vmem:[%s3310_s4 + $0x8] sm:$0xff] (!%p247_p2)  ;;  %v1157_v3 = vld [vmem:[%s3310_s4 + $0x10] sm:$0xff] (!%p247_p2)  ;;  %s2441_s12 = smov (!%p247_p2), 8   ;;  %vm1025_vm0 = vcmask (!%p247_p2), 64512  }
   0x6   : > { %250 = sbr.rel (%p247_p2) target bundleno = 605 (0x25d), region = 44  ;;  %p292_p3 = scmp.lt.s32.totalorder (!%p247_p2), %s2162_s23, 127  ;;  %v2411_v2 = vpack.c.bf16 (!%p247_p2), %v1156_v1, %v1155_v0  ;;  %v1158_v4 = vld [vmem:[%s3310_s4 + $0x18] sm:$0xff] (!%p247_p2)  ;;  %vm1090_vm1 = vcmask (!%p247_p2), 130048   ;;  %vm1159_vm2 = vcmask (!%p247_p2), 261120   ;;  %vm2000_vm3 = vcmask (!%p247_p2), 31744  }
   0x7   : > { %v2415_v5 = vpack.c.bf16 (!%p247_p2), %v1158_v4, %v1157_v3  ;;  %s2442_s16 = smov (!%p247_p2), 16  }
   0x8   : > { %2412 = vmatprep.subr.bf16.mxu0 (!%p247_p2), %v2411_v2  ;;  %2419 = vmatprep.subr.bf16.mxu1 (!%p247_p2), %v2411_v2 }
   0x9   : > { %2414 = vmatpush3.bf16.msra.mxu0 (!%p247_p2), %v2411_v2  ;;  %2421 = vmatpush3.bf16.msra.mxu1 (!%p247_p2), %v2411_v2 }
   0xa   : > { %2416 = vmatprep.subr.bf16.mxu0 (!%p247_p2), %v2415_v5  ;;  %2420 = vmatprep.subr.bf16.mxu1 (!%p247_p2), %v2415_v5 }
   0xd   : > { %s3314_s23 = smov (!%p292_p3, %s2162_s23), 127  ;;  %2418 = vmatpush3.bf16.msra.mxu0 %v2415_v5  ;;  %2422 = vmatpush3.bf16.msra.mxu1 %v2415_v5 }
   0xe   : > { %s2498_s8 = sshll.u32 %s3314_s23, 3 }
   0xf   : > { %s2504_s11 = scalar_lea.vmem %s3307_s1, %s2498_s8  ;;  %s2516_s15 = scalar_lea.vmem %s3308_s2, %s2498_s8 }
  0x10   : > { %v386_v6 = vld [vmem:[%s2504_s11 + $0x8] sm:$0xff]  ;;  %v385_v7 = vld [vmem:[%s2504_s11] sm:$0xff]  ;;  %v419_v14 = vld [vmem:[%s2504_s11 + $0x110] sm:$0xff]  ;;  %s2634_s19 = scalar_lea.vmem %s3306_s0, %s2498_s8  ;;  %s3000_s23 = scalar_lea.vmem %s3309_s3, %s2498_s8 }
  0x11   : > { %579 = vrot.lane.b32.xlu1 %v386_v6, %s2441_s12  ;;  %577 = vrot.lane.b32.xlu0 %v385_v7, %s2441_s12  ;;  %v418_v8 = vld [vmem:[%s2504_s11 + $0x108] sm:$0xff]  ;;  %v417_v9 = vld [vmem:[%s2504_s11 + $0x100] sm:$0xff]  ;;  %s3021_s28 = scalar_lea.vmem %s3312_s6, %s2498_s8 }
  0x12   : > { %v481_v10 = vld [vmem:[%s2516_s15 + $0x100] sm:$0xff]  ;;  %v482_v12 = vld [vmem:[%s2516_s15 + $0x108] sm:$0xff]  ;;  %v387_v15 = vld [vmem:[%s2504_s11 + $0x10] sm:$0xff] }
  0x13   : > { %v449_v11 = vld [vmem:[%s2516_s15] sm:$0xff]  ;;  %v450_v13 = vld [vmem:[%s2516_s15 + $0x8] sm:$0xff]  ;;  %v420_v16 = vld [vmem:[%s2504_s11 + $0x118] sm:$0xff] }
  0x14   : > { %v388_v17 = vld [vmem:[%s2504_s11 + $0x18] sm:$0xff]  ;;  %v483_v18 = vld [vmem:[%s2516_s15 + $0x110] sm:$0xff]  ;;  %v421_v22 = vld [vmem:[%s2504_s11 + $0x120] sm:$0xff] }
  0x15   : > { %643 = vrot.lane.b32.xlu1 %v418_v8, %s2441_s12  ;;  %641 = vrot.lane.b32.xlu0 %v417_v9, %s2441_s12  ;;  %v451_v19 = vld [vmem:[%s2516_s15 + $0x10] sm:$0xff]  ;;  %v484_v20 = vld [vmem:[%s2516_s15 + $0x118] sm:$0xff] }
  0x16   : > { %v452_v21 = vld [vmem:[%s2516_s15 + $0x18] sm:$0xff]  ;;  %v389_v23 = vld [vmem:[%s2504_s11 + $0x20] sm:$0xff]  ;;  %v422_v24 = vld [vmem:[%s2504_s11 + $0x128] sm:$0xff] }
  0x17   : > { %v390_v25 = vld [vmem:[%s2504_s11 + $0x28] sm:$0xff]  ;;  %v485_v26 = vld [vmem:[%s2516_s15 + $0x120] sm:$0xff]  ;;  %v423_v30 = vld [vmem:[%s2504_s11 + $0x130] sm:$0xff] }
  0x18   : > { %v453_v27 = vld [vmem:[%s2516_s15 + $0x20] sm:$0xff]  ;;  %v486_v28 = vld [vmem:[%s2516_s15 + $0x128] sm:$0xff]  ;;  %v391_v31 = vld [vmem:[%s2504_s11 + $0x30] sm:$0xff] }
  0x19   : > { %897 = vrot.lane.b32.xlu1 %v481_v10, %s2442_s16  ;;  %833 = vrot.lane.b32.xlu0 %v449_v11, %s2442_s16  ;;  %v454_v29 = vld [vmem:[%s2516_s15 + $0x28] sm:$0xff]  ;;  %v424_v32 = vld [vmem:[%s2504_s11 + $0x138] sm:$0xff] }
  0x1a   : > { %v392_v33 = vld [vmem:[%s2504_s11 + $0x38] sm:$0xff]  ;;  %v487_v34 = vld [vmem:[%s2516_s15 + $0x130] sm:$0xff]  ;;  %v425_v38 = vld [vmem:[%s2504_s11 + $0x140] sm:$0xff] }
  0x1b   : > { %v455_v35 = vld [vmem:[%s2516_s15 + $0x30] sm:$0xff]  ;;  %v488_v36 = vld [vmem:[%s2516_s15 + $0x138] sm:$0xff]  ;;  %v393_v39 = vld [vmem:[%s2504_s11 + $0x40] sm:$0xff] }
  0x1c   : > { %v456_v37 = vld [vmem:[%s2516_s15 + $0x38] sm:$0xff]  ;;  %v426_v40 = vld [vmem:[%s2504_s11 + $0x148] sm:$0xff]  ;;  %v489_v42 = vld [vmem:[%s2516_s15 + $0x140] sm:$0xff] }
  0x1d   : > { %899 = vrot.lane.b32.xlu1 %v482_v12, %s2442_s16  ;;  %835 = vrot.lane.b32.xlu0 %v450_v13, %s2442_s16  ;;  %v394_v41 = vld [vmem:[%s2504_s11 + $0x48] sm:$0xff]  ;;  %v457_v43 = vld [vmem:[%s2516_s15 + $0x40] sm:$0xff] }
  0x1e   : > { %v490_v44 = vld [vmem:[%s2516_s15 + $0x148] sm:$0xff]  ;;  %v427_v46 = vld [vmem:[%s2504_s11 + $0x150] sm:$0xff]  ;;  %v428_v48 = vld [vmem:[%s2504_s11 + $0x158] sm:$0xff] }
  0x1f   : > { %v458_v45 = vld [vmem:[%s2516_s15 + $0x48] sm:$0xff]  ;;  %v395_v47 = vld [vmem:[%s2504_s11 + $0x50] sm:$0xff]  ;;  %v396_v49 = vld [vmem:[%s2504_s11 + $0x58] sm:$0xff] }
  0x20   : > { %v491_v50 = vld [vmem:[%s2516_s15 + $0x150] sm:$0xff]  ;;  %v492_v52 = vld [vmem:[%s2516_s15 + $0x158] sm:$0xff]  ;;  %v429_v54 = vld [vmem:[%s2504_s11 + $0x160] sm:$0xff] }
  0x21   : > { %645 = vrot.lane.b32.xlu1 %v419_v14, %s2441_s12  ;;  %581 = vrot.lane.b32.xlu0 %v387_v15, %s2441_s12  ;;  %v459_v51 = vld [vmem:[%s2516_s15 + $0x50] sm:$0xff]  ;;  %v460_v53 = vld [vmem:[%s2516_s15 + $0x58] sm:$0xff] }
  0x22   : > { %v397_v55 = vld [vmem:[%s2504_s11 + $0x60] sm:$0xff]  ;;  %v430_v56 = vld [vmem:[%s2504_s11 + $0x168] sm:$0xff]  ;;  %v431_v62 = vld [vmem:[%s2504_s11 + $0x170] sm:$0xff] }
  0x23   : > { %v398_v57 = vld [vmem:[%s2504_s11 + $0x68] sm:$0xff]  ;;  %v493_v58 = vld [vmem:[%s2516_s15 + $0x160] sm:$0xff]  ;;  %v399_v63 = vld [vmem:[%s2504_s11 + $0x70] sm:$0xff] }
  0x24   : > { %v461_v59 = vld [vmem:[%s2516_s15 + $0x60] sm:$0xff]  ;;  %v494_v60 = vld [vmem:[%s2516_s15 + $0x168] sm:$0xff]  ;;  %v432_v0 = vld [vmem:[%s2504_s11 + $0x178] sm:$0xff] }
  0x25   : > { %647 = vrot.lane.b32.xlu1 %v420_v16, %s2441_s12  ;;  %583 = vrot.lane.b32.xlu0 %v388_v17, %s2441_s12  ;;  %v462_v61 = vld [vmem:[%s2516_s15 + $0x68] sm:$0xff]  ;;  %v400_v1 = vld [vmem:[%s2504_s11 + $0x78] sm:$0xff] }
  0x26   : > { %v495_v4 = vld [vmem:[%s2516_s15 + $0x170] sm:$0xff]  ;;  %v321_v8 = vld [vmem:[%s2634_s19] sm:$0xff]  ;;  %v496_v10 = vld [vmem:[%s2516_s15 + $0x178] sm:$0xff] }
  0x27   : > { %v463_v5 = vld [vmem:[%s2516_s15 + $0x70] sm:$0xff]  ;;  %v353_v9 = vld [vmem:[%s2634_s19 + $0x100] sm:$0xff]  ;;  %v464_v11 = vld [vmem:[%s2516_s15 + $0x78] sm:$0xff] }
  0x28   : > { %v322_v16 = vld [vmem:[%s2634_s19 + $0x8] sm:$0xff] }
  0x29   : > { %901 = vrot.lane.b32.xlu1 %v483_v18, %s2442_s16  ;;  %837 = vrot.lane.b32.xlu0 %v451_v19, %s2442_s16  ;;  %v354_v17 = vld [vmem:[%s2634_s19 + $0x108] sm:$0xff] }
  0x2d   : > { %903 = vrot.lane.b32.xlu1 %v484_v20, %s2442_s16  ;;  %839 = vrot.lane.b32.xlu0 %v452_v21, %s2442_s16  ;;  %v433_v20 = vld [vmem:[%s2504_s11 + $0x180] sm:$0xff] }
  0x2e   : > { %v401_v21 = vld [vmem:[%s2504_s11 + $0x80] sm:$0xff] }
  0x31   : > { %649 = vrot.lane.b32.xlu1 %v421_v22, %s2441_s12  ;;  %585 = vrot.lane.b32.xlu0 %v389_v23, %s2441_s12 }
  0x35   : > { %651 = vrot.lane.b32.xlu1 %v422_v24, %s2441_s12  ;;  %587 = vrot.lane.b32.xlu0 %v390_v25, %s2441_s12 }
  0x39   : > { %905 = vrot.lane.b32.xlu1 %v485_v26, %s2442_s16  ;;  %841 = vrot.lane.b32.xlu0 %v453_v27, %s2442_s16 }
  0x3d   : > { %907 = vrot.lane.b32.xlu1 %v486_v28, %s2442_s16  ;;  %843 = vrot.lane.b32.xlu0 %v454_v29, %s2442_s16  ;;  %v434_v28 = vld [vmem:[%s2504_s11 + $0x188] sm:$0xff] }
  0x3e   : > { %v402_v29 = vld [vmem:[%s2504_s11 + $0x88] sm:$0xff] }
  0x41   : > { %653 = vrot.lane.b32.xlu1 %v423_v30, %s2441_s12  ;;  %589 = vrot.lane.b32.xlu0 %v391_v31, %s2441_s12 }
  0x45   : > { %655 = vrot.lane.b32.xlu1 %v424_v32, %s2441_s12  ;;  %591 = vrot.lane.b32.xlu0 %v392_v33, %s2441_s12  ;;  %v497_v32 = vld [vmem:[%s2516_s15 + $0x180] sm:$0xff] }
  0x46   : > { %v465_v33 = vld [vmem:[%s2516_s15 + $0x80] sm:$0xff] }
  0x49   : > { %909 = vrot.lane.b32.xlu1 %v487_v34, %s2442_s16  ;;  %845 = vrot.lane.b32.xlu0 %v455_v35, %s2442_s16 }
  0x4d   : > { %911 = vrot.lane.b32.xlu1 %v488_v36, %s2442_s16  ;;  %847 = vrot.lane.b32.xlu0 %v456_v37, %s2442_s16  ;;  %v355_v36 = vld [vmem:[%s2634_s19 + $0x110] sm:$0xff] }
  0x4e   : > { %v323_v37 = vld [vmem:[%s2634_s19 + $0x10] sm:$0xff] }
  0x51   : > { %657 = vrot.lane.b32.xlu1 %v425_v38, %s2441_s12  ;;  %593 = vrot.lane.b32.xlu0 %v393_v39, %s2441_s12  ;;  %v498_v38 = vld [vmem:[%s2516_s15 + $0x188] sm:$0xff] }
  0x52   : > { %v466_v39 = vld [vmem:[%s2516_s15 + $0x88] sm:$0xff] }
  0x55   : > { %659 = vrot.lane.b32.xlu1 %v426_v40, %s2441_s12  ;;  %595 = vrot.lane.b32.xlu0 %v394_v41, %s2441_s12 }
  0x59   : > { %913 = vrot.lane.b32.xlu1 %v489_v42, %s2442_s16  ;;  %849 = vrot.lane.b32.xlu0 %v457_v43, %s2442_s16 }
  0x5d   : > { %915 = vrot.lane.b32.xlu1 %v490_v44, %s2442_s16  ;;  %851 = vrot.lane.b32.xlu0 %v458_v45, %s2442_s16  ;;  %v356_v44 = vld [vmem:[%s2634_s19 + $0x118] sm:$0xff] }
  0x5e   : > { %v324_v45 = vld [vmem:[%s2634_s19 + $0x18] sm:$0xff] }
  0x61   : > { %661 = vrot.lane.b32.xlu1 %v427_v46, %s2441_s12  ;;  %597 = vrot.lane.b32.xlu0 %v395_v47, %s2441_s12 }
  0x65   : > { %663 = vrot.lane.b32.xlu1 %v428_v48, %s2441_s12  ;;  %599 = vrot.lane.b32.xlu0 %v396_v49, %s2441_s12  ;;  %v435_v48 = vld [vmem:[%s2504_s11 + $0x190] sm:$0xff] }
  0x66   : > { %v403_v49 = vld [vmem:[%s2504_s11 + $0x90] sm:$0xff] }
  0x69   : > { %917 = vrot.lane.b32.xlu1 %v491_v50, %s2442_s16  ;;  %853 = vrot.lane.b32.xlu0 %v459_v51, %s2442_s16 }
  0x6d   : > { %919 = vrot.lane.b32.xlu1 %v492_v52, %s2442_s16  ;;  %855 = vrot.lane.b32.xlu0 %v460_v53, %s2442_s16 }
  0x71   : > { %665 = vrot.lane.b32.xlu1 %v429_v54, %s2441_s12  ;;  %601 = vrot.lane.b32.xlu0 %v397_v55, %s2441_s12 }
  0x75   : > { %667 = vrot.lane.b32.xlu1 %v430_v56, %s2441_s12  ;;  %603 = vrot.lane.b32.xlu0 %v398_v57, %s2441_s12  ;;  %v436_v56 = vld [vmem:[%s2504_s11 + $0x198] sm:$0xff] }
  0x76   : > { %v404_v57 = vld [vmem:[%s2504_s11 + $0x98] sm:$0xff] }
  0x79   : > { %921 = vrot.lane.b32.xlu1 %v493_v58, %s2442_s16  ;;  %857 = vrot.lane.b32.xlu0 %v461_v59, %s2442_s16 }
  0x7d   : > { %923 = vrot.lane.b32.xlu1 %v494_v60, %s2442_s16  ;;  %859 = vrot.lane.b32.xlu0 %v462_v61, %s2442_s16  ;;  %v499_v60 = vld [vmem:[%s2516_s15 + $0x190] sm:$0xff] }
  0x7e   : > { %v467_v61 = vld [vmem:[%s2516_s15 + $0x90] sm:$0xff] }
  0x81   : > { %669 = vrot.lane.b32.xlu1 %v431_v62, %s2441_s12  ;;  %605 = vrot.lane.b32.xlu0 %v399_v63, %s2441_s12 }
  0x83   : > { %v580_v2 = vpop.permute.xlu1 %579  ;;  %v578_v3 = vpop.permute.xlu0 %577 }
  0x84   : > { %v1026_v12 = vsel %vm1025_vm0, %v321_v8, %v578_v3  ;;  %v1027_v22 = vsel %vm1025_vm0, %v322_v16, %v580_v2  ;;  %v500_v2 = vld [vmem:[%s2516_s15 + $0x198] sm:$0xff]  ;;  %v358_v8 = vld [vmem:[%s2634_s19 + $0x128] sm:$0xff] }
  0x85   : > { %671 = vrot.lane.b32.xlu1 %v432_v0, %s2441_s12  ;;  %607 = vrot.lane.b32.xlu0 %v400_v1, %s2441_s12  ;;  %v357_v0 = vld [vmem:[%s2634_s19 + $0x120] sm:$0xff]  ;;  %v468_v3 = vld [vmem:[%s2516_s15 + $0x98] sm:$0xff] }
  0x86   : > { %v325_v1 = vld [vmem:[%s2634_s19 + $0x20] sm:$0xff] }
  0x87   : > { %v644_v6 = vpop.permute.xlu1 %643  ;;  %v642_v7 = vpop.permute.xlu0 %641 }
  0x88   : > { %v1058_v13 = vsel %vm1025_vm0, %v353_v9, %v642_v7  ;;  %v1059_v23 = vsel %vm1025_vm0, %v354_v17, %v644_v6  ;;  %v326_v9 = vld [vmem:[%s2634_s19 + $0x28] sm:$0xff] }
  0x89   : > { %925 = vrot.lane.b32.xlu1 %v495_v4, %s2442_s16  ;;  %861 = vrot.lane.b32.xlu0 %v463_v5, %s2442_s16 }
  0x8b   : > { %v898_v14 = vpop.permute.xlu1 %897  ;;  %v834_v15 = vpop.permute.xlu0 %833 }
  0x8c   : > { %v1091_v18 = vsel %vm1090_vm1, %v1026_v12, %v834_v15  ;;  %v1123_v19 = vsel %vm1090_vm1, %v1058_v13, %v898_v14  ;;  %v437_v12 = vld [vmem:[%s2504_s11 + $0x1a0] sm:$0xff] }
  0x8d   : > { %927 = vrot.lane.b32.xlu1 %v496_v10, %s2442_s16  ;;  %863 = vrot.lane.b32.xlu0 %v464_v11, %s2442_s16  ;;  %v405_v13 = vld [vmem:[%s2504_s11 + $0xa0] sm:$0xff] }
  0x8e   : > { %2315 = vmatprep.mubr.msk.f32.mxu0 %vm1159_vm2, %v1091_v18  ;;  %2363 = vmatprep.mubr.msk.f32.mxu1 %vm1159_vm2, %v1123_v19 }
  0x8f   : > { %v900_v24 = vpop.permute.xlu1 %899  ;;  %v836_v25 = vpop.permute.xlu0 %835 }
  0x90   : > { %v1124_v26 = vsel %vm1090_vm1, %v1059_v23, %v900_v24  ;;  %v1092_v27 = vsel %vm1090_vm1, %v1027_v22, %v836_v25  ;;  %v501_v24 = vld [vmem:[%s2516_s15 + $0x1a0] sm:$0xff] }
  0x91   : > { %673 = vrot.lane.b32.xlu1 %v433_v20, %s2441_s12  ;;  %609 = vrot.lane.b32.xlu0 %v401_v21, %s2441_s12  ;;  %v438_v20 = vld [vmem:[%s2504_s11 + $0x1a8] sm:$0xff]  ;;  %v469_v25 = vld [vmem:[%s2516_s15 + $0xa0] sm:$0xff] }
  0x92   : > { %2316 = vmatmul.mubr.msk.f32.vlgmr.msra.gmra.mrb[0].mxu0 %vm1159_vm2, %v1092_v27  ;;  %2364 = vmatmul.mubr.msk.f32.vlgmr.msra.gmra.mrb[0].mxu1 %vm1159_vm2, %v1124_v26  ;;  %v406_v21 = vld [vmem:[%s2504_s11 + $0xa8] sm:$0xff] }
  0x93   : > { %v646_v30 = vpop.permute.xlu1 %645  ;;  %v582_v31 = vpop.permute.xlu0 %581 }
  0x94   : > { %v1060_v40 = vsel %vm1025_vm0, %v355_v36, %v646_v30  ;;  %v1028_v41 = vsel %vm1025_vm0, %v323_v37, %v582_v31  ;;  %v502_v30 = vld [vmem:[%s2516_s15 + $0x1a8] sm:$0xff]  ;;  %v360_v36 = vld [vmem:[%s2634_s19 + $0x138] sm:$0xff] }
  0x95   : > { %675 = vrot.lane.b32.xlu1 %v434_v28, %s2441_s12  ;;  %611 = vrot.lane.b32.xlu0 %v402_v29, %s2441_s12  ;;  %v359_v28 = vld [vmem:[%s2634_s19 + $0x130] sm:$0xff]  ;;  %v470_v31 = vld [vmem:[%s2516_s15 + $0xa8] sm:$0xff] }
  0x96   : > { %v327_v29 = vld [vmem:[%s2634_s19 + $0x30] sm:$0xff]  ;;  %v328_v37 = vld [vmem:[%s2634_s19 + $0x38] sm:$0xff] }
  0x97   : > { %v648_v34 = vpop.permute.xlu1 %647  ;;  %v584_v35 = vpop.permute.xlu0 %583 }
  0x98   : > { %v1061_v50 = vsel %vm1025_vm0, %v356_v44, %v648_v34  ;;  %v1029_v51 = vsel %vm1025_vm0, %v324_v45, %v584_v35 }
  0x99   : > { %929 = vrot.lane.b32.xlu1 %v497_v32, %s2442_s16  ;;  %865 = vrot.lane.b32.xlu0 %v465_v33, %s2442_s16 }
  0x9b   : > { %v902_v42 = vpop.permute.xlu1 %901  ;;  %v838_v43 = vpop.permute.xlu0 %837 }
  0x9c   : > { %v1125_v46 = vsel %vm1090_vm1, %v1060_v40, %v902_v42  ;;  %v1093_v47 = vsel %vm1090_vm1, %v1028_v41, %v838_v43  ;;  %v439_v40 = vld [vmem:[%s2504_s11 + $0x1b0] sm:$0xff] }
  0x9d   : > { %931 = vrot.lane.b32.xlu1 %v498_v38, %s2442_s16  ;;  %867 = vrot.lane.b32.xlu0 %v466_v39, %s2442_s16  ;;  %v407_v41 = vld [vmem:[%s2504_s11 + $0xb0] sm:$0xff] }
  0x9e   : > { %2318 = vmatprep.mubr.msk.f32.mxu0 %vm1159_vm2, %v1093_v47  ;;  %2366 = vmatprep.mubr.msk.f32.mxu1 %vm1159_vm2, %v1125_v46 }
  0x9f   : > { %v904_v52 = vpop.permute.xlu1 %903  ;;  %v840_v53 = vpop.permute.xlu0 %839 }
  0xa0   : > { %v1126_v54 = vsel %vm1090_vm1, %v1061_v50, %v904_v52  ;;  %v1094_v55 = vsel %vm1090_vm1, %v1029_v51, %v840_v53  ;;  %v503_v52 = vld [vmem:[%s2516_s15 + $0x1b0] sm:$0xff] }
  0xa1   : > { %677 = vrot.lane.b32.xlu1 %v435_v48, %s2441_s12  ;;  %613 = vrot.lane.b32.xlu0 %v403_v49, %s2441_s12  ;;  %v440_v48 = vld [vmem:[%s2504_s11 + $0x1b8] sm:$0xff]  ;;  %v471_v53 = vld [vmem:[%s2516_s15 + $0xb0] sm:$0xff] }
  0xa2   : > { %2319 = vmatmul.mubr.msk.f32.gmra.mrb[2].mxu0 %vm1159_vm2, %v1094_v55  ;;  %2367 = vmatmul.mubr.msk.f32.gmra.mrb[2].mxu1 %vm1159_vm2, %v1126_v54  ;;  %v408_v49 = vld [vmem:[%s2504_s11 + $0xb8] sm:$0xff] }
  0xa3   : > { %v650_v58 = vpop.permute.xlu1 %649  ;;  %v586_v59 = vpop.permute.xlu0 %585 }
  0xa4   : > { %v1062_v4 = vsel %vm1025_vm0, %v357_v0, %v650_v58  ;;  %v1030_v5 = vsel %vm1025_vm0, %v325_v1, %v586_v59  ;;  %v504_v58 = vld [vmem:[%s2516_s15 + $0x1b8] sm:$0xff]  ;;  %v362_v0 = vld [vmem:[%s2634_s19 + $0x148] sm:$0xff] }
  0xa5   : > { %679 = vrot.lane.b32.xlu1 %v436_v56, %s2441_s12  ;;  %615 = vrot.lane.b32.xlu0 %v404_v57, %s2441_s12  ;;  %v361_v56 = vld [vmem:[%s2634_s19 + $0x140] sm:$0xff]  ;;  %v472_v59 = vld [vmem:[%s2516_s15 + $0xb8] sm:$0xff] }
  0xa6   : > { %v329_v57 = vld [vmem:[%s2634_s19 + $0x40] sm:$0xff]  ;;  %v330_v1 = vld [vmem:[%s2634_s19 + $0x48] sm:$0xff] }
  0xa7   : > { %v652_v62 = vpop.permute.xlu1 %651  ;;  %v588_v63 = vpop.permute.xlu0 %587 }
  0xa8   : > { %v1063_v14 = vsel %vm1025_vm0, %v358_v8, %v652_v62  ;;  %v1031_v15 = vsel %vm1025_vm0, %v326_v9, %v588_v63 }
  0xa9   : > { %933 = vrot.lane.b32.xlu1 %v499_v60, %s2442_s16  ;;  %869 = vrot.lane.b32.xlu0 %v467_v61, %s2442_s16 }
  0xab   : > { %v906_v6 = vpop.permute.xlu1 %905  ;;  %v842_v7 = vpop.permute.xlu0 %841 }
  0xac   : > { %v1127_v10 = vsel %vm1090_vm1, %v1062_v4, %v906_v6  ;;  %v1095_v11 = vsel %vm1090_vm1, %v1030_v5, %v842_v7  ;;  %v441_v4 = vld [vmem:[%s2504_s11 + $0x1c0] sm:$0xff] }
  0xad   : > { %935 = vrot.lane.b32.xlu1 %v500_v2, %s2442_s16  ;;  %871 = vrot.lane.b32.xlu0 %v468_v3, %s2442_s16  ;;  %v409_v5 = vld [vmem:[%s2504_s11 + $0xc0] sm:$0xff] }
  0xae   : > { %2321 = vmatprep.mubr.msk.f32.mxu0 %vm1159_vm2, %v1095_v11  ;;  %2369 = vmatprep.mubr.msk.f32.mxu1 %vm1159_vm2, %v1127_v10 }
  0xaf   : > { %v908_v16 = vpop.permute.xlu1 %907  ;;  %v844_v17 = vpop.permute.xlu0 %843 }
  0xb0   : > { %v1128_v18 = vsel %vm1090_vm1, %v1063_v14, %v908_v16  ;;  %v1096_v19 = vsel %vm1090_vm1, %v1031_v15, %v844_v17  ;;  %v505_v16 = vld [vmem:[%s2516_s15 + $0x1c0] sm:$0xff] }
  0xb1   : > { %681 = vrot.lane.b32.xlu1 %v437_v12, %s2441_s12  ;;  %617 = vrot.lane.b32.xlu0 %v405_v13, %s2441_s12  ;;  %v442_v12 = vld [vmem:[%s2504_s11 + $0x1c8] sm:$0xff]  ;;  %v473_v17 = vld [vmem:[%s2516_s15 + $0xc0] sm:$0xff] }
  0xb2   : > { %2322 = vmatmul.mubr.msk.f32.gmra.mrb[4].mxu0 %vm1159_vm2, %v1096_v19  ;;  %2370 = vmatmul.mubr.msk.f32.gmra.mrb[4].mxu1 %vm1159_vm2, %v1128_v18  ;;  %v410_v13 = vld [vmem:[%s2504_s11 + $0xc8] sm:$0xff] }
  0xb3   : > { %v654_v22 = vpop.permute.xlu1 %653  ;;  %v590_v23 = vpop.permute.xlu0 %589 }
  0xb4   : > { %v1064_v32 = vsel %vm1025_vm0, %v359_v28, %v654_v22  ;;  %v1032_v33 = vsel %vm1025_vm0, %v327_v29, %v590_v23  ;;  %v506_v22 = vld [vmem:[%s2516_s15 + $0x1c8] sm:$0xff]  ;;  %v364_v28 = vld [vmem:[%s2634_s19 + $0x158] sm:$0xff] }
  0xb5   : > { %683 = vrot.lane.b32.xlu1 %v438_v20, %s2441_s12  ;;  %619 = vrot.lane.b32.xlu0 %v406_v21, %s2441_s12  ;;  %v363_v20 = vld [vmem:[%s2634_s19 + $0x150] sm:$0xff]  ;;  %v474_v23 = vld [vmem:[%s2516_s15 + $0xc8] sm:$0xff] }
  0xb6   : > { %v331_v21 = vld [vmem:[%s2634_s19 + $0x50] sm:$0xff]  ;;  %v332_v29 = vld [vmem:[%s2634_s19 + $0x58] sm:$0xff] }
  0xb7   : > { %v656_v26 = vpop.permute.xlu1 %655  ;;  %v592_v27 = vpop.permute.xlu0 %591 }
  0xb8   : > { %v1065_v42 = vsel %vm1025_vm0, %v360_v36, %v656_v26  ;;  %v1033_v43 = vsel %vm1025_vm0, %v328_v37, %v592_v27 }
  0xb9   : > { %937 = vrot.lane.b32.xlu1 %v501_v24, %s2442_s16  ;;  %873 = vrot.lane.b32.xlu0 %v469_v25, %s2442_s16 }
  0xbb   : > { %v910_v34 = vpop.permute.xlu1 %909  ;;  %v846_v35 = vpop.permute.xlu0 %845 }
  0xbc   : > { %v1129_v38 = vsel %vm1090_vm1, %v1064_v32, %v910_v34  ;;  %v1097_v39 = vsel %vm1090_vm1, %v1032_v33, %v846_v35  ;;  %v443_v32 = vld [vmem:[%s2504_s11 + $0x1d0] sm:$0xff] }
  0xbd   : > { %939 = vrot.lane.b32.xlu1 %v502_v30, %s2442_s16  ;;  %875 = vrot.lane.b32.xlu0 %v470_v31, %s2442_s16  ;;  %v411_v33 = vld [vmem:[%s2504_s11 + $0xd0] sm:$0xff] }
  0xbe   : > { %2324 = vmatprep.mubr.msk.f32.mxu0 %vm1159_vm2, %v1097_v39  ;;  %2372 = vmatprep.mubr.msk.f32.mxu1 %vm1159_vm2, %v1129_v38 }
  0xbf   : > { %v912_v44 = vpop.permute.xlu1 %911  ;;  %v848_v45 = vpop.permute.xlu0 %847 }
  0xc0   : > { %v1130_v46 = vsel %vm1090_vm1, %v1065_v42, %v912_v44  ;;  %v1098_v47 = vsel %vm1090_vm1, %v1033_v43, %v848_v45  ;;  %v507_v44 = vld [vmem:[%s2516_s15 + $0x1d0] sm:$0xff] }
  0xc1   : > { %685 = vrot.lane.b32.xlu1 %v439_v40, %s2441_s12  ;;  %621 = vrot.lane.b32.xlu0 %v407_v41, %s2441_s12  ;;  %v444_v40 = vld [vmem:[%s2504_s11 + $0x1d8] sm:$0xff]  ;;  %v475_v45 = vld [vmem:[%s2516_s15 + $0xd0] sm:$0xff] }
  0xc2   : > { %2325 = vmatmul.mubr.msk.f32.gmra.mrb[6].mxu0 %vm1159_vm2, %v1098_v47  ;;  %2373 = vmatmul.mubr.msk.f32.gmra.mrb[6].mxu1 %vm1159_vm2, %v1130_v46  ;;  %v412_v41 = vld [vmem:[%s2504_s11 + $0xd8] sm:$0xff] }
  0xc3   : > { %v658_v50 = vpop.permute.xlu1 %657  ;;  %v594_v51 = vpop.permute.xlu0 %593 }
  0xc4   : > { %v1066_v60 = vsel %vm1025_vm0, %v361_v56, %v658_v50  ;;  %v1034_v61 = vsel %vm1025_vm0, %v329_v57, %v594_v51  ;;  %v508_v50 = vld [vmem:[%s2516_s15 + $0x1d8] sm:$0xff]  ;;  %v366_v56 = vld [vmem:[%s2634_s19 + $0x168] sm:$0xff] }
  0xc5   : > { %687 = vrot.lane.b32.xlu1 %v440_v48, %s2441_s12  ;;  %623 = vrot.lane.b32.xlu0 %v408_v49, %s2441_s12  ;;  %v365_v48 = vld [vmem:[%s2634_s19 + $0x160] sm:$0xff]  ;;  %v476_v51 = vld [vmem:[%s2516_s15 + $0xd8] sm:$0xff] }
  0xc6   : > { %v333_v49 = vld [vmem:[%s2634_s19 + $0x60] sm:$0xff]  ;;  %v334_v57 = vld [vmem:[%s2634_s19 + $0x68] sm:$0xff] }
  0xc7   : > { %v660_v54 = vpop.permute.xlu1 %659  ;;  %v596_v55 = vpop.permute.xlu0 %595 }
  0xc8   : > { %v1067_v6 = vsel %vm1025_vm0, %v362_v0, %v660_v54  ;;  %v1035_v7 = vsel %vm1025_vm0, %v330_v1, %v596_v55 }
  0xc9   : > { %941 = vrot.lane.b32.xlu1 %v503_v52, %s2442_s16  ;;  %877 = vrot.lane.b32.xlu0 %v471_v53, %s2442_s16 }
  0xcb   : > { %v914_v62 = vpop.permute.xlu1 %913  ;;  %v850_v63 = vpop.permute.xlu0 %849 }
  0xcc   : > { %v1131_v2 = vsel %vm1090_vm1, %v1066_v60, %v914_v62  ;;  %v1099_v3 = vsel %vm1090_vm1, %v1034_v61, %v850_v63  ;;  %v445_v60 = vld [vmem:[%s2504_s11 + $0x1e0] sm:$0xff] }
  0xcd   : > { %943 = vrot.lane.b32.xlu1 %v504_v58, %s2442_s16  ;;  %879 = vrot.lane.b32.xlu0 %v472_v59, %s2442_s16  ;;  %v413_v61 = vld [vmem:[%s2504_s11 + $0xe0] sm:$0xff] }
  0xce   : > { %2327 = vmatprep.mubr.msk.f32.mxu0 %vm1159_vm2, %v1099_v3  ;;  %2375 = vmatprep.mubr.msk.f32.mxu1 %vm1159_vm2, %v1131_v2 }
  0xcf   : > { %v916_v8 = vpop.permute.xlu1 %915  ;;  %v852_v9 = vpop.permute.xlu0 %851 }
  0xd0   : > { %v1132_v10 = vsel %vm1090_vm1, %v1067_v6, %v916_v8  ;;  %v1100_v11 = vsel %vm1090_vm1, %v1035_v7, %v852_v9  ;;  %v509_v8 = vld [vmem:[%s2516_s15 + $0x1e0] sm:$0xff] }
  0xd1   : > { %689 = vrot.lane.b32.xlu1 %v441_v4, %s2441_s12  ;;  %625 = vrot.lane.b32.xlu0 %v409_v5, %s2441_s12  ;;  %v446_v4 = vld [vmem:[%s2504_s11 + $0x1e8] sm:$0xff]  ;;  %v477_v9 = vld [vmem:[%s2516_s15 + $0xe0] sm:$0xff] }
  0xd2   : > { %2328 = vmatmul.mubr.msk.f32.gmra.mrb[8].mxu0 %vm1159_vm2, %v1100_v11  ;;  %2376 = vmatmul.mubr.msk.f32.gmra.mrb[8].mxu1 %vm1159_vm2, %v1132_v10  ;;  %v414_v5 = vld [vmem:[%s2504_s11 + $0xe8] sm:$0xff] }
  0xd3   : > { %v662_v14 = vpop.permute.xlu1 %661  ;;  %v598_v15 = vpop.permute.xlu0 %597 }
  0xd4   : > { %v1068_v24 = vsel %vm1025_vm0, %v363_v20, %v662_v14  ;;  %v1036_v25 = vsel %vm1025_vm0, %v331_v21, %v598_v15  ;;  %v510_v14 = vld [vmem:[%s2516_s15 + $0x1e8] sm:$0xff]  ;;  %v368_v20 = vld [vmem:[%s2634_s19 + $0x178] sm:$0xff] }
  0xd5   : > { %691 = vrot.lane.b32.xlu1 %v442_v12, %s2441_s12  ;;  %627 = vrot.lane.b32.xlu0 %v410_v13, %s2441_s12  ;;  %v367_v12 = vld [vmem:[%s2634_s19 + $0x170] sm:$0xff]  ;;  %v478_v15 = vld [vmem:[%s2516_s15 + $0xe8] sm:$0xff] }
  0xd6   : > { %v335_v13 = vld [vmem:[%s2634_s19 + $0x70] sm:$0xff]  ;;  %v336_v21 = vld [vmem:[%s2634_s19 + $0x78] sm:$0xff] }
  0xd7   : > { %v664_v18 = vpop.permute.xlu1 %663  ;;  %v600_v19 = vpop.permute.xlu0 %599 }
  0xd8   : > { %v1069_v34 = vsel %vm1025_vm0, %v364_v28, %v664_v18  ;;  %v1037_v35 = vsel %vm1025_vm0, %v332_v29, %v600_v19 }
  0xd9   : > { %945 = vrot.lane.b32.xlu1 %v505_v16, %s2442_s16  ;;  %881 = vrot.lane.b32.xlu0 %v473_v17, %s2442_s16 }
  0xdb   : > { %v918_v26 = vpop.permute.xlu1 %917  ;;  %v854_v27 = vpop.permute.xlu0 %853 }
  0xdc   : > { %v1133_v30 = vsel %vm1090_vm1, %v1068_v24, %v918_v26  ;;  %v1101_v31 = vsel %vm1090_vm1, %v1036_v25, %v854_v27  ;;  %v447_v24 = vld [vmem:[%s2504_s11 + $0x1f0] sm:$0xff] }
  0xdd   : > { %947 = vrot.lane.b32.xlu1 %v506_v22, %s2442_s16  ;;  %883 = vrot.lane.b32.xlu0 %v474_v23, %s2442_s16  ;;  %v415_v25 = vld [vmem:[%s2504_s11 + $0xf0] sm:$0xff] }
  0xde   : > { %2330 = vmatprep.mubr.msk.f32.mxu0 %vm1159_vm2, %v1101_v31  ;;  %2378 = vmatprep.mubr.msk.f32.mxu1 %vm1159_vm2, %v1133_v30 }
  0xdf   : > { %v920_v36 = vpop.permute.xlu1 %919  ;;  %v856_v37 = vpop.permute.xlu0 %855 }
  0xe0   : > { %v1134_v38 = vsel %vm1090_vm1, %v1069_v34, %v920_v36  ;;  %v1102_v39 = vsel %vm1090_vm1, %v1037_v35, %v856_v37  ;;  %v511_v36 = vld [vmem:[%s2516_s15 + $0x1f0] sm:$0xff] }
  0xe1   : > { %693 = vrot.lane.b32.xlu1 %v443_v32, %s2441_s12  ;;  %629 = vrot.lane.b32.xlu0 %v411_v33, %s2441_s12  ;;  %v448_v32 = vld [vmem:[%s2504_s11 + $0x1f8] sm:$0xff]  ;;  %v479_v37 = vld [vmem:[%s2516_s15 + $0xf0] sm:$0xff] }
  0xe2   : > { %2331 = vmatmul.mubr.msk.f32.gmra.mrb[10].mxu0 %vm1159_vm2, %v1102_v39  ;;  %2379 = vmatmul.mubr.msk.f32.gmra.mrb[10].mxu1 %vm1159_vm2, %v1134_v38  ;;  %v416_v33 = vld [vmem:[%s2504_s11 + $0xf8] sm:$0xff] }
  0xe3   : > { %v666_v42 = vpop.permute.xlu1 %665  ;;  %v602_v43 = vpop.permute.xlu0 %601 }
  0xe4   : > { %v1070_v52 = vsel %vm1025_vm0, %v365_v48, %v666_v42  ;;  %v1038_v53 = vsel %vm1025_vm0, %v333_v49, %v602_v43  ;;  %v512_v42 = vld [vmem:[%s2516_s15 + $0x1f8] sm:$0xff]  ;;  %v370_v48 = vld [vmem:[%s2634_s19 + $0x188] sm:$0xff] }
  0xe5   : > { %695 = vrot.lane.b32.xlu1 %v444_v40, %s2441_s12  ;;  %631 = vrot.lane.b32.xlu0 %v412_v41, %s2441_s12  ;;  %v369_v40 = vld [vmem:[%s2634_s19 + $0x180] sm:$0xff]  ;;  %v480_v43 = vld [vmem:[%s2516_s15 + $0xf8] sm:$0xff] }
  0xe6   : > { %v337_v41 = vld [vmem:[%s2634_s19 + $0x80] sm:$0xff]  ;;  %v338_v49 = vld [vmem:[%s2634_s19 + $0x88] sm:$0xff] }
  0xe7   : > { %v668_v46 = vpop.permute.xlu1 %667  ;;  %v604_v47 = vpop.permute.xlu0 %603 }
  0xe8   : > { %v1071_v62 = vsel %vm1025_vm0, %v366_v56, %v668_v46  ;;  %v1039_v63 = vsel %vm1025_vm0, %v334_v57, %v604_v47 }
  0xe9   : > { %949 = vrot.lane.b32.xlu1 %v507_v44, %s2442_s16  ;;  %885 = vrot.lane.b32.xlu0 %v475_v45, %s2442_s16 }
  0xeb   : > { %v922_v54 = vpop.permute.xlu1 %921  ;;  %v858_v55 = vpop.permute.xlu0 %857 }
  0xec   : > { %v1135_v58 = vsel %vm1090_vm1, %v1070_v52, %v922_v54  ;;  %v1103_v59 = vsel %vm1090_vm1, %v1038_v53, %v858_v55 }
  0xed   : > { %951 = vrot.lane.b32.xlu1 %v508_v50, %s2442_s16  ;;  %887 = vrot.lane.b32.xlu0 %v476_v51, %s2442_s16 }
  0xee   : > { %2333 = vmatprep.mubr.msk.f32.mxu0 %vm1159_vm2, %v1103_v59  ;;  %2381 = vmatprep.mubr.msk.f32.mxu1 %vm1159_vm2, %v1135_v58 }
  0xef   : > { %v924_v0 = vpop.permute.xlu1 %923  ;;  %v860_v1 = vpop.permute.xlu0 %859 }
  0xf0   : > { %v1136_v2 = vsel %vm1090_vm1, %v1071_v62, %v924_v0  ;;  %v1104_v3 = vsel %vm1090_vm1, %v1039_v63, %v860_v1  ;;  %v371_v62 = vld [vmem:[%s2634_s19 + $0x190] sm:$0xff] }
  0xf1   : > { %697 = vrot.lane.b32.xlu1 %v445_v60, %s2441_s12  ;;  %633 = vrot.lane.b32.xlu0 %v413_v61, %s2441_s12  ;;  %v339_v63 = vld [vmem:[%s2634_s19 + $0x90] sm:$0xff] }
  0xf2   : > { %2334 = vmatmul.mubr.msk.f32.gmra.mrb[12].mxu0 %vm1159_vm2, %v1104_v3  ;;  %2382 = vmatmul.mubr.msk.f32.gmra.mrb[12].mxu1 %vm1159_vm2, %v1136_v2 }
  0xf3   : > { %v670_v6 = vpop.permute.xlu1 %669  ;;  %v606_v7 = vpop.permute.xlu0 %605 }
  0xf4   : > { %v1072_v16 = vsel %vm1025_vm0, %v367_v12, %v670_v6  ;;  %v1040_v17 = vsel %vm1025_vm0, %v335_v13, %v606_v7 }
  0xf5   : > { %699 = vrot.lane.b32.xlu1 %v446_v4, %s2441_s12  ;;  %635 = vrot.lane.b32.xlu0 %v414_v5, %s2441_s12  ;;  %v372_v4 = vld [vmem:[%s2634_s19 + $0x198] sm:$0xff] }
  0xf6   : > { %v340_v5 = vld [vmem:[%s2634_s19 + $0x98] sm:$0xff] }
  0xf7   : > { %v672_v10 = vpop.permute.xlu1 %671  ;;  %v608_v11 = vpop.permute.xlu0 %607 }
  0xf8   : > { %v1073_v26 = vsel %vm1025_vm0, %v368_v20, %v672_v10  ;;  %v1041_v27 = vsel %vm1025_vm0, %v336_v21, %v608_v11 }
  0xf9   : > { %953 = vrot.lane.b32.xlu1 %v509_v8, %s2442_s16  ;;  %889 = vrot.lane.b32.xlu0 %v477_v9, %s2442_s16 }
  0xfb   : > { %v926_v18 = vpop.permute.xlu1 %925  ;;  %v862_v19 = vpop.permute.xlu0 %861 }
  0xfc   : > { %v1137_v22 = vsel %vm1090_vm1, %v1072_v16, %v926_v18  ;;  %v1105_v23 = vsel %vm1090_vm1, %v1040_v17, %v862_v19  ;;  %v373_v18 = vld [vmem:[%s2634_s19 + $0x1a0] sm:$0xff] }
  0xfd   : > { %955 = vrot.lane.b32.xlu1 %v510_v14, %s2442_s16  ;;  %891 = vrot.lane.b32.xlu0 %v478_v15, %s2442_s16  ;;  %v341_v19 = vld [vmem:[%s2634_s19 + $0xa0] sm:$0xff] }
  0xfe   : > { %2336 = vmatprep.mubr.msk.f32.mxu0 %vm1159_vm2, %v1105_v23  ;;  %2384 = vmatprep.mubr.msk.f32.mxu1 %vm1159_vm2, %v1137_v22 }
  0xff   : > { %v928_v28 = vpop.permute.xlu1 %927  ;;  %v864_v29 = vpop.permute.xlu0 %863 }
 0x100   : > { %v1138_v30 = vsel %vm1090_vm1, %v1073_v26, %v928_v28  ;;  %v1106_v31 = vsel %vm1090_vm1, %v1041_v27, %v864_v29 }
 0x101   : > { %701 = vrot.lane.b32.xlu1 %v447_v24, %s2441_s12  ;;  %637 = vrot.lane.b32.xlu0 %v415_v25, %s2441_s12  ;;  %v374_v24 = vld [vmem:[%s2634_s19 + $0x1a8] sm:$0xff] }
 0x102   : > { %2337 = vmatmul.mubr.msk.f32.gmra.mrb[14].mxu0 %vm1159_vm2, %v1106_v31  ;;  %2385 = vmatmul.mubr.msk.f32.gmra.mrb[14].mxu1 %vm1159_vm2, %v1138_v30  ;;  %v342_v25 = vld [vmem:[%s2634_s19 + $0xa8] sm:$0xff] }
 0x103   : > { %v674_v34 = vpop.permute.xlu1 %673  ;;  %v610_v35 = vpop.permute.xlu0 %609 }
 0x104   : > { %v1074_v44 = vsel %vm1025_vm0, %v369_v40, %v674_v34  ;;  %v1042_v45 = vsel %vm1025_vm0, %v337_v41, %v610_v35 }
 0x105   : > { %703 = vrot.lane.b32.xlu1 %v448_v32, %s2441_s12  ;;  %639 = vrot.lane.b32.xlu0 %v416_v33, %s2441_s12 }
 0x107   : > { %v676_v38 = vpop.permute.xlu1 %675  ;;  %v612_v39 = vpop.permute.xlu0 %611 }
 0x108   : > { %v1075_v52 = vsel %vm1025_vm0, %v370_v48, %v676_v38  ;;  %v1043_v53 = vsel %vm1025_vm0, %v338_v49, %v612_v39  ;;  %v375_v38 = vld [vmem:[%s2634_s19 + $0x1b0] sm:$0xff] }
 0x109   : > { %957 = vrot.lane.b32.xlu1 %v511_v36, %s2442_s16  ;;  %893 = vrot.lane.b32.xlu0 %v479_v37, %s2442_s16  ;;  %v343_v39 = vld [vmem:[%s2634_s19 + $0xb0] sm:$0xff] }
 0x10b   : > { %v930_v46 = vpop.permute.xlu1 %929  ;;  %v866_v47 = vpop.permute.xlu0 %865 }
 0x10c   : > { %v1139_v50 = vsel %vm1090_vm1, %v1074_v44, %v930_v46  ;;  %v1107_v51 = vsel %vm1090_vm1, %v1042_v45, %v866_v47  ;;  %v376_v44 = vld [vmem:[%s2634_s19 + $0x1b8] sm:$0xff] }
 0x10d   : > { %959 = vrot.lane.b32.xlu1 %v512_v42, %s2442_s16  ;;  %895 = vrot.lane.b32.xlu0 %v480_v43, %s2442_s16  ;;  %v344_v45 = vld [vmem:[%s2634_s19 + $0xb8] sm:$0xff] }
 0x10e   : > { %2339 = vmatprep.mubr.msk.f32.mxu0 %vm1159_vm2, %v1107_v51  ;;  %2387 = vmatprep.mubr.msk.f32.mxu1 %vm1159_vm2, %v1139_v50 }
 0x10f   : > { %v932_v54 = vpop.permute.xlu1 %931  ;;  %v868_v55 = vpop.permute.xlu0 %867 }
 0x110   : > { %v1140_v56 = vsel %vm1090_vm1, %v1075_v52, %v932_v54  ;;  %v1108_v57 = vsel %vm1090_vm1, %v1043_v53, %v868_v55 }
 0x111   : > { %2340 = vmatmul.mubr.msk.f32.gmra.mrb[16].mxu0 %vm1159_vm2, %v1108_v57  ;;  %2388 = vmatmul.mubr.msk.f32.gmra.mrb[16].mxu1 %vm1159_vm2, %v1140_v56 }
 0x113   : > { %v678_v58 = vpop.permute.xlu1 %677  ;;  %v614_v59 = vpop.permute.xlu0 %613 }
 0x114   : > { %v1076_v0 = vsel %vm1025_vm0, %v371_v62, %v678_v58  ;;  %v1044_v1 = vsel %vm1025_vm0, %v339_v63, %v614_v59  ;;  %v377_v58 = vld [vmem:[%s2634_s19 + $0x1c0] sm:$0xff] }
 0x115   : > { %v345_v59 = vld [vmem:[%s2634_s19 + $0xc0] sm:$0xff] }
 0x117   : > { %v680_v60 = vpop.permute.xlu1 %679  ;;  %v616_v61 = vpop.permute.xlu0 %615 }
 0x118   : > { %v1077_v8 = vsel %vm1025_vm0, %v372_v4, %v680_v60  ;;  %v1045_v9 = vsel %vm1025_vm0, %v340_v5, %v616_v61 }
 0x11b   : > { %v934_v2 = vpop.permute.xlu1 %933  ;;  %v870_v3 = vpop.permute.xlu0 %869 }
 0x11c   : > { %v1141_v6 = vsel %vm1090_vm1, %v1076_v0, %v934_v2  ;;  %v1109_v7 = vsel %vm1090_vm1, %v1044_v1, %v870_v3  ;;  %v378_v0 = vld [vmem:[%s2634_s19 + $0x1c8] sm:$0xff] }
 0x11d   : > { %2342 = vmatprep.mubr.msk.f32.mxu0 %vm1159_vm2, %v1109_v7  ;;  %2390 = vmatprep.mubr.msk.f32.mxu1 %vm1159_vm2, %v1141_v6  ;;  %v346_v1 = vld [vmem:[%s2634_s19 + $0xc8] sm:$0xff] }
 0x11f   : > { %v936_v10 = vpop.permute.xlu1 %935  ;;  %v872_v11 = vpop.permute.xlu0 %871 }
 0x120   : > { %v1142_v12 = vsel %vm1090_vm1, %v1077_v8, %v936_v10  ;;  %v1110_v13 = vsel %vm1090_vm1, %v1045_v9, %v872_v11 }
 0x121   : > { %2343 = vmatmul.mubr.msk.f32.gmra.mrb[18].mxu0 %vm1159_vm2, %v1110_v13  ;;  %2391 = vmatmul.mubr.msk.f32.gmra.mrb[18].mxu1 %vm1159_vm2, %v1142_v12 }
 0x123   : > { %v682_v14 = vpop.permute.xlu1 %681  ;;  %v618_v15 = vpop.permute.xlu0 %617 }
 0x124   : > { %v1078_v20 = vsel %vm1025_vm0, %v373_v18, %v682_v14  ;;  %v1046_v21 = vsel %vm1025_vm0, %v341_v19, %v618_v15  ;;  %v379_v14 = vld [vmem:[%s2634_s19 + $0x1d0] sm:$0xff] }
 0x125   : > { %v347_v15 = vld [vmem:[%s2634_s19 + $0xd0] sm:$0xff] }
 0x127   : > { %v684_v16 = vpop.permute.xlu1 %683  ;;  %v620_v17 = vpop.permute.xlu0 %619 }
 0x128   : > { %v1079_v28 = vsel %vm1025_vm0, %v374_v24, %v684_v16  ;;  %v1047_v29 = vsel %vm1025_vm0, %v342_v25, %v620_v17 }
 0x12b   : > { %v938_v22 = vpop.permute.xlu1 %937  ;;  %v874_v23 = vpop.permute.xlu0 %873 }
 0x12c   : > { %v1143_v26 = vsel %vm1090_vm1, %v1078_v20, %v938_v22  ;;  %v1111_v27 = vsel %vm1090_vm1, %v1046_v21, %v874_v23  ;;  %v380_v20 = vld [vmem:[%s2634_s19 + $0x1d8] sm:$0xff] }
 0x12d   : > { %2345 = vmatprep.mubr.msk.f32.mxu0 %vm1159_vm2, %v1111_v27  ;;  %2393 = vmatprep.mubr.msk.f32.mxu1 %vm1159_vm2, %v1143_v26  ;;  %v348_v21 = vld [vmem:[%s2634_s19 + $0xd8] sm:$0xff] }
 0x12f   : > { %v940_v30 = vpop.permute.xlu1 %939  ;;  %v876_v31 = vpop.permute.xlu0 %875 }
 0x130   : > { %v1144_v32 = vsel %vm1090_vm1, %v1079_v28, %v940_v30  ;;  %v1112_v33 = vsel %vm1090_vm1, %v1047_v29, %v876_v31 }
 0x131   : > { %2346 = vmatmul.mubr.msk.f32.gmra.mrb[20].mxu0 %vm1159_vm2, %v1112_v33  ;;  %2394 = vmatmul.mubr.msk.f32.gmra.mrb[20].mxu1 %vm1159_vm2, %v1144_v32  ;;  %v1738_v32 = vld [vmem:[%s3000_s23 + $0x8] sm:$0xff] }
 0x132   : > { %v1770_v33 = vld [vmem:[%s3000_s23 + $0x108] sm:$0xff] }
 0x133   : > { %v686_v34 = vpop.permute.xlu1 %685  ;;  %v622_v35 = vpop.permute.xlu0 %621 }
 0x134   : > { %v1080_v40 = vsel %vm1025_vm0, %v375_v38, %v686_v34  ;;  %v1048_v41 = vsel %vm1025_vm0, %v343_v39, %v622_v35  ;;  %v1737_v34 = vld [vmem:[%s3000_s23] sm:$0xff] }
 0x135   : > { %v1769_v35 = vld [vmem:[%s3000_s23 + $0x100] sm:$0xff] }
 0x137   : > { %v688_v36 = vpop.permute.xlu1 %687  ;;  %v624_v37 = vpop.permute.xlu0 %623 }
 0x138   : > { %v1081_v48 = vsel %vm1025_vm0, %v376_v44, %v688_v36  ;;  %v1049_v49 = vsel %vm1025_vm0, %v344_v45, %v624_v37  ;;  %v3011_v37 = vld [vmem:[%s3311_s5] ss:$0 sm:$0xff] }
 0x13b   : > { %v942_v42 = vpop.permute.xlu1 %941  ;;  %v878_v43 = vpop.permute.xlu0 %877 }
 0x13c   : > { %v1145_v46 = vsel %vm1090_vm1, %v1080_v40, %v942_v42  ;;  %v1113_v47 = vsel %vm1090_vm1, %v1048_v41, %v878_v43 }
 0x13d   : > { %2348 = vmatprep.mubr.msk.f32.mxu0 %vm1159_vm2, %v1113_v47  ;;  %2396 = vmatprep.mubr.msk.f32.mxu1 %vm1159_vm2, %v1145_v46  ;;  %v381_v47 = vld [vmem:[%s2634_s19 + $0x1e0] sm:$0xff] }
 0x13f   : > { %v944_v50 = vpop.permute.xlu1 %943  ;;  %v880_v51 = vpop.permute.xlu0 %879 }
 0x140   : > { %v1146_v52 = vsel %vm1090_vm1, %v1081_v48, %v944_v50  ;;  %v1114_v53 = vsel %vm1090_vm1, %v1049_v49, %v880_v51  ;;  %v349_v48 = vld [vmem:[%s2634_s19 + $0xe0] sm:$0xff] }
 0x141   : > { %2349 = vmatmul.mubr.msk.f32.gmra.mrb[22].mxu0 %vm1159_vm2, %v1114_v53  ;;  %2397 = vmatmul.mubr.msk.f32.gmra.mrb[22].mxu1 %vm1159_vm2, %v1146_v52 }
 0x143   : > { %v690_v54 = vpop.permute.xlu1 %689  ;;  %v626_v55 = vpop.permute.xlu0 %625 }
 0x144   : > { %v1082_v60 = vsel %vm1025_vm0, %v377_v58, %v690_v54  ;;  %v1050_v61 = vsel %vm1025_vm0, %v345_v59, %v626_v55 }
 0x147   : > { %v692_v56 = vpop.permute.xlu1 %691  ;;  %v628_v57 = vpop.permute.xlu0 %627 }
 0x148   : > { %v1083_v4 = vsel %vm1025_vm0, %v378_v0, %v692_v56  ;;  %v1051_v5 = vsel %vm1025_vm0, %v346_v1, %v628_v57 }
 0x14b   : > { %v946_v62 = vpop.permute.xlu1 %945  ;;  %v882_v63 = vpop.permute.xlu0 %881 }
 0x14c   : > { %v1147_v2 = vsel %vm1090_vm1, %v1082_v60, %v946_v62  ;;  %v1115_v3 = vsel %vm1090_vm1, %v1050_v61, %v882_v63  ;;  %v382_v61 = vld [vmem:[%s2634_s19 + $0x1e8] sm:$0xff] }
 0x14d   : > { %2351 = vmatprep.mubr.msk.f32.mxu0 %vm1159_vm2, %v1115_v3  ;;  %2399 = vmatprep.mubr.msk.f32.mxu1 %vm1159_vm2, %v1147_v2  ;;  %v350_v62 = vld [vmem:[%s2634_s19 + $0xe8] sm:$0xff] }
 0x14f   : > { %v948_v6 = vpop.permute.xlu1 %947  ;;  %v884_v7 = vpop.permute.xlu0 %883 }
 0x150   : > { %v1148_v8 = vsel %vm1090_vm1, %v1083_v4, %v948_v6  ;;  %v1116_v9 = vsel %vm1090_vm1, %v1051_v5, %v884_v7 }
 0x151   : > { %2352 = vmatmul.mubr.msk.f32.gmra.mrb[24].mxu0 %vm1159_vm2, %v1116_v9  ;;  %2400 = vmatmul.mubr.msk.f32.gmra.mrb[24].mxu1 %vm1159_vm2, %v1148_v8  ;;  %v1740_v9 = vld [vmem:[%s3000_s23 + $0x18] sm:$0xff] }
 0x153   : > { %v694_v10 = vpop.permute.xlu1 %693  ;;  %v630_v11 = vpop.permute.xlu0 %629 }
 0x154   : > { %v1084_v16 = vsel %vm1025_vm0, %v379_v14, %v694_v10  ;;  %v1052_v17 = vsel %vm1025_vm0, %v347_v15, %v630_v11  ;;  %v1772_v10 = vld [vmem:[%s3000_s23 + $0x118] sm:$0xff]  ;;  %v1739_v11 = vld [vmem:[%s3000_s23 + $0x10] sm:$0xff] }
 0x157   : > { %v696_v12 = vpop.permute.xlu1 %695  ;;  %v632_v13 = vpop.permute.xlu0 %631 }
 0x158   : > { %v1085_v24 = vsel %vm1025_vm0, %v380_v20, %v696_v12  ;;  %v1053_v25 = vsel %vm1025_vm0, %v348_v21, %v632_v13  ;;  %v1771_v12 = vld [vmem:[%s3000_s23 + $0x110] sm:$0xff] }
 0x15b   : > { %v950_v18 = vpop.permute.xlu1 %949  ;;  %v886_v19 = vpop.permute.xlu0 %885 }
 0x15c   : > { %v1149_v22 = vsel %vm1090_vm1, %v1084_v16, %v950_v18  ;;  %v1117_v23 = vsel %vm1090_vm1, %v1052_v17, %v886_v19 }
 0x15d   : > { %2354 = vmatprep.mubr.msk.f32.mxu0 %vm1159_vm2, %v1117_v23  ;;  %2402 = vmatprep.mubr.msk.f32.mxu1 %vm1159_vm2, %v1149_v22  ;;  %v383_v23 = vld [vmem:[%s2634_s19 + $0x1f0] sm:$0xff] }
 0x15f   : > { %v952_v26 = vpop.permute.xlu1 %951  ;;  %v888_v27 = vpop.permute.xlu0 %887 }
 0x160   : > { %v1150_v28 = vsel %vm1090_vm1, %v1085_v24, %v952_v26  ;;  %v1118_v29 = vsel %vm1090_vm1, %v1053_v25, %v888_v27  ;;  %v351_v24 = vld [vmem:[%s2634_s19 + $0xf0] sm:$0xff] }
 0x161   : > { %2355 = vmatmul.mubr.msk.f32.gmra.mrb[26].mxu0 %vm1159_vm2, %v1118_v29  ;;  %2403 = vmatmul.mubr.msk.f32.gmra.mrb[26].mxu1 %vm1159_vm2, %v1150_v28 }
 0x163   : > { %v698_v30 = vpop.permute.xlu1 %697  ;;  %v634_v31 = vpop.permute.xlu0 %633 }
 0x164   : > { %v1086_v55 = vsel %vm1025_vm0, %v381_v47, %v698_v30  ;;  %v1054_v56 = vsel %vm1025_vm0, %v349_v48, %v634_v31  ;;  %v1742_v48 = vld [vmem:[%s3000_s23 + $0x28] sm:$0xff] }
 0x165   : > { %v2317_v36 = vpop.f32.mrb[0].mxu0  ;;  %v2365_v38 = vpop.f32.mrb[0].mxu1 }
 0x166   : > { %v1802_v39 = vadd.f32 %v2317_v36, %v1738_v32  ;;  %v1834_v40 = vadd.f32 %v2365_v38, %v1770_v33  ;;  %v1418_v41 = vpop.f32.mrb[1].mxu0  ;;  %v1578_v42 = vpop.f32.mrb[1].mxu1  ;;  %v384_v38 = vld [vmem:[%s2634_s19 + $0x1f8] sm:$0xff] }
 0x167   : > { %v1801_v43 = vadd.f32 %v1737_v34, %v1418_v41  ;;  %v1833_v44 = vadd.f32 %v1769_v35, %v1578_v42  ;;  %v700_v45 = vpop.permute.xlu1 %699  ;;  %v636_v46 = vpop.permute.xlu0 %635 }
 0x168   : > { %v1873_v49 = vadd.f32 %v3011_v37, %v1802_v39  ;;  %v1905_v50 = vadd.f32 %v3011_v37, %v1834_v40  ;;  %v1087_v1 = vsel %vm1025_vm0, %v382_v61, %v700_v45  ;;  %v1055_v2 = vsel %vm1025_vm0, %v350_v62, %v636_v46  ;;  %v352_v39 = vld [vmem:[%s2634_s19 + $0xf8] sm:$0xff] }
 0x169   : > { %v1872_v51 = vadd.f32 %v3011_v37, %v1801_v43  ;;  %v1904_v52 = vadd.f32 %v3011_v37, %v1833_v44 }
 0x16a   : > { %v1937_v53 = vmax.f32 %v1873_v49, 0.0  ;;  %v1969_v54 = vmax.f32 %v1905_v50, 0.0  ;;  %v1774_v49 = vld [vmem:[%s3000_s23 + $0x128] sm:$0xff]  ;;  %v1741_v50 = vld [vmem:[%s3000_s23 + $0x20] sm:$0xff] }
 0x16b   : > { %v1936_v57 = vmax.f32 %v1872_v51, 0.0  ;;  %v1968_v58 = vmax.f32 %v1904_v52, 0.0  ;;  %v954_v59 = vpop.permute.xlu1 %953  ;;  %v890_v60 = vpop.permute.xlu0 %889  ;;  %v1773_v51 = vld [vmem:[%s3000_s23 + $0x120] sm:$0xff] }
 0x16c   : > { %2002 = vst.msk [vmem:[%s3021_s28 + $0x8] sm:$0xff] %vm2000_vm3, %v1937_v53  ;;  %2034 = vst.msk [vmem:[%s3021_s28 + $0x108] sm:$0xff] %vm2000_vm3, %v1969_v54  ;;  %v1151_v63 = vsel %vm1090_vm1, %v1086_v55, %v954_v59  ;;  %v1119_v0 = vsel %vm1090_vm1, %v1054_v56, %v890_v60 }
 0x16d   : > { %2001 = vst.msk [vmem:[%s3021_s28] sm:$0xff] %vm2000_vm3, %v1936_v57  ;;  %2033 = vst.msk [vmem:[%s3021_s28 + $0x100] sm:$0xff] %vm2000_vm3, %v1968_v58  ;;  %2357 = vmatprep.mubr.msk.f32.mxu0 %vm1159_vm2, %v1119_v0  ;;  %2405 = vmatprep.mubr.msk.f32.mxu1 %vm1159_vm2, %v1151_v63 }
 0x16f   : > { %v956_v3 = vpop.permute.xlu1 %955  ;;  %v892_v4 = vpop.permute.xlu0 %891 }
 0x170   : > { %v1152_v5 = vsel %vm1090_vm1, %v1087_v1, %v956_v3  ;;  %v1120_v6 = vsel %vm1090_vm1, %v1055_v2, %v892_v4  ;;  %v1744_v4 = vld [vmem:[%s3000_s23 + $0x38] sm:$0xff] }
 0x171   : > { %2358 = vmatmul.mubr.msk.f32.gmra.mrb[28].mxu0 %vm1159_vm2, %v1120_v6  ;;  %2406 = vmatmul.mubr.msk.f32.gmra.mrb[28].mxu1 %vm1159_vm2, %v1152_v5  ;;  %v1776_v5 = vld [vmem:[%s3000_s23 + $0x138] sm:$0xff]  ;;  %v1743_v6 = vld [vmem:[%s3000_s23 + $0x30] sm:$0xff] }
 0x173   : > { %v702_v7 = vpop.permute.xlu1 %701  ;;  %v638_v8 = vpop.permute.xlu0 %637 }
 0x174   : > { %v1088_v31 = vsel %vm1025_vm0, %v383_v23, %v702_v7  ;;  %v1056_v32 = vsel %vm1025_vm0, %v351_v24, %v638_v8  ;;  %v1775_v7 = vld [vmem:[%s3000_s23 + $0x130] sm:$0xff]  ;;  %v1746_v24 = vld [vmem:[%s3000_s23 + $0x48] sm:$0xff] }
 0x175   : > { %v2320_v13 = vpop.f32.mrb[2].mxu0  ;;  %v2368_v14 = vpop.f32.mrb[2].mxu1 }
 0x176   : > { %v1804_v15 = vadd.f32 %v2320_v13, %v1740_v9  ;;  %v1836_v16 = vadd.f32 %v2368_v14, %v1772_v10  ;;  %v1428_v17 = vpop.f32.mrb[3].mxu0  ;;  %v1588_v18 = vpop.f32.mrb[3].mxu1 }
 0x177   : > { %v1803_v19 = vadd.f32 %v1739_v11, %v1428_v17  ;;  %v1835_v20 = vadd.f32 %v1771_v12, %v1588_v18  ;;  %v704_v21 = vpop.permute.xlu1 %703  ;;  %v640_v22 = vpop.permute.xlu0 %639 }
 0x178   : > { %v1875_v25 = vadd.f32 %v3011_v37, %v1804_v15  ;;  %v1907_v26 = vadd.f32 %v3011_v37, %v1836_v16  ;;  %v1089_v42 = vsel %vm1025_vm0, %v384_v38, %v704_v21  ;;  %v1057_v43 = vsel %vm1025_vm0, %v352_v39, %v640_v22 }
 0x179   : > { %v1874_v27 = vadd.f32 %v3011_v37, %v1803_v19  ;;  %v1906_v28 = vadd.f32 %v3011_v37, %v1835_v20 }
 0x17a   : > { %v1939_v29 = vmax.f32 %v1875_v25, 0.0  ;;  %v1971_v30 = vmax.f32 %v1907_v26, 0.0  ;;  %v1778_v25 = vld [vmem:[%s3000_s23 + $0x148] sm:$0xff]  ;;  %v1745_v26 = vld [vmem:[%s3000_s23 + $0x40] sm:$0xff] }
 0x17b   : > { %v1938_v33 = vmax.f32 %v1874_v27, 0.0  ;;  %v1970_v34 = vmax.f32 %v1906_v28, 0.0  ;;  %v958_v35 = vpop.permute.xlu1 %957  ;;  %v894_v36 = vpop.permute.xlu0 %893  ;;  %v1777_v27 = vld [vmem:[%s3000_s23 + $0x140] sm:$0xff] }
 0x17c   : > { %2004 = vst.msk [vmem:[%s3021_s28 + $0x18] sm:$0xff] %vm2000_vm3, %v1939_v29  ;;  %2036 = vst.msk [vmem:[%s3021_s28 + $0x118] sm:$0xff] %vm2000_vm3, %v1971_v30  ;;  %v1153_v40 = vsel %vm1090_vm1, %v1088_v31, %v958_v35  ;;  %v1121_v41 = vsel %vm1090_vm1, %v1056_v32, %v894_v36 }
 0x17d   : > { %2003 = vst.msk [vmem:[%s3021_s28 + $0x10] sm:$0xff] %vm2000_vm3, %v1938_v33  ;;  %2035 = vst.msk [vmem:[%s3021_s28 + $0x110] sm:$0xff] %vm2000_vm3, %v1970_v34  ;;  %2360 = vmatprep.mubr.msk.f32.mxu0 %vm1159_vm2, %v1121_v41  ;;  %2408 = vmatprep.mubr.msk.f32.mxu1 %vm1159_vm2, %v1153_v40 }
 0x17f   : > { %v960_v44 = vpop.permute.xlu1 %959  ;;  %v896_v45 = vpop.permute.xlu0 %895 }
 0x180   : > { %v1154_v46 = vsel %vm1090_vm1, %v1089_v42, %v960_v44  ;;  %v1122_v47 = vsel %vm1090_vm1, %v1057_v43, %v896_v45  ;;  %v1748_v45 = vld [vmem:[%s3000_s23 + $0x58] sm:$0xff] }
 0x181   : > { %2361 = vmatmul.mubr.msk.f32.gmra.mrb[30].mxu0 %vm1159_vm2, %v1122_v47  ;;  %2409 = vmatmul.mubr.msk.f32.gmra.mrb[30].mxu1 %vm1159_vm2, %v1154_v46  ;;  %v1780_v46 = vld [vmem:[%s3000_s23 + $0x158] sm:$0xff]  ;;  %v1747_v47 = vld [vmem:[%s3000_s23 + $0x50] sm:$0xff] }
 0x185   : > { %v2323_v52 = vpop.f32.mrb[4].mxu0  ;;  %v2371_v53 = vpop.f32.mrb[4].mxu1 }
 0x186   : > { %v1806_v54 = vadd.f32 %v2323_v52, %v1742_v48  ;;  %v1838_v55 = vadd.f32 %v2371_v53, %v1774_v49  ;;  %v1438_v56 = vpop.f32.mrb[5].mxu0  ;;  %v1598_v57 = vpop.f32.mrb[5].mxu1  ;;  %v1779_v48 = vld [vmem:[%s3000_s23 + $0x150] sm:$0xff] }
 0x187   : > { %v1805_v58 = vadd.f32 %v1741_v50, %v1438_v56  ;;  %v1837_v59 = vadd.f32 %v1773_v51, %v1598_v57 }
 0x188   : > { %v1877_v60 = vadd.f32 %v3011_v37, %v1806_v54  ;;  %v1909_v61 = vadd.f32 %v3011_v37, %v1838_v55 }
 0x189   : > { %v1876_v62 = vadd.f32 %v3011_v37, %v1805_v58  ;;  %v1908_v63 = vadd.f32 %v3011_v37, %v1837_v59 }
 0x18a   : > { %v1941_v0 = vmax.f32 %v1877_v60, 0.0  ;;  %v1973_v1 = vmax.f32 %v1909_v61, 0.0 }
 0x18b   : > { %v1940_v2 = vmax.f32 %v1876_v62, 0.0  ;;  %v1972_v3 = vmax.f32 %v1908_v63, 0.0 }
 0x18c   : > { %2006 = vst.msk [vmem:[%s3021_s28 + $0x28] sm:$0xff] %vm2000_vm3, %v1941_v0  ;;  %2038 = vst.msk [vmem:[%s3021_s28 + $0x128] sm:$0xff] %vm2000_vm3, %v1973_v1  ;;  %v1750_v1 = vld [vmem:[%s3000_s23 + $0x68] sm:$0xff] }
 0x18d   : > { %2005 = vst.msk [vmem:[%s3021_s28 + $0x20] sm:$0xff] %vm2000_vm3, %v1940_v2  ;;  %2037 = vst.msk [vmem:[%s3021_s28 + $0x120] sm:$0xff] %vm2000_vm3, %v1972_v3  ;;  %v1782_v2 = vld [vmem:[%s3000_s23 + $0x168] sm:$0xff]  ;;  %v1749_v3 = vld [vmem:[%s3000_s23 + $0x60] sm:$0xff] }
 0x195   : > { %v2326_v8 = vpop.f32.mrb[6].mxu0  ;;  %v2374_v9 = vpop.f32.mrb[6].mxu1 }
 0x196   : > { %v1808_v10 = vadd.f32 %v2326_v8, %v1744_v4  ;;  %v1840_v11 = vadd.f32 %v2374_v9, %v1776_v5  ;;  %v1448_v12 = vpop.f32.mrb[7].mxu0  ;;  %v1608_v13 = vpop.f32.mrb[7].mxu1  ;;  %v1781_v4 = vld [vmem:[%s3000_s23 + $0x160] sm:$0xff] }
 0x197   : > { %v1807_v14 = vadd.f32 %v1743_v6, %v1448_v12  ;;  %v1839_v15 = vadd.f32 %v1775_v7, %v1608_v13 }
 0x198   : > { %v1879_v16 = vadd.f32 %v3011_v37, %v1808_v10  ;;  %v1911_v17 = vadd.f32 %v3011_v37, %v1840_v11 }
 0x199   : > { %v1878_v18 = vadd.f32 %v3011_v37, %v1807_v14  ;;  %v1910_v19 = vadd.f32 %v3011_v37, %v1839_v15 }
 0x19a   : > { %v1943_v20 = vmax.f32 %v1879_v16, 0.0  ;;  %v1975_v21 = vmax.f32 %v1911_v17, 0.0 }
 0x19b   : > { %v1942_v22 = vmax.f32 %v1878_v18, 0.0  ;;  %v1974_v23 = vmax.f32 %v1910_v19, 0.0 }
 0x19c   : > { %2008 = vst.msk [vmem:[%s3021_s28 + $0x38] sm:$0xff] %vm2000_vm3, %v1943_v20  ;;  %2040 = vst.msk [vmem:[%s3021_s28 + $0x138] sm:$0xff] %vm2000_vm3, %v1975_v21  ;;  %v1752_v21 = vld [vmem:[%s3000_s23 + $0x78] sm:$0xff] }
 0x19d   : > { %2007 = vst.msk [vmem:[%s3021_s28 + $0x30] sm:$0xff] %vm2000_vm3, %v1942_v22  ;;  %2039 = vst.msk [vmem:[%s3021_s28 + $0x130] sm:$0xff] %vm2000_vm3, %v1974_v23  ;;  %v1784_v22 = vld [vmem:[%s3000_s23 + $0x178] sm:$0xff]  ;;  %v1751_v23 = vld [vmem:[%s3000_s23 + $0x70] sm:$0xff] }
 0x1a5   : > { %v2329_v28 = vpop.f32.mrb[8].mxu0  ;;  %v2377_v29 = vpop.f32.mrb[8].mxu1 }
 0x1a6   : > { %v1810_v30 = vadd.f32 %v2329_v28, %v1746_v24  ;;  %v1842_v31 = vadd.f32 %v2377_v29, %v1778_v25  ;;  %v1458_v32 = vpop.f32.mrb[9].mxu0  ;;  %v1618_v33 = vpop.f32.mrb[9].mxu1  ;;  %v1783_v24 = vld [vmem:[%s3000_s23 + $0x170] sm:$0xff] }
 0x1a7   : > { %v1809_v34 = vadd.f32 %v1745_v26, %v1458_v32  ;;  %v1841_v35 = vadd.f32 %v1777_v27, %v1618_v33 }
 0x1a8   : > { %v1881_v36 = vadd.f32 %v3011_v37, %v1810_v30  ;;  %v1913_v38 = vadd.f32 %v3011_v37, %v1842_v31 }
 0x1a9   : > { %v1880_v39 = vadd.f32 %v3011_v37, %v1809_v34  ;;  %v1912_v40 = vadd.f32 %v3011_v37, %v1841_v35 }
 0x1aa   : > { %v1945_v41 = vmax.f32 %v1881_v36, 0.0  ;;  %v1977_v42 = vmax.f32 %v1913_v38, 0.0 }
 0x1ab   : > { %v1944_v43 = vmax.f32 %v1880_v39, 0.0  ;;  %v1976_v44 = vmax.f32 %v1912_v40, 0.0 }
 0x1ac   : > { %2010 = vst.msk [vmem:[%s3021_s28 + $0x48] sm:$0xff] %vm2000_vm3, %v1945_v41  ;;  %2042 = vst.msk [vmem:[%s3021_s28 + $0x148] sm:$0xff] %vm2000_vm3, %v1977_v42  ;;  %v1754_v42 = vld [vmem:[%s3000_s23 + $0x88] sm:$0xff] }
 0x1ad   : > { %2009 = vst.msk [vmem:[%s3021_s28 + $0x40] sm:$0xff] %vm2000_vm3, %v1944_v43  ;;  %2041 = vst.msk [vmem:[%s3021_s28 + $0x140] sm:$0xff] %vm2000_vm3, %v1976_v44  ;;  %v1786_v43 = vld [vmem:[%s3000_s23 + $0x188] sm:$0xff]  ;;  %v1753_v44 = vld [vmem:[%s3000_s23 + $0x80] sm:$0xff] }
 0x1b5   : > { %v2332_v49 = vpop.f32.mrb[10].mxu0  ;;  %v2380_v50 = vpop.f32.mrb[10].mxu1 }
 0x1b6   : > { %v1812_v51 = vadd.f32 %v2332_v49, %v1748_v45  ;;  %v1844_v52 = vadd.f32 %v2380_v50, %v1780_v46  ;;  %v1468_v53 = vpop.f32.mrb[11].mxu0  ;;  %v1628_v54 = vpop.f32.mrb[11].mxu1  ;;  %v1785_v45 = vld [vmem:[%s3000_s23 + $0x180] sm:$0xff] }
 0x1b7   : > { %v1811_v55 = vadd.f32 %v1747_v47, %v1468_v53  ;;  %v1843_v56 = vadd.f32 %v1779_v48, %v1628_v54 }
 0x1b8   : > { %v1883_v57 = vadd.f32 %v3011_v37, %v1812_v51  ;;  %v1915_v58 = vadd.f32 %v3011_v37, %v1844_v52 }
 0x1b9   : > { %v1882_v59 = vadd.f32 %v3011_v37, %v1811_v55  ;;  %v1914_v60 = vadd.f32 %v3011_v37, %v1843_v56 }
 0x1ba   : > { %v1947_v61 = vmax.f32 %v1883_v57, 0.0  ;;  %v1979_v62 = vmax.f32 %v1915_v58, 0.0 }
 0x1bb   : > { %v1946_v63 = vmax.f32 %v1882_v59, 0.0  ;;  %v1978_v0 = vmax.f32 %v1914_v60, 0.0 }
 0x1bc   : > { %2012 = vst.msk [vmem:[%s3021_s28 + $0x58] sm:$0xff] %vm2000_vm3, %v1947_v61  ;;  %2044 = vst.msk [vmem:[%s3021_s28 + $0x158] sm:$0xff] %vm2000_vm3, %v1979_v62  ;;  %v1756_v62 = vld [vmem:[%s3000_s23 + $0x98] sm:$0xff] }
 0x1bd   : > { %2011 = vst.msk [vmem:[%s3021_s28 + $0x50] sm:$0xff] %vm2000_vm3, %v1946_v63  ;;  %2043 = vst.msk [vmem:[%s3021_s28 + $0x150] sm:$0xff] %vm2000_vm3, %v1978_v0  ;;  %v1788_v63 = vld [vmem:[%s3000_s23 + $0x198] sm:$0xff]  ;;  %v1755_v0 = vld [vmem:[%s3000_s23 + $0x90] sm:$0xff] }
 0x1c5   : > { %v2335_v5 = vpop.f32.mrb[12].mxu0  ;;  %v2383_v6 = vpop.f32.mrb[12].mxu1 }
 0x1c6   : > { %v1814_v7 = vadd.f32 %v2335_v5, %v1750_v1  ;;  %v1846_v8 = vadd.f32 %v2383_v6, %v1782_v2  ;;  %v1478_v9 = vpop.f32.mrb[13].mxu0  ;;  %v1638_v10 = vpop.f32.mrb[13].mxu1  ;;  %v1787_v1 = vld [vmem:[%s3000_s23 + $0x190] sm:$0xff] }
 0x1c7   : > { %v1813_v11 = vadd.f32 %v1749_v3, %v1478_v9  ;;  %v1845_v12 = vadd.f32 %v1781_v4, %v1638_v10 }
 0x1c8   : > { %v1885_v13 = vadd.f32 %v3011_v37, %v1814_v7  ;;  %v1917_v14 = vadd.f32 %v3011_v37, %v1846_v8 }
 0x1c9   : > { %v1884_v15 = vadd.f32 %v3011_v37, %v1813_v11  ;;  %v1916_v16 = vadd.f32 %v3011_v37, %v1845_v12 }
 0x1ca   : > { %v1949_v17 = vmax.f32 %v1885_v13, 0.0  ;;  %v1981_v18 = vmax.f32 %v1917_v14, 0.0 }
 0x1cb   : > { %v1948_v19 = vmax.f32 %v1884_v15, 0.0  ;;  %v1980_v20 = vmax.f32 %v1916_v16, 0.0 }
 0x1cc   : > { %2014 = vst.msk [vmem:[%s3021_s28 + $0x68] sm:$0xff] %vm2000_vm3, %v1949_v17  ;;  %2046 = vst.msk [vmem:[%s3021_s28 + $0x168] sm:$0xff] %vm2000_vm3, %v1981_v18  ;;  %v1758_v18 = vld [vmem:[%s3000_s23 + $0xa8] sm:$0xff] }
 0x1cd   : > { %2013 = vst.msk [vmem:[%s3021_s28 + $0x60] sm:$0xff] %vm2000_vm3, %v1948_v19  ;;  %2045 = vst.msk [vmem:[%s3021_s28 + $0x160] sm:$0xff] %vm2000_vm3, %v1980_v20  ;;  %v1790_v19 = vld [vmem:[%s3000_s23 + $0x1a8] sm:$0xff]  ;;  %v1757_v20 = vld [vmem:[%s3000_s23 + $0xa0] sm:$0xff] }
 0x1d5   : > { %v2338_v25 = vpop.f32.mrb[14].mxu0  ;;  %v2386_v26 = vpop.f32.mrb[14].mxu1 }
 0x1d6   : > { %v1816_v27 = vadd.f32 %v2338_v25, %v1752_v21  ;;  %v1848_v28 = vadd.f32 %v2386_v26, %v1784_v22  ;;  %v1488_v29 = vpop.f32.mrb[15].mxu0  ;;  %v1648_v30 = vpop.f32.mrb[15].mxu1  ;;  %v1789_v21 = vld [vmem:[%s3000_s23 + $0x1a0] sm:$0xff] }
 0x1d7   : > { %v1815_v31 = vadd.f32 %v1751_v23, %v1488_v29  ;;  %v1847_v32 = vadd.f32 %v1783_v24, %v1648_v30 }
 0x1d8   : > { %v1887_v33 = vadd.f32 %v3011_v37, %v1816_v27  ;;  %v1919_v34 = vadd.f32 %v3011_v37, %v1848_v28 }
 0x1d9   : > { %v1886_v35 = vadd.f32 %v3011_v37, %v1815_v31  ;;  %v1918_v36 = vadd.f32 %v3011_v37, %v1847_v32 }
 0x1da   : > { %v1951_v38 = vmax.f32 %v1887_v33, 0.0  ;;  %v1983_v39 = vmax.f32 %v1919_v34, 0.0 }
 0x1db   : > { %v1950_v40 = vmax.f32 %v1886_v35, 0.0  ;;  %v1982_v41 = vmax.f32 %v1918_v36, 0.0 }
 0x1dc   : > { %2016 = vst.msk [vmem:[%s3021_s28 + $0x78] sm:$0xff] %vm2000_vm3, %v1951_v38  ;;  %2048 = vst.msk [vmem:[%s3021_s28 + $0x178] sm:$0xff] %vm2000_vm3, %v1983_v39  ;;  %v1760_v39 = vld [vmem:[%s3000_s23 + $0xb8] sm:$0xff] }
 0x1dd   : > { %2015 = vst.msk [vmem:[%s3021_s28 + $0x70] sm:$0xff] %vm2000_vm3, %v1950_v40  ;;  %2047 = vst.msk [vmem:[%s3021_s28 + $0x170] sm:$0xff] %vm2000_vm3, %v1982_v41  ;;  %v1792_v40 = vld [vmem:[%s3000_s23 + $0x1b8] sm:$0xff]  ;;  %v1759_v41 = vld [vmem:[%s3000_s23 + $0xb0] sm:$0xff] }
 0x1e4   : > { %v2341_v46 = vpop.f32.mrb[16].mxu0  ;;  %v2389_v47 = vpop.f32.mrb[16].mxu1 }
 0x1e5   : > { %v1818_v48 = vadd.f32 %v2341_v46, %v1754_v42  ;;  %v1850_v49 = vadd.f32 %v2389_v47, %v1786_v43  ;;  %v1498_v50 = vpop.f32.mrb[17].mxu0  ;;  %v1658_v51 = vpop.f32.mrb[17].mxu1  ;;  %v1791_v42 = vld [vmem:[%s3000_s23 + $0x1b0] sm:$0xff] }
 0x1e6   : > { %v1817_v52 = vadd.f32 %v1753_v44, %v1498_v50  ;;  %v1849_v53 = vadd.f32 %v1785_v45, %v1658_v51 }
 0x1e7   : > { %v1889_v54 = vadd.f32 %v3011_v37, %v1818_v48  ;;  %v1921_v55 = vadd.f32 %v3011_v37, %v1850_v49 }
 0x1e8   : > { %v1888_v56 = vadd.f32 %v3011_v37, %v1817_v52  ;;  %v1920_v57 = vadd.f32 %v3011_v37, %v1849_v53 }
 0x1e9   : > { %v1953_v58 = vmax.f32 %v1889_v54, 0.0  ;;  %v1985_v59 = vmax.f32 %v1921_v55, 0.0 }
 0x1ea   : > { %v1952_v60 = vmax.f32 %v1888_v56, 0.0  ;;  %v1984_v61 = vmax.f32 %v1920_v57, 0.0 }
 0x1eb   : > { %2018 = vst.msk [vmem:[%s3021_s28 + $0x88] sm:$0xff] %vm2000_vm3, %v1953_v58  ;;  %2050 = vst.msk [vmem:[%s3021_s28 + $0x188] sm:$0xff] %vm2000_vm3, %v1985_v59  ;;  %v1762_v59 = vld [vmem:[%s3000_s23 + $0xc8] sm:$0xff] }
 0x1ec   : > { %2017 = vst.msk [vmem:[%s3021_s28 + $0x80] sm:$0xff] %vm2000_vm3, %v1952_v60  ;;  %2049 = vst.msk [vmem:[%s3021_s28 + $0x180] sm:$0xff] %vm2000_vm3, %v1984_v61  ;;  %v1794_v60 = vld [vmem:[%s3000_s23 + $0x1c8] sm:$0xff]  ;;  %v1761_v61 = vld [vmem:[%s3000_s23 + $0xc0] sm:$0xff] }
 0x1f4   : > { %v2344_v2 = vpop.f32.mrb[18].mxu0  ;;  %v2392_v3 = vpop.f32.mrb[18].mxu1 }
 0x1f5   : > { %v1820_v4 = vadd.f32 %v2344_v2, %v1756_v62  ;;  %v1852_v5 = vadd.f32 %v2392_v3, %v1788_v63  ;;  %v1508_v6 = vpop.f32.mrb[19].mxu0  ;;  %v1668_v7 = vpop.f32.mrb[19].mxu1  ;;  %v1793_v62 = vld [vmem:[%s3000_s23 + $0x1c0] sm:$0xff] }
 0x1f6   : > { %v1819_v8 = vadd.f32 %v1755_v0, %v1508_v6  ;;  %v1851_v9 = vadd.f32 %v1787_v1, %v1668_v7 }
 0x1f7   : > { %v1891_v10 = vadd.f32 %v3011_v37, %v1820_v4  ;;  %v1923_v11 = vadd.f32 %v3011_v37, %v1852_v5 }
 0x1f8   : > { %v1890_v12 = vadd.f32 %v3011_v37, %v1819_v8  ;;  %v1922_v13 = vadd.f32 %v3011_v37, %v1851_v9 }
 0x1f9   : > { %v1955_v14 = vmax.f32 %v1891_v10, 0.0  ;;  %v1987_v15 = vmax.f32 %v1923_v11, 0.0 }
 0x1fa   : > { %v1954_v16 = vmax.f32 %v1890_v12, 0.0  ;;  %v1986_v17 = vmax.f32 %v1922_v13, 0.0 }
 0x1fb   : > { %2020 = vst.msk [vmem:[%s3021_s28 + $0x98] sm:$0xff] %vm2000_vm3, %v1955_v14  ;;  %2052 = vst.msk [vmem:[%s3021_s28 + $0x198] sm:$0xff] %vm2000_vm3, %v1987_v15  ;;  %v1764_v15 = vld [vmem:[%s3000_s23 + $0xd8] sm:$0xff] }
 0x1fc   : > { %2019 = vst.msk [vmem:[%s3021_s28 + $0x90] sm:$0xff] %vm2000_vm3, %v1954_v16  ;;  %2051 = vst.msk [vmem:[%s3021_s28 + $0x190] sm:$0xff] %vm2000_vm3, %v1986_v17  ;;  %v1796_v16 = vld [vmem:[%s3000_s23 + $0x1d8] sm:$0xff]  ;;  %v1763_v17 = vld [vmem:[%s3000_s23 + $0xd0] sm:$0xff] }
 0x204   : > { %v2347_v22 = vpop.f32.mrb[20].mxu0  ;;  %v2395_v23 = vpop.f32.mrb[20].mxu1 }
 0x205   : > { %v1822_v24 = vadd.f32 %v2347_v22, %v1758_v18  ;;  %v1854_v25 = vadd.f32 %v2395_v23, %v1790_v19  ;;  %v1518_v26 = vpop.f32.mrb[21].mxu0  ;;  %v1678_v27 = vpop.f32.mrb[21].mxu1  ;;  %v1795_v18 = vld [vmem:[%s3000_s23 + $0x1d0] sm:$0xff] }
 0x206   : > { %v1821_v28 = vadd.f32 %v1757_v20, %v1518_v26  ;;  %v1853_v29 = vadd.f32 %v1789_v21, %v1678_v27 }
 0x207   : > { %v1893_v30 = vadd.f32 %v3011_v37, %v1822_v24  ;;  %v1925_v31 = vadd.f32 %v3011_v37, %v1854_v25 }
 0x208   : > { %v1892_v32 = vadd.f32 %v3011_v37, %v1821_v28  ;;  %v1924_v33 = vadd.f32 %v3011_v37, %v1853_v29 }
 0x209   : > { %v1957_v34 = vmax.f32 %v1893_v30, 0.0  ;;  %v1989_v35 = vmax.f32 %v1925_v31, 0.0 }
 0x20a   : > { %v1956_v36 = vmax.f32 %v1892_v32, 0.0  ;;  %v1988_v38 = vmax.f32 %v1924_v33, 0.0 }
 0x20b   : > { %2022 = vst.msk [vmem:[%s3021_s28 + $0xa8] sm:$0xff] %vm2000_vm3, %v1957_v34  ;;  %2054 = vst.msk [vmem:[%s3021_s28 + $0x1a8] sm:$0xff] %vm2000_vm3, %v1989_v35  ;;  %v1766_v35 = vld [vmem:[%s3000_s23 + $0xe8] sm:$0xff] }
 0x20c   : > { %2021 = vst.msk [vmem:[%s3021_s28 + $0xa0] sm:$0xff] %vm2000_vm3, %v1956_v36  ;;  %2053 = vst.msk [vmem:[%s3021_s28 + $0x1a0] sm:$0xff] %vm2000_vm3, %v1988_v38  ;;  %v1798_v36 = vld [vmem:[%s3000_s23 + $0x1e8] sm:$0xff]  ;;  %v1765_v38 = vld [vmem:[%s3000_s23 + $0xe0] sm:$0xff] }
 0x214   : > { %v2350_v43 = vpop.f32.mrb[22].mxu0  ;;  %v2398_v44 = vpop.f32.mrb[22].mxu1 }
 0x215   : > { %v1824_v45 = vadd.f32 %v2350_v43, %v1760_v39  ;;  %v1856_v46 = vadd.f32 %v2398_v44, %v1792_v40  ;;  %v1528_v47 = vpop.f32.mrb[23].mxu0  ;;  %v1688_v48 = vpop.f32.mrb[23].mxu1  ;;  %v1797_v39 = vld [vmem:[%s3000_s23 + $0x1e0] sm:$0xff] }
 0x216   : > { %v1823_v49 = vadd.f32 %v1759_v41, %v1528_v47  ;;  %v1855_v50 = vadd.f32 %v1791_v42, %v1688_v48 }
 0x217   : > { %v1895_v51 = vadd.f32 %v3011_v37, %v1824_v45  ;;  %v1927_v52 = vadd.f32 %v3011_v37, %v1856_v46 }
 0x218   : > { %v1894_v53 = vadd.f32 %v3011_v37, %v1823_v49  ;;  %v1926_v54 = vadd.f32 %v3011_v37, %v1855_v50 }
 0x219   : > { %v1959_v55 = vmax.f32 %v1895_v51, 0.0  ;;  %v1991_v56 = vmax.f32 %v1927_v52, 0.0 }
 0x21a   : > { %v1958_v57 = vmax.f32 %v1894_v53, 0.0  ;;  %v1990_v58 = vmax.f32 %v1926_v54, 0.0 }
 0x21b   : > { %2024 = vst.msk [vmem:[%s3021_s28 + $0xb8] sm:$0xff] %vm2000_vm3, %v1959_v55  ;;  %2056 = vst.msk [vmem:[%s3021_s28 + $0x1b8] sm:$0xff] %vm2000_vm3, %v1991_v56  ;;  %v1768_v56 = vld [vmem:[%s3000_s23 + $0xf8] sm:$0xff] }
 0x21c   : > { %2023 = vst.msk [vmem:[%s3021_s28 + $0xb0] sm:$0xff] %vm2000_vm3, %v1958_v57  ;;  %2055 = vst.msk [vmem:[%s3021_s28 + $0x1b0] sm:$0xff] %vm2000_vm3, %v1990_v58  ;;  %v1800_v57 = vld [vmem:[%s3000_s23 + $0x1f8] sm:$0xff]  ;;  %v1767_v58 = vld [vmem:[%s3000_s23 + $0xf0] sm:$0xff] }
 0x224   : > { %v2353_v63 = vpop.f32.mrb[24].mxu0  ;;  %v2401_v0 = vpop.f32.mrb[24].mxu1 }
 0x225   : > { %v1826_v1 = vadd.f32 %v2353_v63, %v1762_v59  ;;  %v1858_v2 = vadd.f32 %v2401_v0, %v1794_v60  ;;  %v1538_v3 = vpop.f32.mrb[25].mxu0  ;;  %v1698_v4 = vpop.f32.mrb[25].mxu1  ;;  %v1799_v59 = vld [vmem:[%s3000_s23 + $0x1f0] sm:$0xff] }
 0x226   : > { %v1825_v5 = vadd.f32 %v1761_v61, %v1538_v3  ;;  %v1857_v6 = vadd.f32 %v1793_v62, %v1698_v4 }
 0x227   : > { %v1897_v7 = vadd.f32 %v3011_v37, %v1826_v1  ;;  %v1929_v8 = vadd.f32 %v3011_v37, %v1858_v2 }
 0x228   : > { %v1896_v9 = vadd.f32 %v3011_v37, %v1825_v5  ;;  %v1928_v10 = vadd.f32 %v3011_v37, %v1857_v6 }
 0x229   : > { %v1961_v11 = vmax.f32 %v1897_v7, 0.0  ;;  %v1993_v12 = vmax.f32 %v1929_v8, 0.0 }
 0x22a   : > { %v1960_v13 = vmax.f32 %v1896_v9, 0.0  ;;  %v1992_v14 = vmax.f32 %v1928_v10, 0.0 }
 0x22b   : > { %2026 = vst.msk [vmem:[%s3021_s28 + $0xc8] sm:$0xff] %vm2000_vm3, %v1961_v11  ;;  %2058 = vst.msk [vmem:[%s3021_s28 + $0x1c8] sm:$0xff] %vm2000_vm3, %v1993_v12 }
 0x22c   : > { %2025 = vst.msk [vmem:[%s3021_s28 + $0xc0] sm:$0xff] %vm2000_vm3, %v1960_v13  ;;  %2057 = vst.msk [vmem:[%s3021_s28 + $0x1c0] sm:$0xff] %vm2000_vm3, %v1992_v14 }
 0x234   : > { %v2356_v19 = vpop.f32.mrb[26].mxu0  ;;  %v2404_v20 = vpop.f32.mrb[26].mxu1 }
 0x235   : > { %v1828_v21 = vadd.f32 %v2356_v19, %v1764_v15  ;;  %v1860_v22 = vadd.f32 %v2404_v20, %v1796_v16  ;;  %v1548_v23 = vpop.f32.mrb[27].mxu0  ;;  %v1708_v24 = vpop.f32.mrb[27].mxu1 }
 0x236   : > { %v1827_v25 = vadd.f32 %v1763_v17, %v1548_v23  ;;  %v1859_v26 = vadd.f32 %v1795_v18, %v1708_v24 }
 0x237   : > { %v1899_v27 = vadd.f32 %v3011_v37, %v1828_v21  ;;  %v1931_v28 = vadd.f32 %v3011_v37, %v1860_v22 }
 0x238   : > { %v1898_v29 = vadd.f32 %v3011_v37, %v1827_v25  ;;  %v1930_v30 = vadd.f32 %v3011_v37, %v1859_v26 }
 0x239   : > { %v1963_v31 = vmax.f32 %v1899_v27, 0.0  ;;  %v1995_v32 = vmax.f32 %v1931_v28, 0.0 }
 0x23a   : > { %v1962_v33 = vmax.f32 %v1898_v29, 0.0  ;;  %v1994_v34 = vmax.f32 %v1930_v30, 0.0 }
 0x23b   : > { %2028 = vst.msk [vmem:[%s3021_s28 + $0xd8] sm:$0xff] %vm2000_vm3, %v1963_v31  ;;  %2060 = vst.msk [vmem:[%s3021_s28 + $0x1d8] sm:$0xff] %vm2000_vm3, %v1995_v32 }
 0x23c   : > { %2027 = vst.msk [vmem:[%s3021_s28 + $0xd0] sm:$0xff] %vm2000_vm3, %v1962_v33  ;;  %2059 = vst.msk [vmem:[%s3021_s28 + $0x1d0] sm:$0xff] %vm2000_vm3, %v1994_v34 }
 0x244   : > { %v2359_v40 = vpop.f32.mrb[28].mxu0  ;;  %v2407_v41 = vpop.f32.mrb[28].mxu1 }
 0x245   : > { %v1830_v42 = vadd.f32 %v2359_v40, %v1766_v35  ;;  %v1862_v43 = vadd.f32 %v2407_v41, %v1798_v36  ;;  %v1558_v44 = vpop.f32.mrb[29].mxu0  ;;  %v1718_v45 = vpop.f32.mrb[29].mxu1 }
 0x246   : > { %v1829_v46 = vadd.f32 %v1765_v38, %v1558_v44  ;;  %v1861_v47 = vadd.f32 %v1797_v39, %v1718_v45 }
 0x247   : > { %v1901_v48 = vadd.f32 %v3011_v37, %v1830_v42  ;;  %v1933_v49 = vadd.f32 %v3011_v37, %v1862_v43 }
 0x248   : > { %v1900_v50 = vadd.f32 %v3011_v37, %v1829_v46  ;;  %v1932_v51 = vadd.f32 %v3011_v37, %v1861_v47 }
 0x249   : > { %v1965_v52 = vmax.f32 %v1901_v48, 0.0  ;;  %v1997_v53 = vmax.f32 %v1933_v49, 0.0 }
 0x24a   : > { %v1964_v54 = vmax.f32 %v1900_v50, 0.0  ;;  %v1996_v55 = vmax.f32 %v1932_v51, 0.0 }
 0x24b   : > { %2030 = vst.msk [vmem:[%s3021_s28 + $0xe8] sm:$0xff] %vm2000_vm3, %v1965_v52  ;;  %2062 = vst.msk [vmem:[%s3021_s28 + $0x1e8] sm:$0xff] %vm2000_vm3, %v1997_v53 }
 0x24c   : > { %2029 = vst.msk [vmem:[%s3021_s28 + $0xe0] sm:$0xff] %vm2000_vm3, %v1964_v54  ;;  %2061 = vst.msk [vmem:[%s3021_s28 + $0x1e0] sm:$0xff] %vm2000_vm3, %v1996_v55 }
 0x254   : > { %v2362_v60 = vpop.f32.mrb[30].mxu0  ;;  %v2410_v61 = vpop.f32.mrb[30].mxu1 }
 0x255   : > { %v1832_v62 = vadd.f32 %v2362_v60, %v1768_v56  ;;  %v1864_v63 = vadd.f32 %v2410_v61, %v1800_v57  ;;  %v1568_v0 = vpop.f32.mrb[31].mxu0  ;;  %v1728_v1 = vpop.f32.mrb[31].mxu1 }
 0x256   : > { %v1831_v2 = vadd.f32 %v1767_v58, %v1568_v0  ;;  %v1863_v3 = vadd.f32 %v1799_v59, %v1728_v1 }
 0x257   : > { %v1903_v4 = vadd.f32 %v3011_v37, %v1832_v62  ;;  %v1935_v5 = vadd.f32 %v3011_v37, %v1864_v63 }
 0x258   : > { %v1902_v6 = vadd.f32 %v3011_v37, %v1831_v2  ;;  %v1934_v7 = vadd.f32 %v3011_v37, %v1863_v3 }
 0x259   : > { %v1967_v8 = vmax.f32 %v1903_v4, 0.0  ;;  %v1999_v9 = vmax.f32 %v1935_v5, 0.0 }
 0x25a   : > { %v1966_v10 = vmax.f32 %v1902_v6, 0.0  ;;  %v1998_v11 = vmax.f32 %v1934_v7, 0.0 }
 0x25b   : > { %2032 = vst.msk [vmem:[%s3021_s28 + $0xf8] sm:$0xff] %vm2000_vm3, %v1967_v8  ;;  %2064 = vst.msk [vmem:[%s3021_s28 + $0x1f8] sm:$0xff] %vm2000_vm3, %v1999_v9 }
 0x25c   : > { %2031 = vst.msk [vmem:[%s3021_s28 + $0xf0] sm:$0xff] %vm2000_vm3, %v1966_v10  ;;  %2063 = vst.msk [vmem:[%s3021_s28 + $0x1f0] sm:$0xff] %vm2000_vm3, %v1998_v11 }
 0x25d PF: > { %s16_s21 = sadd.s32 1, %s2439_s21  }
 0x25e   : > { %p13_p4 = scmp.ge.s32.totalorder %s16_s21, 4  }
 0x260   :  { %15 = sbr.rel (!%p13_p4) target bundleno = 1 (0x1), region = 83 }

</bundles_post_ra>
